<compile_context>
chip_gen: v7x
topology: tpu7x:2x2x1
jax: 0.10.0
libtpu: 0.0.40
codegen_flags: <defaults>
</compile_context>

<pallas_src>
import functools
import math

import jax
import jax.numpy as jnp
from jax.experimental import pallas as pl
from jax.experimental.pallas import tpu as pltpu


# ---------------------------------------------------------------------------
# Tiling constants
# ---------------------------------------------------------------------------

_LANE = 128                      # TPU lane width
_TM_MATMUL = 512                 # target M tile for the matmul
_TK_TARGET = 2048                # target K (reduction) tile
_TM_ELEMWISE = 2048              # rows per block for elementwise kernels
# 48 MiB: leaves headroom on v7x (64 MiB physical VMEM per TensorCore) and is
# comfortably below v5e/v6e's 128 MiB.
_VMEM_LIMIT = 48 * 1024 * 1024


def _round_up(x, m):
    return ((x + m - 1) // m) * m


def _pick_tm(m, target=_TM_MATMUL):
    """M tile: 512 when M is large, but keep >=2 tiles when possible so the
    'parallel' M axis can be sharded across both v7x TensorCores."""
    if m >= 2 * target:
        return target
    if m <= 8:
        return m
    return min(m, max(8, _round_up((m + 1) // 2, 8)))


def _pick_tk(k, target=_TK_TARGET):
    """Return (K_padded, tk).  Single K tile when K <= target, else the largest
    K-divisor that is a multiple of 128 (>=512), else zero-pad K to a multiple
    of 1024 so the bf16 A tile stays bounded (v7x: 64 MiB VMEM)."""
    if k <= target:
        return k, k
    best = 0
    for d in range(128, target + 1, 128):
        if k % d == 0:
            best = d
    if best >= 512:
        return k, best
    tk = 1024
    return _round_up(k, tk), tk


# ---------------------------------------------------------------------------
# Pallas kernels
# ---------------------------------------------------------------------------

def _stats_epilogue(y, o_ref, sum_ref, sq_ref, row_base, tm, m_total):
    """Store the tile and its per-column sum / sum-of-squares (BN statistics).
    Tail rows of a partial last tile are masked out (only emitted if needed)."""
    o_ref[...] = y.astype(o_ref.dtype)
    if m_total % tm != 0:
        row = jax.lax.broadcasted_iota(jnp.int32, y.shape, 0) + row_base
        y = jnp.where(row < m_total, y, 0.0)
    sum_ref[...] = jnp.sum(y, axis=0).reshape(sum_ref.shape)
    sq_ref[...] = jnp.sum(y * y, axis=0).reshape(sq_ref.shape)


def _mm_kernel(a_ref, w_ref, b_ref, o_ref):
    """Single-K-tile matmul, no stats."""
    y = jnp.dot(a_ref[...], w_ref[...], preferred_element_type=jnp.float32)
    o_ref[...] = (y + b_ref[...]).astype(o_ref.dtype)


def _mm_stats_kernel(a_ref, w_ref, b_ref, o_ref, sum_ref, sq_ref, *, tm, m_total):
    """Single-K-tile matmul with fused per-column BN statistics."""
    i = pl.program_id(0)                  # top level only (lowering-safe)
    y = jnp.dot(a_ref[...], w_ref[...], preferred_element_type=jnp.float32)
    y = y + b_ref[...]
    _stats_epilogue(y, o_ref, sum_ref, sq_ref, i * tm, tm, m_total)


def _mm_ktiled_kernel(a_ref, w_ref, b_ref, o_ref, acc_ref, *, tk):
    """K-tiled matmul (f32 VMEM accumulator); W is fully VMEM resident and
    sliced in-kernel.  program_id/num_programs hoisted to the top level."""
    k = pl.program_id(1)
    nk = pl.num_programs(1)

    @pl.when(k == 0)
    def _():
        acc_ref[...] = jnp.zeros_like(acc_ref)

    acc_ref[...] += jnp.dot(a_ref[...], w_ref[pl.ds(k * tk, tk), :],
                            preferred_element_type=jnp.float32)

    @pl.when(k == nk - 1)
    def _():
        o_ref[...] = (acc_ref[...] + b_ref[...]).astype(o_ref.dtype)


def _mm_stats_ktiled_kernel(a_ref, w_ref, b_ref, o_ref, sum_ref, sq_ref, acc_ref,
                            *, tm, m_total, tk):
    i = pl.program_id(0)
    k = pl.program_id(1)
    nk = pl.num_programs(1)
    row_base = i * tm

    @pl.when(k == 0)
    def _():
        acc_ref[...] = jnp.zeros_like(acc_ref)

    acc_ref[...] += jnp.dot(a_ref[...], w_ref[pl.ds(k * tk, tk), :],
                            preferred_element_type=jnp.float32)

    @pl.when(k == nk - 1)
    def _():
        y = acc_ref[...] + b_ref[...]
        _stats_epilogue(y, o_ref, sum_ref, sq_ref, row_base, tm, m_total)


def _bn_relu_kernel(x_ref, scale_ref, shift_ref, o_ref):
    # Load bf16, compute in f32 (v5e has no bf16 VALU path), store in out dtype.
    x = x_ref[...].astype(jnp.float32)
    o_ref[...] = jnp.maximum(x * scale_ref[...] + shift_ref[...], 0.0
                             ).astype(o_ref.dtype)


def _bn_relu_interleave_kernel(x_ref, scale_ref, shift_ref, o_ref, *, cp):
    """BN+ReLU on phase-packed deconv output and direct sub-pixel interleave.

    x_ref: (1, th, W, 4*cp) with columns ordered (py, px, ch).
    o_ref: (1, th, 2, W, 2*cp); for a fixed py the two px phases are already
    adjacent along lanes, so each py needs a single contiguous 2*cp-lane store.
    """
    x = x_ref[...].astype(jnp.float32)
    y = jnp.maximum(x * scale_ref[...] + shift_ref[...], 0.0).astype(o_ref.dtype)
    o_ref[0, :, 0, :, :] = y[0, :, :, :2 * cp]
    o_ref[0, :, 1, :, :] = y[0, :, :, 2 * cp:]


# ---------------------------------------------------------------------------
# Pallas wrappers
# ---------------------------------------------------------------------------

def matmul_bias_opt(a, w, b, *, with_stats, out_dtype,
                    compute_dtype=jnp.bfloat16):
    """(M, K) @ (K, C) + b on the MXU (bf16 operands, f32 accumulation).

    The output channel dim is padded to a multiple of 128 for lane-dense
    stores.  If `with_stats`, per-column sum / sum-of-squares (BN statistics)
    are fused into the epilogue.  Returns y (M, Cp) in `out_dtype`
    (+ col_sum, col_sq in f32 when with_stats).
    """
    M, K = a.shape
    Cn = w.shape[1]
    Cp = _round_up(Cn, _LANE)
    if Cp != Cn:
        w = jnp.pad(w, ((0, 0), (0, Cp - Cn)))
        b = jnp.pad(b, (0, Cp - Cn))
    Kp, tk = _pick_tk(K)
    if Kp != K:                         # zero-padded K contributes nothing
        a = jnp.pad(a, ((0, 0), (0, Kp - K)))
        w = jnp.pad(w, ((0, Kp - K), (0, 0)))
    a = a.astype(compute_dtype)
    w = w.astype(compute_dtype)
    b2 = b.reshape(1, Cp).astype(jnp.float32)

    tm = _pick_tm(M)
    n_m = pl.cdiv(M, tm)
    n_k = Kp // tk

    a_spec = pl.BlockSpec((tm, tk) if n_k > 1 else (tm, Kp),
                          lambda i, k: (i, k))
    # Constant block index -> W is fetched once and stays VMEM resident.
    w_spec = pl.BlockSpec((Kp, Cp), lambda i, k: (0, 0))
    b_spec = pl.BlockSpec((1, Cp), lambda i, k: (0, 0))
    y_shape = jax.ShapeDtypeStruct((M, Cp), out_dtype)
    y_spec = pl.BlockSpec((tm, Cp), lambda i, k: (i, 0))
    cparams = pltpu.CompilerParams(
        dimension_semantics=("parallel", "arbitrary"),
        vmem_limit_bytes=_VMEM_LIMIT)

    if with_stats:
        st_shape = jax.ShapeDtypeStruct((n_m, 1, Cp), jnp.float32)
        st_spec = pl.BlockSpec((1, 1, Cp), lambda i, k: (i, 0, 0))
        if n_k == 1:
            kernel = functools.partial(_mm_stats_kernel, tm=tm, m_total=M)
            scratch = []
        else:
            kernel = functools.partial(_mm_stats_ktiled_kernel,
                                       tm=tm, m_total=M, tk=tk)
            scratch = [pltpu.VMEM((tm, Cp), jnp.float32)]
        y, s, sq = pl.pallas_call(
            kernel,
            out_shape=(y_shape, st_shape, st_shape),
            grid_spec=pltpu.PrefetchScalarGridSpec(
                num_scalar_prefetch=0, grid=(n_m, n_k),
                in_specs=[a_spec, w_spec, b_spec],
                out_specs=(y_spec, st_spec, st_spec),
                scratch_shapes=scratch),
            compiler_params=cparams,
        )(a, w, b2)
        return y, jnp.sum(s, axis=(0, 1)), jnp.sum(sq, axis=(0, 1))

    if n_k == 1:
        kernel = _mm_kernel
        scratch = []
    else:
        kernel = functools.partial(_mm_ktiled_kernel, tk=tk)
        scratch = [pltpu.VMEM((tm, Cp), jnp.float32)]
    y = pl.pallas_call(
        kernel,
        out_shape=y_shape,
        grid_spec=pltpu.PrefetchScalarGridSpec(
            num_scalar_prefetch=0, grid=(n_m, n_k),
            in_specs=[a_spec, w_spec, b_spec],
            out_specs=y_spec,
            scratch_shapes=scratch),
        compiler_params=cparams,
    )(a, w, b2)
    return y


def _bn_scale_shift(col_sum, col_sq, gamma, beta, *, count, eps=1e-5):
    """Training-mode BatchNorm scale/shift from fused sum / sum-of-squares."""
    cp = col_sum.shape[0]
    c = gamma.shape[0]
    mean = col_sum / count
    var = jnp.maximum(col_sq / count - mean * mean, 0.0)  # biased (PyTorch BN)
    if cp != c:
        gamma = jnp.pad(gamma, (0, cp - c), constant_values=1.0)
        beta = jnp.pad(beta, (0, cp - c))
    scale = gamma / jnp.sqrt(var + eps)
    shift = beta - mean * scale
    return scale.astype(jnp.float32), shift.astype(jnp.float32)


def bn_relu_apply(y, col_sum, col_sq, gamma, beta, *, count, out_dtype,
                  eps=1e-5):
    """Apply BN (from fused stats) + ReLU on a lane-padded (M, Cp) activation.
    Padded channels carry zeros and stay exactly zero through BN+ReLU."""
    M, Cp = y.shape
    scale, shift = _bn_scale_shift(col_sum, col_sq, gamma, beta,
                                   count=count, eps=eps)
    tm = min(_TM_ELEMWISE, M)
    n_m = pl.cdiv(M, tm)
    return pl.pallas_call(
        _bn_relu_kernel,
        out_shape=jax.ShapeDtypeStruct((M, Cp), out_dtype),
        grid_spec=pltpu.PrefetchScalarGridSpec(
            num_scalar_prefetch=0, grid=(n_m,),
            in_specs=[pl.BlockSpec((tm, Cp), lambda i: (i, 0)),
                      pl.BlockSpec((1, Cp), lambda i: (0, 0)),
                      pl.BlockSpec((1, Cp), lambda i: (0, 0))],
            out_specs=pl.BlockSpec((tm, Cp), lambda i: (i, 0))),
        compiler_params=pltpu.CompilerParams(
            dimension_semantics=("parallel",),
            vmem_limit_bytes=_VMEM_LIMIT),
    )(y, scale.reshape(1, Cp), shift.reshape(1, Cp))


def bn_relu_interleave(y_all, col_sum, col_sq, gamma, beta, *, count,
                       n, h, w_sp, cp, out_dtype, eps=1e-5):
    """BN+ReLU on the phase-packed (M, 4*cp) deconv output, writing the
    spatially interleaved 2x-upsampled result directly from the kernel.
    Returns (N, 2H, 2W, cp)."""
    scale, shift = _bn_scale_shift(col_sum, col_sq, gamma, beta,
                                   count=count, eps=eps)
    scale4 = jnp.tile(scale, 4).reshape(1, 1, 1, 4 * cp)
    shift4 = jnp.tile(shift, 4).reshape(1, 1, 1, 4 * cp)
    x4 = y_all.reshape(n, h, w_sp, 4 * cp)

    th = max(1, min(h, _TM_ELEMWISE // max(1, w_sp)))
    n_h = pl.cdiv(h, th)
    kernel = functools.partial(_bn_relu_interleave_kernel, cp=cp)
    out = pl.pallas_call(
        kernel,
        out_shape=jax.ShapeDtypeStruct((n, h, 2, w_sp, 2 * cp), out_dtype),
        grid_spec=pltpu.PrefetchScalarGridSpec(
            num_scalar_prefetch=0, grid=(n, n_h),
            in_specs=[
                pl.BlockSpec((1, th, w_sp, 4 * cp), lambda a, b: (a, b, 0, 0)),
                pl.BlockSpec((1, 1, 1, 4 * cp), lambda a, b: (0, 0, 0, 0)),
                pl.BlockSpec((1, 1, 1, 4 * cp), lambda a, b: (0, 0, 0, 0))],
            out_specs=pl.BlockSpec((1, th, 2, w_sp, 2 * cp),
                                   lambda a, b: (a, b, 0, 0, 0))),
        compiler_params=pltpu.CompilerParams(
            dimension_semantics=("parallel", "parallel"),
            vmem_limit_bytes=_VMEM_LIMIT),
    )(x4, scale4, shift4)
    # (n, h, 2, w_sp, 2*cp) -> (n, 2h, 2w_sp, cp) is a free row-major reshape.
    return out.reshape(n, 2 * h, 2 * w_sp, cp)


# ---------------------------------------------------------------------------
# JAX glue: im2col, offset conv, deformable sampling, fused-phase deconv weight
# ---------------------------------------------------------------------------

def _im2col(xp, K):
    """xp: [N, Hp, Wp, C] already padded, stride 1 -> [N, Ho, Wo, K*K, C]."""
    N, Hp, Wp, C = xp.shape
    Ho, Wo = Hp - K + 1, Wp - K + 1
    cols = [xp[:, i:i + Ho, j:j + Wo, :] for i in range(K) for j in range(K)]
    return jnp.stack(cols, axis=3)


def conv2d_3x3(x, w, b, *, compute_dtype, out_dtype):
    """Plain 3x3 conv, stride 1, pad 1.  x: [N,H,W,Cin], w: [Cout,Cin,3,3].
    Returns (M, Cp) lane-padded output (no fused BN stats)."""
    N, H, W, Cin = x.shape
    xp = jnp.pad(x, ((0, 0), (1, 1), (1, 1), (0, 0))).astype(compute_dtype)
    patches = _im2col(xp, 3)                              # [N,H,W,9,Cin]
    a = patches.reshape(N * H * W, 9 * Cin)
    wm = jnp.transpose(w, (2, 3, 1, 0)).reshape(9 * Cin, w.shape[0])
    return matmul_bias_opt(a, wm, b, with_stats=False,
                           out_dtype=out_dtype, compute_dtype=compute_dtype)


def dcn_v2_patches(x, offset, mask, K=3, pad=1):
    """Modulated deformable sampling (DCNv2) -> im2col-like patches.

    x: [N,H,W,Cin], offset: [N,H,W,2*K*K] (channel 2k = dy, 2k+1 = dx of tap k),
    mask: [N,H,W,K*K].  Returns [N,H,W,K*K,Cin] (f32).
    TODO(synk): replace the XLA take_along_axis gather with a Pallas kernel.
    """
    N, H, W, Cin = x.shape
    KK = K * K
    dy = offset[..., 0::2]
    dx = offset[..., 1::2]
    ki = (jnp.arange(KK, dtype=jnp.float32) // K)
    kj = (jnp.arange(KK, dtype=jnp.float32) % K)
    hh = jnp.arange(H, dtype=jnp.float32)
    ww = jnp.arange(W, dtype=jnp.float32)
    py = hh[None, :, None, None] - pad + ki[None, None, None, :] + dy
    px = ww[None, None, :, None] - pad + kj[None, None, None, :] + dx
    y0 = jnp.floor(py)
    x0 = jnp.floor(px)
    ly = py - y0
    lx = px - x0
    xf = x.reshape(N, H * W, Cin)

    def gather(yi, xi, wgt):
        valid = ((yi >= 0) & (yi < H) & (xi >= 0) & (xi < W)).astype(jnp.float32)
        yc = jnp.clip(yi, 0, H - 1).astype(jnp.int32)
        xc = jnp.clip(xi, 0, W - 1).astype(jnp.int32)
        idx = (yc * W + xc).reshape(N, H * W * KK, 1)
        v = jnp.take_along_axis(xf, idx, axis=1).reshape(N, H, W, KK, Cin)
        return v * (wgt * valid)[..., None]

    samp = (gather(y0, x0, (1 - ly) * (1 - lx))
            + gather(y0, x0 + 1, (1 - ly) * lx)
            + gather(y0 + 1, x0, ly * (1 - lx))
            + gather(y0 + 1, x0 + 1, ly * lx))
    return samp * mask[..., None]


def _deconv_weight_matrix(up_w, cin_p, cout_p):
    """ConvTranspose2d(k=4,s=2,p=1) weight (torch layout [Cin,Cout,4,4]) ->
    a single (9*cin_p, 4*cout_p) matrix for the shared-3x3-patch, phase-packed
    deconv:  out[2r+py, 2c+px, co] = sum_{u,v,ci} xpad[r+u, c+v, ci] *
    W[(u*3+v)*cin_p + ci, (py*2+px)*cout_p + co].
    """
    Cin, Cout = up_w.shape[0], up_w.shape[1]
    wm = jnp.zeros((9, cin_p, 4, cout_p), jnp.float32)
    for u in range(3):
        for v in range(3):
            for py in range(2):
                for px in range(2):
                    d, e = u - py, v - px
                    if d in (0, 1) and e in (0, 1):
                        tap = up_w[:, :, 3 + py - 2 * u, 3 + px - 2 * v]
                        wm = wm.at[u * 3 + v, :Cin, py * 2 + px, :Cout].set(tap)
    return wm.reshape(9 * cin_p, 4 * cout_p)


# ---------------------------------------------------------------------------
# DeconvLayer: deterministic parameter init + forward
# ---------------------------------------------------------------------------

def init_params(key, in_planes, out_planes, deconv_kernel=4):
    k1, k2 = jax.random.split(key)
    KK = 9
    # DCN main conv weight/bias (DCNv2.reset_parameters: uniform(-stdv,stdv), b=0)
    stdv = 1.0 / math.sqrt(in_planes * KK)
    dcn_w = jax.random.uniform(k1, (out_planes, in_planes, 3, 3),
                               jnp.float32, -stdv, stdv)
    dcn_b = jnp.zeros((out_planes,), jnp.float32)
    # conv_offset_mask: zero-initialized by DCN.init_offset()
    off_w = jnp.zeros((3 * KK, in_planes, 3, 3), jnp.float32)
    off_b = jnp.zeros((3 * KK,), jnp.float32)
    # ConvTranspose2d weight (bias=False): default init, then bilinear on [:, 0]
    kd = deconv_kernel
    bound = 1.0 / math.sqrt(out_planes * kd * kd)
    up_w = jax.random.uniform(k2, (out_planes, out_planes, kd, kd),
                              jnp.float32, -bound, bound)
    f = math.ceil(kd / 2)
    cc = (2 * f - 1 - f % 2) / (2.0 * f)
    ii = jnp.arange(kd, dtype=jnp.float32)
    bil = (1 - jnp.abs(ii[:, None] / f - cc)) * (1 - jnp.abs(ii[None, :] / f - cc))
    up_w = up_w.at[:, 0, :, :].set(bil)
    return dict(
        dcn_w=dcn_w, dcn_b=dcn_b, off_w=off_w, off_b=off_b, up_w=up_w,
        bn1_g=jnp.ones((out_planes,), jnp.float32),
        bn1_b=jnp.zeros((out_planes,), jnp.float32),
        bn2_g=jnp.ones((out_planes,), jnp.float32),
        bn2_b=jnp.zeros((out_planes,), jnp.float32),
    )


def deconv_layer_forward(params, x_nchw, *, compute_dtype=jnp.bfloat16):
    store_dtype = compute_dtype          # bf16 intermediates on the fast path
    x = jnp.transpose(x_nchw, (0, 2, 3, 1)).astype(jnp.float32)  # NCHW -> NHWC
    N, H, W, Cin = x.shape
    M = N * H * W
    KK = 9
    Cout = params["dcn_w"].shape[0]

    # --- DCN offset/mask conv (plain 3x3 conv; Pallas matmul, no stats) ---
    om = conv2d_3x3(x, params["off_w"], params["off_b"],
                    compute_dtype=compute_dtype, out_dtype=store_dtype)
    om = om[:, :3 * KK].astype(jnp.float32).reshape(N, H, W, 3 * KK)
    o1, o2, mch = om[..., :KK], om[..., KK:2 * KK], om[..., 2 * KK:]
    # DCNv2 layout: offset = cat(o1, o2); channel 2k is dy, 2k+1 is dx of tap k.
    offset = jnp.concatenate([o1, o2], axis=-1)
    mask = jax.nn.sigmoid(mch)

    # --- DCN modulated bilinear sampling (XLA gather) + Pallas matmul ---
    patches = dcn_v2_patches(x, offset, mask, K=3, pad=1)
    a = patches.astype(compute_dtype).reshape(M, KK * Cin)
    wm = jnp.transpose(params["dcn_w"], (2, 3, 1, 0)).reshape(KK * Cin, Cout)
    y, s1, sq1 = matmul_bias_opt(a, wm, params["dcn_b"], with_stats=True,
                                 out_dtype=store_dtype,
                                 compute_dtype=compute_dtype)   # (M, Cp)
    Cp = y.shape[1]

    # --- BN1 (stats fused into the matmul above) + ReLU ---
    y1 = bn_relu_apply(y, s1, sq1, params["bn1_g"], params["bn1_b"],
                       count=M, out_dtype=store_dtype)
    y1 = y1.reshape(N, H, W, Cp)

    # --- ConvTranspose2d k4 s2 p1: one matmul, 4 phases packed along lanes ---
    xp = jnp.pad(y1, ((0, 0), (1, 1), (1, 1), (0, 0)))
    pat = _im2col(xp, 3).reshape(M, 9 * Cp)            # bf16 3x3 patch slab
    w_all = _deconv_weight_matrix(params["up_w"], Cp, Cp)    # (9*Cp, 4*Cp)
    zero_b = jnp.zeros((4 * Cp,), jnp.float32)
    y_all, s_all, sq_all = matmul_bias_opt(pat, w_all, zero_b, with_stats=True,
                                           out_dtype=store_dtype,
                                           compute_dtype=compute_dtype)
    s2 = s_all.reshape(4, Cp).sum(axis=0)
    sq2 = sq_all.reshape(4, Cp).sum(axis=0)

    # --- BN2 + ReLU + sub-pixel interleave (single Pallas kernel) ---
    out = bn_relu_interleave(y_all, s2, sq2, params["bn2_g"], params["bn2_b"],
                             count=4 * M, n=N, h=H, w_sp=W, cp=Cp,
                             out_dtype=jnp.float32)
    out = out[..., :Cout]
    return jnp.transpose(out, (0, 3, 1, 2))                      # NHWC -> NCHW


# ---------------------------------------------------------------------------
# Pure-JAX reference (valid because the offset conv is zero-initialized:
# offsets are exactly 0 and the DCN modulation mask is sigmoid(0) = 0.5).
# ---------------------------------------------------------------------------

def _ref_bn_relu(y, gamma, beta, eps=1e-5):
    mean = jnp.mean(y, axis=(0, 1, 2))
    var = jnp.mean(jnp.square(y - mean), axis=(0, 1, 2))
    return jax.nn.relu((y - mean) / jnp.sqrt(var + eps) * gamma + beta)


def reference_forward(params, x_nchw, eps=1e-5):
    x = jnp.transpose(x_nchw, (0, 2, 3, 1)).astype(jnp.float32)
    hi = jax.lax.Precision.HIGHEST
    w = jnp.transpose(params["dcn_w"], (2, 3, 1, 0))              # HWIO
    y = 0.5 * jax.lax.conv_general_dilated(
        x, w, (1, 1), ((1, 1), (1, 1)),
        dimension_numbers=("NHWC", "HWIO", "NHWC"), precision=hi)
    y = y + params["dcn_b"]
    y = _ref_bn_relu(y, params["bn1_g"], params["bn1_b"], eps)
    wt = params["up_w"]                                            # (Cin,Cout,4,4)
    w2 = jnp.transpose(wt[:, :, ::-1, ::-1], (2, 3, 0, 1))         # flipped, HWIO
    y = jax.lax.conv_general_dilated(
        y, w2, (1, 1), ((2, 2), (2, 2)), lhs_dilation=(2, 2),
        dimension_numbers=("NHWC", "HWIO", "NHWC"), precision=hi)
    y = _ref_bn_relu(y, params["bn2_g"], params["bn2_b"], eps)
    return jnp.transpose(y, (0, 3, 1, 2))


# ---------------------------------------------------------------------------
# Main
# ---------------------------------------------------------------------------

if __name__ == "__main__":
    key = jax.random.PRNGKey(0)
    kx, kp = jax.random.split(key)
    in_planes, out_planes = 4, 8
    x = jax.random.normal(kx, (2, in_planes, 16, 16), jnp.float32)
    params = init_params(kp, in_planes, out_planes, deconv_kernel=4)

    fwd_bf16 = jax.jit(functools.partial(deconv_layer_forward, params,
                                         compute_dtype=jnp.bfloat16))
    fwd_f32 = jax.jit(functools.partial(deconv_layer_forward, params,
                                        compute_dtype=jnp.float32))
    ref_fn = jax.jit(functools.partial(reference_forward, params))

    out = fwd_bf16(x)          # fast path (bf16 operands + bf16 intermediates)
    out_f32 = fwd_f32(x)       # f32 path for the tight correctness check
    ref = ref_fn(x)
    jax.block_until_ready((out, out_f32, ref))

    assert out.shape == (2, out_planes, 32, 32), out.shape
    assert bool(jnp.all(jnp.isfinite(out)))
    err_f32 = float(jnp.max(jnp.abs(out_f32 - ref)))
    assert err_f32 < 5e-2, err_f32
    # bf16 intermediates loosen the fast-path tolerance slightly.
    err_bf16 = float(jnp.max(jnp.abs(out.astype(jnp.float32) - ref)))
    assert err_bf16 < 0.3, err_bf16
    print("KERNEL_OK")
</pallas_src>

<mosaic_0001>
module attributes {stable_mosaic.version = 11 : i64} {
  func.func @_mm_kernel(%arg0: i32, %arg1: i32, %arg2: memref<256x36xbf16, #tpu.memory_space<vmem>>, %arg3: memref<36x128xbf16, #tpu.memory_space<vmem>>, %arg4: memref<1x128xf32, #tpu.memory_space<vmem>>, %arg5: memref<256x128xbf16, #tpu.memory_space<vmem>>) attributes {dimension_semantics = [#tpu.dimension_semantics<parallel>, #tpu.dimension_semantics<arbitrary>], iteration_bounds = array<i64: 2, 1>, scalar_prefetch = 0 : i64, scratch_operands = 0 : i64, tpu.core_type = #tpu.core_type<tc>, window_params = [{transform_indices = @transform_0, window_bounds = array<i64: 256, 36>}, {pipeline_mode = #tpu.pipeline_mode<synchronous>, transform_indices = @transform_1, window_bounds = array<i64: 36, 128>}, {pipeline_mode = #tpu.pipeline_mode<synchronous>, transform_indices = @transform_2, window_bounds = array<i64: 1, 128>}, {transform_indices = @transform_3, window_bounds = array<i64: 256, 128>}]} {
    %c0 = arith.constant 0 : index
    %c0_0 = arith.constant 0 : index
    %0 = vector.load %arg2[%c0, %c0_0] : memref<256x36xbf16, #tpu.memory_space<vmem>>, vector<256x36xbf16>
    %c0_1 = arith.constant 0 : index
    %c0_2 = arith.constant 0 : index
    %1 = vector.load %arg3[%c0_1, %c0_2] : memref<36x128xbf16, #tpu.memory_space<vmem>>, vector<36x128xbf16>
    %cst = arith.constant dense<0.000000e+00> : vector<256x128xf32>
    %2 = tpu.matmul %0, %1, %cst {dimension_numbers = #tpu.dot_dimension_numbers<[1], [0], [0], [1], [0, 0, 1, 1], [], []>} : vector<256x36xbf16>, vector<36x128xbf16>, vector<256x128xf32> -> vector<256x128xf32>
    %c0_3 = arith.constant 0 : index
    %c0_4 = arith.constant 0 : index
    %3 = vector.load %arg4[%c0_3, %c0_4] : memref<1x128xf32, #tpu.memory_space<vmem>>, vector<1x128xf32>
    %4 = vector.broadcast %3 : vector<1x128xf32> to vector<256x128xf32>
    %5 = arith.addf %2, %4 : vector<256x128xf32>
    %6 = arith.truncf %5 : vector<256x128xf32> to vector<256x128xbf16>
    %c0_5 = arith.constant 0 : index
    %c0_6 = arith.constant 0 : index
    %7 = vector.load %arg5[%c0_5, %c0_6] : memref<256x128xbf16, #tpu.memory_space<vmem>>, vector<256x128xbf16>
    tpu.vector_store %arg5[%c0_5, %c0_6], %6 {strides = array<i32>} : memref<256x128xbf16, #tpu.memory_space<vmem>>, vector<256x128xbf16>,
    return
  }
  func.func @transform_0(%arg0: i32, %arg1: i32) -> (i32, i32) {
    %c0_i32 = arith.constant 0 : i32
    return %arg0, %arg1 : i32, i32
  }
  func.func @transform_1(%arg0: i32, %arg1: i32) -> (i32, i32) {
    %c0_i32 = arith.constant 0 : i32
    %c0_i32_0 = arith.constant 0 : i32
    %c0_i32_1 = arith.constant 0 : i32
    return %c0_i32, %c0_i32_0 : i32, i32
  }
  func.func @transform_2(%arg0: i32, %arg1: i32) -> (i32, i32) {
    %c0_i32 = arith.constant 0 : i32
    %c0_i32_0 = arith.constant 0 : i32
    %c0_i32_1 = arith.constant 0 : i32
    return %c0_i32, %c0_i32_0 : i32, i32
  }
  func.func @transform_3(%arg0: i32, %arg1: i32) -> (i32, i32) {
    %c0_i32 = arith.constant 0 : i32
    %c0_i32_0 = arith.constant 0 : i32
    return %arg0, %c0_i32 : i32, i32
  }
}

module attributes {stable_mosaic.version = 11 : i64} {
  func.func @_mm_stats_kernel(%arg0: i32, %arg1: i32, %arg2: memref<256x36xbf16, #tpu.memory_space<vmem>>, %arg3: memref<36x128xbf16, #tpu.memory_space<vmem>>, %arg4: memref<1x128xf32, #tpu.memory_space<vmem>>, %arg5: memref<256x128xbf16, #tpu.memory_space<vmem>>, %arg6: memref<1x1x128xf32, #tpu.memory_space<vmem>>, %arg7: memref<1x1x128xf32, #tpu.memory_space<vmem>>) attributes {dimension_semantics = [#tpu.dimension_semantics<parallel>, #tpu.dimension_semantics<arbitrary>], iteration_bounds = array<i64: 2, 1>, scalar_prefetch = 0 : i64, scratch_operands = 0 : i64, tpu.core_type = #tpu.core_type<tc>, window_params = [{transform_indices = @transform_0, window_bounds = array<i64: 256, 36>}, {pipeline_mode = #tpu.pipeline_mode<synchronous>, transform_indices = @transform_1, window_bounds = array<i64: 36, 128>}, {pipeline_mode = #tpu.pipeline_mode<synchronous>, transform_indices = @transform_2, window_bounds = array<i64: 1, 128>}, {transform_indices = @transform_3, window_bounds = array<i64: 256, 128>}, {transform_indices = @transform_4, window_bounds = array<i64: 1, 1, 128>}, {transform_indices = @transform_5, window_bounds = array<i64: 1, 1, 128>}]} {
    %c0 = arith.constant 0 : index
    %c0_0 = arith.constant 0 : index
    %0 = vector.load %arg2[%c0, %c0_0] : memref<256x36xbf16, #tpu.memory_space<vmem>>, vector<256x36xbf16>
    %c0_1 = arith.constant 0 : index
    %c0_2 = arith.constant 0 : index
    %1 = vector.load %arg3[%c0_1, %c0_2] : memref<36x128xbf16, #tpu.memory_space<vmem>>, vector<36x128xbf16>
    %cst = arith.constant dense<0.000000e+00> : vector<256x128xf32>
    %2 = tpu.matmul %0, %1, %cst {dimension_numbers = #tpu.dot_dimension_numbers<[1], [0], [0], [1], [0, 0, 1, 1], [], []>} : vector<256x36xbf16>, vector<36x128xbf16>, vector<256x128xf32> -> vector<256x128xf32>
    %c0_3 = arith.constant 0 : index
    %c0_4 = arith.constant 0 : index
    %3 = vector.load %arg4[%c0_3, %c0_4] : memref<1x128xf32, #tpu.memory_space<vmem>>, vector<1x128xf32>
    %4 = vector.broadcast %3 : vector<1x128xf32> to vector<256x128xf32>
    %5 = arith.addf %2, %4 : vector<256x128xf32>
    %6 = arith.truncf %5 : vector<256x128xf32> to vector<256x128xbf16>
    %c0_5 = arith.constant 0 : index
    %c0_6 = arith.constant 0 : index
    %7 = vector.load %arg5[%c0_5, %c0_6] : memref<256x128xbf16, #tpu.memory_space<vmem>>, vector<256x128xbf16>
    tpu.vector_store %arg5[%c0_5, %c0_6], %6 {strides = array<i32>} : memref<256x128xbf16, #tpu.memory_space<vmem>>, vector<256x128xbf16>,
    %cst_7 = arith.constant dense<0.000000e+00> : vector<128xf32>
    %8 = vector.multi_reduction <add>, %5, %cst_7 [0] : vector<256x128xf32> to vector<128xf32>
    %9 = vector.shape_cast %8 : vector<128xf32> to vector<1x1x128xf32>
    %c0_8 = arith.constant 0 : index
    %c0_9 = arith.constant 0 : index
    %c0_10 = arith.constant 0 : index
    %10 = vector.load %arg6[%c0_8, %c0_9, %c0_10] : memref<1x1x128xf32, #tpu.memory_space<vmem>>, vector<1x1x128xf32>
    tpu.vector_store %arg6[%c0_8, %c0_9, %c0_10], %9 {strides = array<i32>} : memref<1x1x128xf32, #tpu.memory_space<vmem>>, vector<1x1x128xf32>,
    %11 = arith.mulf %5, %5 : vector<256x128xf32>
    %cst_11 = arith.constant dense<0.000000e+00> : vector<128xf32>
    %12 = vector.multi_reduction <add>, %11, %cst_11 [0] : vector<256x128xf32> to vector<128xf32>
    %13 = vector.shape_cast %12 : vector<128xf32> to vector<1x1x128xf32>
    %c0_12 = arith.constant 0 : index
    %c0_13 = arith.constant 0 : index
    %c0_14 = arith.constant 0 : index
    %14 = vector.load %arg7[%c0_12, %c0_13, %c0_14] : memref<1x1x128xf32, #tpu.memory_space<vmem>>, vector<1x1x128xf32>
    tpu.vector_store %arg7[%c0_12, %c0_13, %c0_14], %13 {strides = array<i32>} : memref<1x1x128xf32, #tpu.memory_space<vmem>>, vector<1x1x128xf32>,
    return
  }
  func.func @transform_0(%arg0: i32, %arg1: i32) -> (i32, i32) {
    %c0_i32 = arith.constant 0 : i32
    return %arg0, %arg1 : i32, i32
  }
  func.func @transform_1(%arg0: i32, %arg1: i32) -> (i32, i32) {
    %c0_i32 = arith.constant 0 : i32
    %c0_i32_0 = arith.constant 0 : i32
    %c0_i32_1 = arith.constant 0 : i32
    return %c0_i32, %c0_i32_0 : i32, i32
  }
  func.func @transform_2(%arg0: i32, %arg1: i32) -> (i32, i32) {
    %c0_i32 = arith.constant 0 : i32
    %c0_i32_0 = arith.constant 0 : i32
    %c0_i32_1 = arith.constant 0 : i32
    return %c0_i32, %c0_i32_0 : i32, i32
  }
  func.func @transform_3(%arg0: i32, %arg1: i32) -> (i32, i32) {
    %c0_i32 = arith.constant 0 : i32
    %c0_i32_0 = arith.constant 0 : i32
    return %arg0, %c0_i32 : i32, i32
  }
  func.func @transform_4(%arg0: i32, %arg1: i32) -> (i32, i32, i32) {
    %c0_i32 = arith.constant 0 : i32
    %c0_i32_0 = arith.constant 0 : i32
    %c0_i32_1 = arith.constant 0 : i32
    return %arg0, %c0_i32, %c0_i32_0 : i32, i32, i32
  }
  func.func @transform_5(%arg0: i32, %arg1: i32) -> (i32, i32, i32) {
    %c0_i32 = arith.constant 0 : i32
    %c0_i32_0 = arith.constant 0 : i32
    %c0_i32_1 = arith.constant 0 : i32
    return %arg0, %c0_i32, %c0_i32_0 : i32, i32, i32
  }
}

module attributes {stable_mosaic.version = 11 : i64} {
  func.func @_bn_relu_kernel(%arg0: i32, %arg1: memref<512x128xbf16, #tpu.memory_space<vmem>>, %arg2: memref<1x128xf32, #tpu.memory_space<vmem>>, %arg3: memref<1x128xf32, #tpu.memory_space<vmem>>, %arg4: memref<512x128xbf16, #tpu.memory_space<vmem>>) attributes {dimension_semantics = [#tpu.dimension_semantics<parallel>], iteration_bounds = array<i64: 1>, scalar_prefetch = 0 : i64, scratch_operands = 0 : i64, tpu.core_type = #tpu.core_type<tc>, window_params = [{transform_indices = @transform_0, window_bounds = array<i64: 512, 128>}, {pipeline_mode = #tpu.pipeline_mode<synchronous>, transform_indices = @transform_1, window_bounds = array<i64: 1, 128>}, {pipeline_mode = #tpu.pipeline_mode<synchronous>, transform_indices = @transform_2, window_bounds = array<i64: 1, 128>}, {transform_indices = @transform_3, window_bounds = array<i64: 512, 128>}]} {
    %c0 = arith.constant 0 : index
    %c0_0 = arith.constant 0 : index
    %0 = vector.load %arg1[%c0, %c0_0] : memref<512x128xbf16, #tpu.memory_space<vmem>>, vector<512x128xbf16>
    %1 = arith.extf %0 : vector<512x128xbf16> to vector<512x128xf32>
    %c0_1 = arith.constant 0 : index
    %c0_2 = arith.constant 0 : index
    %2 = vector.load %arg2[%c0_1, %c0_2] : memref<1x128xf32, #tpu.memory_space<vmem>>, vector<1x128xf32>
    %3 = vector.broadcast %2 : vector<1x128xf32> to vector<512x128xf32>
    %4 = arith.mulf %1, %3 : vector<512x128xf32>
    %c0_3 = arith.constant 0 : index
    %c0_4 = arith.constant 0 : index
    %5 = vector.load %arg3[%c0_3, %c0_4] : memref<1x128xf32, #tpu.memory_space<vmem>>, vector<1x128xf32>
    %6 = vector.broadcast %5 : vector<1x128xf32> to vector<512x128xf32>
    %7 = arith.addf %4, %6 : vector<512x128xf32>
    %cst = arith.constant 0.000000e+00 : f32
    %8 = vector.broadcast %cst : f32 to vector<512x128xf32>
    %9 = arith.maximumf %7, %8 : vector<512x128xf32>
    %10 = arith.truncf %9 : vector<512x128xf32> to vector<512x128xbf16>
    %c0_5 = arith.constant 0 : index
    %c0_6 = arith.constant 0 : index
    %11 = vector.load %arg4[%c0_5, %c0_6] : memref<512x128xbf16, #tpu.memory_space<vmem>>, vector<512x128xbf16>
    tpu.vector_store %arg4[%c0_5, %c0_6], %10 {strides = array<i32>} : memref<512x128xbf16, #tpu.memory_space<vmem>>, vector<512x128xbf16>,
    return
  }
  func.func @transform_0(%arg0: i32) -> (i32, i32) {
    %c0_i32 = arith.constant 0 : i32
    %c0_i32_0 = arith.constant 0 : i32
    return %arg0, %c0_i32 : i32, i32
  }
  func.func @transform_1(%arg0: i32) -> (i32, i32) {
    %c0_i32 = arith.constant 0 : i32
    %c0_i32_0 = arith.constant 0 : i32
    %c0_i32_1 = arith.constant 0 : i32
    return %c0_i32, %c0_i32_0 : i32, i32
  }
  func.func @transform_2(%arg0: i32) -> (i32, i32) {
    %c0_i32 = arith.constant 0 : i32
    %c0_i32_0 = arith.constant 0 : i32
    %c0_i32_1 = arith.constant 0 : i32
    return %c0_i32, %c0_i32_0 : i32, i32
  }
  func.func @transform_3(%arg0: i32) -> (i32, i32) {
    %c0_i32 = arith.constant 0 : i32
    %c0_i32_0 = arith.constant 0 : i32
    return %arg0, %c0_i32 : i32, i32
  }
}

module attributes {stable_mosaic.version = 11 : i64} {
  func.func @_mm_stats_kernel(%arg0: i32, %arg1: i32, %arg2: memref<256x1152xbf16, #tpu.memory_space<vmem>>, %arg3: memref<1152x512xbf16, #tpu.memory_space<vmem>>, %arg4: memref<1x512xf32, #tpu.memory_space<vmem>>, %arg5: memref<256x512xbf16, #tpu.memory_space<vmem>>, %arg6: memref<1x1x512xf32, #tpu.memory_space<vmem>>, %arg7: memref<1x1x512xf32, #tpu.memory_space<vmem>>) attributes {dimension_semantics = [#tpu.dimension_semantics<parallel>, #tpu.dimension_semantics<arbitrary>], iteration_bounds = array<i64: 2, 1>, scalar_prefetch = 0 : i64, scratch_operands = 0 : i64, tpu.core_type = #tpu.core_type<tc>, window_params = [{transform_indices = @transform_0, window_bounds = array<i64: 256, 1152>}, {pipeline_mode = #tpu.pipeline_mode<synchronous>, transform_indices = @transform_1, window_bounds = array<i64: 1152, 512>}, {pipeline_mode = #tpu.pipeline_mode<synchronous>, transform_indices = @transform_2, window_bounds = array<i64: 1, 512>}, {transform_indices = @transform_3, window_bounds = array<i64: 256, 512>}, {transform_indices = @transform_4, window_bounds = array<i64: 1, 1, 512>}, {transform_indices = @transform_5, window_bounds = array<i64: 1, 1, 512>}]} {
    %c0 = arith.constant 0 : index
    %c0_0 = arith.constant 0 : index
    %0 = vector.load %arg2[%c0, %c0_0] : memref<256x1152xbf16, #tpu.memory_space<vmem>>, vector<256x1152xbf16>
    %c0_1 = arith.constant 0 : index
    %c0_2 = arith.constant 0 : index
    %1 = vector.load %arg3[%c0_1, %c0_2] : memref<1152x512xbf16, #tpu.memory_space<vmem>>, vector<1152x512xbf16>
    %cst = arith.constant dense<0.000000e+00> : vector<256x512xf32>
    %2 = tpu.matmul %0, %1, %cst {dimension_numbers = #tpu.dot_dimension_numbers<[1], [0], [0], [1], [0, 0, 1, 1], [], []>} : vector<256x1152xbf16>, vector<1152x512xbf16>, vector<256x512xf32> -> vector<256x512xf32>
    %c0_3 = arith.constant 0 : index
    %c0_4 = arith.constant 0 : index
    %3 = vector.load %arg4[%c0_3, %c0_4] : memref<1x512xf32, #tpu.memory_space<vmem>>, vector<1x512xf32>
    %4 = vector.broadcast %3 : vector<1x512xf32> to vector<256x512xf32>
    %5 = arith.addf %2, %4 : vector<256x512xf32>
    %6 = arith.truncf %5 : vector<256x512xf32> to vector<256x512xbf16>
    %c0_5 = arith.constant 0 : index
    %c0_6 = arith.constant 0 : index
    %7 = vector.load %arg5[%c0_5, %c0_6] : memref<256x512xbf16, #tpu.memory_space<vmem>>, vector<256x512xbf16>
    tpu.vector_store %arg5[%c0_5, %c0_6], %6 {strides = array<i32>} : memref<256x512xbf16, #tpu.memory_space<vmem>>, vector<256x512xbf16>,
    %cst_7 = arith.constant dense<0.000000e+00> : vector<512xf32>
    %8 = vector.multi_reduction <add>, %5, %cst_7 [0] : vector<256x512xf32> to vector<512xf32>
    %9 = vector.shape_cast %8 : vector<512xf32> to vector<1x1x512xf32>
    %c0_8 = arith.constant 0 : index
    %c0_9 = arith.constant 0 : index
    %c0_10 = arith.constant 0 : index
    %10 = vector.load %arg6[%c0_8, %c0_9, %c0_10] : memref<1x1x512xf32, #tpu.memory_space<vmem>>, vector<1x1x512xf32>
    tpu.vector_store %arg6[%c0_8, %c0_9, %c0_10], %9 {strides = array<i32>} : memref<1x1x512xf32, #tpu.memory_space<vmem>>, vector<1x1x512xf32>,
    %11 = arith.mulf %5, %5 : vector<256x512xf32>
    %cst_11 = arith.constant dense<0.000000e+00> : vector<512xf32>
    %12 = vector.multi_reduction <add>, %11, %cst_11 [0] : vector<256x512xf32> to vector<512xf32>
    %13 = vector.shape_cast %12 : vector<512xf32> to vector<1x1x512xf32>
    %c0_12 = arith.constant 0 : index
    %c0_13 = arith.constant 0 : index
    %c0_14 = arith.constant 0 : index
    %14 = vector.load %arg7[%c0_12, %c0_13, %c0_14] : memref<1x1x512xf32, #tpu.memory_space<vmem>>, vector<1x1x512xf32>
    tpu.vector_store %arg7[%c0_12, %c0_13, %c0_14], %13 {strides = array<i32>} : memref<1x1x512xf32, #tpu.memory_space<vmem>>, vector<1x1x512xf32>,
    return
  }
  func.func @transform_0(%arg0: i32, %arg1: i32) -> (i32, i32) {
    %c0_i32 = arith.constant 0 : i32
    return %arg0, %arg1 : i32, i32
  }
  func.func @transform_1(%arg0: i32, %arg1: i32) -> (i32, i32) {
    %c0_i32 = arith.constant 0 : i32
    %c0_i32_0 = arith.constant 0 : i32
    %c0_i32_1 = arith.constant 0 : i32
    return %c0_i32, %c0_i32_0 : i32, i32
  }
  func.func @transform_2(%arg0: i32, %arg1: i32) -> (i32, i32) {
    %c0_i32 = arith.constant 0 : i32
    %c0_i32_0 = arith.constant 0 : i32
    %c0_i32_1 = arith.constant 0 : i32
    return %c0_i32, %c0_i32_0 : i32, i32
  }
  func.func @transform_3(%arg0: i32, %arg1: i32) -> (i32, i32) {
    %c0_i32 = arith.constant 0 : i32
    %c0_i32_0 = arith.constant 0 : i32
    return %arg0, %c0_i32 : i32, i32
  }
  func.func @transform_4(%arg0: i32, %arg1: i32) -> (i32, i32, i32) {
    %c0_i32 = arith.constant 0 : i32
    %c0_i32_0 = arith.constant 0 : i32
    %c0_i32_1 = arith.constant 0 : i32
    return %arg0, %c0_i32, %c0_i32_0 : i32, i32, i32
  }
  func.func @transform_5(%arg0: i32, %arg1: i32) -> (i32, i32, i32) {
    %c0_i32 = arith.constant 0 : i32
    %c0_i32_0 = arith.constant 0 : i32
    %c0_i32_1 = arith.constant 0 : i32
    return %arg0, %c0_i32, %c0_i32_0 : i32, i32, i32
  }
}

module attributes {stable_mosaic.version = 11 : i64} {
  func.func @_bn_relu_interleave_kernel(%arg0: i32, %arg1: i32, %arg2: memref<1x16x16x512xbf16, #tpu.memory_space<vmem>>, %arg3: memref<1x1x1x512xf32, #tpu.memory_space<vmem>>, %arg4: memref<1x1x1x512xf32, #tpu.memory_space<vmem>>, %arg5: memref<1x16x2x16x256xf32, #tpu.memory_space<vmem>>) attributes {dimension_semantics = [#tpu.dimension_semantics<parallel>, #tpu.dimension_semantics<parallel>], iteration_bounds = array<i64: 2, 1>, scalar_prefetch = 0 : i64, scratch_operands = 0 : i64, tpu.core_type = #tpu.core_type<tc>, window_params = [{transform_indices = @transform_0, window_bounds = array<i64: 1, 16, 16, 512>}, {pipeline_mode = #tpu.pipeline_mode<synchronous>, transform_indices = @transform_1, window_bounds = array<i64: 1, 1, 1, 512>}, {pipeline_mode = #tpu.pipeline_mode<synchronous>, transform_indices = @transform_2, window_bounds = array<i64: 1, 1, 1, 512>}, {transform_indices = @transform_3, window_bounds = array<i64: 1, 16, 2, 16, 256>}]} {
    %c0 = arith.constant 0 : index
    %c0_0 = arith.constant 0 : index
    %c0_1 = arith.constant 0 : index
    %c0_2 = arith.constant 0 : index
    %0 = vector.load %arg2[%c0, %c0_0, %c0_1, %c0_2] : memref<1x16x16x512xbf16, #tpu.memory_space<vmem>>, vector<1x16x16x512xbf16>
    %1 = arith.extf %0 : vector<1x16x16x512xbf16> to vector<1x16x16x512xf32>
    %c0_3 = arith.constant 0 : index
    %c0_4 = arith.constant 0 : index
    %c0_5 = arith.constant 0 : index
    %c0_6 = arith.constant 0 : index
    %2 = vector.load %arg3[%c0_3, %c0_4, %c0_5, %c0_6] : memref<1x1x1x512xf32, #tpu.memory_space<vmem>>, vector<1x1x1x512xf32>
    %3 = vector.broadcast %2 : vector<1x1x1x512xf32> to vector<1x16x16x512xf32>
    %4 = arith.mulf %1, %3 : vector<1x16x16x512xf32>
    %c0_7 = arith.constant 0 : index
    %c0_8 = arith.constant 0 : index
    %c0_9 = arith.constant 0 : index
    %c0_10 = arith.constant 0 : index
    %5 = vector.load %arg4[%c0_7, %c0_8, %c0_9, %c0_10] : memref<1x1x1x512xf32, #tpu.memory_space<vmem>>, vector<1x1x1x512xf32>
    %6 = vector.broadcast %5 : vector<1x1x1x512xf32> to vector<1x16x16x512xf32>
    %7 = arith.addf %4, %6 : vector<1x16x16x512xf32>
    %cst = arith.constant 0.000000e+00 : f32
    %8 = vector.broadcast %cst : f32 to vector<1x16x16x512xf32>
    %9 = arith.maximumf %7, %8 : vector<1x16x16x512xf32>
    %10 = vector.extract_strided_slice %9 {offsets = [0, 0, 0, 0], sizes = [1, 16, 16, 256], strides = [1, 1, 1, 1]} : vector<1x16x16x512xf32> to vector<1x16x16x256xf32>
    %11 = vector.shape_cast %10 : vector<1x16x16x256xf32> to vector<16x16x256xf32>
    %c0_11 = arith.constant 0 : index
    %c0_12 = arith.constant 0 : index
    %c0_13 = arith.constant 0 : index
    %c0_14 = arith.constant 0 : index
    %c0_15 = arith.constant 0 : index
    %12 = vector.load %arg5[%c0_11, %c0_12, %c0_13, %c0_14, %c0_15] : memref<1x16x2x16x256xf32, #tpu.memory_space<vmem>>, vector<1x16x1x16x256xf32>
    %13 = vector.shape_cast %12 : vector<1x16x1x16x256xf32> to vector<16x16x256xf32>
    %14 = vector.shape_cast %11 : vector<16x16x256xf32> to vector<1x16x1x16x256xf32>
    tpu.vector_store %arg5[%c0_11, %c0_12, %c0_13, %c0_14, %c0_15], %14 {strides = array<i32>} : memref<1x16x2x16x256xf32, #tpu.memory_space<vmem>>, vector<1x16x1x16x256xf32>,
    %15 = vector.extract_strided_slice %9 {offsets = [0, 0, 0, 256], sizes = [1, 16, 16, 256], strides = [1, 1, 1, 1]} : vector<1x16x16x512xf32> to vector<1x16x16x256xf32>
    %16 = vector.shape_cast %15 : vector<1x16x16x256xf32> to vector<16x16x256xf32>
    %c0_16 = arith.constant 0 : index
    %c0_17 = arith.constant 0 : index
    %c1 = arith.constant 1 : index
    %c0_18 = arith.constant 0 : index
    %c0_19 = arith.constant 0 : index
    %17 = vector.load %arg5[%c0_16, %c0_17, %c1, %c0_18, %c0_19] : memref<1x16x2x16x256xf32, #tpu.memory_space<vmem>>, vector<1x16x1x16x256xf32>
    %18 = vector.shape_cast %17 : vector<1x16x1x16x256xf32> to vector<16x16x256xf32>
    %19 = vector.shape_cast %16 : vector<16x16x256xf32> to vector<1x16x1x16x256xf32>
    tpu.vector_store %arg5[%c0_16, %c0_17, %c1, %c0_18, %c0_19], %19 {strides = array<i32>} : memref<1x16x2x16x256xf32, #tpu.memory_space<vmem>>, vector<1x16x1x16x256xf32>,
    return
  }
  func.func @transform_0(%arg0: i32, %arg1: i32) -> (i32, i32, i32, i32) {
    %c0_i32 = arith.constant 0 : i32
    %c0_i32_0 = arith.constant 0 : i32
    %c0_i32_1 = arith.constant 0 : i32
    return %arg0, %arg1, %c0_i32, %c0_i32_0 : i32, i32, i32, i32
  }
  func.func @transform_1(%arg0: i32, %arg1: i32) -> (i32, i32, i32, i32) {
    %c0_i32 = arith.constant 0 : i32
    %c0_i32_0 = arith.constant 0 : i32
    %c0_i32_1 = arith.constant 0 : i32
    %c0_i32_2 = arith.constant 0 : i32
    %c0_i32_3 = arith.constant 0 : i32
    return %c0_i32, %c0_i32_0, %c0_i32_1, %c0_i32_2 : i32, i32, i32, i32
  }
  func.func @transform_2(%arg0: i32, %arg1: i32) -> (i32, i32, i32, i32) {
    %c0_i32 = arith.constant 0 : i32
    %c0_i32_0 = arith.constant 0 : i32
    %c0_i32_1 = arith.constant 0 : i32
    %c0_i32_2 = arith.constant 0 : i32
    %c0_i32_3 = arith.constant 0 : i32
    return %c0_i32, %c0_i32_0, %c0_i32_1, %c0_i32_2 : i32, i32, i32, i32
  }
  func.func @transform_3(%arg0: i32, %arg1: i32) -> (i32, i32, i32, i32, i32) {
    %c0_i32 = arith.constant 0 : i32
    %c0_i32_0 = arith.constant 0 : i32
    %c0_i32_1 = arith.constant 0 : i32
    %c0_i32_2 = arith.constant 0 : i32
    return %arg0, %arg1, %c0_i32, %c0_i32_0, %c0_i32_1 : i32, i32, i32, i32, i32
  }
}

</mosaic_0001>

<bundles_post_ra>
// kernel: deconv_layer_forward.5
= control target key start
LH: loop header
LB: loop body
LE: loop exit
PB: predicated region body
PF: predicated region fallthrough
CT: control target
= control target key end

     0   :  { %s1137_s12 = smov 0   ;;  %s1139_s13 = smov 0   ;;  %s1275_s0 = inlined_call_operand.vmem [shape: bf16[512,36], index: 0, kind: input, shape index: {}]   ;;  %s1276_s1 = inlined_call_operand.vmem [shape: bf16[36,128], index: 1, kind: input, shape index: {}]   ;;  %s1277_s2 = inlined_call_operand.vmem [shape: f32[1,128], index: 2, kind: input, shape index: {}]   ;;  %s1278_s3 = inlined_call_operand.vmem [shape: bf16[512,128], index: 3, kind: output, shape index: {}]  }
   0x1   :  { %s1141_s14 = smov 0  }
   0x2 LB: > { %s25_s15 = sadd.s32 1, %s1111_s13  ;;  %p783_p0 = scmp.ge.s32.totalorder %s1115_s14, 1  ;;  %s1115_s14 = sphi %s1141_s14, %s13_s14   ;;  %s1111_s13 = sphi %s1139_s13, %s1280_s13   ;;  %s1107_s12 = sphi %s1137_s12, %s1279_s12  }
   0x3   : > { %p27_p1 = scmp.ge.s32.totalorder %s25_s15, 2  ;;  %p155_p2 = scmp.lt.s32.totalorder %s1115_s14, 3 }
   0x5   : > { %s1282_s15 = smov (%p27_p1, %s25_s15), 0  ;;  %p156_p3 = pnand %p783_p0, %p155_p2 }
   0x6   : > { %v1074_v0 = vld [vmem:[%s1276_s1] sm:$0xff] (!%p156_p3)   ;;  %v1075_v1 = vld [vmem:[%s1276_s1 + $0x8] sm:$0xff] (!%p156_p3)   ;;  %s784_s20 = sshll.u32 (!%p156_p3), %s1107_s12, 5  ;;  %v1076_v2 = vld [vmem:[%s1276_s1 + $0x10] ss:$0 sps:$4 sm:$0x33] (!%p156_p3)  }
   0x7   : > { %159 = sbr.rel (%p156_p3) target bundleno = 264 (0x108), region = 32  ;;  %1004 = vmatprep.subr.bf16.mxu0 (!%p156_p3), %v1074_v0  ;;  %1042 = vmatprep.subr.bf16.mxu1 (!%p156_p3), %v1074_v0  ;;  %p183_p4 = scmp.lt.s32.totalorder (!%p156_p3), %s784_s20, 63  ;;  %vm386_vm0 = vcmask (!%p156_p3), 1041408   ;;  %vm337_vm1 = vcmask (!%p156_p3), 293888   ;;  %v1209_v21 = vld [vmem:[%s1277_s2] ss:$0 sm:$0xff] (!%p156_p3) }
   0x8   : > { %1005 = vmatpush3.bf16.msra.mxu0 (!%p156_p3), %v1074_v0  ;;  %1045 = vmatpush3.bf16.msra.mxu1 (!%p156_p3), %v1074_v0  ;;  %v388_v3 = vsel (!%p156_p3), %vm386_vm0, %v1076_v2, 0 }
   0x9   : > { %1006 = vmatprep.subr.bf16.mxu0 (!%p156_p3), %v1075_v1  ;;  %1043 = vmatprep.subr.bf16.mxu1 (!%p156_p3), %v1075_v1 }
   0xc   : > { %1007 = vmatpush3.bf16.msra.mxu0 (!%p156_p3), %v1075_v1  ;;  %1046 = vmatpush3.bf16.msra.mxu1 (!%p156_p3), %v1075_v1 }
   0xd   : > { %1048 = vmatprep.subr.msk.bf16.mxu0 (!%p156_p3), %vm386_vm0, %v1076_v2  ;;  %1049 = vmatprep.subr.msk.bf16.mxu1 (!%p156_p3), %vm386_vm0, %v1076_v2 }
   0xe   : > { %s1284_s20 = smov (!%p183_p4, %s784_s20), 63 }
   0xf   : > { %s785_s23 = sshll.u32 %s1284_s20, 2 }
  0x10   : > { %s1172_s26 = scalar_lea.vmem %s1275_s0, %s785_s23  ;;  %1009 = vmatpush3.bf16.msra.mxu0 %v388_v3  ;;  %1047 = vmatpush3.bf16.msra.mxu1 %v388_v3  ;;  %s1222_s4 = scalar_lea.vmem %s1278_s3, %s785_s23 }
  0x11   : > { %v1077_v4 = vld [vmem:[%s1172_s26] sm:$0xff]   ;;  %v1079_v6 = vld [vmem:[%s1172_s26 + $0x8] sm:$0xff]   ;;  %v1081_v8 = vld [vmem:[%s1172_s26 + $0x10] sm:$0xff]  }
  0x12   : > { %v1078_v5 = vld [vmem:[%s1172_s26 + $0x40] sm:$0xff]   ;;  %1010 = vmatprep.mubr.msk.bf16.mxu0 %vm337_vm1, %v1077_v4  ;;  %v1080_v7 = vld [vmem:[%s1172_s26 + $0x48] sm:$0xff]   ;;  %v1082_v9 = vld [vmem:[%s1172_s26 + $0x50] sm:$0xff]  }
  0x13   : > { %1026 = vmatprep.mubr.msk.bf16.mxu1 %vm337_vm1, %v1078_v5  ;;  %1011 = vmatmul.mubr.msk.bf16.vlgmr.msra.gmra.mrb[0].mxu0 %vm337_vm1, %v1079_v6  ;;  %v1083_v10 = vld [vmem:[%s1172_s26 + $0x18] sm:$0xff]   ;;  %v1085_v12 = vld [vmem:[%s1172_s26 + $0x20] sm:$0xff]   ;;  %v1087_v14 = vld [vmem:[%s1172_s26 + $0x28] sm:$0xff]  }
  0x14   : > { %1027 = vmatmul.mubr.msk.bf16.vlgmr.msra.gmra.mrb[0].mxu1 %vm337_vm1, %v1080_v7  ;;  %1014 = vmatprep.mubr.msk.bf16.mxu0 %vm337_vm1, %v1081_v8  ;;  %v1084_v11 = vld [vmem:[%s1172_s26 + $0x58] sm:$0xff]   ;;  %v1086_v13 = vld [vmem:[%s1172_s26 + $0x60] sm:$0xff]   ;;  %v1088_v15 = vld [vmem:[%s1172_s26 + $0x68] sm:$0xff]  }
  0x15   : > { %1030 = vmatprep.mubr.msk.bf16.mxu1 %vm337_vm1, %v1082_v9  ;;  %v1089_v16 = vld [vmem:[%s1172_s26 + $0x30] sm:$0xff]   ;;  %v1091_v18 = vld [vmem:[%s1172_s26 + $0x38] sm:$0xff]  }
  0x16   : > { %v1090_v17 = vld [vmem:[%s1172_s26 + $0x70] sm:$0xff]   ;;  %v1092_v19 = vld [vmem:[%s1172_s26 + $0x78] sm:$0xff]  }
  0x1b   : > { %1015 = vmatmul.mubr.msk.bf16.gmra.mrb[4].mxu0 %vm337_vm1, %v1083_v10 }
  0x1c   : > { %1031 = vmatmul.mubr.msk.bf16.gmra.mrb[4].mxu1 %vm337_vm1, %v1084_v11  ;;  %1018 = vmatprep.mubr.msk.bf16.mxu0 %vm337_vm1, %v1085_v12 }
  0x1d   : > { %1034 = vmatprep.mubr.msk.bf16.mxu1 %vm337_vm1, %v1086_v13 }
  0x23   : > { %1019 = vmatmul.mubr.msk.bf16.gmra.mrb[8].mxu0 %vm337_vm1, %v1087_v14 }
  0x24   : > { %1035 = vmatmul.mubr.msk.bf16.gmra.mrb[8].mxu1 %vm337_vm1, %v1088_v15  ;;  %1022 = vmatprep.mubr.msk.bf16.mxu0 %vm337_vm1, %v1089_v16 }
  0x25   : > { %1038 = vmatprep.mubr.msk.bf16.mxu1 %vm337_vm1, %v1090_v17 }
  0x2b   : > { %1023 = vmatmul.mubr.msk.bf16.gmra.mrb[12].mxu0 %vm337_vm1, %v1091_v18 }
  0x2c   : > { %1039 = vmatmul.mubr.msk.bf16.gmra.mrb[12].mxu1 %vm337_vm1, %v1092_v19 }
  0xe6   : > { %v1012_v20 = vpop.f32.mrb[0].mxu0 }
  0xe7   : > { %v1028_v22 = vpop.f32.mrb[0].mxu1  ;;  %v424_v23 = vpop.f32.mrb[1].mxu0  ;;  %v433_v27 = vadd.f32 %v1012_v20, %v1209_v21 }
  0xe8   : > { %v488_v24 = vpop.f32.mrb[1].mxu1  ;;  %v1013_v25 = vpop.f32.mrb[2].mxu0  ;;  %v497_v28 = vadd.f32 %v1028_v22, %v1209_v21  ;;  %v425_v33 = vadd.f32 %v1209_v21, %v424_v23 }
  0xe9   : > { %v1029_v26 = vpop.f32.mrb[2].mxu1  ;;  %v436_v29 = vadd.f32 %v1013_v25, %v1209_v21  ;;  %v427_v31 = vpop.f32.mrb[3].mxu0  ;;  %v489_v34 = vadd.f32 %v1209_v21, %v488_v24 }
  0xea   : > { %v500_v30 = vadd.f32 %v1029_v26, %v1209_v21  ;;  %v491_v32 = vpop.f32.mrb[3].mxu1  ;;  %v428_v35 = vadd.f32 %v1209_v21, %v427_v31 }
  0xeb   : > { %v492_v36 = vadd.f32 %v1209_v21, %v491_v32  ;;  %v898_v37 = vpack.c.bf16 %v436_v29, %v433_v27 }
  0xec   : > { %v938_v38 = vpack.c.bf16 %v500_v30, %v497_v28  ;;  %v893_v39 = vpack.c.bf16 %v428_v35, %v425_v33 }
  0xed   : > { %v933_v40 = vpack.c.bf16 %v492_v36, %v489_v34  ;;  %970 = vst [vmem:[%s1222_s4 + $0x8] sm:$0xff] %v898_v37  }
  0xee   : > { %978 = vst [vmem:[%s1222_s4 + $0x48] sm:$0xff] %v938_v38   ;;  %894 = vst [vmem:[%s1222_s4] sm:$0xff] %v893_v39   ;;  %v1016_v41 = vpop.f32.mrb[4].mxu0 }
  0xef   : > { %977 = vst [vmem:[%s1222_s4 + $0x40] sm:$0xff] %v933_v40   ;;  %v1032_v42 = vpop.f32.mrb[4].mxu1  ;;  %v440_v43 = vpop.f32.mrb[5].mxu0  ;;  %v449_v47 = vadd.f32 %v1016_v41, %v1209_v21 }
  0xf0   : > { %v504_v44 = vpop.f32.mrb[5].mxu1  ;;  %v1017_v45 = vpop.f32.mrb[6].mxu0  ;;  %v513_v48 = vadd.f32 %v1032_v42, %v1209_v21  ;;  %v441_v53 = vadd.f32 %v1209_v21, %v440_v43 }
  0xf1   : > { %v1033_v46 = vpop.f32.mrb[6].mxu1  ;;  %v452_v49 = vadd.f32 %v1017_v45, %v1209_v21  ;;  %v443_v51 = vpop.f32.mrb[7].mxu0  ;;  %v505_v54 = vadd.f32 %v1209_v21, %v504_v44 }
  0xf2   : > { %v516_v50 = vadd.f32 %v1033_v46, %v1209_v21  ;;  %v507_v52 = vpop.f32.mrb[7].mxu1  ;;  %v444_v55 = vadd.f32 %v1209_v21, %v443_v51 }
  0xf3   : > { %v508_v56 = vadd.f32 %v1209_v21, %v507_v52  ;;  %v908_v57 = vpack.c.bf16 %v452_v49, %v449_v47 }
  0xf4   : > { %v948_v58 = vpack.c.bf16 %v516_v50, %v513_v48  ;;  %v903_v59 = vpack.c.bf16 %v444_v55, %v441_v53 }
  0xf5   : > { %v943_v60 = vpack.c.bf16 %v508_v56, %v505_v54  ;;  %972 = vst [vmem:[%s1222_s4 + $0x18] sm:$0xff] %v908_v57  }
  0xf6   : > { %980 = vst [vmem:[%s1222_s4 + $0x58] sm:$0xff] %v948_v58   ;;  %971 = vst [vmem:[%s1222_s4 + $0x10] sm:$0xff] %v903_v59   ;;  %v1020_v61 = vpop.f32.mrb[8].mxu0 }
  0xf7   : > { %979 = vst [vmem:[%s1222_s4 + $0x50] sm:$0xff] %v943_v60   ;;  %v1036_v62 = vpop.f32.mrb[8].mxu1  ;;  %v456_v63 = vpop.f32.mrb[9].mxu0  ;;  %v465_v3 = vadd.f32 %v1020_v61, %v1209_v21 }
  0xf8   : > { %v520_v0 = vpop.f32.mrb[9].mxu1  ;;  %v1021_v1 = vpop.f32.mrb[10].mxu0  ;;  %v529_v4 = vadd.f32 %v1036_v62, %v1209_v21  ;;  %v457_v9 = vadd.f32 %v1209_v21, %v456_v63 }
  0xf9   : > { %v1037_v2 = vpop.f32.mrb[10].mxu1  ;;  %v468_v5 = vadd.f32 %v1021_v1, %v1209_v21  ;;  %v459_v7 = vpop.f32.mrb[11].mxu0  ;;  %v521_v10 = vadd.f32 %v1209_v21, %v520_v0 }
  0xfa   : > { %v532_v6 = vadd.f32 %v1037_v2, %v1209_v21  ;;  %v523_v8 = vpop.f32.mrb[11].mxu1  ;;  %v460_v11 = vadd.f32 %v1209_v21, %v459_v7 }
  0xfb   : > { %v524_v12 = vadd.f32 %v1209_v21, %v523_v8  ;;  %v918_v13 = vpack.c.bf16 %v468_v5, %v465_v3 }
  0xfc   : > { %v958_v14 = vpack.c.bf16 %v532_v6, %v529_v4  ;;  %v913_v15 = vpack.c.bf16 %v460_v11, %v457_v9 }
  0xfd   : > { %v953_v16 = vpack.c.bf16 %v524_v12, %v521_v10  ;;  %974 = vst [vmem:[%s1222_s4 + $0x28] sm:$0xff] %v918_v13  }
  0xfe   : > { %982 = vst [vmem:[%s1222_s4 + $0x68] sm:$0xff] %v958_v14   ;;  %973 = vst [vmem:[%s1222_s4 + $0x20] sm:$0xff] %v913_v15   ;;  %v1024_v17 = vpop.f32.mrb[12].mxu0 }
  0xff   : > { %981 = vst [vmem:[%s1222_s4 + $0x60] sm:$0xff] %v953_v16   ;;  %v1040_v18 = vpop.f32.mrb[12].mxu1  ;;  %v472_v19 = vpop.f32.mrb[13].mxu0  ;;  %v481_v24 = vadd.f32 %v1024_v17, %v1209_v21 }
 0x100   : > { %v536_v20 = vpop.f32.mrb[13].mxu1  ;;  %v1025_v22 = vpop.f32.mrb[14].mxu0  ;;  %v545_v25 = vadd.f32 %v1040_v18, %v1209_v21  ;;  %v473_v30 = vadd.f32 %v1209_v21, %v472_v19 }
 0x101   : > { %v1041_v23 = vpop.f32.mrb[14].mxu1  ;;  %v484_v26 = vadd.f32 %v1025_v22, %v1209_v21  ;;  %v475_v28 = vpop.f32.mrb[15].mxu0  ;;  %v537_v31 = vadd.f32 %v1209_v21, %v536_v20 }
 0x102   : > { %v548_v27 = vadd.f32 %v1041_v23, %v1209_v21  ;;  %v539_v29 = vpop.f32.mrb[15].mxu1  ;;  %v476_v32 = vadd.f32 %v1209_v21, %v475_v28 }
 0x103   : > { %v540_v33 = vadd.f32 %v1209_v21, %v539_v29  ;;  %v928_v34 = vpack.c.bf16 %v484_v26, %v481_v24 }
 0x104   : > { %v968_v35 = vpack.c.bf16 %v548_v27, %v545_v25  ;;  %v923_v36 = vpack.c.bf16 %v476_v32, %v473_v30 }
 0x105   : > { %v963_v37 = vpack.c.bf16 %v540_v33, %v537_v31  ;;  %976 = vst [vmem:[%s1222_s4 + $0x38] sm:$0xff] %v928_v34  }
 0x106   : > { %984 = vst [vmem:[%s1222_s4 + $0x78] sm:$0xff] %v968_v35   ;;  %975 = vst [vmem:[%s1222_s4 + $0x30] sm:$0xff] %v923_v36  }
 0x107   : > { %983 = vst [vmem:[%s1222_s4 + $0x70] sm:$0xff] %v963_v37  }
 0x108 PF: > { %s13_s14 = sadd.s32 1, %s1115_s14   ;;  %s1279_s12 = smov %s1111_s13 }
 0x109   : > { %p10_p5 = scmp.ge.s32.totalorder %s13_s14, 4   ;;  %s1280_s13 = smov %s1282_s15 }
 0x10b   :  { %12 = sbr.rel (!%p10_p5) target bundleno = 2 (0x2), region = 62 }

// kernel: mul.0
= control target key start
LH: loop header
LB: loop body
LE: loop exit
PB: predicated region body
PF: predicated region fallthrough
CT: control target
= control target key end

     0   :  { %s452_s0 = inlined_call_operand.vmem [shape: f32[512,36], index: 0, kind: input, shape index: {}]   ;;  %s453_s1 = inlined_call_operand.vmem [shape: f32[512,36], index: 1, kind: input, shape index: {}]   ;;  %s454_s2 = inlined_call_operand.vmem [shape: f32[512,36], index: 2, kind: output, shape index: {}]  }
   0x1   :  { %v3_v0 = vld [vmem:[%s452_s0] sm:$0xff]  ;;  %v212_v14 = vld [vmem:[%s452_s0 + $0x8] sm:$0xff]  ;;  %v227_v29 = vld [vmem:[%s452_s0 + $0x10] sm:$0xff] }
   0x2   :  { %v4_v1 = vld [vmem:[%s453_s1] sm:$0xff]  ;;  %v213_v15 = vld [vmem:[%s453_s1 + $0x8] sm:$0xff]  ;;  %v228_v31 = vld [vmem:[%s453_s1 + $0x10] sm:$0xff] }
   0x3   :  { %v200_v2 = vld [vmem:[%s452_s0 + $0x20] sm:$0xff]  ;;  %v7_v3 = vmul.f32 %v4_v1, %v3_v0  ;;  %v56_v17 = vmul.f32 %v213_v15, %v212_v14  ;;  %v215_v18 = vld [vmem:[%s452_s0 + $0x28] sm:$0xff]  ;;  %v230_v32 = vld [vmem:[%s452_s0 + $0x30] sm:$0xff]  ;;  %v106_v34 = vmul.f32 %v228_v31, %v227_v29 }
   0x4   :  { %v201_v4 = vld [vmem:[%s453_s1 + $0x20] sm:$0xff]  ;;  %v216_v19 = vld [vmem:[%s453_s1 + $0x28] sm:$0xff]  ;;  %v231_v33 = vld [vmem:[%s453_s1 + $0x30] sm:$0xff] }
   0x5   :  { %v203_v5 = vld [vmem:[%s452_s0 + $0x40] sm:$0xff]  ;;  %v16_v7 = vmul.f32 %v201_v4, %v200_v2  ;;  %9 = vst [vmem:[%s454_s2] sm:$0xff] %v7_v3  ;;  %v218_v20 = vld [vmem:[%s452_s0 + $0x48] sm:$0xff]  ;;  %v66_v21 = vmul.f32 %v216_v19, %v215_v18  ;;  %214 = vst [vmem:[%s454_s2 + $0x8] sm:$0xff] %v56_v17  ;;  %v116_v35 = vmul.f32 %v231_v33, %v230_v32 }
   0x6   :  { %v204_v6 = vld [vmem:[%s453_s1 + $0x40] sm:$0xff]  ;;  %v219_v22 = vld [vmem:[%s453_s1 + $0x48] sm:$0xff]  ;;  %v233_v36 = vld [vmem:[%s452_s0 + $0x50] sm:$0xff]  ;;  %229 = vst [vmem:[%s454_s2 + $0x10] sm:$0xff] %v106_v34 }
   0x7   :  { %v26_v8 = vmul.f32 %v204_v6, %v203_v5  ;;  %v206_v9 = vld [vmem:[%s452_s0 + $0x60] sm:$0xff]  ;;  %202 = vst [vmem:[%s454_s2 + $0x20] sm:$0xff] %v16_v7  ;;  %v221_v23 = vld [vmem:[%s452_s0 + $0x68] sm:$0xff]  ;;  %v76_v25 = vmul.f32 %v219_v22, %v218_v20  ;;  %217 = vst [vmem:[%s454_s2 + $0x28] sm:$0xff] %v66_v21 }
   0x8   :  { %v207_v10 = vld [vmem:[%s453_s1 + $0x60] sm:$0xff]  ;;  %v222_v24 = vld [vmem:[%s453_s1 + $0x68] sm:$0xff]  ;;  %v234_v37 = vld [vmem:[%s453_s1 + $0x50] sm:$0xff]  ;;  %232 = vst [vmem:[%s454_s2 + $0x30] sm:$0xff] %v116_v35 }
   0x9   :  { %v209_v11 = vld [vmem:[%s452_s0 + $0x80] sm:$0xff]  ;;  %v36_v12 = vmul.f32 %v207_v10, %v206_v9  ;;  %205 = vst [vmem:[%s454_s2 + $0x40] sm:$0xff] %v26_v8  ;;  %v86_v26 = vmul.f32 %v222_v24, %v221_v23  ;;  %v224_v27 = vld [vmem:[%s452_s0 + $0x88] sm:$0xff]  ;;  %220 = vst [vmem:[%s454_s2 + $0x48] sm:$0xff] %v76_v25  ;;  %v126_v39 = vmul.f32 %v234_v37, %v233_v36 }
   0xa   :  { %v210_v13 = vld [vmem:[%s453_s1 + $0x80] sm:$0xff]  ;;  %v225_v28 = vld [vmem:[%s453_s1 + $0x88] sm:$0xff]  ;;  %v236_v38 = vld [vmem:[%s452_s0 + $0x70] sm:$0xff] }
   0xb   :  { %v46_v16 = vmul.f32 %v210_v13, %v209_v11  ;;  %208 = vst [vmem:[%s454_s2 + $0x60] sm:$0xff] %v36_v12  ;;  %v96_v30 = vmul.f32 %v225_v28, %v224_v27  ;;  %223 = vst [vmem:[%s454_s2 + $0x68] sm:$0xff] %v86_v26  ;;  %v237_v40 = vld [vmem:[%s453_s1 + $0x70] sm:$0xff]  ;;  %v242_v45 = vld [vmem:[%s452_s0 + $0x18] sm:$0xff] }
   0xc   :  { %v239_v41 = vld [vmem:[%s452_s0 + $0x90] sm:$0xff]  ;;  %v136_v43 = vmul.f32 %v237_v40, %v236_v38  ;;  %v243_v46 = vld [vmem:[%s453_s1 + $0x18] sm:$0xff]  ;;  %235 = vst [vmem:[%s454_s2 + $0x50] sm:$0xff] %v126_v39 }
   0xd   :  { %211 = vst [vmem:[%s454_s2 + $0x80] sm:$0xff] %v46_v16  ;;  %226 = vst [vmem:[%s454_s2 + $0x88] sm:$0xff] %v96_v30  ;;  %v240_v42 = vld [vmem:[%s453_s1 + $0x90] sm:$0xff]  ;;  %v245_v47 = vld [vmem:[%s452_s0 + $0x38] sm:$0xff]  ;;  %v156_v48 = vmul.f32 %v243_v46, %v242_v45 }
   0xe   :  { %v146_v44 = vmul.f32 %v240_v42, %v239_v41  ;;  %v246_v49 = vld [vmem:[%s453_s1 + $0x38] sm:$0xff]  ;;  %238 = vst [vmem:[%s454_s2 + $0x70] sm:$0xff] %v136_v43 }
   0xf   :  { %v248_v50 = vld [vmem:[%s452_s0 + $0x58] sm:$0xff]  ;;  %v166_v52 = vmul.f32 %v246_v49, %v245_v47  ;;  %244 = vst [vmem:[%s454_s2 + $0x18] sm:$0xff] %v156_v48 }
  0x10   :  { %v249_v51 = vld [vmem:[%s453_s1 + $0x58] sm:$0xff]  ;;  %241 = vst [vmem:[%s454_s2 + $0x90] sm:$0xff] %v146_v44 }
  0x11   :  { %v176_v53 = vmul.f32 %v249_v51, %v248_v50  ;;  %v251_v54 = vld [vmem:[%s452_s0 + $0x78] sm:$0xff]  ;;  %247 = vst [vmem:[%s454_s2 + $0x38] sm:$0xff] %v166_v52 }
  0x12   :  { %v252_v55 = vld [vmem:[%s453_s1 + $0x78] sm:$0xff] }
  0x13   :  { %v254_v56 = vld [vmem:[%s452_s0 + $0x98] sm:$0xff]  ;;  %v186_v57 = vmul.f32 %v252_v55, %v251_v54  ;;  %250 = vst [vmem:[%s454_s2 + $0x58] sm:$0xff] %v176_v53 }
  0x14   :  { %v255_v58 = vld [vmem:[%s453_s1 + $0x98] sm:$0xff] }
  0x15   :  { %v196_v59 = vmul.f32 %v255_v58, %v254_v56  ;;  %253 = vst [vmem:[%s454_s2 + $0x78] sm:$0xff] %v186_v57 }
  0x17   :  { %256 = vst [vmem:[%s454_s2 + $0x98] sm:$0xff] %v196_v59 }

// kernel: deconv_layer_forward.6
= control target key start
LH: loop header
LB: loop body
LE: loop exit
PB: predicated region body
PF: predicated region fallthrough
CT: control target
= control target key end

     0   :  { %s1376_s18 = smov 0   ;;  %s1378_s19 = smov 0   ;;  %s1597_s0 = inlined_call_operand.vmem [shape: bf16[512,36], index: 0, kind: input, shape index: {}]   ;;  %s1598_s1 = inlined_call_operand.vmem [shape: bf16[36,128], index: 1, kind: input, shape index: {}]   ;;  %s1599_s2 = inlined_call_operand.vmem [shape: f32[1,128], index: 2, kind: input, shape index: {}]   ;;  %s1600_s3 = inlined_call_operand.vmem [shape: bf16[512,128], index: 3, kind: output, shape index: {0}]   ;;  %s1601_s4 = inlined_call_operand.vmem [shape: f32[2,1,128], index: 4, kind: output, shape index: {1}]   ;;  %s1602_s5 = inlined_call_operand.vmem [shape: f32[2,1,128], index: 5, kind: output, shape index: {2}]  }
   0x1   :  { %s1380_s20 = smov 0  }
   0x2 LB: > { %s28_s21 = sadd.s32 1, %s1340_s19  ;;  %p1012_p0 = scmp.ge.s32.totalorder %s1344_s20, 1  ;;  %s1344_s20 = sphi %s1380_s20, %s16_s20   ;;  %s1340_s19 = sphi %s1378_s19, %s1604_s19   ;;  %s1336_s18 = sphi %s1376_s18, %s1603_s18  }
   0x3   : > { %p30_p1 = scmp.ge.s32.totalorder %s28_s21, 2  ;;  %p210_p2 = scmp.lt.s32.totalorder %s1344_s20, 3 }
   0x5   : > { %s1606_s21 = smov (%p30_p1, %s28_s21), 0  ;;  %p211_p3 = pnand %p1012_p0, %p210_p2 }
   0x6   : > { %v1303_v0 = vld [vmem:[%s1598_s1] sm:$0xff] (!%p211_p3)   ;;  %v1304_v1 = vld [vmem:[%s1598_s1 + $0x8] sm:$0xff] (!%p211_p3)   ;;  %s1013_s26 = sshll.u32 (!%p211_p3), %s1336_s18, 5  ;;  %v1305_v2 = vld [vmem:[%s1598_s1 + $0x10] ss:$0 sps:$4 sm:$0x33] (!%p211_p3)  }
   0x7   : > { %214 = sbr.rel (%p211_p3) target bundleno = 313 (0x139), region = 32  ;;  %1233 = vmatprep.subr.bf16.mxu0 (!%p211_p3), %v1303_v0  ;;  %p248_p4 = scmp.lt.s32.totalorder (!%p211_p3), %s1013_s26, 63  ;;  %1271 = vmatprep.subr.bf16.mxu1 (!%p211_p3), %v1303_v0  ;;  %vm457_vm0 = vcmask (!%p211_p3), 1041408   ;;  %vm408_vm1 = vcmask (!%p211_p3), 293888   ;;  %v1451_v20 = vld [vmem:[%s1599_s2] ss:$0 sm:$0xff] (!%p211_p3) }
   0x8   : > { %1234 = vmatpush3.bf16.msra.mxu0 (!%p211_p3), %v1303_v0  ;;  %1274 = vmatpush3.bf16.msra.mxu1 (!%p211_p3), %v1303_v0  ;;  %v459_v3 = vsel (!%p211_p3), %vm457_vm0, %v1305_v2, 0  ;;  %p262_p5 = scmp.lt.s32.totalorder (!%p211_p3), %s1336_s18, 1 }
   0x9   : > { %1235 = vmatprep.subr.bf16.mxu0 (!%p211_p3), %v1304_v1  ;;  %1272 = vmatprep.subr.bf16.mxu1 (!%p211_p3), %v1304_v1 }
   0xc   : > { %1236 = vmatpush3.bf16.msra.mxu0 (!%p211_p3), %v1304_v1  ;;  %1275 = vmatpush3.bf16.msra.mxu1 (!%p211_p3), %v1304_v1 }
   0xd   : > { %1277 = vmatprep.subr.msk.bf16.mxu0 (!%p211_p3), %vm457_vm0, %v1305_v2  ;;  %1278 = vmatprep.subr.msk.bf16.mxu1 (!%p211_p3), %vm457_vm0, %v1305_v2 }
   0xe   : > { %s1608_s26 = smov (!%p248_p4, %s1013_s26), 63  ;;  %s1610_s18 = smov (!%p262_p5, %s1336_s18), 1 }
   0xf   : > { %s1014_s29 = sshll.u32 %s1608_s26, 2  ;;  %s264_s15 = scalar_lea.vmem %s1601_s4, %s1610_s18 }
  0x10   : > { %s1414_s7 = scalar_lea.vmem %s1597_s0, %s1014_s29  ;;  %1238 = vmatpush3.bf16.msra.mxu0 %v459_v3  ;;  %1276 = vmatpush3.bf16.msra.mxu1 %v459_v3  ;;  %s1461_s12 = scalar_lea.vmem %s1600_s3, %s1014_s29 }
  0x11   : > { %v1306_v4 = vld [vmem:[%s1414_s7] sm:$0xff]   ;;  %v1307_v5 = vld [vmem:[%s1414_s7 + $0x8] sm:$0xff]   ;;  %v1308_v6 = vld [vmem:[%s1414_s7 + $0x10] sm:$0xff]   ;;  %s267_s22 = scalar_lea.vmem %s1602_s5, %s1610_s18 }
  0x12   : > { %1239 = vmatprep.mubr.msk.bf16.mxu0 %vm408_vm1, %v1306_v4  ;;  %v1309_v7 = vld [vmem:[%s1414_s7 + $0x18] sm:$0xff]   ;;  %v1314_v8 = vld [vmem:[%s1414_s7 + $0x40] sm:$0xff]   ;;  %v1315_v9 = vld [vmem:[%s1414_s7 + $0x48] sm:$0xff]  }
  0x13   : > { %1240 = vmatmul.mubr.msk.bf16.vlgmr.msra.gmra.mrb[0].mxu0 %vm408_vm1, %v1307_v5  ;;  %1255 = vmatprep.mubr.msk.bf16.mxu1 %vm408_vm1, %v1314_v8  ;;  %v1316_v10 = vld [vmem:[%s1414_s7 + $0x50] sm:$0xff]   ;;  %v1310_v11 = vld [vmem:[%s1414_s7 + $0x20] sm:$0xff]   ;;  %v1317_v12 = vld [vmem:[%s1414_s7 + $0x58] sm:$0xff]  }
  0x14   : > { %1243 = vmatprep.mubr.msk.bf16.mxu0 %vm408_vm1, %v1308_v6  ;;  %1256 = vmatmul.mubr.msk.bf16.vlgmr.msra.gmra.mrb[0].mxu1 %vm408_vm1, %v1315_v9  ;;  %v1318_v13 = vld [vmem:[%s1414_s7 + $0x60] sm:$0xff]   ;;  %v1311_v14 = vld [vmem:[%s1414_s7 + $0x28] sm:$0xff]   ;;  %v1312_v15 = vld [vmem:[%s1414_s7 + $0x30] sm:$0xff]  }
  0x15   : > { %1259 = vmatprep.mubr.msk.bf16.mxu1 %vm408_vm1, %v1316_v10  ;;  %v1319_v16 = vld [vmem:[%s1414_s7 + $0x68] sm:$0xff]   ;;  %v1320_v17 = vld [vmem:[%s1414_s7 + $0x70] sm:$0xff]   ;;  %v1313_v18 = vld [vmem:[%s1414_s7 + $0x38] sm:$0xff]  }
  0x16   : > { %v1321_v19 = vld [vmem:[%s1414_s7 + $0x78] sm:$0xff]  }
  0x1b   : > { %1244 = vmatmul.mubr.msk.bf16.gmra.mrb[4].mxu0 %vm408_vm1, %v1309_v7 }
  0x1c   : > { %1247 = vmatprep.mubr.msk.bf16.mxu0 %vm408_vm1, %v1310_v11  ;;  %1260 = vmatmul.mubr.msk.bf16.gmra.mrb[4].mxu1 %vm408_vm1, %v1317_v12 }
  0x1d   : > { %1263 = vmatprep.mubr.msk.bf16.mxu1 %vm408_vm1, %v1318_v13 }
  0x23   : > { %1248 = vmatmul.mubr.msk.bf16.gmra.mrb[8].mxu0 %vm408_vm1, %v1311_v14 }
  0x24   : > { %1251 = vmatprep.mubr.msk.bf16.mxu0 %vm408_vm1, %v1312_v15  ;;  %1264 = vmatmul.mubr.msk.bf16.gmra.mrb[8].mxu1 %vm408_vm1, %v1319_v16 }
  0x25   : > { %1267 = vmatprep.mubr.msk.bf16.mxu1 %vm408_vm1, %v1320_v17 }
  0x2b   : > { %1252 = vmatmul.mubr.msk.bf16.gmra.mrb[12].mxu0 %vm408_vm1, %v1313_v18 }
  0x2c   : > { %1268 = vmatmul.mubr.msk.bf16.gmra.mrb[12].mxu1 %vm408_vm1, %v1321_v19 }
  0xe6   : > { %v1241_v21 = vpop.f32.mrb[0].mxu0 }
  0xe7   : > { %v495_v22 = vpop.f32.mrb[1].mxu0  ;;  %v504_v25 = vadd.f32 %v1241_v21, %v1451_v20  ;;  %v1257_v31 = vpop.f32.mrb[0].mxu1 }
  0xe8   : > { %v496_v23 = vadd.f32 %v1451_v20, %v495_v22  ;;  %v1242_v24 = vpop.f32.mrb[2].mxu0  ;;  %v1465_v35 = vadd.f32 %v1257_v31, %v1451_v20  ;;  %v559_v36 = vpop.f32.mrb[1].mxu1 }
  0xe9   : > { %v507_v26 = vadd.f32 %v1242_v24, %v1451_v20  ;;  %v498_v27 = vpop.f32.mrb[3].mxu0  ;;  %v1469_v37 = vadd.f32 %v1451_v20, %v559_v36  ;;  %v1258_v38 = vpop.f32.mrb[2].mxu1  ;;  %v822_v39 = vmul.f32 %v504_v25, %v504_v25 }
  0xea   : > { %v499_v28 = vadd.f32 %v1451_v20, %v498_v27  ;;  %v820_v29 = vmul.f32 %v496_v23, %v496_v23  ;;  %v1473_v43 = vadd.f32 %v1258_v38, %v1451_v20  ;;  %v562_v44 = vpop.f32.mrb[3].mxu1 }
  0xeb   : > { %v1127_v30 = vpack.c.bf16 %v507_v26, %v504_v25  ;;  %v823_v45 = vmul.f32 %v507_v26, %v507_v26  ;;  %v1476_v47 = vadd.f32 %v1451_v20, %v562_v44 }
  0xec   : > { %v1122_v32 = vpack.c.bf16 %v499_v28, %v496_v23  ;;  %v782_v33 = vadd.f32 %v499_v28, %v496_v23  ;;  %v821_v34 = vmul.f32 %v499_v28, %v499_v28  ;;  %v1167_v52 = vpack.c.bf16 %v1473_v43, %v1465_v35 }
  0xed   : > { %1199 = vst [vmem:[%s1461_s12 + $0x8] sm:$0xff] %v1127_v30   ;;  %v1162_v56 = vpack.c.bf16 %v1476_v47, %v1469_v37 }
  0xee   : > { %1123 = vst [vmem:[%s1461_s12] sm:$0xff] %v1122_v32   ;;  %v783_v40 = vadd.f32 %v782_v33, %v504_v25  ;;  %v852_v41 = vadd.f32 %v821_v34, %v820_v29  ;;  %v1245_v42 = vpop.f32.mrb[4].mxu0  ;;  %1207 = vst [vmem:[%s1461_s12 + $0x48] sm:$0xff] %v1167_v52  }
  0xef   : > { %v511_v46 = vpop.f32.mrb[5].mxu0  ;;  %v520_v53 = vadd.f32 %v1245_v42, %v1451_v20  ;;  %1206 = vst [vmem:[%s1461_s12 + $0x40] sm:$0xff] %v1162_v56   ;;  %v1261_v62 = vpop.f32.mrb[4].mxu1 }
  0xf0   : > { %v853_v48 = vadd.f32 %v852_v41, %v822_v39  ;;  %v512_v49 = vadd.f32 %v1451_v20, %v511_v46  ;;  %v784_v50 = vadd.f32 %v783_v40, %v507_v26  ;;  %v1246_v51 = vpop.f32.mrb[6].mxu0  ;;  %v575_v3 = vpop.f32.mrb[5].mxu1  ;;  %v1490_v4 = vadd.f32 %v1261_v62, %v1451_v20 }
  0xf1   : > { %v523_v54 = vadd.f32 %v1246_v51, %v1451_v20  ;;  %v514_v55 = vpop.f32.mrb[7].mxu0  ;;  %v1493_v5 = vadd.f32 %v1451_v20, %v575_v3  ;;  %v1262_v6 = vpop.f32.mrb[6].mxu1  ;;  %v826_v7 = vmul.f32 %v520_v53, %v520_v53 }
  0xf2   : > { %v785_v57 = vadd.f32 %v784_v50, %v512_v49  ;;  %v824_v58 = vmul.f32 %v512_v49, %v512_v49  ;;  %v854_v59 = vadd.f32 %v853_v48, %v823_v45  ;;  %v515_v60 = vadd.f32 %v1451_v20, %v514_v55  ;;  %v578_v12 = vpop.f32.mrb[7].mxu1 }
  0xf3   : > { %v1137_v61 = vpack.c.bf16 %v523_v54, %v520_v53  ;;  %v1497_v11 = vadd.f32 %v1262_v6, %v1451_v20  ;;  %v827_v13 = vmul.f32 %v523_v54, %v523_v54  ;;  %v1500_v15 = vadd.f32 %v1451_v20, %v578_v12 }
  0xf4   : > { %v855_v63 = vadd.f32 %v854_v59, %v824_v58  ;;  %v1132_v0 = vpack.c.bf16 %v515_v60, %v512_v49  ;;  %v786_v1 = vadd.f32 %v785_v57, %v515_v60  ;;  %v825_v2 = vmul.f32 %v515_v60, %v515_v60 }
  0xf5   : > { %1201 = vst [vmem:[%s1461_s12 + $0x18] sm:$0xff] %v1137_v61   ;;  %v1177_v21 = vpack.c.bf16 %v1497_v11, %v1490_v4  ;;  %v1172_v25 = vpack.c.bf16 %v1500_v15, %v1493_v5 }
  0xf6   : > { %1200 = vst [vmem:[%s1461_s12 + $0x10] sm:$0xff] %v1132_v0   ;;  %v787_v8 = vadd.f32 %v786_v1, %v520_v53  ;;  %v856_v9 = vadd.f32 %v855_v63, %v825_v2  ;;  %v1249_v10 = vpop.f32.mrb[8].mxu0 }
  0xf7   : > { %v527_v14 = vpop.f32.mrb[9].mxu0  ;;  %v536_v22 = vadd.f32 %v1249_v10, %v1451_v20  ;;  %1209 = vst [vmem:[%s1461_s12 + $0x58] sm:$0xff] %v1177_v21   ;;  %1208 = vst [vmem:[%s1461_s12 + $0x50] sm:$0xff] %v1172_v25   ;;  %v1265_v31 = vpop.f32.mrb[8].mxu1 }
  0xf8   : > { %v857_v16 = vadd.f32 %v856_v9, %v826_v7  ;;  %v528_v17 = vadd.f32 %v1451_v20, %v527_v14  ;;  %v788_v18 = vadd.f32 %v787_v8, %v523_v54  ;;  %v1250_v19 = vpop.f32.mrb[10].mxu0  ;;  %v591_v38 = vpop.f32.mrb[9].mxu1  ;;  %v1514_v39 = vadd.f32 %v1265_v31, %v1451_v20 }
  0xf9   : > { %v539_v23 = vadd.f32 %v1250_v19, %v1451_v20  ;;  %v530_v24 = vpop.f32.mrb[11].mxu0  ;;  %v1517_v40 = vadd.f32 %v1451_v20, %v591_v38  ;;  %v1266_v41 = vpop.f32.mrb[10].mxu1  ;;  %v830_v42 = vmul.f32 %v536_v22, %v536_v22  ;;  %v839_v38 = vmul.f32 %v1473_v43, %v1473_v43 }
  0xfa   : > { %v789_v26 = vadd.f32 %v788_v18, %v528_v17  ;;  %v828_v27 = vmul.f32 %v528_v17, %v528_v17  ;;  %v858_v28 = vadd.f32 %v857_v16, %v827_v13  ;;  %v531_v29 = vadd.f32 %v1451_v20, %v530_v24  ;;  %v594_v49 = vpop.f32.mrb[11].mxu1 }
  0xfb   : > { %v1147_v30 = vpack.c.bf16 %v539_v23, %v536_v22  ;;  %v1521_v48 = vadd.f32 %v1266_v41, %v1451_v20  ;;  %v831_v50 = vmul.f32 %v539_v23, %v539_v23  ;;  %v1524_v52 = vadd.f32 %v1451_v20, %v594_v49 }
  0xfc   : > { %v859_v32 = vadd.f32 %v858_v28, %v828_v27  ;;  %v1142_v33 = vpack.c.bf16 %v531_v29, %v528_v17  ;;  %v790_v34 = vadd.f32 %v789_v26, %v531_v29  ;;  %v829_v36 = vmul.f32 %v531_v29, %v531_v29 }
  0xfd   : > { %1203 = vst [vmem:[%s1461_s12 + $0x28] sm:$0xff] %v1147_v30   ;;  %v1187_v57 = vpack.c.bf16 %v1521_v48, %v1514_v39  ;;  %v1182_v61 = vpack.c.bf16 %v1524_v52, %v1517_v40  ;;  %v841_v49 = vmul.f32 %v1500_v15, %v1500_v15 }
  0xfe   : > { %1202 = vst [vmem:[%s1461_s12 + $0x20] sm:$0xff] %v1142_v33   ;;  %v791_v44 = vadd.f32 %v790_v34, %v536_v22  ;;  %v860_v45 = vadd.f32 %v859_v32, %v829_v36  ;;  %v1253_v46 = vpop.f32.mrb[12].mxu0  ;;  %v836_v22 = vmul.f32 %v1469_v37, %v1469_v37  ;;  %v837_v33 = vmul.f32 %v1476_v47, %v1476_v47 }
  0xff   : > { %v543_v51 = vpop.f32.mrb[13].mxu0  ;;  %v552_v58 = vadd.f32 %v1253_v46, %v1451_v20  ;;  %1211 = vst [vmem:[%s1461_s12 + $0x68] sm:$0xff] %v1187_v57   ;;  %1210 = vst [vmem:[%s1461_s12 + $0x60] sm:$0xff] %v1182_v61   ;;  %v1269_v3 = vpop.f32.mrb[12].mxu1  ;;  %v838_v34 = vmul.f32 %v1465_v35, %v1465_v35 }
 0x100   : > { %v861_v53 = vadd.f32 %v860_v45, %v830_v42  ;;  %v544_v54 = vadd.f32 %v1451_v20, %v543_v51  ;;  %v792_v55 = vadd.f32 %v791_v44, %v539_v23  ;;  %v1254_v56 = vpop.f32.mrb[14].mxu0  ;;  %v607_v10 = vpop.f32.mrb[13].mxu1  ;;  %v616_v12 = vadd.f32 %v1269_v3, %v1451_v20 }
 0x101   : > { %v555_v59 = vadd.f32 %v1254_v56, %v1451_v20  ;;  %v546_v60 = vpop.f32.mrb[15].mxu0  ;;  %v608_v13 = vadd.f32 %v1451_v20, %v607_v10  ;;  %v1270_v14 = vpop.f32.mrb[14].mxu1  ;;  %v834_v16 = vmul.f32 %v552_v58, %v552_v58  ;;  %v840_v42 = vmul.f32 %v1493_v5, %v1493_v5 }
 0x102   : > { %v793_v62 = vadd.f32 %v792_v55, %v544_v54  ;;  %v832_v63 = vmul.f32 %v544_v54, %v544_v54  ;;  %v862_v0 = vadd.f32 %v861_v53, %v831_v50  ;;  %v547_v1 = vadd.f32 %v1451_v20, %v546_v60  ;;  %v610_v21 = vpop.f32.mrb[15].mxu1 }
 0x103   : > { %v1157_v2 = vpack.c.bf16 %v555_v59, %v552_v58  ;;  %v619_v19 = vadd.f32 %v1270_v14, %v1451_v20  ;;  %v611_v23 = vadd.f32 %v1451_v20, %v610_v21  ;;  %v835_v24 = vmul.f32 %v555_v59, %v555_v59 }
 0x104   : > { %v863_v6 = vadd.f32 %v862_v0, %v832_v63  ;;  %v1152_v7 = vpack.c.bf16 %v547_v1, %v544_v54  ;;  %v794_v8 = vadd.f32 %v793_v62, %v547_v1  ;;  %v833_v9 = vmul.f32 %v547_v1, %v547_v1 }
 0x105   : > { %1205 = vst [vmem:[%s1461_s12 + $0x38] sm:$0xff] %v1157_v2   ;;  %v1197_v27 = vpack.c.bf16 %v619_v19, %v616_v12  ;;  %v1192_v28 = vpack.c.bf16 %v611_v23, %v608_v13  ;;  %v848_v62 = vmul.f32 %v608_v13, %v608_v13  ;;  %v850_v3 = vmul.f32 %v616_v12, %v616_v12 }
 0x106   : > { %1204 = vst [vmem:[%s1461_s12 + $0x30] sm:$0xff] %v1152_v7   ;;  %v795_v17 = vadd.f32 %v794_v8, %v552_v58  ;;  %v864_v18 = vadd.f32 %v863_v6, %v833_v9  ;;  %v845_v58 = vmul.f32 %v1524_v52, %v1524_v52  ;;  %v851_v8 = vmul.f32 %v619_v19, %v619_v19 }
 0x107   : > { %1213 = vst [vmem:[%s1461_s12 + $0x78] sm:$0xff] %v1197_v27   ;;  %1212 = vst [vmem:[%s1461_s12 + $0x70] sm:$0xff] %v1192_v28  }
 0x108   : > { %v865_v25 = vadd.f32 %v864_v18, %v834_v16  ;;  %v796_v26 = vadd.f32 %v795_v17, %v555_v59 }
 0x10a   : > { %v797_v29 = vadd.f32 %v796_v26, %v1469_v37  ;;  %v866_v30 = vadd.f32 %v865_v25, %v835_v24 }
 0x10c   : > { %v867_v31 = vadd.f32 %v866_v30, %v836_v22  ;;  %v798_v32 = vadd.f32 %v797_v29, %v1476_v47 }
 0x10e   : > { %v799_v20 = vadd.f32 %v798_v32, %v1465_v35  ;;  %v868_v36 = vadd.f32 %v867_v31, %v837_v33  ;;  %v842_v35 = vmul.f32 %v1490_v4, %v1490_v4 }
 0x110   : > { %v869_v41 = vadd.f32 %v868_v36, %v838_v34  ;;  %v800_v37 = vadd.f32 %v799_v20, %v1473_v43  ;;  %v843_v43 = vmul.f32 %v1497_v11, %v1497_v11 }
 0x112   : > { %v801_v44 = vadd.f32 %v800_v37, %v1493_v5  ;;  %v870_v45 = vadd.f32 %v869_v41, %v839_v38  ;;  %v844_v5 = vmul.f32 %v1517_v40, %v1517_v40 }
 0x114   : > { %v871_v46 = vadd.f32 %v870_v45, %v840_v42  ;;  %v802_v47 = vadd.f32 %v801_v44, %v1500_v15 }
 0x116   : > { %v803_v50 = vadd.f32 %v802_v47, %v1490_v4  ;;  %v872_v51 = vadd.f32 %v871_v46, %v841_v49  ;;  %v846_v4 = vmul.f32 %v1514_v39, %v1514_v39 }
 0x118   : > { %v873_v53 = vadd.f32 %v872_v51, %v842_v35  ;;  %v804_v54 = vadd.f32 %v803_v50, %v1497_v11  ;;  %v847_v11 = vmul.f32 %v1521_v48, %v1521_v48 }
 0x11a   : > { %v805_v55 = vadd.f32 %v804_v54, %v1517_v40  ;;  %v874_v56 = vadd.f32 %v873_v53, %v843_v43 }
 0x11c   : > { %v875_v57 = vadd.f32 %v874_v56, %v844_v5  ;;  %v806_v15 = vadd.f32 %v805_v55, %v1524_v52  ;;  %v849_v52 = vmul.f32 %v611_v23, %v611_v23 }
 0x11e   : > { %v807_v59 = vadd.f32 %v806_v15, %v1514_v39  ;;  %v876_v60 = vadd.f32 %v875_v57, %v845_v58 }
 0x120   : > { %v877_v61 = vadd.f32 %v876_v60, %v846_v4  ;;  %v808_v40 = vadd.f32 %v807_v59, %v1521_v48 }
 0x122   : > { %v809_v63 = vadd.f32 %v808_v40, %v608_v13  ;;  %v878_v0 = vadd.f32 %v877_v61, %v847_v11 }
 0x124   : > { %v879_v1 = vadd.f32 %v878_v0, %v848_v62  ;;  %v810_v2 = vadd.f32 %v809_v63, %v611_v23 }
 0x126   : > { %v811_v6 = vadd.f32 %v810_v2, %v616_v12  ;;  %v880_v7 = vadd.f32 %v879_v1, %v849_v52 }
 0x128   : > { %v812_v39 = vadd.f32 %v811_v6, %v619_v19  ;;  %v881_v9 = vadd.f32 %v880_v7, %v850_v3 }
 0x12a   : > { %v813_v10 = vrot.slane %v812_v39, 4  ;;  %v882_v14 = vadd.f32 %v881_v9, %v851_v8 }
 0x12c   : > { %v814_v16 = vadd.f32 %v813_v10, %v812_v39  ;;  %v883_v17 = vrot.slane %v882_v14, 4 }
 0x12e   : > { %v815_v18 = vrot.slane %v814_v16, 2  ;;  %v884_v48 = vadd.f32 %v883_v17, %v882_v14 }
 0x130   : > { %v816_v13 = vadd.f32 %v815_v18, %v814_v16  ;;  %v885_v21 = vrot.slane %v884_v48, 2 }
 0x132   : > { %v817_v22 = vrot.slane %v816_v13, 1  ;;  %v886_v24 = vadd.f32 %v885_v21, %v884_v48 }
 0x134   : > { %v818_v12 = vadd.f32 %v817_v22, %v816_v13  ;;  %v887_v23 = vrot.slane %v886_v24, 1 }
 0x136   : > { %819 = vst [vmem:[%s264_s15] sm:$0x1] %v818_v12  ;;  %v888_v19 = vadd.f32 %v887_v23, %v886_v24 }
 0x138   : > { %889 = vst [vmem:[%s267_s22] sm:$0x1] %v888_v19 }
 0x139 PF: > { %s16_s20 = sadd.s32 1, %s1344_s20   ;;  %s1603_s18 = smov %s1340_s19 }
 0x13a   : > { %p13_p6 = scmp.ge.s32.totalorder %s16_s20, 4   ;;  %s1604_s19 = smov %s1606_s21 }
 0x13c   :  { %15 = sbr.rel (!%p13_p6) target bundleno = 2 (0x2), region = 86 }

// kernel: deconv_layer_forward.7
= control target key start
LH: loop header
LB: loop body
LE: loop exit
PB: predicated region body
PF: predicated region fallthrough
CT: control target
= control target key end

     0   :  { %s1502_s0 = inlined_call_operand.vmem [shape: bf16[512,128], index: 0, kind: input, shape index: {}]   ;;  %s1503_s1 = inlined_call_operand.vmem [shape: f32[1,128], index: 1, kind: input, shape index: {}]   ;;  %s1504_s2 = inlined_call_operand.vmem [shape: f32[1,128], index: 2, kind: input, shape index: {}]   ;;  %s1505_s3 = inlined_call_operand.vmem [shape: bf16[512,128], index: 3, kind: output, shape index: {}]  }
   0x1   :  { %v803_v0 = vld [vmem:[%s1502_s0] sm:$0xff]   ;;  %v1090_v4 = vld [vmem:[%s1502_s0 + $0x8] sm:$0xff]   ;;  %v1091_v5 = vld [vmem:[%s1502_s0 + $0x10] sm:$0xff]  }
   0x2   :  { %v1178_v1 = vld [vmem:[%s1503_s1] ss:$0 sm:$0xff]  ;;  %v804_v2 = vunpack.c.l.bf16 %v803_v0  ;;  %v805_v3 = vunpack.c.h.bf16 %v803_v0  ;;  %v1092_v6 = vld [vmem:[%s1502_s0 + $0x18] sm:$0xff]   ;;  %v808_v8 = vunpack.c.l.bf16 %v1090_v4  ;;  %v809_v9 = vunpack.c.h.bf16 %v1090_v4  ;;  %v1094_v33 = vld [vmem:[%s1502_s0 + $0x28] sm:$0xff]  }
   0x3   :  { %v1192_v7 = vld [vmem:[%s1504_s2] ss:$0 sm:$0xff]  ;;  %v812_v10 = vunpack.c.l.bf16 %v1091_v5  ;;  %v813_v11 = vunpack.c.h.bf16 %v1091_v5  ;;  %v816_v14 = vunpack.c.l.bf16 %v1092_v6  ;;  %v817_v15 = vunpack.c.h.bf16 %v1092_v6  ;;  %v1095_v38 = vld [vmem:[%s1502_s0 + $0x30] sm:$0xff]   ;;  %v1096_v43 = vld [vmem:[%s1502_s0 + $0x38] sm:$0xff]  }
   0x4   :  { %v149_v12 = vmul.f32 %v804_v2, %v1178_v1  ;;  %v150_v13 = vmul.f32 %v805_v3, %v1178_v1  ;;  %v151_v16 = vmul.f32 %v808_v8, %v1178_v1  ;;  %v152_v17 = vmul.f32 %v809_v9, %v1178_v1  ;;  %v1093_v28 = vld [vmem:[%s1502_s0 + $0x20] sm:$0xff]  }
   0x5   :  { %v153_v18 = vmul.f32 %v812_v10, %v1178_v1  ;;  %v154_v19 = vmul.f32 %v813_v11, %v1178_v1  ;;  %v155_v22 = vmul.f32 %v816_v14, %v1178_v1  ;;  %v156_v23 = vmul.f32 %v817_v15, %v1178_v1  ;;  %v1097_v0 = vld [vmem:[%s1502_s0 + $0x40] sm:$0xff]   ;;  %v1098_v11 = vld [vmem:[%s1502_s0 + $0x48] sm:$0xff]  }
   0x6   :  { %v220_v20 = vadd.f32 %v1192_v7, %v149_v12  ;;  %v221_v21 = vadd.f32 %v1192_v7, %v150_v13  ;;  %v222_v24 = vadd.f32 %v1192_v7, %v151_v16  ;;  %v223_v25 = vadd.f32 %v1192_v7, %v152_v17  ;;  %v1099_v16 = vld [vmem:[%s1502_s0 + $0x50] sm:$0xff]  }
   0x7   :  { %v224_v26 = vadd.f32 %v1192_v7, %v153_v18  ;;  %v225_v27 = vadd.f32 %v1192_v7, %v154_v19  ;;  %v226_v31 = vadd.f32 %v1192_v7, %v155_v22  ;;  %v227_v32 = vadd.f32 %v1192_v7, %v156_v23 }
   0x8   :  { %v284_v29 = vmax.f32 %v220_v20, 0.0  ;;  %v285_v30 = vmax.f32 %v221_v21, 0.0  ;;  %v286_v34 = vmax.f32 %v222_v24, 0.0  ;;  %v287_v35 = vmax.f32 %v223_v25, 0.0  ;;  %v1100_v25 = vld [vmem:[%s1502_s0 + $0x58] sm:$0xff]  }
   0x9   :  { %v288_v36 = vmax.f32 %v224_v26, 0.0  ;;  %v289_v37 = vmax.f32 %v225_v27, 0.0  ;;  %v290_v40 = vmax.f32 %v226_v31, 0.0  ;;  %v291_v41 = vmax.f32 %v227_v32, 0.0 }
   0xa   :  { %v933_v39 = vpack.c.bf16 %v285_v30, %v284_v29  ;;  %v820_v42 = vunpack.c.l.bf16 %v1093_v28  ;;  %v938_v44 = vpack.c.bf16 %v287_v35, %v286_v34  ;;  %v821_v46 = vunpack.c.h.bf16 %v1093_v28 }
   0xb   :  { %v943_v45 = vpack.c.bf16 %v289_v37, %v288_v36  ;;  %v824_v47 = vunpack.c.l.bf16 %v1094_v33  ;;  %v948_v48 = vpack.c.bf16 %v291_v41, %v290_v40  ;;  %v825_v50 = vunpack.c.h.bf16 %v1094_v33 }
   0xc   :  { %934 = vst [vmem:[%s1505_s3] sm:$0xff] %v933_v39   ;;  %v157_v49 = vmul.f32 %v820_v42, %v1178_v1  ;;  %v828_v51 = vunpack.c.l.bf16 %v1095_v38  ;;  %1121 = vst [vmem:[%s1505_s3 + $0x8] sm:$0xff] %v938_v44   ;;  %v158_v52 = vmul.f32 %v821_v46, %v1178_v1  ;;  %v829_v54 = vunpack.c.h.bf16 %v1095_v38  ;;  %v1101_v38 = vld [vmem:[%s1502_s0 + $0x60] sm:$0xff]  }
   0xd   :  { %1122 = vst [vmem:[%s1505_s3 + $0x10] sm:$0xff] %v943_v45   ;;  %v159_v53 = vmul.f32 %v824_v47, %v1178_v1  ;;  %v832_v55 = vunpack.c.l.bf16 %v1096_v43  ;;  %1123 = vst [vmem:[%s1505_s3 + $0x18] sm:$0xff] %v948_v48   ;;  %v160_v57 = vmul.f32 %v825_v50, %v1178_v1  ;;  %v833_v59 = vunpack.c.h.bf16 %v1096_v43 }
   0xe   :  { %v228_v56 = vadd.f32 %v1192_v7, %v157_v49  ;;  %v161_v58 = vmul.f32 %v828_v51, %v1178_v1  ;;  %v229_v60 = vadd.f32 %v1192_v7, %v158_v52  ;;  %v162_v62 = vmul.f32 %v829_v54, %v1178_v1  ;;  %v1102_v51 = vld [vmem:[%s1502_s0 + $0x68] sm:$0xff]  }
   0xf   :  { %v230_v61 = vadd.f32 %v1192_v7, %v159_v53  ;;  %v163_v63 = vmul.f32 %v832_v55, %v1178_v1  ;;  %v231_v3 = vadd.f32 %v1192_v7, %v160_v57  ;;  %v164_v5 = vmul.f32 %v833_v59, %v1178_v1 }
  0x10   :  { %v292_v2 = vmax.f32 %v228_v56, 0.0  ;;  %v232_v4 = vadd.f32 %v1192_v7, %v161_v58  ;;  %v293_v6 = vmax.f32 %v229_v60, 0.0  ;;  %v233_v9 = vadd.f32 %v1192_v7, %v162_v62  ;;  %v1103_v60 = vld [vmem:[%s1502_s0 + $0x70] sm:$0xff]  }
  0x11   :  { %v294_v8 = vmax.f32 %v230_v61, 0.0  ;;  %v234_v10 = vadd.f32 %v1192_v7, %v163_v63  ;;  %v295_v12 = vmax.f32 %v231_v3, 0.0  ;;  %v235_v14 = vadd.f32 %v1192_v7, %v164_v5 }
  0x12   :  { %v296_v13 = vmax.f32 %v232_v4, 0.0  ;;  %v836_v15 = vunpack.c.l.bf16 %v1097_v0  ;;  %v953_v17 = vpack.c.bf16 %v293_v6, %v292_v2  ;;  %v297_v18 = vmax.f32 %v233_v9, 0.0  ;;  %v1104_v2 = vld [vmem:[%s1502_s0 + $0x78] sm:$0xff]  }
  0x13   :  { %v298_v19 = vmax.f32 %v234_v10, 0.0  ;;  %v837_v20 = vunpack.c.h.bf16 %v1097_v0  ;;  %v958_v21 = vpack.c.bf16 %v295_v12, %v294_v8  ;;  %v299_v22 = vmax.f32 %v235_v14, 0.0  ;;  %v1105_v12 = vld [vmem:[%s1502_s0 + $0x80] sm:$0xff]  }
  0x14   :  { %v165_v23 = vmul.f32 %v836_v15, %v1178_v1  ;;  %v840_v24 = vunpack.c.l.bf16 %v1098_v11  ;;  %1124 = vst [vmem:[%s1505_s3 + $0x20] sm:$0xff] %v953_v17   ;;  %v963_v26 = vpack.c.bf16 %v297_v18, %v296_v13  ;;  %v841_v28 = vunpack.c.h.bf16 %v1098_v11 }
  0x15   :  { %v166_v27 = vmul.f32 %v837_v20, %v1178_v1  ;;  %v844_v29 = vunpack.c.l.bf16 %v1099_v16  ;;  %1125 = vst [vmem:[%s1505_s3 + $0x28] sm:$0xff] %v958_v21   ;;  %v968_v30 = vpack.c.bf16 %v299_v22, %v298_v19  ;;  %v845_v33 = vunpack.c.h.bf16 %v1099_v16 }
  0x16   :  { %v236_v31 = vadd.f32 %v1192_v7, %v165_v23  ;;  %v167_v32 = vmul.f32 %v840_v24, %v1178_v1  ;;  %1126 = vst [vmem:[%s1505_s3 + $0x30] sm:$0xff] %v963_v26   ;;  %v168_v35 = vmul.f32 %v841_v28, %v1178_v1  ;;  %v848_v37 = vunpack.c.l.bf16 %v1100_v25 }
  0x17   :  { %v237_v34 = vadd.f32 %v1192_v7, %v166_v27  ;;  %v169_v36 = vmul.f32 %v844_v29, %v1178_v1  ;;  %1127 = vst [vmem:[%s1505_s3 + $0x38] sm:$0xff] %v968_v30   ;;  %v170_v41 = vmul.f32 %v845_v33, %v1178_v1  ;;  %v849_v42 = vunpack.c.h.bf16 %v1100_v25  ;;  %v1106_v29 = vld [vmem:[%s1502_s0 + $0x88] sm:$0xff]  }
  0x18   :  { %v300_v39 = vmax.f32 %v236_v31, 0.0  ;;  %v238_v40 = vadd.f32 %v1192_v7, %v167_v32  ;;  %v239_v44 = vadd.f32 %v1192_v7, %v168_v35  ;;  %v171_v46 = vmul.f32 %v848_v37, %v1178_v1 }
  0x19   :  { %v301_v43 = vmax.f32 %v237_v34, 0.0  ;;  %v240_v45 = vadd.f32 %v1192_v7, %v169_v36  ;;  %v241_v48 = vadd.f32 %v1192_v7, %v170_v41  ;;  %v172_v49 = vmul.f32 %v849_v42, %v1178_v1  ;;  %v1107_v34 = vld [vmem:[%s1502_s0 + $0x90] sm:$0xff]  }
  0x1a   :  { %v302_v47 = vmax.f32 %v238_v40, 0.0  ;;  %v852_v50 = vunpack.c.l.bf16 %v1101_v38  ;;  %v303_v53 = vmax.f32 %v239_v44, 0.0  ;;  %v242_v55 = vadd.f32 %v1192_v7, %v171_v46 }
  0x1b   :  { %v973_v52 = vpack.c.bf16 %v301_v43, %v300_v39  ;;  %v304_v54 = vmax.f32 %v240_v45, 0.0  ;;  %v305_v56 = vmax.f32 %v241_v48, 0.0  ;;  %v243_v57 = vadd.f32 %v1192_v7, %v172_v49  ;;  %v1108_v43 = vld [vmem:[%s1502_s0 + $0x98] sm:$0xff]  }
  0x1c   :  { %v853_v58 = vunpack.c.h.bf16 %v1101_v38  ;;  %v173_v59 = vmul.f32 %v852_v50, %v1178_v1  ;;  %v978_v61 = vpack.c.bf16 %v303_v53, %v302_v47  ;;  %v306_v62 = vmax.f32 %v242_v55, 0.0 }
  0x1d   :  { %1128 = vst [vmem:[%s1505_s3 + $0x40] sm:$0xff] %v973_v52   ;;  %v856_v63 = vunpack.c.l.bf16 %v1102_v51  ;;  %v857_v0 = vunpack.c.h.bf16 %v1102_v51  ;;  %v983_v3 = vpack.c.bf16 %v305_v56, %v304_v54  ;;  %v307_v4 = vmax.f32 %v243_v57, 0.0  ;;  %v1109_v56 = vld [vmem:[%s1502_s0 + $0xa0] sm:$0xff]  }
  0x1e   :  { %v174_v5 = vmul.f32 %v853_v58, %v1178_v1  ;;  %v244_v6 = vadd.f32 %v1192_v7, %v173_v59  ;;  %1129 = vst [vmem:[%s1505_s3 + $0x48] sm:$0xff] %v978_v61   ;;  %v860_v10 = vunpack.c.l.bf16 %v1103_v60  ;;  %v861_v11 = vunpack.c.h.bf16 %v1103_v60 }
  0x1f   :  { %v175_v8 = vmul.f32 %v856_v63, %v1178_v1  ;;  %v176_v9 = vmul.f32 %v857_v0, %v1178_v1  ;;  %1130 = vst [vmem:[%s1505_s3 + $0x50] sm:$0xff] %v983_v3   ;;  %v988_v13 = vpack.c.bf16 %v307_v4, %v306_v62  ;;  %v864_v16 = vunpack.c.l.bf16 %v1104_v2 }
  0x20   :  { %v245_v14 = vadd.f32 %v1192_v7, %v174_v5  ;;  %v308_v15 = vmax.f32 %v244_v6, 0.0  ;;  %v177_v19 = vmul.f32 %v860_v10, %v1178_v1  ;;  %v178_v20 = vmul.f32 %v861_v11, %v1178_v1 }
  0x21   :  { %v246_v17 = vadd.f32 %v1192_v7, %v175_v8  ;;  %v247_v18 = vadd.f32 %v1192_v7, %v176_v9  ;;  %1131 = vst [vmem:[%s1505_s3 + $0x58] sm:$0xff] %v988_v13   ;;  %v865_v22 = vunpack.c.h.bf16 %v1104_v2  ;;  %v179_v23 = vmul.f32 %v864_v16, %v1178_v1  ;;  %v1110_v2 = vld [vmem:[%s1502_s0 + $0xa8] sm:$0xff]   ;;  %v1111_v16 = vld [vmem:[%s1502_s0 + $0xb0] sm:$0xff]  }
  0x22   :  { %v309_v21 = vmax.f32 %v245_v14, 0.0  ;;  %v868_v24 = vunpack.c.l.bf16 %v1105_v12  ;;  %v248_v27 = vadd.f32 %v1192_v7, %v177_v19  ;;  %v249_v28 = vadd.f32 %v1192_v7, %v178_v20 }
  0x23   :  { %v310_v25 = vmax.f32 %v246_v17, 0.0  ;;  %v311_v26 = vmax.f32 %v247_v18, 0.0  ;;  %v180_v31 = vmul.f32 %v865_v22, %v1178_v1  ;;  %v250_v32 = vadd.f32 %v1192_v7, %v179_v23 }
  0x24   :  { %v993_v30 = vpack.c.bf16 %v309_v21, %v308_v15  ;;  %v869_v33 = vunpack.c.h.bf16 %v1105_v12  ;;  %v312_v36 = vmax.f32 %v248_v27, 0.0  ;;  %v313_v37 = vmax.f32 %v249_v28, 0.0  ;;  %v1112_v21 = vld [vmem:[%s1502_s0 + $0xb8] sm:$0xff]  }
  0x25   :  { %v998_v35 = vpack.c.bf16 %v311_v26, %v310_v25  ;;  %v181_v38 = vmul.f32 %v868_v24, %v1178_v1  ;;  %v251_v39 = vadd.f32 %v1192_v7, %v180_v31  ;;  %v314_v40 = vmax.f32 %v250_v32, 0.0 }
  0x26   :  { %1132 = vst [vmem:[%s1505_s3 + $0x60] sm:$0xff] %v993_v30   ;;  %v182_v41 = vmul.f32 %v869_v33, %v1178_v1  ;;  %v872_v42 = vunpack.c.l.bf16 %v1106_v29  ;;  %v1003_v44 = vpack.c.bf16 %v313_v37, %v312_v36  ;;  %v873_v46 = vunpack.c.h.bf16 %v1106_v29 }
  0x27   :  { %1133 = vst [vmem:[%s1505_s3 + $0x68] sm:$0xff] %v998_v35   ;;  %v252_v45 = vadd.f32 %v1192_v7, %v181_v38  ;;  %v876_v47 = vunpack.c.l.bf16 %v1107_v34  ;;  %v315_v48 = vmax.f32 %v251_v39, 0.0  ;;  %v877_v51 = vunpack.c.h.bf16 %v1107_v34  ;;  %v1113_v34 = vld [vmem:[%s1502_s0 + $0xc0] sm:$0xff]  }
  0x28   :  { %v253_v49 = vadd.f32 %v1192_v7, %v182_v41  ;;  %v183_v50 = vmul.f32 %v872_v42, %v1178_v1  ;;  %1134 = vst [vmem:[%s1505_s3 + $0x70] sm:$0xff] %v1003_v44   ;;  %v184_v53 = vmul.f32 %v873_v46, %v1178_v1  ;;  %v880_v55 = vunpack.c.l.bf16 %v1108_v43 }
  0x29   :  { %v316_v52 = vmax.f32 %v252_v45, 0.0  ;;  %v185_v54 = vmul.f32 %v876_v47, %v1178_v1  ;;  %v1008_v57 = vpack.c.bf16 %v315_v48, %v314_v40  ;;  %v186_v60 = vmul.f32 %v877_v51, %v1178_v1  ;;  %v1114_v47 = vld [vmem:[%s1502_s0 + $0xc8] sm:$0xff]  }
  0x2a   :  { %v317_v58 = vmax.f32 %v253_v49, 0.0  ;;  %v254_v59 = vadd.f32 %v1192_v7, %v183_v50  ;;  %v255_v61 = vadd.f32 %v1192_v7, %v184_v53  ;;  %v881_v63 = vunpack.c.h.bf16 %v1108_v43 }
  0x2b   :  { %v256_v62 = vadd.f32 %v1192_v7, %v185_v54  ;;  %v187_v0 = vmul.f32 %v880_v55, %v1178_v1  ;;  %1135 = vst [vmem:[%s1505_s3 + $0x78] sm:$0xff] %v1008_v57   ;;  %v257_v5 = vadd.f32 %v1192_v7, %v186_v60  ;;  %v884_v6 = vunpack.c.l.bf16 %v1109_v56 }
  0x2c   :  { %v1013_v3 = vpack.c.bf16 %v317_v58, %v316_v52  ;;  %v318_v4 = vmax.f32 %v254_v59, 0.0  ;;  %v319_v8 = vmax.f32 %v255_v61, 0.0  ;;  %v188_v10 = vmul.f32 %v881_v63, %v1178_v1  ;;  %v1115_v52 = vld [vmem:[%s1502_s0 + $0xd0] sm:$0xff]   ;;  %v1116_v61 = vld [vmem:[%s1502_s0 + $0xd8] sm:$0xff]  }
  0x2d   :  { %v320_v9 = vmax.f32 %v256_v62, 0.0  ;;  %v258_v11 = vadd.f32 %v1192_v7, %v187_v0  ;;  %v321_v12 = vmax.f32 %v257_v5, 0.0  ;;  %v885_v13 = vunpack.c.h.bf16 %v1109_v56 }
  0x2e   :  { %1136 = vst [vmem:[%s1505_s3 + $0x80] sm:$0xff] %v1013_v3   ;;  %v189_v14 = vmul.f32 %v884_v6, %v1178_v1  ;;  %v888_v15 = vunpack.c.l.bf16 %v1110_v2  ;;  %v1018_v17 = vpack.c.bf16 %v319_v8, %v318_v4  ;;  %v259_v18 = vadd.f32 %v1192_v7, %v188_v10 }
  0x2f   :  { %v322_v19 = vmax.f32 %v258_v11, 0.0  ;;  %v889_v20 = vunpack.c.h.bf16 %v1110_v2  ;;  %v1023_v22 = vpack.c.bf16 %v321_v12, %v320_v9  ;;  %v190_v23 = vmul.f32 %v885_v13, %v1178_v1  ;;  %v1117_v12 = vld [vmem:[%s1502_s0 + $0xe0] sm:$0xff]  }
  0x30   :  { %v260_v24 = vadd.f32 %v1192_v7, %v189_v14  ;;  %v191_v25 = vmul.f32 %v888_v15, %v1178_v1  ;;  %1137 = vst [vmem:[%s1505_s3 + $0x88] sm:$0xff] %v1018_v17   ;;  %v323_v26 = vmax.f32 %v259_v18, 0.0  ;;  %v892_v28 = vunpack.c.l.bf16 %v1111_v16 }
  0x31   :  { %v192_v27 = vmul.f32 %v889_v20, %v1178_v1  ;;  %v893_v29 = vunpack.c.h.bf16 %v1111_v16  ;;  %1138 = vst [vmem:[%s1505_s3 + $0x90] sm:$0xff] %v1023_v22   ;;  %v261_v30 = vadd.f32 %v1192_v7, %v190_v23  ;;  %v896_v33 = vunpack.c.l.bf16 %v1112_v21 }
  0x32   :  { %v324_v31 = vmax.f32 %v260_v24, 0.0  ;;  %v262_v32 = vadd.f32 %v1192_v7, %v191_v25  ;;  %v1028_v35 = vpack.c.bf16 %v323_v26, %v322_v19  ;;  %v193_v37 = vmul.f32 %v892_v28, %v1178_v1 }
  0x33   :  { %v263_v36 = vadd.f32 %v1192_v7, %v192_v27  ;;  %v194_v38 = vmul.f32 %v893_v29, %v1178_v1  ;;  %v325_v39 = vmax.f32 %v261_v30, 0.0  ;;  %v897_v41 = vunpack.c.h.bf16 %v1112_v21  ;;  %v1118_v21 = vld [vmem:[%s1502_s0 + $0xe8] sm:$0xff]  }
  0x34   :  { %v326_v40 = vmax.f32 %v262_v32, 0.0  ;;  %v195_v42 = vmul.f32 %v896_v33, %v1178_v1  ;;  %1139 = vst [vmem:[%s1505_s3 + $0x98] sm:$0xff] %v1028_v35   ;;  %v264_v44 = vadd.f32 %v1192_v7, %v193_v37  ;;  %v900_v46 = vunpack.c.l.bf16 %v1113_v34 }
  0x35   :  { %v327_v43 = vmax.f32 %v263_v36, 0.0  ;;  %v265_v45 = vadd.f32 %v1192_v7, %v194_v38  ;;  %v1033_v48 = vpack.c.bf16 %v325_v39, %v324_v31  ;;  %v196_v49 = vmul.f32 %v897_v41, %v1178_v1  ;;  %v1120_v39 = vld [vmem:[%s1502_s0 + $0xf8] sm:$0xff]  }
  0x36   :  { %v266_v50 = vadd.f32 %v1192_v7, %v195_v42  ;;  %v901_v51 = vunpack.c.h.bf16 %v1113_v34  ;;  %v328_v54 = vmax.f32 %v264_v44, 0.0  ;;  %v197_v56 = vmul.f32 %v900_v46, %v1178_v1  ;;  %v1119_v34 = vld [vmem:[%s1502_s0 + $0xf0] sm:$0xff]  }
  0x37   :  { %v1038_v53 = vpack.c.bf16 %v327_v43, %v326_v40  ;;  %v329_v55 = vmax.f32 %v265_v45, 0.0  ;;  %1140 = vst [vmem:[%s1505_s3 + $0xa0] sm:$0xff] %v1033_v48   ;;  %v267_v57 = vadd.f32 %v1192_v7, %v196_v49  ;;  %v904_v60 = vunpack.c.l.bf16 %v1114_v47 }
  0x38   :  { %v330_v58 = vmax.f32 %v266_v50, 0.0  ;;  %v198_v59 = vmul.f32 %v901_v51, %v1178_v1  ;;  %v268_v63 = vadd.f32 %v1192_v7, %v197_v56  ;;  %v905_v0 = vunpack.c.h.bf16 %v1114_v47 }
  0x39   :  { %1141 = vst [vmem:[%s1505_s3 + $0xa8] sm:$0xff] %v1038_v53   ;;  %v1043_v62 = vpack.c.bf16 %v329_v55, %v328_v54  ;;  %v908_v2 = vunpack.c.l.bf16 %v1115_v52  ;;  %v331_v3 = vmax.f32 %v267_v57, 0.0  ;;  %v199_v5 = vmul.f32 %v904_v60, %v1178_v1 }
  0x3a   :  { %v269_v4 = vadd.f32 %v1192_v7, %v198_v59  ;;  %v909_v6 = vunpack.c.h.bf16 %v1115_v52  ;;  %v332_v8 = vmax.f32 %v268_v63, 0.0  ;;  %v200_v9 = vmul.f32 %v905_v0, %v1178_v1 }
  0x3b   :  { %1142 = vst [vmem:[%s1505_s3 + $0xb0] sm:$0xff] %v1043_v62   ;;  %v201_v10 = vmul.f32 %v908_v2, %v1178_v1  ;;  %v912_v11 = vunpack.c.l.bf16 %v1116_v61  ;;  %v1048_v13 = vpack.c.bf16 %v331_v3, %v330_v58  ;;  %v270_v15 = vadd.f32 %v1192_v7, %v199_v5 }
  0x3c   :  { %v333_v14 = vmax.f32 %v269_v4, 0.0  ;;  %v202_v16 = vmul.f32 %v909_v6, %v1178_v1  ;;  %v271_v17 = vadd.f32 %v1192_v7, %v200_v9  ;;  %v913_v19 = vunpack.c.h.bf16 %v1116_v61 }
  0x3d   :  { %v272_v18 = vadd.f32 %v1192_v7, %v201_v10  ;;  %v203_v20 = vmul.f32 %v912_v11, %v1178_v1  ;;  %1143 = vst [vmem:[%s1505_s3 + $0xb8] sm:$0xff] %v1048_v13   ;;  %v334_v23 = vmax.f32 %v270_v15, 0.0  ;;  %v916_v25 = vunpack.c.l.bf16 %v1117_v12 }
  0x3e   :  { %v1053_v22 = vpack.c.bf16 %v333_v14, %v332_v8  ;;  %v273_v24 = vadd.f32 %v1192_v7, %v202_v16  ;;  %v335_v26 = vmax.f32 %v271_v17, 0.0  ;;  %v204_v28 = vmul.f32 %v913_v19, %v1178_v1 }
  0x3f   :  { %v336_v27 = vmax.f32 %v272_v18, 0.0  ;;  %v274_v29 = vadd.f32 %v1192_v7, %v203_v20  ;;  %v917_v31 = vunpack.c.h.bf16 %v1117_v12  ;;  %v205_v32 = vmul.f32 %v916_v25, %v1178_v1 }
  0x40   :  { %1144 = vst [vmem:[%s1505_s3 + $0xc0] sm:$0xff] %v1053_v22   ;;  %v337_v30 = vmax.f32 %v273_v24, 0.0  ;;  %v920_v33 = vunpack.c.l.bf16 %v1118_v21  ;;  %v1058_v35 = vpack.c.bf16 %v335_v26, %v334_v23  ;;  %v275_v36 = vadd.f32 %v1192_v7, %v204_v28 }
  0x41   :  { %v338_v37 = vmax.f32 %v274_v29, 0.0  ;;  %v921_v38 = vunpack.c.h.bf16 %v1118_v21  ;;  %v206_v41 = vmul.f32 %v917_v31, %v1178_v1  ;;  %v276_v42 = vadd.f32 %v1192_v7, %v205_v32 }
  0x42   :  { %v1063_v40 = vpack.c.bf16 %v337_v30, %v336_v27  ;;  %v207_v43 = vmul.f32 %v920_v33, %v1178_v1  ;;  %1145 = vst [vmem:[%s1505_s3 + $0xc8] sm:$0xff] %v1058_v35   ;;  %v339_v44 = vmax.f32 %v275_v36, 0.0  ;;  %v924_v46 = vunpack.c.l.bf16 %v1119_v34 }
  0x43   :  { %v208_v45 = vmul.f32 %v921_v38, %v1178_v1  ;;  %v925_v47 = vunpack.c.h.bf16 %v1119_v34  ;;  %v277_v48 = vadd.f32 %v1192_v7, %v206_v41  ;;  %v340_v49 = vmax.f32 %v276_v42, 0.0 }
  0x44   :  { %1146 = vst [vmem:[%s1505_s3 + $0xd0] sm:$0xff] %v1063_v40   ;;  %v278_v50 = vadd.f32 %v1192_v7, %v207_v43  ;;  %v928_v51 = vunpack.c.l.bf16 %v1120_v39  ;;  %v1068_v52 = vpack.c.bf16 %v339_v44, %v338_v37  ;;  %v209_v54 = vmul.f32 %v924_v46, %v1178_v1 }
  0x45   :  { %v279_v53 = vadd.f32 %v1192_v7, %v208_v45  ;;  %v210_v55 = vmul.f32 %v925_v47, %v1178_v1  ;;  %v341_v56 = vmax.f32 %v277_v48, 0.0  ;;  %v929_v58 = vunpack.c.h.bf16 %v1120_v39 }
  0x46   :  { %v342_v57 = vmax.f32 %v278_v50, 0.0  ;;  %v211_v59 = vmul.f32 %v928_v51, %v1178_v1  ;;  %1147 = vst [vmem:[%s1505_s3 + $0xd8] sm:$0xff] %v1068_v52   ;;  %v280_v61 = vadd.f32 %v1192_v7, %v209_v54 }
  0x47   :  { %v343_v60 = vmax.f32 %v279_v53, 0.0  ;;  %v281_v62 = vadd.f32 %v1192_v7, %v210_v55  ;;  %v1073_v63 = vpack.c.bf16 %v341_v56, %v340_v49  ;;  %v212_v0 = vmul.f32 %v929_v58, %v1178_v1 }
  0x48   :  { %v282_v2 = vadd.f32 %v1192_v7, %v211_v59  ;;  %v344_v4 = vmax.f32 %v280_v61, 0.0 }
  0x49   :  { %v1078_v3 = vpack.c.bf16 %v343_v60, %v342_v57  ;;  %v345_v5 = vmax.f32 %v281_v62, 0.0  ;;  %1148 = vst [vmem:[%s1505_s3 + $0xe0] sm:$0xff] %v1073_v63   ;;  %v283_v6 = vadd.f32 %v1192_v7, %v212_v0 }
  0x4a   :  { %v346_v8 = vmax.f32 %v282_v2, 0.0 }
  0x4b   :  { %1149 = vst [vmem:[%s1505_s3 + $0xe8] sm:$0xff] %v1078_v3   ;;  %v1083_v9 = vpack.c.bf16 %v345_v5, %v344_v4  ;;  %v347_v10 = vmax.f32 %v283_v6, 0.0 }
  0x4d   :  { %1150 = vst [vmem:[%s1505_s3 + $0xf0] sm:$0xff] %v1083_v9   ;;  %v1088_v1 = vpack.c.bf16 %v347_v10, %v346_v8 }
  0x4f   :  { %1151 = vst [vmem:[%s1505_s3 + $0xf8] sm:$0xff] %v1088_v1  }

// kernel: tile.13
= control target key start
LH: loop header
LB: loop body
LE: loop exit
PB: predicated region body
PF: predicated region fallthrough
CT: control target
= control target key end

     0   :  { %s22_s0 = inlined_call_operand.vmem [shape: f32[128], index: 0, kind: input, shape index: {}]   ;;  %s23_s1 = inlined_call_operand.vmem [shape: f32[4,128], index: 1, kind: output, shape index: {}]  }
   0x1   :  { %v4_v0 = vld [vmem:[%s22_s0] ss:$0 sm:$0xff] }
   0x2   :  { %5 = vst [vmem:[%s23_s1] sm:$0xf] %v4_v0 }

// kernel: deconv_layer_forward.9
= control target key start
LH: loop header
LB: loop body
LE: loop exit
PB: predicated region body
PF: predicated region fallthrough
CT: control target
= control target key end

     0   :  { %s1205_s12 = smov 0   ;;  %s1207_s13 = smov 0   ;;  %s1742_s0 = inlined_call_operand.vmem [shape: bf16[2,16,16,512], index: 0, kind: input, shape index: {}]   ;;  %s1743_s1 = inlined_call_operand.vmem [shape: f32[1,1,1,512], index: 1, kind: input, shape index: {}]   ;;  %s1744_s2 = inlined_call_operand.vmem [shape: f32[1,1,1,512], index: 2, kind: input, shape index: {}]   ;;  %s1745_s3 = inlined_call_operand.vmem [shape: f32[2,16,2,16,256], index: 3, kind: output, shape index: {}]  }
   0x1   :  { %s1209_s14 = smov 0  }
   0x2 LB: > { %s25_s15 = sadd.s32 1, %s1179_s13  ;;  %p1064_p0 = scmp.ge.s32.totalorder %s1183_s14, 1  ;;  %s1183_s14 = sphi %s1209_s14, %s13_s14   ;;  %s1179_s13 = sphi %s1207_s13, %s1747_s13   ;;  %s1175_s12 = sphi %s1205_s12, %s1746_s12  }
   0x3   : > { %p27_p1 = scmp.ge.s32.totalorder %s25_s15, 2  ;;  %p159_p2 = scmp.lt.s32.totalorder %s1183_s14, 3 }
   0x5   : > { %s1749_s15 = smov (%p27_p1, %s25_s15), 0  ;;  %p160_p3 = pnand %p1064_p0, %p159_p2 }
   0x6   : > { %p194_p4 = scmp.lt.s32.totalorder (!%p160_p3), %s1175_s12, 1  ;;  %v409_v0 = vlaneseq (!%p160_p3)  ;;  %v1230_v2 = vld [vmem:[%s1743_s1] sm:$0xf] (!%p160_p3) }
   0x7   : > { %163 = sbr.rel (%p160_p3) target bundleno = 151 (0x97), region = 32  ;;  %v1235_v3 = vld [vmem:[%s1744_s2] sm:$0xf] (!%p160_p3) }
   0x8   : > { %v1225_v1 = vshrl.u32 (!%p160_p3), %v409_v0, 7 }
   0xa   : > { %v411_v4 = vsub.s32 (!%p160_p3), 0, %v1225_v1  ;;  %v415_v5 = vsub.s32 (!%p160_p3), 1, %v1225_v1  ;;  %v419_v6 = vsub.s32 (!%p160_p3), 2, %v1225_v1  ;;  %v423_v7 = vsub.s32 (!%p160_p3), 3, %v1225_v1 }
   0xc   : > { %v1249_v9 = vrot.slane (!%p160_p3), %v1230_v2, %v411_v4  ;;  %v1252_v10 = vrot.slane (!%p160_p3), %v1235_v3, %v411_v4  ;;  %v1255_v11 = vrot.slane (!%p160_p3), %v1230_v2, %v415_v5  ;;  %v1258_v12 = vrot.slane (!%p160_p3), %v1235_v3, %v415_v5 }
   0xe   : > { %s1751_s12 = smov (!%p194_p4, %s1175_s12), 1 }
   0xf   : > { %s1135_s20 = sshll.u32 %s1751_s12, 9  ;;  %s1136_s24 = sshll.u32 %s1751_s12, 10 }
  0x10   : > { %s1243_s23 = scalar_lea.vmem %s1742_s0, %s1135_s20  ;;  %s1279_s27 = scalar_lea.vmem %s1745_s3, %s1136_s24 }
  0x11   : > { %v215_v8 = vld [vmem:[%s1243_s23] sm:$0xff]  ;;  %v217_v13 = vld [vmem:[%s1243_s23 + $0x10] sm:$0xff] }
  0x12   : > { %v219_v14 = vld [vmem:[%s1243_s23 + $0x20] sm:$0xff]  ;;  %v279_v15 = vunpack.c.l.bf16 %v215_v8  ;;  %v280_v16 = vunpack.c.h.bf16 %v215_v8  ;;  %v283_v17 = vunpack.c.l.bf16 %v217_v13  ;;  %v284_v18 = vunpack.c.h.bf16 %v217_v13  ;;  %v221_v19 = vld [vmem:[%s1243_s23 + $0x30] sm:$0xff] }
  0x13   : > { %v287_v20 = vunpack.c.l.bf16 %v219_v14  ;;  %v288_v21 = vunpack.c.h.bf16 %v219_v14  ;;  %v291_v22 = vunpack.c.l.bf16 %v221_v19  ;;  %v292_v23 = vunpack.c.h.bf16 %v221_v19  ;;  %v223_v40 = vld [vmem:[%s1243_s23 + $0x40] sm:$0xff]  ;;  %v225_v41 = vld [vmem:[%s1243_s23 + $0x50] sm:$0xff] }
  0x14   : > { %v429_v24 = vmul.f32 %v1249_v9, %v279_v15  ;;  %v430_v25 = vmul.f32 %v1255_v11, %v280_v16  ;;  %v433_v26 = vmul.f32 %v1249_v9, %v283_v17  ;;  %v434_v27 = vmul.f32 %v1255_v11, %v284_v18  ;;  %v227_v46 = vld [vmem:[%s1243_s23 + $0x60] sm:$0xff]  ;;  %v229_v47 = vld [vmem:[%s1243_s23 + $0x70] sm:$0xff] }
  0x15   : > { %v437_v28 = vmul.f32 %v1249_v9, %v287_v20  ;;  %v438_v29 = vmul.f32 %v1255_v11, %v288_v21  ;;  %v441_v30 = vmul.f32 %v1249_v9, %v291_v22  ;;  %v442_v31 = vmul.f32 %v1255_v11, %v292_v23  ;;  %v231_v21 = vld [vmem:[%s1243_s23 + $0x80] sm:$0xff]  ;;  %v233_v22 = vld [vmem:[%s1243_s23 + $0x90] sm:$0xff] }
  0x16   : > { %v579_v32 = vadd.f32 %v1252_v10, %v429_v24  ;;  %v580_v33 = vadd.f32 %v1258_v12, %v430_v25  ;;  %v583_v34 = vadd.f32 %v1252_v10, %v433_v26  ;;  %v584_v35 = vadd.f32 %v1258_v12, %v434_v27  ;;  %v235_v27 = vld [vmem:[%s1243_s23 + $0xa0] sm:$0xff] }
  0x17   : > { %v587_v36 = vadd.f32 %v1252_v10, %v437_v28  ;;  %v588_v37 = vadd.f32 %v1258_v12, %v438_v29  ;;  %v591_v38 = vadd.f32 %v1252_v10, %v441_v30  ;;  %v592_v39 = vadd.f32 %v1258_v12, %v442_v31  ;;  %v237_v28 = vld [vmem:[%s1243_s23 + $0xb0] sm:$0xff] }
  0x18   : > { %v707_v42 = vmax.f32 %v579_v32, 0.0  ;;  %v708_v43 = vmax.f32 %v580_v33, 0.0  ;;  %v711_v44 = vmax.f32 %v583_v34, 0.0  ;;  %v712_v45 = vmax.f32 %v584_v35, 0.0 }
  0x19   : > { %v715_v48 = vmax.f32 %v587_v36, 0.0  ;;  %v716_v49 = vmax.f32 %v588_v37, 0.0  ;;  %v719_v50 = vmax.f32 %v591_v38, 0.0  ;;  %v720_v51 = vmax.f32 %v592_v39, 0.0 }
  0x1a   : > { %835 = vst [vmem:[%s1279_s27] sm:$0xff] %v707_v42  ;;  %836 = vst [vmem:[%s1279_s27 + $0x8] sm:$0xff] %v708_v43  ;;  %v295_v52 = vunpack.c.l.bf16 %v223_v40  ;;  %v296_v53 = vunpack.c.h.bf16 %v223_v40  ;;  %v299_v54 = vunpack.c.l.bf16 %v225_v41  ;;  %v300_v55 = vunpack.c.h.bf16 %v225_v41 }
  0x1b   : > { %837 = vst [vmem:[%s1279_s27 + $0x10] sm:$0xff] %v711_v44  ;;  %838 = vst [vmem:[%s1279_s27 + $0x18] sm:$0xff] %v712_v45  ;;  %v303_v56 = vunpack.c.l.bf16 %v227_v46  ;;  %v304_v57 = vunpack.c.h.bf16 %v227_v46  ;;  %v307_v58 = vunpack.c.l.bf16 %v229_v47  ;;  %v308_v59 = vunpack.c.h.bf16 %v229_v47 }
  0x1c   : > { %839 = vst [vmem:[%s1279_s27 + $0x40] sm:$0xff] %v715_v48  ;;  %840 = vst [vmem:[%s1279_s27 + $0x48] sm:$0xff] %v716_v49  ;;  %v445_v60 = vmul.f32 %v1249_v9, %v295_v52  ;;  %v446_v61 = vmul.f32 %v1255_v11, %v296_v53  ;;  %v449_v62 = vmul.f32 %v1249_v9, %v299_v54  ;;  %v311_v33 = vunpack.c.l.bf16 %v231_v21 }
  0x1d   : > { %841 = vst [vmem:[%s1279_s27 + $0x50] sm:$0xff] %v719_v50  ;;  %842 = vst [vmem:[%s1279_s27 + $0x58] sm:$0xff] %v720_v51  ;;  %v450_v63 = vmul.f32 %v1255_v11, %v300_v55  ;;  %v453_v0 = vmul.f32 %v1249_v9, %v303_v56  ;;  %v454_v4 = vmul.f32 %v1255_v11, %v304_v57  ;;  %v312_v34 = vunpack.c.h.bf16 %v231_v21  ;;  %v239_v57 = vld [vmem:[%s1243_s23 + $0xc0] sm:$0xff] }
  0x1e   : > { %v457_v5 = vmul.f32 %v1249_v9, %v307_v58  ;;  %v458_v8 = vmul.f32 %v1255_v11, %v308_v59  ;;  %v595_v13 = vadd.f32 %v1252_v10, %v445_v60  ;;  %v596_v14 = vadd.f32 %v1258_v12, %v446_v61  ;;  %v241_v58 = vld [vmem:[%s1243_s23 + $0xd0] sm:$0xff] }
  0x1f   : > { %v599_v15 = vadd.f32 %v1252_v10, %v449_v62  ;;  %v600_v16 = vadd.f32 %v1258_v12, %v450_v63  ;;  %v603_v17 = vadd.f32 %v1252_v10, %v453_v0  ;;  %v604_v18 = vadd.f32 %v1258_v12, %v454_v4  ;;  %v243_v63 = vld [vmem:[%s1243_s23 + $0xe0] sm:$0xff]  ;;  %v245_v0 = vld [vmem:[%s1243_s23 + $0xf0] sm:$0xff] }
  0x20   : > { %v607_v19 = vadd.f32 %v1252_v10, %v457_v5  ;;  %v608_v20 = vadd.f32 %v1258_v12, %v458_v8  ;;  %v723_v23 = vmax.f32 %v595_v13, 0.0  ;;  %v724_v24 = vmax.f32 %v596_v14, 0.0 }
  0x21   : > { %v727_v25 = vmax.f32 %v599_v15, 0.0  ;;  %v728_v26 = vmax.f32 %v600_v16, 0.0  ;;  %v731_v29 = vmax.f32 %v603_v17, 0.0  ;;  %v732_v30 = vmax.f32 %v604_v18, 0.0 }
  0x22   : > { %v735_v31 = vmax.f32 %v607_v19, 0.0  ;;  %v736_v32 = vmax.f32 %v608_v20, 0.0  ;;  %843 = vst [vmem:[%s1279_s27 + $0x80] sm:$0xff] %v723_v23  ;;  %844 = vst [vmem:[%s1279_s27 + $0x88] sm:$0xff] %v724_v24  ;;  %v315_v35 = vunpack.c.l.bf16 %v233_v22  ;;  %v316_v36 = vunpack.c.h.bf16 %v233_v22 }
  0x23   : > { %845 = vst [vmem:[%s1279_s27 + $0x90] sm:$0xff] %v727_v25  ;;  %846 = vst [vmem:[%s1279_s27 + $0x98] sm:$0xff] %v728_v26  ;;  %v319_v37 = vunpack.c.l.bf16 %v235_v27  ;;  %v320_v38 = vunpack.c.h.bf16 %v235_v27  ;;  %v323_v39 = vunpack.c.l.bf16 %v237_v28  ;;  %v324_v40 = vunpack.c.h.bf16 %v237_v28 }
  0x24   : > { %847 = vst [vmem:[%s1279_s27 + $0xc0] sm:$0xff] %v731_v29  ;;  %848 = vst [vmem:[%s1279_s27 + $0xc8] sm:$0xff] %v732_v30  ;;  %v461_v41 = vmul.f32 %v1249_v9, %v311_v33  ;;  %v462_v42 = vmul.f32 %v1255_v11, %v312_v34  ;;  %v465_v43 = vmul.f32 %v1249_v9, %v315_v35  ;;  %v327_v14 = vunpack.c.l.bf16 %v239_v57 }
  0x25   : > { %849 = vst [vmem:[%s1279_s27 + $0xd0] sm:$0xff] %v735_v31  ;;  %850 = vst [vmem:[%s1279_s27 + $0xd8] sm:$0xff] %v736_v32  ;;  %v466_v44 = vmul.f32 %v1255_v11, %v316_v36  ;;  %v469_v45 = vmul.f32 %v1249_v9, %v319_v37  ;;  %v470_v46 = vmul.f32 %v1255_v11, %v320_v38  ;;  %v328_v15 = vunpack.c.h.bf16 %v239_v57  ;;  %v247_v38 = vld [vmem:[%s1243_s23 + $0x100] sm:$0xff] }
  0x26   : > { %v473_v47 = vmul.f32 %v1249_v9, %v323_v39  ;;  %v474_v48 = vmul.f32 %v1255_v11, %v324_v40  ;;  %v611_v49 = vadd.f32 %v1252_v10, %v461_v41  ;;  %v612_v50 = vadd.f32 %v1258_v12, %v462_v42  ;;  %v249_v39 = vld [vmem:[%s1243_s23 + $0x110] sm:$0xff] }
  0x27   : > { %v615_v51 = vadd.f32 %v1252_v10, %v465_v43  ;;  %v616_v52 = vadd.f32 %v1258_v12, %v466_v44  ;;  %v619_v53 = vadd.f32 %v1252_v10, %v469_v45  ;;  %v620_v54 = vadd.f32 %v1258_v12, %v470_v46  ;;  %v251_v44 = vld [vmem:[%s1243_s23 + $0x120] sm:$0xff]  ;;  %v253_v45 = vld [vmem:[%s1243_s23 + $0x130] sm:$0xff] }
  0x28   : > { %v623_v55 = vadd.f32 %v1252_v10, %v473_v47  ;;  %v624_v56 = vadd.f32 %v1258_v12, %v474_v48  ;;  %v739_v59 = vmax.f32 %v611_v49, 0.0  ;;  %v740_v60 = vmax.f32 %v612_v50, 0.0 }
  0x29   : > { %v743_v61 = vmax.f32 %v615_v51, 0.0  ;;  %v744_v62 = vmax.f32 %v616_v52, 0.0  ;;  %v747_v4 = vmax.f32 %v619_v53, 0.0  ;;  %v748_v5 = vmax.f32 %v620_v54, 0.0 }
  0x2a   : > { %v751_v8 = vmax.f32 %v623_v55, 0.0  ;;  %v752_v13 = vmax.f32 %v624_v56, 0.0  ;;  %851 = vst [vmem:[%s1279_s27 + $0x100] sm:$0xff] %v739_v59  ;;  %852 = vst [vmem:[%s1279_s27 + $0x108] sm:$0xff] %v740_v60  ;;  %v331_v16 = vunpack.c.l.bf16 %v241_v58  ;;  %v332_v17 = vunpack.c.h.bf16 %v241_v58 }
  0x2b   : > { %853 = vst [vmem:[%s1279_s27 + $0x110] sm:$0xff] %v743_v61  ;;  %854 = vst [vmem:[%s1279_s27 + $0x118] sm:$0xff] %v744_v62  ;;  %v335_v18 = vunpack.c.l.bf16 %v243_v63  ;;  %v336_v19 = vunpack.c.h.bf16 %v243_v63  ;;  %v339_v20 = vunpack.c.l.bf16 %v245_v0  ;;  %v340_v21 = vunpack.c.h.bf16 %v245_v0 }
  0x2c   : > { %855 = vst [vmem:[%s1279_s27 + $0x140] sm:$0xff] %v747_v4  ;;  %856 = vst [vmem:[%s1279_s27 + $0x148] sm:$0xff] %v748_v5  ;;  %v477_v22 = vmul.f32 %v1249_v9, %v327_v14  ;;  %v478_v23 = vmul.f32 %v1255_v11, %v328_v15  ;;  %v481_v24 = vmul.f32 %v1249_v9, %v331_v16  ;;  %v343_v50 = vunpack.c.l.bf16 %v247_v38 }
  0x2d   : > { %857 = vst [vmem:[%s1279_s27 + $0x150] sm:$0xff] %v751_v8  ;;  %858 = vst [vmem:[%s1279_s27 + $0x158] sm:$0xff] %v752_v13  ;;  %v482_v25 = vmul.f32 %v1255_v11, %v332_v17  ;;  %v485_v26 = vmul.f32 %v1249_v9, %v335_v18  ;;  %v486_v27 = vmul.f32 %v1255_v11, %v336_v19  ;;  %v344_v51 = vunpack.c.h.bf16 %v247_v38  ;;  %v255_v19 = vld [vmem:[%s1243_s23 + $0x140] sm:$0xff] }
  0x2e   : > { %v489_v28 = vmul.f32 %v1249_v9, %v339_v20  ;;  %v490_v29 = vmul.f32 %v1255_v11, %v340_v21  ;;  %v627_v30 = vadd.f32 %v1252_v10, %v477_v22  ;;  %v628_v31 = vadd.f32 %v1258_v12, %v478_v23  ;;  %v257_v20 = vld [vmem:[%s1243_s23 + $0x150] sm:$0xff] }
  0x2f   : > { %v631_v32 = vadd.f32 %v1252_v10, %v481_v24  ;;  %v632_v33 = vadd.f32 %v1258_v12, %v482_v25  ;;  %v635_v34 = vadd.f32 %v1252_v10, %v485_v26  ;;  %v636_v35 = vadd.f32 %v1258_v12, %v486_v27  ;;  %v259_v25 = vld [vmem:[%s1243_s23 + $0x160] sm:$0xff]  ;;  %v261_v26 = vld [vmem:[%s1243_s23 + $0x170] sm:$0xff] }
  0x30   : > { %v639_v36 = vadd.f32 %v1252_v10, %v489_v28  ;;  %v640_v37 = vadd.f32 %v1258_v12, %v490_v29  ;;  %v755_v40 = vmax.f32 %v627_v30, 0.0  ;;  %v756_v41 = vmax.f32 %v628_v31, 0.0 }
  0x31   : > { %v759_v42 = vmax.f32 %v631_v32, 0.0  ;;  %v760_v43 = vmax.f32 %v632_v33, 0.0  ;;  %v763_v46 = vmax.f32 %v635_v34, 0.0  ;;  %v764_v47 = vmax.f32 %v636_v35, 0.0 }
  0x32   : > { %v767_v48 = vmax.f32 %v639_v36, 0.0  ;;  %v768_v49 = vmax.f32 %v640_v37, 0.0  ;;  %859 = vst [vmem:[%s1279_s27 + $0x180] sm:$0xff] %v755_v40  ;;  %860 = vst [vmem:[%s1279_s27 + $0x188] sm:$0xff] %v756_v41  ;;  %v347_v52 = vunpack.c.l.bf16 %v249_v39  ;;  %v348_v53 = vunpack.c.h.bf16 %v249_v39 }
  0x33   : > { %861 = vst [vmem:[%s1279_s27 + $0x190] sm:$0xff] %v759_v42  ;;  %862 = vst [vmem:[%s1279_s27 + $0x198] sm:$0xff] %v760_v43  ;;  %v351_v54 = vunpack.c.l.bf16 %v251_v44  ;;  %v352_v55 = vunpack.c.h.bf16 %v251_v44  ;;  %v355_v56 = vunpack.c.l.bf16 %v253_v45  ;;  %v356_v57 = vunpack.c.h.bf16 %v253_v45 }
  0x34   : > { %863 = vst [vmem:[%s1279_s27 + $0x1c0] sm:$0xff] %v763_v46  ;;  %864 = vst [vmem:[%s1279_s27 + $0x1c8] sm:$0xff] %v764_v47  ;;  %v493_v58 = vmul.f32 %v1249_v9, %v343_v50  ;;  %v494_v59 = vmul.f32 %v1255_v11, %v344_v51  ;;  %v497_v60 = vmul.f32 %v1249_v9, %v347_v52  ;;  %v359_v31 = vunpack.c.l.bf16 %v255_v19 }
  0x35   : > { %865 = vst [vmem:[%s1279_s27 + $0x1d0] sm:$0xff] %v767_v48  ;;  %866 = vst [vmem:[%s1279_s27 + $0x1d8] sm:$0xff] %v768_v49  ;;  %v498_v61 = vmul.f32 %v1255_v11, %v348_v53  ;;  %v501_v62 = vmul.f32 %v1249_v9, %v351_v54  ;;  %v502_v63 = vmul.f32 %v1255_v11, %v352_v55  ;;  %v360_v32 = vunpack.c.h.bf16 %v255_v19  ;;  %v263_v55 = vld [vmem:[%s1243_s23 + $0x180] sm:$0xff] }
  0x36   : > { %v505_v0 = vmul.f32 %v1249_v9, %v355_v56  ;;  %v506_v4 = vmul.f32 %v1255_v11, %v356_v57  ;;  %v643_v5 = vadd.f32 %v1252_v10, %v493_v58  ;;  %v644_v8 = vadd.f32 %v1258_v12, %v494_v59  ;;  %v265_v56 = vld [vmem:[%s1243_s23 + $0x190] sm:$0xff] }
  0x37   : > { %v647_v13 = vadd.f32 %v1252_v10, %v497_v60  ;;  %v648_v14 = vadd.f32 %v1258_v12, %v498_v61  ;;  %v651_v15 = vadd.f32 %v1252_v10, %v501_v62  ;;  %v652_v16 = vadd.f32 %v1258_v12, %v502_v63  ;;  %v267_v61 = vld [vmem:[%s1243_s23 + $0x1a0] sm:$0xff]  ;;  %v269_v62 = vld [vmem:[%s1243_s23 + $0x1b0] sm:$0xff] }
  0x38   : > { %v655_v17 = vadd.f32 %v1252_v10, %v505_v0  ;;  %v656_v18 = vadd.f32 %v1258_v12, %v506_v4  ;;  %v771_v21 = vmax.f32 %v643_v5, 0.0  ;;  %v772_v22 = vmax.f32 %v644_v8, 0.0 }
  0x39   : > { %v775_v23 = vmax.f32 %v647_v13, 0.0  ;;  %v776_v24 = vmax.f32 %v648_v14, 0.0  ;;  %v779_v27 = vmax.f32 %v651_v15, 0.0  ;;  %v780_v28 = vmax.f32 %v652_v16, 0.0 }
  0x3a   : > { %v783_v29 = vmax.f32 %v655_v17, 0.0  ;;  %v784_v30 = vmax.f32 %v656_v18, 0.0  ;;  %867 = vst [vmem:[%s1279_s27 + $0x200] sm:$0xff] %v771_v21  ;;  %868 = vst [vmem:[%s1279_s27 + $0x208] sm:$0xff] %v772_v22  ;;  %v363_v33 = vunpack.c.l.bf16 %v257_v20  ;;  %v364_v34 = vunpack.c.h.bf16 %v257_v20 }
  0x3b   : > { %869 = vst [vmem:[%s1279_s27 + $0x210] sm:$0xff] %v775_v23  ;;  %870 = vst [vmem:[%s1279_s27 + $0x218] sm:$0xff] %v776_v24  ;;  %v367_v35 = vunpack.c.l.bf16 %v259_v25  ;;  %v368_v36 = vunpack.c.h.bf16 %v259_v25  ;;  %v371_v37 = vunpack.c.l.bf16 %v261_v26  ;;  %v372_v38 = vunpack.c.h.bf16 %v261_v26 }
  0x3c   : > { %871 = vst [vmem:[%s1279_s27 + $0x240] sm:$0xff] %v779_v27  ;;  %872 = vst [vmem:[%s1279_s27 + $0x248] sm:$0xff] %v780_v28  ;;  %v509_v39 = vmul.f32 %v1249_v9, %v359_v31  ;;  %v510_v40 = vmul.f32 %v1255_v11, %v360_v32  ;;  %v513_v41 = vmul.f32 %v1249_v9, %v363_v33  ;;  %v375_v8 = vunpack.c.l.bf16 %v263_v55 }
  0x3d   : > { %873 = vst [vmem:[%s1279_s27 + $0x250] sm:$0xff] %v783_v29  ;;  %874 = vst [vmem:[%s1279_s27 + $0x258] sm:$0xff] %v784_v30  ;;  %v514_v42 = vmul.f32 %v1255_v11, %v364_v34  ;;  %v517_v43 = vmul.f32 %v1249_v9, %v367_v35  ;;  %v518_v44 = vmul.f32 %v1255_v11, %v368_v36  ;;  %v376_v13 = vunpack.c.h.bf16 %v263_v55  ;;  %v271_v36 = vld [vmem:[%s1243_s23 + $0x1c0] sm:$0xff] }
  0x3e   : > { %v521_v45 = vmul.f32 %v1249_v9, %v371_v37  ;;  %v522_v46 = vmul.f32 %v1255_v11, %v372_v38  ;;  %v659_v47 = vadd.f32 %v1252_v10, %v509_v39  ;;  %v660_v48 = vadd.f32 %v1258_v12, %v510_v40  ;;  %v273_v37 = vld [vmem:[%s1243_s23 + $0x1d0] sm:$0xff] }
  0x3f   : > { %v663_v49 = vadd.f32 %v1252_v10, %v513_v41  ;;  %v664_v50 = vadd.f32 %v1258_v12, %v514_v42  ;;  %v667_v51 = vadd.f32 %v1252_v10, %v517_v43  ;;  %v668_v52 = vadd.f32 %v1258_v12, %v518_v44  ;;  %v275_v42 = vld [vmem:[%s1243_s23 + $0x1e0] sm:$0xff]  ;;  %v277_v43 = vld [vmem:[%s1243_s23 + $0x1f0] sm:$0xff] }
  0x40   : > { %v671_v53 = vadd.f32 %v1252_v10, %v521_v45  ;;  %v672_v54 = vadd.f32 %v1258_v12, %v522_v46  ;;  %v787_v57 = vmax.f32 %v659_v47, 0.0  ;;  %v788_v58 = vmax.f32 %v660_v48, 0.0 }
  0x41   : > { %v791_v59 = vmax.f32 %v663_v49, 0.0  ;;  %v792_v60 = vmax.f32 %v664_v50, 0.0  ;;  %v795_v63 = vmax.f32 %v667_v51, 0.0  ;;  %v796_v0 = vmax.f32 %v668_v52, 0.0 }
  0x42   : > { %v799_v4 = vmax.f32 %v671_v53, 0.0  ;;  %v800_v5 = vmax.f32 %v672_v54, 0.0  ;;  %875 = vst [vmem:[%s1279_s27 + $0x280] sm:$0xff] %v787_v57  ;;  %876 = vst [vmem:[%s1279_s27 + $0x288] sm:$0xff] %v788_v58  ;;  %v379_v14 = vunpack.c.l.bf16 %v265_v56  ;;  %v380_v15 = vunpack.c.h.bf16 %v265_v56 }
  0x43   : > { %877 = vst [vmem:[%s1279_s27 + $0x290] sm:$0xff] %v791_v59  ;;  %878 = vst [vmem:[%s1279_s27 + $0x298] sm:$0xff] %v792_v60  ;;  %v383_v16 = vunpack.c.l.bf16 %v267_v61  ;;  %v384_v17 = vunpack.c.h.bf16 %v267_v61  ;;  %v387_v18 = vunpack.c.l.bf16 %v269_v62  ;;  %v388_v19 = vunpack.c.h.bf16 %v269_v62 }
  0x44   : > { %879 = vst [vmem:[%s1279_s27 + $0x2c0] sm:$0xff] %v795_v63  ;;  %880 = vst [vmem:[%s1279_s27 + $0x2c8] sm:$0xff] %v796_v0  ;;  %v525_v20 = vmul.f32 %v1249_v9, %v375_v8  ;;  %v526_v21 = vmul.f32 %v1255_v11, %v376_v13  ;;  %v529_v22 = vmul.f32 %v1249_v9, %v379_v14  ;;  %v391_v48 = vunpack.c.l.bf16 %v271_v36 }
  0x45   : > { %881 = vst [vmem:[%s1279_s27 + $0x2d0] sm:$0xff] %v799_v4  ;;  %882 = vst [vmem:[%s1279_s27 + $0x2d8] sm:$0xff] %v800_v5  ;;  %v530_v23 = vmul.f32 %v1255_v11, %v380_v15  ;;  %v533_v24 = vmul.f32 %v1249_v9, %v383_v16  ;;  %v534_v25 = vmul.f32 %v1255_v11, %v384_v17  ;;  %v392_v49 = vunpack.c.h.bf16 %v271_v36  ;;  %v216_v15 = vld [vmem:[%s1243_s23 + $0x8] sm:$0xff] }
  0x46   : > { %v537_v26 = vmul.f32 %v1249_v9, %v387_v18  ;;  %v538_v27 = vmul.f32 %v1255_v11, %v388_v19  ;;  %v675_v28 = vadd.f32 %v1252_v10, %v525_v20  ;;  %v676_v29 = vadd.f32 %v1258_v12, %v526_v21  ;;  %v218_v20 = vld [vmem:[%s1243_s23 + $0x18] sm:$0xff] }
  0x47   : > { %v679_v30 = vadd.f32 %v1252_v10, %v529_v22  ;;  %v680_v31 = vadd.f32 %v1258_v12, %v530_v23  ;;  %v683_v32 = vadd.f32 %v1252_v10, %v533_v24  ;;  %v684_v33 = vadd.f32 %v1258_v12, %v534_v25  ;;  %v220_v25 = vld [vmem:[%s1243_s23 + $0x28] sm:$0xff] }
  0x48   : > { %v687_v34 = vadd.f32 %v1252_v10, %v537_v26  ;;  %v688_v35 = vadd.f32 %v1258_v12, %v538_v27  ;;  %v803_v38 = vmax.f32 %v675_v28, 0.0  ;;  %v804_v39 = vmax.f32 %v676_v29, 0.0 }
  0x49   : > { %v807_v40 = vmax.f32 %v679_v30, 0.0  ;;  %v808_v41 = vmax.f32 %v680_v31, 0.0  ;;  %v811_v44 = vmax.f32 %v683_v32, 0.0  ;;  %v812_v45 = vmax.f32 %v684_v33, 0.0 }
  0x4a   : > { %v815_v46 = vmax.f32 %v687_v34, 0.0  ;;  %v816_v47 = vmax.f32 %v688_v35, 0.0  ;;  %883 = vst [vmem:[%s1279_s27 + $0x300] sm:$0xff] %v803_v38  ;;  %884 = vst [vmem:[%s1279_s27 + $0x308] sm:$0xff] %v804_v39  ;;  %v395_v50 = vunpack.c.l.bf16 %v273_v37  ;;  %v396_v51 = vunpack.c.h.bf16 %v273_v37 }
  0x4b   : > { %885 = vst [vmem:[%s1279_s27 + $0x310] sm:$0xff] %v807_v40  ;;  %886 = vst [vmem:[%s1279_s27 + $0x318] sm:$0xff] %v808_v41  ;;  %v399_v52 = vunpack.c.l.bf16 %v275_v42  ;;  %v400_v53 = vunpack.c.h.bf16 %v275_v42  ;;  %v403_v54 = vunpack.c.l.bf16 %v277_v43  ;;  %v404_v55 = vunpack.c.h.bf16 %v277_v43 }
  0x4c   : > { %887 = vst [vmem:[%s1279_s27 + $0x340] sm:$0xff] %v811_v44  ;;  %888 = vst [vmem:[%s1279_s27 + $0x348] sm:$0xff] %v812_v45  ;;  %v541_v56 = vmul.f32 %v1249_v9, %v391_v48  ;;  %v542_v57 = vmul.f32 %v1255_v11, %v392_v49  ;;  %v545_v58 = vmul.f32 %v1249_v9, %v395_v50  ;;  %v282_v28 = vunpack.c.h.bf16 %v216_v15  ;;  %v224_v44 = vld [vmem:[%s1243_s23 + $0x48] sm:$0xff]  ;;  %v226_v49 = vld [vmem:[%s1243_s23 + $0x58] sm:$0xff] }
  0x4d   : > { %889 = vst [vmem:[%s1279_s27 + $0x350] sm:$0xff] %v815_v46  ;;  %890 = vst [vmem:[%s1279_s27 + $0x358] sm:$0xff] %v816_v47  ;;  %v546_v59 = vmul.f32 %v1255_v11, %v396_v51  ;;  %v549_v60 = vmul.f32 %v1249_v9, %v399_v52  ;;  %v550_v61 = vmul.f32 %v1255_v11, %v400_v53  ;;  %v285_v31 = vunpack.c.l.bf16 %v218_v20 }
  0x4e   : > { %v553_v62 = vmul.f32 %v1249_v9, %v403_v54  ;;  %v554_v63 = vmul.f32 %v1255_v11, %v404_v55  ;;  %v691_v0 = vadd.f32 %v1252_v10, %v541_v56  ;;  %v692_v4 = vadd.f32 %v1258_v12, %v542_v57  ;;  %v228_v54 = vld [vmem:[%s1243_s23 + $0x68] sm:$0xff]  ;;  %v230_v55 = vld [vmem:[%s1243_s23 + $0x78] sm:$0xff] }
  0x4f   : > { %v695_v5 = vadd.f32 %v1252_v10, %v545_v58  ;;  %v696_v8 = vadd.f32 %v1258_v12, %v546_v59  ;;  %v699_v13 = vadd.f32 %v1252_v10, %v549_v60  ;;  %v700_v14 = vadd.f32 %v1258_v12, %v550_v61 }
  0x50   : > { %v703_v9 = vadd.f32 %v1252_v10, %v553_v62  ;;  %v704_v11 = vadd.f32 %v1258_v12, %v554_v63  ;;  %v819_v16 = vmax.f32 %v691_v0, 0.0  ;;  %v820_v17 = vmax.f32 %v692_v4, 0.0  ;;  %v222_v10 = vld [vmem:[%s1243_s23 + $0x38] sm:$0xff] }
  0x51   : > { %v823_v18 = vmax.f32 %v695_v5, 0.0  ;;  %v824_v19 = vmax.f32 %v696_v8, 0.0  ;;  %v827_v21 = vmax.f32 %v699_v13, 0.0  ;;  %v828_v22 = vmax.f32 %v700_v14, 0.0 }
  0x52   : > { %v831_v23 = vmax.f32 %v703_v9, 0.0  ;;  %v832_v24 = vmax.f32 %v704_v11, 0.0  ;;  %891 = vst [vmem:[%s1279_s27 + $0x380] sm:$0xff] %v819_v16  ;;  %892 = vst [vmem:[%s1279_s27 + $0x388] sm:$0xff] %v820_v17  ;;  %v281_v12 = vunpack.c.l.bf16 %v216_v15  ;;  %v1492_v26 = vrot.slane %v1230_v2, %v419_v6 }
  0x53   : > { %893 = vst [vmem:[%s1279_s27 + $0x390] sm:$0xff] %v823_v18  ;;  %894 = vst [vmem:[%s1279_s27 + $0x398] sm:$0xff] %v824_v19  ;;  %v1497_v27 = vrot.slane %v1235_v3, %v419_v6  ;;  %v1506_v29 = vrot.slane %v1230_v2, %v423_v7  ;;  %v1511_v30 = vrot.slane %v1235_v3, %v423_v7  ;;  %v286_v32 = vunpack.c.h.bf16 %v218_v20 }
  0x54   : > { %895 = vst [vmem:[%s1279_s27 + $0x3c0] sm:$0xff] %v827_v21  ;;  %896 = vst [vmem:[%s1279_s27 + $0x3c8] sm:$0xff] %v828_v22  ;;  %v431_v6 = vmul.f32 %v1492_v26, %v281_v12  ;;  %v289_v33 = vunpack.c.l.bf16 %v220_v25  ;;  %v290_v34 = vunpack.c.h.bf16 %v220_v25  ;;  %v293_v35 = vunpack.c.l.bf16 %v222_v10 }
  0x55   : > { %897 = vst [vmem:[%s1279_s27 + $0x3d0] sm:$0xff] %v831_v23  ;;  %898 = vst [vmem:[%s1279_s27 + $0x3d8] sm:$0xff] %v832_v24  ;;  %v432_v36 = vmul.f32 %v1506_v29, %v282_v28  ;;  %v435_v37 = vmul.f32 %v1492_v26, %v285_v31  ;;  %v436_v2 = vmul.f32 %v1506_v29, %v286_v32  ;;  %v294_v38 = vunpack.c.h.bf16 %v222_v10  ;;  %v232_v23 = vld [vmem:[%s1243_s23 + $0x88] sm:$0xff]  ;;  %v234_v28 = vld [vmem:[%s1243_s23 + $0x98] sm:$0xff] }
  0x56   : > { %v581_v1 = vadd.f32 %v1497_v27, %v431_v6  ;;  %v439_v3 = vmul.f32 %v1492_v26, %v289_v33  ;;  %v440_v7 = vmul.f32 %v1506_v29, %v290_v34  ;;  %v443_v39 = vmul.f32 %v1492_v26, %v293_v35  ;;  %v236_v34 = vld [vmem:[%s1243_s23 + $0xa8] sm:$0xff]  ;;  %v238_v35 = vld [vmem:[%s1243_s23 + $0xb8] sm:$0xff] }
  0x57   : > { %v582_v40 = vadd.f32 %v1511_v30, %v432_v36  ;;  %v585_v41 = vadd.f32 %v1497_v27, %v435_v37  ;;  %v586_v42 = vadd.f32 %v1511_v30, %v436_v2  ;;  %v444_v43 = vmul.f32 %v1506_v29, %v294_v38 }
  0x58   : > { %v709_v45 = vmax.f32 %v581_v1, 0.0  ;;  %v589_v46 = vadd.f32 %v1497_v27, %v439_v3  ;;  %v590_v47 = vadd.f32 %v1511_v30, %v440_v7  ;;  %v593_v48 = vadd.f32 %v1497_v27, %v443_v39 }
  0x59   : > { %v710_v50 = vmax.f32 %v582_v40, 0.0  ;;  %v713_v51 = vmax.f32 %v585_v41, 0.0  ;;  %v714_v52 = vmax.f32 %v586_v42, 0.0  ;;  %v594_v53 = vadd.f32 %v1511_v30, %v444_v43 }
  0x5a   : > { %1069 = vst [vmem:[%s1279_s27 + $0x20] sm:$0xff] %v709_v45  ;;  %v717_v56 = vmax.f32 %v589_v46, 0.0  ;;  %v718_v57 = vmax.f32 %v590_v47, 0.0  ;;  %v721_v58 = vmax.f32 %v593_v48, 0.0  ;;  %v297_v59 = vunpack.c.l.bf16 %v224_v44 }
  0x5b   : > { %1070 = vst [vmem:[%s1279_s27 + $0x28] sm:$0xff] %v710_v50  ;;  %1071 = vst [vmem:[%s1279_s27 + $0x30] sm:$0xff] %v713_v51  ;;  %v722_v60 = vmax.f32 %v594_v53, 0.0  ;;  %v298_v61 = vunpack.c.h.bf16 %v224_v44  ;;  %v301_v62 = vunpack.c.l.bf16 %v226_v49  ;;  %v302_v63 = vunpack.c.h.bf16 %v226_v49 }
  0x5c   : > { %1072 = vst [vmem:[%s1279_s27 + $0x38] sm:$0xff] %v714_v52  ;;  %1073 = vst [vmem:[%s1279_s27 + $0x60] sm:$0xff] %v717_v56  ;;  %v447_v0 = vmul.f32 %v1492_v26, %v297_v59  ;;  %v305_v4 = vunpack.c.l.bf16 %v228_v54  ;;  %v306_v5 = vunpack.c.h.bf16 %v228_v54  ;;  %v309_v8 = vunpack.c.l.bf16 %v230_v55  ;;  %v240_v56 = vld [vmem:[%s1243_s23 + $0xc8] sm:$0xff] }
  0x5d   : > { %1074 = vst [vmem:[%s1279_s27 + $0x68] sm:$0xff] %v718_v57  ;;  %1075 = vst [vmem:[%s1279_s27 + $0x70] sm:$0xff] %v721_v58  ;;  %v448_v13 = vmul.f32 %v1506_v29, %v298_v61  ;;  %v451_v14 = vmul.f32 %v1492_v26, %v301_v62  ;;  %v452_v9 = vmul.f32 %v1506_v29, %v302_v63  ;;  %v310_v11 = vunpack.c.h.bf16 %v230_v55  ;;  %v242_v61 = vld [vmem:[%s1243_s23 + $0xd8] sm:$0xff] }
  0x5e   : > { %1076 = vst [vmem:[%s1279_s27 + $0x78] sm:$0xff] %v722_v60  ;;  %v597_v15 = vadd.f32 %v1497_v27, %v447_v0  ;;  %v455_v16 = vmul.f32 %v1492_v26, %v305_v4  ;;  %v456_v17 = vmul.f32 %v1506_v29, %v306_v5  ;;  %v459_v18 = vmul.f32 %v1492_v26, %v309_v8  ;;  %v244_v5 = vld [vmem:[%s1243_s23 + $0xe8] sm:$0xff]  ;;  %v246_v8 = vld [vmem:[%s1243_s23 + $0xf8] sm:$0xff] }
  0x5f   : > { %v598_v19 = vadd.f32 %v1511_v30, %v448_v13  ;;  %v601_v20 = vadd.f32 %v1497_v27, %v451_v14  ;;  %v602_v21 = vadd.f32 %v1511_v30, %v452_v9  ;;  %v460_v22 = vmul.f32 %v1506_v29, %v310_v11 }
  0x60   : > { %v725_v24 = vmax.f32 %v597_v15, 0.0  ;;  %v605_v25 = vadd.f32 %v1497_v27, %v455_v16  ;;  %v606_v10 = vadd.f32 %v1511_v30, %v456_v17  ;;  %v609_v12 = vadd.f32 %v1497_v27, %v459_v18 }
  0x61   : > { %v726_v31 = vmax.f32 %v598_v19, 0.0  ;;  %v729_v32 = vmax.f32 %v601_v20, 0.0  ;;  %v730_v6 = vmax.f32 %v602_v21, 0.0  ;;  %v610_v33 = vadd.f32 %v1511_v30, %v460_v22 }
  0x62   : > { %1077 = vst [vmem:[%s1279_s27 + $0xa0] sm:$0xff] %v725_v24  ;;  %v733_v36 = vmax.f32 %v605_v25, 0.0  ;;  %v734_v37 = vmax.f32 %v606_v10, 0.0  ;;  %v737_v2 = vmax.f32 %v609_v12, 0.0  ;;  %v313_v38 = vunpack.c.l.bf16 %v232_v23 }
  0x63   : > { %1078 = vst [vmem:[%s1279_s27 + $0xa8] sm:$0xff] %v726_v31  ;;  %1079 = vst [vmem:[%s1279_s27 + $0xb0] sm:$0xff] %v729_v32  ;;  %v738_v1 = vmax.f32 %v610_v33, 0.0  ;;  %v314_v3 = vunpack.c.h.bf16 %v232_v23  ;;  %v317_v7 = vunpack.c.l.bf16 %v234_v28  ;;  %v318_v39 = vunpack.c.h.bf16 %v234_v28 }
  0x64   : > { %1080 = vst [vmem:[%s1279_s27 + $0xb8] sm:$0xff] %v730_v6  ;;  %1081 = vst [vmem:[%s1279_s27 + $0xe0] sm:$0xff] %v733_v36  ;;  %v463_v40 = vmul.f32 %v1492_v26, %v313_v38  ;;  %v321_v41 = vunpack.c.l.bf16 %v236_v34  ;;  %v322_v42 = vunpack.c.h.bf16 %v236_v34  ;;  %v325_v43 = vunpack.c.l.bf16 %v238_v35  ;;  %v248_v36 = vld [vmem:[%s1243_s23 + $0x108] sm:$0xff] }
  0x65   : > { %1082 = vst [vmem:[%s1279_s27 + $0xe8] sm:$0xff] %v734_v37  ;;  %1083 = vst [vmem:[%s1279_s27 + $0xf0] sm:$0xff] %v737_v2  ;;  %v464_v44 = vmul.f32 %v1506_v29, %v314_v3  ;;  %v467_v45 = vmul.f32 %v1492_v26, %v317_v7  ;;  %v468_v46 = vmul.f32 %v1506_v29, %v318_v39  ;;  %v326_v47 = vunpack.c.h.bf16 %v238_v35  ;;  %v250_v3 = vld [vmem:[%s1243_s23 + $0x118] sm:$0xff] }
  0x66   : > { %1084 = vst [vmem:[%s1279_s27 + $0xf8] sm:$0xff] %v738_v1  ;;  %v613_v48 = vadd.f32 %v1497_v27, %v463_v40  ;;  %v471_v49 = vmul.f32 %v1492_v26, %v321_v41  ;;  %v472_v50 = vmul.f32 %v1506_v29, %v322_v42  ;;  %v475_v51 = vmul.f32 %v1492_v26, %v325_v43  ;;  %v252_v42 = vld [vmem:[%s1243_s23 + $0x128] sm:$0xff]  ;;  %v254_v43 = vld [vmem:[%s1243_s23 + $0x138] sm:$0xff] }
  0x67   : > { %v614_v52 = vadd.f32 %v1511_v30, %v464_v44  ;;  %v617_v53 = vadd.f32 %v1497_v27, %v467_v45  ;;  %v618_v54 = vadd.f32 %v1511_v30, %v468_v46  ;;  %v476_v55 = vmul.f32 %v1506_v29, %v326_v47 }
  0x68   : > { %v741_v57 = vmax.f32 %v613_v48, 0.0  ;;  %v621_v58 = vadd.f32 %v1497_v27, %v471_v49  ;;  %v622_v59 = vadd.f32 %v1511_v30, %v472_v50  ;;  %v625_v60 = vadd.f32 %v1497_v27, %v475_v51 }
  0x69   : > { %v742_v62 = vmax.f32 %v614_v52, 0.0  ;;  %v745_v63 = vmax.f32 %v617_v53, 0.0  ;;  %v746_v0 = vmax.f32 %v618_v54, 0.0  ;;  %v626_v4 = vadd.f32 %v1511_v30, %v476_v55 }
  0x6a   : > { %1085 = vst [vmem:[%s1279_s27 + $0x120] sm:$0xff] %v741_v57  ;;  %v749_v13 = vmax.f32 %v621_v58, 0.0  ;;  %v750_v14 = vmax.f32 %v622_v59, 0.0  ;;  %v753_v9 = vmax.f32 %v625_v60, 0.0  ;;  %v329_v11 = vunpack.c.l.bf16 %v240_v56 }
  0x6b   : > { %1086 = vst [vmem:[%s1279_s27 + $0x128] sm:$0xff] %v742_v62  ;;  %1087 = vst [vmem:[%s1279_s27 + $0x130] sm:$0xff] %v745_v63  ;;  %v754_v15 = vmax.f32 %v626_v4, 0.0  ;;  %v330_v16 = vunpack.c.h.bf16 %v240_v56  ;;  %v333_v17 = vunpack.c.l.bf16 %v242_v61  ;;  %v334_v18 = vunpack.c.h.bf16 %v242_v61 }
  0x6c   : > { %1088 = vst [vmem:[%s1279_s27 + $0x138] sm:$0xff] %v746_v0  ;;  %1089 = vst [vmem:[%s1279_s27 + $0x160] sm:$0xff] %v749_v13  ;;  %v479_v19 = vmul.f32 %v1492_v26, %v329_v11  ;;  %v337_v20 = vunpack.c.l.bf16 %v244_v5  ;;  %v338_v21 = vunpack.c.h.bf16 %v244_v5  ;;  %v341_v22 = vunpack.c.l.bf16 %v246_v8  ;;  %v256_v13 = vld [vmem:[%s1243_s23 + $0x148] sm:$0xff] }
  0x6d   : > { %1090 = vst [vmem:[%s1279_s27 + $0x168] sm:$0xff] %v750_v14  ;;  %1091 = vst [vmem:[%s1279_s27 + $0x170] sm:$0xff] %v753_v9  ;;  %v480_v23 = vmul.f32 %v1506_v29, %v330_v16  ;;  %v483_v24 = vmul.f32 %v1492_v26, %v333_v17  ;;  %v484_v25 = vmul.f32 %v1506_v29, %v334_v18  ;;  %v342_v10 = vunpack.c.h.bf16 %v246_v8  ;;  %v258_v16 = vld [vmem:[%s1243_s23 + $0x158] sm:$0xff] }
  0x6e   : > { %1092 = vst [vmem:[%s1279_s27 + $0x178] sm:$0xff] %v754_v15  ;;  %v629_v12 = vadd.f32 %v1497_v27, %v479_v19  ;;  %v487_v28 = vmul.f32 %v1492_v26, %v337_v20  ;;  %v488_v31 = vmul.f32 %v1506_v29, %v338_v21  ;;  %v491_v32 = vmul.f32 %v1492_v26, %v341_v22  ;;  %v260_v21 = vld [vmem:[%s1243_s23 + $0x168] sm:$0xff]  ;;  %v262_v22 = vld [vmem:[%s1243_s23 + $0x178] sm:$0xff] }
  0x6f   : > { %v630_v6 = vadd.f32 %v1511_v30, %v480_v23  ;;  %v633_v33 = vadd.f32 %v1497_v27, %v483_v24  ;;  %v634_v34 = vadd.f32 %v1511_v30, %v484_v25  ;;  %v492_v35 = vmul.f32 %v1506_v29, %v342_v10 }
  0x70   : > { %v757_v37 = vmax.f32 %v629_v12, 0.0  ;;  %v637_v2 = vadd.f32 %v1497_v27, %v487_v28  ;;  %v638_v38 = vadd.f32 %v1511_v30, %v488_v31  ;;  %v641_v1 = vadd.f32 %v1497_v27, %v491_v32 }
  0x71   : > { %v758_v7 = vmax.f32 %v630_v6, 0.0  ;;  %v761_v39 = vmax.f32 %v633_v33, 0.0  ;;  %v762_v40 = vmax.f32 %v634_v34, 0.0  ;;  %v642_v41 = vadd.f32 %v1511_v30, %v492_v35 }
  0x72   : > { %1093 = vst [vmem:[%s1279_s27 + $0x1a0] sm:$0xff] %v757_v37  ;;  %v765_v44 = vmax.f32 %v637_v2, 0.0  ;;  %v766_v45 = vmax.f32 %v638_v38, 0.0  ;;  %v769_v46 = vmax.f32 %v641_v1, 0.0  ;;  %v345_v47 = vunpack.c.l.bf16 %v248_v36 }
  0x73   : > { %1094 = vst [vmem:[%s1279_s27 + $0x1a8] sm:$0xff] %v758_v7  ;;  %1095 = vst [vmem:[%s1279_s27 + $0x1b0] sm:$0xff] %v761_v39  ;;  %v770_v48 = vmax.f32 %v642_v41, 0.0  ;;  %v346_v49 = vunpack.c.h.bf16 %v248_v36  ;;  %v349_v50 = vunpack.c.l.bf16 %v250_v3  ;;  %v350_v51 = vunpack.c.h.bf16 %v250_v3 }
  0x74   : > { %1096 = vst [vmem:[%s1279_s27 + $0x1b8] sm:$0xff] %v762_v40  ;;  %1097 = vst [vmem:[%s1279_s27 + $0x1e0] sm:$0xff] %v765_v44  ;;  %v495_v52 = vmul.f32 %v1492_v26, %v345_v47  ;;  %v353_v53 = vunpack.c.l.bf16 %v252_v42  ;;  %v354_v54 = vunpack.c.h.bf16 %v252_v42  ;;  %v357_v55 = vunpack.c.l.bf16 %v254_v43  ;;  %v264_v44 = vld [vmem:[%s1243_s23 + $0x188] sm:$0xff] }
  0x75   : > { %1098 = vst [vmem:[%s1279_s27 + $0x1e8] sm:$0xff] %v766_v45  ;;  %1099 = vst [vmem:[%s1279_s27 + $0x1f0] sm:$0xff] %v769_v46  ;;  %v496_v56 = vmul.f32 %v1506_v29, %v346_v49  ;;  %v499_v57 = vmul.f32 %v1492_v26, %v349_v50  ;;  %v500_v58 = vmul.f32 %v1506_v29, %v350_v51  ;;  %v358_v59 = vunpack.c.h.bf16 %v254_v43  ;;  %v266_v49 = vld [vmem:[%s1243_s23 + $0x198] sm:$0xff] }
  0x76   : > { %1100 = vst [vmem:[%s1279_s27 + $0x1f8] sm:$0xff] %v770_v48  ;;  %v645_v60 = vadd.f32 %v1497_v27, %v495_v52  ;;  %v503_v61 = vmul.f32 %v1492_v26, %v353_v53  ;;  %v504_v62 = vmul.f32 %v1506_v29, %v354_v54  ;;  %v507_v63 = vmul.f32 %v1492_v26, %v357_v55  ;;  %v268_v54 = vld [vmem:[%s1243_s23 + $0x1a8] sm:$0xff]  ;;  %v270_v55 = vld [vmem:[%s1243_s23 + $0x1b8] sm:$0xff] }
  0x77   : > { %v646_v0 = vadd.f32 %v1511_v30, %v496_v56  ;;  %v649_v4 = vadd.f32 %v1497_v27, %v499_v57  ;;  %v650_v5 = vadd.f32 %v1511_v30, %v500_v58  ;;  %v508_v8 = vmul.f32 %v1506_v29, %v358_v59 }
  0x78   : > { %v773_v14 = vmax.f32 %v645_v60, 0.0  ;;  %v653_v9 = vadd.f32 %v1497_v27, %v503_v61  ;;  %v654_v11 = vadd.f32 %v1511_v30, %v504_v62  ;;  %v657_v15 = vadd.f32 %v1497_v27, %v507_v63 }
  0x79   : > { %v774_v17 = vmax.f32 %v646_v0, 0.0  ;;  %v777_v18 = vmax.f32 %v649_v4, 0.0  ;;  %v778_v19 = vmax.f32 %v650_v5, 0.0  ;;  %v658_v20 = vadd.f32 %v1511_v30, %v508_v8 }
  0x7a   : > { %1101 = vst [vmem:[%s1279_s27 + $0x220] sm:$0xff] %v773_v14  ;;  %v781_v23 = vmax.f32 %v653_v9, 0.0  ;;  %v782_v24 = vmax.f32 %v654_v11, 0.0  ;;  %v785_v25 = vmax.f32 %v657_v15, 0.0  ;;  %v361_v10 = vunpack.c.l.bf16 %v256_v13 }
  0x7b   : > { %1102 = vst [vmem:[%s1279_s27 + $0x228] sm:$0xff] %v774_v17  ;;  %1103 = vst [vmem:[%s1279_s27 + $0x230] sm:$0xff] %v777_v18  ;;  %v786_v12 = vmax.f32 %v658_v20, 0.0  ;;  %v362_v28 = vunpack.c.h.bf16 %v256_v13  ;;  %v365_v31 = vunpack.c.l.bf16 %v258_v16  ;;  %v366_v32 = vunpack.c.h.bf16 %v258_v16 }
  0x7c   : > { %1104 = vst [vmem:[%s1279_s27 + $0x238] sm:$0xff] %v778_v19  ;;  %1105 = vst [vmem:[%s1279_s27 + $0x260] sm:$0xff] %v781_v23  ;;  %v511_v6 = vmul.f32 %v1492_v26, %v361_v10  ;;  %v369_v33 = vunpack.c.l.bf16 %v260_v21  ;;  %v370_v34 = vunpack.c.h.bf16 %v260_v21  ;;  %v373_v35 = vunpack.c.l.bf16 %v262_v22  ;;  %v272_v23 = vld [vmem:[%s1243_s23 + $0x1c8] sm:$0xff] }
  0x7d   : > { %1106 = vst [vmem:[%s1279_s27 + $0x268] sm:$0xff] %v782_v24  ;;  %1107 = vst [vmem:[%s1279_s27 + $0x270] sm:$0xff] %v785_v25  ;;  %v512_v36 = vmul.f32 %v1506_v29, %v362_v28  ;;  %v515_v37 = vmul.f32 %v1492_v26, %v365_v31  ;;  %v516_v2 = vmul.f32 %v1506_v29, %v366_v32  ;;  %v374_v38 = vunpack.c.h.bf16 %v262_v22  ;;  %v274_v28 = vld [vmem:[%s1243_s23 + $0x1d8] sm:$0xff] }
  0x7e   : > { %1108 = vst [vmem:[%s1279_s27 + $0x278] sm:$0xff] %v786_v12  ;;  %v661_v1 = vadd.f32 %v1497_v27, %v511_v6  ;;  %v519_v3 = vmul.f32 %v1492_v26, %v369_v33  ;;  %v520_v7 = vmul.f32 %v1506_v29, %v370_v34  ;;  %v523_v39 = vmul.f32 %v1492_v26, %v373_v35  ;;  %v276_v34 = vld [vmem:[%s1243_s23 + $0x1e8] sm:$0xff]  ;;  %v278_v35 = vld [vmem:[%s1243_s23 + $0x1f8] sm:$0xff] }
  0x7f   : > { %v662_v40 = vadd.f32 %v1511_v30, %v512_v36  ;;  %v665_v41 = vadd.f32 %v1497_v27, %v515_v37  ;;  %v666_v42 = vadd.f32 %v1511_v30, %v516_v2  ;;  %v524_v43 = vmul.f32 %v1506_v29, %v374_v38 }
  0x80   : > { %v789_v45 = vmax.f32 %v661_v1, 0.0  ;;  %v669_v46 = vadd.f32 %v1497_v27, %v519_v3  ;;  %v670_v47 = vadd.f32 %v1511_v30, %v520_v7  ;;  %v673_v48 = vadd.f32 %v1497_v27, %v523_v39 }
  0x81   : > { %v790_v50 = vmax.f32 %v662_v40, 0.0  ;;  %v793_v51 = vmax.f32 %v665_v41, 0.0  ;;  %v794_v52 = vmax.f32 %v666_v42, 0.0  ;;  %v674_v53 = vadd.f32 %v1511_v30, %v524_v43 }
  0x82   : > { %1109 = vst [vmem:[%s1279_s27 + $0x2a0] sm:$0xff] %v789_v45  ;;  %v797_v56 = vmax.f32 %v669_v46, 0.0  ;;  %v798_v57 = vmax.f32 %v670_v47, 0.0  ;;  %v801_v58 = vmax.f32 %v673_v48, 0.0  ;;  %v377_v59 = vunpack.c.l.bf16 %v264_v44 }
  0x83   : > { %1110 = vst [vmem:[%s1279_s27 + $0x2a8] sm:$0xff] %v790_v50  ;;  %1111 = vst [vmem:[%s1279_s27 + $0x2b0] sm:$0xff] %v793_v51  ;;  %v802_v60 = vmax.f32 %v674_v53, 0.0  ;;  %v378_v61 = vunpack.c.h.bf16 %v264_v44  ;;  %v381_v62 = vunpack.c.l.bf16 %v266_v49  ;;  %v382_v63 = vunpack.c.h.bf16 %v266_v49 }
  0x84   : > { %1112 = vst [vmem:[%s1279_s27 + $0x2b8] sm:$0xff] %v794_v52  ;;  %1113 = vst [vmem:[%s1279_s27 + $0x2e0] sm:$0xff] %v797_v56  ;;  %v527_v0 = vmul.f32 %v1492_v26, %v377_v59  ;;  %v385_v4 = vunpack.c.l.bf16 %v268_v54  ;;  %v386_v5 = vunpack.c.h.bf16 %v268_v54  ;;  %v389_v8 = vunpack.c.l.bf16 %v270_v55 }
  0x85   : > { %1114 = vst [vmem:[%s1279_s27 + $0x2e8] sm:$0xff] %v798_v57  ;;  %1115 = vst [vmem:[%s1279_s27 + $0x2f0] sm:$0xff] %v801_v58  ;;  %v528_v13 = vmul.f32 %v1506_v29, %v378_v61  ;;  %v531_v14 = vmul.f32 %v1492_v26, %v381_v62  ;;  %v532_v9 = vmul.f32 %v1506_v29, %v382_v63  ;;  %v390_v11 = vunpack.c.h.bf16 %v270_v55 }
  0x86   : > { %1116 = vst [vmem:[%s1279_s27 + $0x2f8] sm:$0xff] %v802_v60  ;;  %v677_v15 = vadd.f32 %v1497_v27, %v527_v0  ;;  %v535_v16 = vmul.f32 %v1492_v26, %v385_v4  ;;  %v536_v17 = vmul.f32 %v1506_v29, %v386_v5  ;;  %v539_v18 = vmul.f32 %v1492_v26, %v389_v8 }
  0x87   : > { %v678_v19 = vadd.f32 %v1511_v30, %v528_v13  ;;  %v681_v20 = vadd.f32 %v1497_v27, %v531_v14  ;;  %v682_v21 = vadd.f32 %v1511_v30, %v532_v9  ;;  %v540_v22 = vmul.f32 %v1506_v29, %v390_v11 }
  0x88   : > { %v805_v24 = vmax.f32 %v677_v15, 0.0  ;;  %v685_v25 = vadd.f32 %v1497_v27, %v535_v16  ;;  %v686_v10 = vadd.f32 %v1511_v30, %v536_v17  ;;  %v689_v12 = vadd.f32 %v1497_v27, %v539_v18 }
  0x89   : > { %v806_v31 = vmax.f32 %v678_v19, 0.0  ;;  %v809_v32 = vmax.f32 %v681_v20, 0.0  ;;  %v810_v6 = vmax.f32 %v682_v21, 0.0  ;;  %v690_v33 = vadd.f32 %v1511_v30, %v540_v22 }
  0x8a   : > { %1117 = vst [vmem:[%s1279_s27 + $0x320] sm:$0xff] %v805_v24  ;;  %v813_v36 = vmax.f32 %v685_v25, 0.0  ;;  %v814_v37 = vmax.f32 %v686_v10, 0.0  ;;  %v817_v2 = vmax.f32 %v689_v12, 0.0  ;;  %v393_v38 = vunpack.c.l.bf16 %v272_v23 }
  0x8b   : > { %1118 = vst [vmem:[%s1279_s27 + $0x328] sm:$0xff] %v806_v31  ;;  %1119 = vst [vmem:[%s1279_s27 + $0x330] sm:$0xff] %v809_v32  ;;  %v818_v1 = vmax.f32 %v690_v33, 0.0  ;;  %v394_v3 = vunpack.c.h.bf16 %v272_v23  ;;  %v397_v7 = vunpack.c.l.bf16 %v274_v28  ;;  %v398_v39 = vunpack.c.h.bf16 %v274_v28 }
  0x8c   : > { %1120 = vst [vmem:[%s1279_s27 + $0x338] sm:$0xff] %v810_v6  ;;  %1121 = vst [vmem:[%s1279_s27 + $0x360] sm:$0xff] %v813_v36  ;;  %v543_v40 = vmul.f32 %v1492_v26, %v393_v38  ;;  %v401_v41 = vunpack.c.l.bf16 %v276_v34  ;;  %v402_v42 = vunpack.c.h.bf16 %v276_v34  ;;  %v405_v43 = vunpack.c.l.bf16 %v278_v35 }
  0x8d   : > { %1122 = vst [vmem:[%s1279_s27 + $0x368] sm:$0xff] %v814_v37  ;;  %1123 = vst [vmem:[%s1279_s27 + $0x370] sm:$0xff] %v817_v2  ;;  %v544_v44 = vmul.f32 %v1506_v29, %v394_v3  ;;  %v547_v45 = vmul.f32 %v1492_v26, %v397_v7  ;;  %v548_v46 = vmul.f32 %v1506_v29, %v398_v39  ;;  %v406_v47 = vunpack.c.h.bf16 %v278_v35 }
  0x8e   : > { %1124 = vst [vmem:[%s1279_s27 + $0x378] sm:$0xff] %v818_v1  ;;  %v693_v48 = vadd.f32 %v1497_v27, %v543_v40  ;;  %v551_v49 = vmul.f32 %v1492_v26, %v401_v41  ;;  %v552_v50 = vmul.f32 %v1506_v29, %v402_v42  ;;  %v555_v51 = vmul.f32 %v1492_v26, %v405_v43 }
  0x8f   : > { %v694_v52 = vadd.f32 %v1511_v30, %v544_v44  ;;  %v697_v53 = vadd.f32 %v1497_v27, %v547_v45  ;;  %v698_v54 = vadd.f32 %v1511_v30, %v548_v46  ;;  %v556_v55 = vmul.f32 %v1506_v29, %v406_v47 }
  0x90   : > { %v821_v56 = vmax.f32 %v693_v48, 0.0  ;;  %v701_v57 = vadd.f32 %v1497_v27, %v551_v49  ;;  %v702_v58 = vadd.f32 %v1511_v30, %v552_v50  ;;  %v705_v26 = vadd.f32 %v1497_v27, %v555_v51 }
  0x91   : > { %v822_v59 = vmax.f32 %v694_v52, 0.0  ;;  %v825_v60 = vmax.f32 %v697_v53, 0.0  ;;  %v826_v61 = vmax.f32 %v698_v54, 0.0  ;;  %v706_v62 = vadd.f32 %v1511_v30, %v556_v55 }
  0x92   : > { %1125 = vst [vmem:[%s1279_s27 + $0x3a0] sm:$0xff] %v821_v56  ;;  %v829_v63 = vmax.f32 %v701_v57, 0.0  ;;  %v830_v0 = vmax.f32 %v702_v58, 0.0  ;;  %v833_v29 = vmax.f32 %v705_v26, 0.0 }
  0x93   : > { %1126 = vst [vmem:[%s1279_s27 + $0x3a8] sm:$0xff] %v822_v59  ;;  %1127 = vst [vmem:[%s1279_s27 + $0x3b0] sm:$0xff] %v825_v60  ;;  %v834_v4 = vmax.f32 %v706_v62, 0.0 }
  0x94   : > { %1128 = vst [vmem:[%s1279_s27 + $0x3b8] sm:$0xff] %v826_v61  ;;  %1129 = vst [vmem:[%s1279_s27 + $0x3e0] sm:$0xff] %v829_v63 }
  0x95   : > { %1130 = vst [vmem:[%s1279_s27 + $0x3e8] sm:$0xff] %v830_v0  ;;  %1131 = vst [vmem:[%s1279_s27 + $0x3f0] sm:$0xff] %v833_v29 }
  0x96   : > { %1132 = vst [vmem:[%s1279_s27 + $0x3f8] sm:$0xff] %v834_v4 }
  0x97 PF: > { %s13_s14 = sadd.s32 1, %s1183_s14   ;;  %s1746_s12 = smov %s1179_s13 }
  0x98   : > { %p10_p5 = scmp.ge.s32.totalorder %s13_s14, 4   ;;  %s1747_s13 = smov %s1749_s15 }
  0x9a   :  { %12 = sbr.rel (!%p10_p5) target bundleno = 2 (0x2), region = 63 }

// kernel: deconv_layer_forward.8
= control target key start
LH: loop header
LB: loop body
LE: loop exit
PB: predicated region body
PF: predicated region fallthrough
CT: control target
= control target key end

     0   :  { %s7868_s18 = smov 0   ;;  %s7870_s19 = smov 0   ;;  %s9289_s0 = inlined_call_operand.vmem [shape: bf16[512,1152], index: 0, kind: input, shape index: {}]   ;;  %s9290_s1 = inlined_call_operand.vmem [shape: bf16[1152,512], index: 1, kind: input, shape index: {}]   ;;  %s9291_s2 = inlined_call_operand.vmem [shape: f32[1,512], index: 2, kind: input, shape index: {}]   ;;  %s9292_s3 = inlined_call_operand.vmem [shape: bf16[512,512], index: 3, kind: output, shape index: {0}]   ;;  %s9293_s4 = inlined_call_operand.vmem [shape: f32[2,1,512], index: 4, kind: output, shape index: {1}]   ;;  %s9294_s5 = inlined_call_operand.vmem [shape: f32[2,1,512], index: 5, kind: output, shape index: {2}]  }
   0x1   :  { %s7872_s20 = smov 0  }
   0x2 LB: > { %s28_s21 = sadd.s32 1, %s7830_s19  ;;  %p5934_p0 = scmp.ge.s32.totalorder %s7834_s20, 1  ;;  %s7834_s20 = sphi %s7872_s20, %s16_s20   ;;  %s7830_s19 = sphi %s7870_s19, %s9296_s19   ;;  %s7826_s18 = sphi %s7868_s18, %s9295_s18  }
   0x3   : > { %p30_p1 = scmp.ge.s32.totalorder %s28_s21, 2  ;;  %p213_p2 = scmp.lt.s32.totalorder %s7834_s20, 3 }
   0x5   : > { %s9298_s21 = smov (%p30_p1, %s28_s21), 0  ;;  %p214_p3 = pnand %p5934_p0, %p213_p2 }
   0x6   : > { %v7172_v0 = vld [vmem:[%s9290_s1 + $0x4] ss:$16 sps:$4 sm:$0xff] (!%p214_p3)   ;;  %v7174_v1 = vld [vmem:[%s9290_s1 + $0xc] ss:$16 sps:$4 sm:$0xff] (!%p214_p3)   ;;  %v7176_v2 = vld [vmem:[%s9290_s1] ss:$16 sps:$4 sm:$0xff] (!%p214_p3)  }
   0x7   : > { %217 = sbr.rel (%p214_p3) target bundleno = 969 (0x3c9), region = 32  ;;  %2929 = vmatprep.subr.bf16.mxu0 (!%p214_p3), %v7172_v0  ;;  %v7177_v3 = vld [vmem:[%s9290_s1 + $0x8] ss:$16 sps:$4 sm:$0xff] (!%p214_p3)   ;;  %3894 = vmatprep.subr.bf16.mxu1 (!%p214_p3), %v7174_v1  ;;  %v7178_v4 = vld [vmem:[%s9290_s1 + $0x24] ss:$16 sps:$4 sm:$0xff] (!%p214_p3)   ;;  %s5935_s15 = sshll.u32 (!%p214_p3), %s7826_s18, 5 }
   0x8   : > { %2930 = vmatpush1.bf16.msra.mxu0 (!%p214_p3), %v7176_v2  ;;  %3895 = vmatpush1.bf16.msra.mxu1 (!%p214_p3), %v7177_v3  ;;  %v7180_v5 = vld [vmem:[%s9290_s1 + $0x2c] ss:$16 sps:$4 sm:$0xff] (!%p214_p3)   ;;  %v7182_v6 = vld [vmem:[%s9290_s1 + $0x20] ss:$16 sps:$4 sm:$0xff] (!%p214_p3)   ;;  %v7183_v7 = vld [vmem:[%s9290_s1 + $0x28] ss:$16 sps:$4 sm:$0xff] (!%p214_p3)  }
   0x9   : > { %2931 = vmatprep.subr.bf16.mxu0 (!%p214_p3), %v7178_v4  ;;  %3896 = vmatprep.subr.bf16.mxu1 (!%p214_p3), %v7180_v5  ;;  %v7184_v8 = vld [vmem:[%s9290_s1 + $0x44] ss:$16 sps:$4 sm:$0xff] (!%p214_p3)   ;;  %v7186_v9 = vld [vmem:[%s9290_s1 + $0x4c] ss:$16 sps:$4 sm:$0xff] (!%p214_p3)   ;;  %v7188_v10 = vld [vmem:[%s9290_s1 + $0x40] ss:$16 sps:$4 sm:$0xff] (!%p214_p3)  }
   0xa   : > { %v7189_v11 = vld [vmem:[%s9290_s1 + $0x48] ss:$16 sps:$4 sm:$0xff] (!%p214_p3)   ;;  %v7190_v12 = vld [vmem:[%s9290_s1 + $0x64] ss:$16 sps:$4 sm:$0xff] (!%p214_p3)   ;;  %v7192_v13 = vld [vmem:[%s9290_s1 + $0x6c] ss:$16 sps:$4 sm:$0xff] (!%p214_p3)  }
   0xb   : > { %v7194_v14 = vld [vmem:[%s9290_s1 + $0x60] ss:$16 sps:$4 sm:$0xff] (!%p214_p3)   ;;  %v7195_v15 = vld [vmem:[%s9290_s1 + $0x68] ss:$16 sps:$4 sm:$0xff] (!%p214_p3)   ;;  %v7196_v16 = vld [vmem:[%s9290_s1 + $0x84] ss:$16 sps:$4 sm:$0xff] (!%p214_p3)  }
   0xc   : > { %2932 = vmatpush1.bf16.msra.mxu0 (!%p214_p3), %v7182_v6  ;;  %3897 = vmatpush1.bf16.msra.mxu1 (!%p214_p3), %v7183_v7  ;;  %v7198_v17 = vld [vmem:[%s9290_s1 + $0x8c] ss:$16 sps:$4 sm:$0xff] (!%p214_p3)   ;;  %v7200_v18 = vld [vmem:[%s9290_s1 + $0x80] ss:$16 sps:$4 sm:$0xff] (!%p214_p3)   ;;  %v7201_v19 = vld [vmem:[%s9290_s1 + $0x88] ss:$16 sps:$4 sm:$0xff] (!%p214_p3)  }
   0xd   : > { %2933 = vmatprep.subr.bf16.mxu0 (!%p214_p3), %v7184_v8  ;;  %3898 = vmatprep.subr.bf16.mxu1 (!%p214_p3), %v7186_v9  ;;  %v7202_v20 = vld [vmem:[%s9290_s1 + $0xa4] ss:$16 sps:$4 sm:$0xff] (!%p214_p3)   ;;  %v7204_v21 = vld [vmem:[%s9290_s1 + $0xac] ss:$16 sps:$4 sm:$0xff] (!%p214_p3)   ;;  %v7206_v22 = vld [vmem:[%s9290_s1 + $0xa0] ss:$16 sps:$4 sm:$0xff] (!%p214_p3)  }
   0xe   : > { %v7207_v23 = vld [vmem:[%s9290_s1 + $0xa8] ss:$16 sps:$4 sm:$0xff]   ;;  %v7208_v24 = vld [vmem:[%s9290_s1 + $0xc4] ss:$16 sps:$4 sm:$0xff]   ;;  %v7210_v25 = vld [vmem:[%s9290_s1 + $0xcc] ss:$16 sps:$4 sm:$0xff]  }
   0xf   : > { %v7212_v26 = vld [vmem:[%s9290_s1 + $0xc0] ss:$16 sps:$4 sm:$0xff]   ;;  %v7213_v27 = vld [vmem:[%s9290_s1 + $0xc8] ss:$16 sps:$4 sm:$0xff]   ;;  %v7214_v28 = vld [vmem:[%s9290_s1 + $0xe4] ss:$16 sps:$4 sm:$0xff]  }
  0x10   : > { %2934 = vmatpush1.bf16.msra.mxu0 %v7188_v10  ;;  %3899 = vmatpush1.bf16.msra.mxu1 %v7189_v11  ;;  %v7216_v29 = vld [vmem:[%s9290_s1 + $0xec] ss:$16 sps:$4 sm:$0xff]   ;;  %v7218_v30 = vld [vmem:[%s9290_s1 + $0xe0] ss:$16 sps:$4 sm:$0xff]   ;;  %v7219_v31 = vld [vmem:[%s9290_s1 + $0xe8] ss:$16 sps:$4 sm:$0xff]  }
  0x11   : > { %2935 = vmatprep.subr.bf16.mxu0 %v7190_v12  ;;  %3900 = vmatprep.subr.bf16.mxu1 %v7192_v13  ;;  %v7220_v32 = vld [vmem:[%s9290_s1 + $0x104] ss:$16 sps:$4 sm:$0xff]   ;;  %p257_p4 = scmp.lt.s32.totalorder %s5935_s15, 63  ;;  %v7222_v33 = vld [vmem:[%s9290_s1 + $0x10c] ss:$16 sps:$4 sm:$0xff]   ;;  %p274_p5 = scmp.lt.s32.totalorder %s7826_s18, 1 }
  0x12   : > { %v7224_v34 = vld [vmem:[%s9290_s1 + $0x100] ss:$16 sps:$4 sm:$0xff]   ;;  %v7225_v35 = vld [vmem:[%s9290_s1 + $0x108] ss:$16 sps:$4 sm:$0xff]   ;;  %v7226_v36 = vld [vmem:[%s9290_s1 + $0x124] ss:$16 sps:$4 sm:$0xff]  }
  0x13   : > { %s9300_s15 = smov (!%p257_p4, %s5935_s15), 63  ;;  %v7228_v37 = vld [vmem:[%s9290_s1 + $0x12c] ss:$16 sps:$4 sm:$0xff]   ;;  %v7230_v38 = vld [vmem:[%s9290_s1 + $0x120] ss:$16 sps:$4 sm:$0xff]   ;;  %s9302_s18 = smov (!%p274_p5, %s7826_s18), 1 }
  0x14   : > { %2936 = vmatpush1.bf16.msra.mxu0 %v7194_v14  ;;  %3901 = vmatpush1.bf16.msra.mxu1 %v7195_v15  ;;  %v7231_v39 = vld [vmem:[%s9290_s1 + $0x128] ss:$16 sps:$4 sm:$0xff]   ;;  %v7232_v40 = vld [vmem:[%s9290_s1 + $0x144] ss:$16 sps:$4 sm:$0xff]   ;;  %s7145_s22 = smul.u32 36, %s9300_s15 }
  0x15   : > { %2937 = vmatprep.subr.bf16.mxu0 %v7196_v16  ;;  %3902 = vmatprep.subr.bf16.mxu1 %v7198_v17  ;;  %v7234_v41 = vld [vmem:[%s9290_s1 + $0x14c] ss:$16 sps:$4 sm:$0xff]   ;;  %v7236_v42 = vld [vmem:[%s9290_s1 + $0x140] ss:$16 sps:$4 sm:$0xff]   ;;  %v7237_v43 = vld [vmem:[%s9290_s1 + $0x148] ss:$16 sps:$4 sm:$0xff]  }
  0x16   : > { %v7238_v44 = vld [vmem:[%s9290_s1 + $0x164] ss:$16 sps:$4 sm:$0xff]   ;;  %s8030_s8 = scalar_lea.vmem %s9289_s0, %s7145_s22  ;;  %v7240_v45 = vld [vmem:[%s9290_s1 + $0x16c] ss:$16 sps:$4 sm:$0xff]   ;;  %v7242_v46 = vld [vmem:[%s9290_s1 + $0x160] ss:$16 sps:$4 sm:$0xff]  }
  0x17   : > { %v7243_v47 = vld [vmem:[%s9290_s1 + $0x168] ss:$16 sps:$4 sm:$0xff]   ;;  %v7244_v49 = vld [vmem:[%s9290_s1 + $0x184] ss:$16 sps:$4 sm:$0xff]   ;;  %v7246_v50 = vld [vmem:[%s9290_s1 + $0x18c] ss:$16 sps:$4 sm:$0xff]  }
  0x18   : > { %2938 = vmatpush1.bf16.msra.mxu0 %v7200_v18  ;;  %3903 = vmatpush1.bf16.msra.mxu1 %v7201_v19  ;;  %v7270_v48 = vld [vmem:[%s8030_s8 + $0x4] ss:$36 sps:$4 sm:$0xff]   ;;  %v7248_v51 = vld [vmem:[%s9290_s1 + $0x180] ss:$16 sps:$4 sm:$0xff]   ;;  %v7252_v54 = vld [vmem:[%s9290_s1 + $0x1ac] ss:$16 sps:$4 sm:$0xff]  }
  0x19   : > { %2939 = vmatprep.subr.bf16.mxu0 %v7202_v20  ;;  %3904 = vmatprep.subr.bf16.mxu1 %v7204_v21  ;;  %v7249_v52 = vld [vmem:[%s9290_s1 + $0x188] ss:$16 sps:$4 sm:$0xff]   ;;  %v7250_v53 = vld [vmem:[%s9290_s1 + $0x1a4] ss:$16 sps:$4 sm:$0xff]   ;;  %v7254_v55 = vld [vmem:[%s9290_s1 + $0x1a0] ss:$16 sps:$4 sm:$0xff]  }
  0x1a   : > { %2961 = vmatprep.mubr.bf16.mxu0 %v7270_v48  ;;  %3926 = vmatprep.mubr.bf16.mxu1 %v7270_v48  ;;  %v7255_v56 = vld [vmem:[%s9290_s1 + $0x1a8] ss:$16 sps:$4 sm:$0xff]   ;;  %v7256_v57 = vld [vmem:[%s9290_s1 + $0x1c4] ss:$16 sps:$4 sm:$0xff]   ;;  %v7258_v58 = vld [vmem:[%s9290_s1 + $0x1cc] ss:$16 sps:$4 sm:$0xff]  }
  0x1b   : > { %v7260_v59 = vld [vmem:[%s9290_s1 + $0x1c0] ss:$16 sps:$4 sm:$0xff]   ;;  %v7261_v60 = vld [vmem:[%s9290_s1 + $0x1c8] ss:$16 sps:$4 sm:$0xff]   ;;  %v7262_v61 = vld [vmem:[%s9290_s1 + $0x1e4] ss:$16 sps:$4 sm:$0xff]  }
  0x1c   : > { %2940 = vmatpush1.bf16.msra.mxu0 %v7206_v22  ;;  %3905 = vmatpush1.bf16.msra.mxu1 %v7207_v23  ;;  %v7264_v62 = vld [vmem:[%s9290_s1 + $0x1ec] ss:$16 sps:$4 sm:$0xff]   ;;  %v7266_v63 = vld [vmem:[%s9290_s1 + $0x1e0] ss:$16 sps:$4 sm:$0xff]   ;;  %v7267_v0 = vld [vmem:[%s9290_s1 + $0x1e8] ss:$16 sps:$4 sm:$0xff]  }
  0x1d   : > { %2941 = vmatprep.subr.bf16.mxu0 %v7208_v24  ;;  %3906 = vmatprep.subr.bf16.mxu1 %v7210_v25  ;;  %v7273_v1 = vld [vmem:[%s9290_s1 + $0x204] ss:$16 sps:$4 sm:$0xff]   ;;  %v7276_v2 = vld [vmem:[%s9290_s1 + $0x20c] ss:$16 sps:$4 sm:$0xff]   ;;  %v7271_v4 = vld [vmem:[%s9290_s1 + $0x200] ss:$16 sps:$4 sm:$0xff]  }
  0x1e   : > { %v7268_v3 = vld [vmem:[%s8030_s8] ss:$36 sps:$4 sm:$0xff]   ;;  %v7274_v5 = vld [vmem:[%s9290_s1 + $0x208] ss:$16 sps:$4 sm:$0xff]   ;;  %v7277_v6 = vld [vmem:[%s8030_s8 + $0x4c] ss:$36 sps:$4 sm:$0xff]  }
  0x1f   : > { %v7282_v7 = vld [vmem:[%s9290_s1 + $0x224] ss:$16 sps:$4 sm:$0xff]   ;;  %v7285_v8 = vld [vmem:[%s9290_s1 + $0x22c] ss:$16 sps:$4 sm:$0xff]   ;;  %v7280_v9 = vld [vmem:[%s9290_s1 + $0x220] ss:$16 sps:$4 sm:$0xff]  }
  0x20   : > { %2942 = vmatpush1.bf16.msra.mxu0 %v7212_v26  ;;  %3907 = vmatpush1.bf16.msra.mxu1 %v7213_v27  ;;  %v7283_v10 = vld [vmem:[%s9290_s1 + $0x228] ss:$16 sps:$4 sm:$0xff]   ;;  %v7291_v11 = vld [vmem:[%s9290_s1 + $0x244] ss:$16 sps:$4 sm:$0xff]   ;;  %v7294_v12 = vld [vmem:[%s9290_s1 + $0x24c] ss:$16 sps:$4 sm:$0xff]  }
  0x21   : > { %2943 = vmatprep.subr.bf16.mxu0 %v7214_v28  ;;  %3908 = vmatprep.subr.bf16.mxu1 %v7216_v29  ;;  %v7279_v13 = vld [vmem:[%s8030_s8 + $0x48] ss:$36 sps:$4 sm:$0xff]   ;;  %v7286_v14 = vld [vmem:[%s8030_s8 + $0x94] ss:$36 sps:$4 sm:$0xff]   ;;  %v7289_v15 = vld [vmem:[%s9290_s1 + $0x240] ss:$16 sps:$4 sm:$0xff]  }
  0x22   : > { %v7292_v16 = vld [vmem:[%s9290_s1 + $0x248] ss:$16 sps:$4 sm:$0xff]   ;;  %v7300_v17 = vld [vmem:[%s9290_s1 + $0x264] ss:$16 sps:$4 sm:$0xff]   ;;  %v7303_v18 = vld [vmem:[%s9290_s1 + $0x26c] ss:$16 sps:$4 sm:$0xff]  }
  0x23   : > { %v7298_v19 = vld [vmem:[%s9290_s1 + $0x260] ss:$16 sps:$4 sm:$0xff]   ;;  %v7301_v20 = vld [vmem:[%s9290_s1 + $0x268] ss:$16 sps:$4 sm:$0xff]   ;;  %v7309_v21 = vld [vmem:[%s9290_s1 + $0x284] ss:$16 sps:$4 sm:$0xff]  }
  0x24   : > { %2944 = vmatpush1.bf16.msra.mxu0 %v7218_v30  ;;  %3909 = vmatpush1.bf16.msra.mxu1 %v7219_v31  ;;  %v7312_v22 = vld [vmem:[%s9290_s1 + $0x28c] ss:$16 sps:$4 sm:$0xff]   ;;  %v7288_v23 = vld [vmem:[%s8030_s8 + $0x90] ss:$36 sps:$4 sm:$0xff]   ;;  %v7310_v26 = vld [vmem:[%s9290_s1 + $0x288] ss:$16 sps:$4 sm:$0xff]  }
  0x25   : > { %2945 = vmatprep.subr.bf16.mxu0 %v7220_v32  ;;  %3910 = vmatprep.subr.bf16.mxu1 %v7222_v33  ;;  %v7295_v24 = vld [vmem:[%s8030_s8 + $0xdc] ss:$36 sps:$4 sm:$0xff]   ;;  %v7318_v27 = vld [vmem:[%s9290_s1 + $0x2a4] ss:$16 sps:$4 sm:$0xff]   ;;  %v7319_v30 = vld [vmem:[%s9290_s1 + $0x2a8] ss:$16 sps:$4 sm:$0xff]  }
  0x26   : > { %v7307_v25 = vld [vmem:[%s9290_s1 + $0x280] ss:$16 sps:$4 sm:$0xff]   ;;  %v7321_v28 = vld [vmem:[%s9290_s1 + $0x2ac] ss:$16 sps:$4 sm:$0xff]   ;;  %v7327_v31 = vld [vmem:[%s9290_s1 + $0x2c4] ss:$16 sps:$4 sm:$0xff]  }
  0x27   : > { %v7316_v29 = vld [vmem:[%s9290_s1 + $0x2a0] ss:$16 sps:$4 sm:$0xff]   ;;  %v7330_v32 = vld [vmem:[%s9290_s1 + $0x2cc] ss:$16 sps:$4 sm:$0xff]  }
  0x28   : > { %2946 = vmatpush1.bf16.msra.mxu0 %v7224_v34  ;;  %3911 = vmatpush1.bf16.msra.mxu1 %v7225_v35  ;;  %v7297_v33 = vld [vmem:[%s8030_s8 + $0xd8] ss:$36 sps:$4 sm:$0xff]   ;;  %v7304_v34 = vld [vmem:[%s8030_s8 + $0x124] ss:$36 sps:$4 sm:$0xff]   ;;  %v7325_v35 = vld [vmem:[%s9290_s1 + $0x2c0] ss:$16 sps:$4 sm:$0xff]  }
  0x29   : > { %2947 = vmatprep.subr.bf16.mxu0 %v7226_v36  ;;  %3912 = vmatprep.subr.bf16.mxu1 %v7228_v37  ;;  %v7328_v36 = vld [vmem:[%s9290_s1 + $0x2c8] ss:$16 sps:$4 sm:$0xff]   ;;  %v7336_v37 = vld [vmem:[%s9290_s1 + $0x2e4] ss:$16 sps:$4 sm:$0xff]   ;;  %v7357_v48 = vld [vmem:[%s9290_s1 + $0x32c] ss:$16 sps:$4 sm:$0xff]  }
  0x2c   : > { %2948 = vmatpush1.bf16.msra.mxu0 %v7230_v38  ;;  %3913 = vmatpush1.bf16.msra.mxu1 %v7231_v39  ;;  %v7339_v38 = vld [vmem:[%s9290_s1 + $0x2ec] ss:$16 sps:$4 sm:$0xff]   ;;  %v7334_v39 = vld [vmem:[%s9290_s1 + $0x2e0] ss:$16 sps:$4 sm:$0xff]  }
  0x2d   : > { %2949 = vmatprep.subr.bf16.mxu0 %v7232_v40  ;;  %3914 = vmatprep.subr.bf16.mxu1 %v7234_v41  ;;  %v7337_v40 = vld [vmem:[%s9290_s1 + $0x2e8] ss:$16 sps:$4 sm:$0xff]   ;;  %v7345_v41 = vld [vmem:[%s9290_s1 + $0x304] ss:$16 sps:$4 sm:$0xff]  }
  0x30   : > { %2950 = vmatpush1.bf16.msra.mxu0 %v7236_v42  ;;  %3915 = vmatpush1.bf16.msra.mxu1 %v7237_v43  ;;  %v7348_v42 = vld [vmem:[%s9290_s1 + $0x30c] ss:$16 sps:$4 sm:$0xff]   ;;  %v7306_v43 = vld [vmem:[%s8030_s8 + $0x120] ss:$36 sps:$4 sm:$0xff]  }
  0x31   : > { %2951 = vmatprep.subr.bf16.mxu0 %v7238_v44  ;;  %3916 = vmatprep.subr.bf16.mxu1 %v7240_v45  ;;  %v7313_v44 = vld [vmem:[%s8030_s8 + $0x16c] ss:$36 sps:$4 sm:$0xff]  }
  0x32   : > { %v7343_v45 = vld [vmem:[%s9290_s1 + $0x300] ss:$16 sps:$4 sm:$0xff]  }
  0x34   : > { %2952 = vmatpush1.bf16.msra.mxu0 %v7242_v46  ;;  %3917 = vmatpush1.bf16.msra.mxu1 %v7243_v47  ;;  %v7346_v46 = vld [vmem:[%s9290_s1 + $0x308] ss:$16 sps:$4 sm:$0xff]   ;;  %v7354_v47 = vld [vmem:[%s9290_s1 + $0x324] ss:$16 sps:$4 sm:$0xff]  }
  0x35   : > { %2953 = vmatprep.subr.bf16.mxu0 %v7244_v49  ;;  %3918 = vmatprep.subr.bf16.mxu1 %v7246_v50  ;;  %v7352_v49 = vld [vmem:[%s9290_s1 + $0x320] ss:$16 sps:$4 sm:$0xff]   ;;  %v7355_v50 = vld [vmem:[%s9290_s1 + $0x328] ss:$16 sps:$4 sm:$0xff]  }
  0x38   : > { %2954 = vmatpush1.bf16.msra.mxu0 %v7248_v51  ;;  %3919 = vmatpush1.bf16.msra.mxu1 %v7249_v52  ;;  %v7363_v51 = vld [vmem:[%s9290_s1 + $0x344] ss:$16 sps:$4 sm:$0xff]   ;;  %v7366_v52 = vld [vmem:[%s9290_s1 + $0x34c] ss:$16 sps:$4 sm:$0xff]  }
  0x39   : > { %2955 = vmatprep.subr.bf16.mxu0 %v7250_v53  ;;  %3920 = vmatprep.subr.bf16.mxu1 %v7252_v54  ;;  %v7315_v53 = vld [vmem:[%s8030_s8 + $0x168] ss:$36 sps:$4 sm:$0xff]   ;;  %v7322_v54 = vld [vmem:[%s8030_s8 + $0x1b4] ss:$36 sps:$4 sm:$0xff]  }
  0x3c   : > { %2956 = vmatpush1.bf16.msra.mxu0 %v7254_v55  ;;  %3921 = vmatpush1.bf16.msra.mxu1 %v7255_v56  ;;  %v7361_v55 = vld [vmem:[%s9290_s1 + $0x340] ss:$16 sps:$4 sm:$0xff]   ;;  %v7364_v56 = vld [vmem:[%s9290_s1 + $0x348] ss:$16 sps:$4 sm:$0xff]  }
  0x3d   : > { %2957 = vmatprep.subr.bf16.mxu0 %v7256_v57  ;;  %3922 = vmatprep.subr.bf16.mxu1 %v7258_v58  ;;  %v7372_v57 = vld [vmem:[%s9290_s1 + $0x364] ss:$16 sps:$4 sm:$0xff]   ;;  %v7375_v58 = vld [vmem:[%s9290_s1 + $0x36c] ss:$16 sps:$4 sm:$0xff]  }
  0x40   : > { %2958 = vmatpush1.bf16.msra.mxu0 %v7260_v59  ;;  %3923 = vmatpush1.bf16.msra.mxu1 %v7261_v60  ;;  %v7370_v59 = vld [vmem:[%s9290_s1 + $0x360] ss:$16 sps:$4 sm:$0xff]   ;;  %v7373_v60 = vld [vmem:[%s9290_s1 + $0x368] ss:$16 sps:$4 sm:$0xff]  }
  0x41   : > { %2959 = vmatprep.subr.bf16.mxu0 %v7262_v61  ;;  %3924 = vmatprep.subr.bf16.mxu1 %v7264_v62  ;;  %v7381_v61 = vld [vmem:[%s9290_s1 + $0x384] ss:$16 sps:$4 sm:$0xff]   ;;  %v7384_v62 = vld [vmem:[%s9290_s1 + $0x38c] ss:$16 sps:$4 sm:$0xff]  }
  0x44   : > { %2960 = vmatpush1.bf16.msra.mxu0 %v7266_v63  ;;  %3925 = vmatpush1.bf16.msra.mxu1 %v7267_v0  ;;  %v7324_v63 = vld [vmem:[%s8030_s8 + $0x1b0] ss:$36 sps:$4 sm:$0xff]   ;;  %v7331_v0 = vld [vmem:[%s8030_s8 + $0x1fc] ss:$36 sps:$4 sm:$0xff]  }
  0x45   : > { %3122 = vmatprep.subr.bf16.mxu0 %v7273_v1  ;;  %4087 = vmatprep.subr.bf16.mxu1 %v7276_v2  ;;  %v7379_v1 = vld [vmem:[%s9290_s1 + $0x380] ss:$16 sps:$4 sm:$0xff]   ;;  %v7382_v2 = vld [vmem:[%s9290_s1 + $0x388] ss:$16 sps:$4 sm:$0xff]  }
  0x47   : > { %2962 = vmatmul.mubr.bf16.vlgmr.msra.gmra.mrb[0].mxu0 %v7268_v3  ;;  %3927 = vmatmul.mubr.bf16.vlgmr.msra.gmra.mrb[0].mxu1 %v7268_v3  ;;  %v7390_v3 = vld [vmem:[%s9290_s1 + $0x3a4] ss:$16 sps:$4 sm:$0xff]  }
  0x48   : > { %3123 = vmatpush1.bf16.msra.mxu0 %v7271_v4  ;;  %4088 = vmatpush1.bf16.msra.mxu1 %v7274_v5  ;;  %v7393_v4 = vld [vmem:[%s9290_s1 + $0x3ac] ss:$16 sps:$4 sm:$0xff]   ;;  %v7388_v5 = vld [vmem:[%s9290_s1 + $0x3a0] ss:$16 sps:$4 sm:$0xff]  }
  0x49   : > { %2971 = vmatprep.mubr.bf16.mxu0 %v7277_v6  ;;  %3936 = vmatprep.mubr.bf16.mxu1 %v7277_v6  ;;  %v7391_v6 = vld [vmem:[%s9290_s1 + $0x3a8] ss:$16 sps:$4 sm:$0xff]  }
  0x4a   : > { %3124 = vmatprep.subr.bf16.mxu0 %v7282_v7  ;;  %4089 = vmatprep.subr.bf16.mxu1 %v7285_v8  ;;  %v7399_v7 = vld [vmem:[%s9290_s1 + $0x3c4] ss:$16 sps:$4 sm:$0xff]   ;;  %v7402_v8 = vld [vmem:[%s9290_s1 + $0x3cc] ss:$16 sps:$4 sm:$0xff]  }
  0x4c   : > { %3125 = vmatpush1.bf16.msra.mxu0 %v7280_v9  ;;  %4090 = vmatpush1.bf16.msra.mxu1 %v7283_v10  ;;  %v7333_v9 = vld [vmem:[%s8030_s8 + $0x1f8] ss:$36 sps:$4 sm:$0xff]   ;;  %v7340_v10 = vld [vmem:[%s8030_s8 + $0x244] ss:$36 sps:$4 sm:$0xff]  }
  0x4d   : > { %3126 = vmatprep.subr.bf16.mxu0 %v7291_v11  ;;  %4091 = vmatprep.subr.bf16.mxu1 %v7294_v12  ;;  %v7397_v11 = vld [vmem:[%s9290_s1 + $0x3c0] ss:$16 sps:$4 sm:$0xff]   ;;  %v7400_v12 = vld [vmem:[%s9290_s1 + $0x3c8] ss:$16 sps:$4 sm:$0xff]  }
  0x4f   : > { %2972 = vmatmul.mubr.bf16.gmra.mrb[4].mxu0 %v7279_v13  ;;  %3937 = vmatmul.mubr.bf16.gmra.mrb[4].mxu1 %v7279_v13  ;;  %v7408_v13 = vld [vmem:[%s9290_s1 + $0x3e4] ss:$16 sps:$4 sm:$0xff]  }
  0x50   : > { %2981 = vmatprep.mubr.bf16.mxu0 %v7286_v14  ;;  %3946 = vmatprep.mubr.bf16.mxu1 %v7286_v14  ;;  %v7411_v14 = vld [vmem:[%s9290_s1 + $0x3ec] ss:$16 sps:$4 sm:$0xff]  }
  0x51   : > { %3127 = vmatpush1.bf16.msra.mxu0 %v7289_v15  ;;  %4092 = vmatpush1.bf16.msra.mxu1 %v7292_v16  ;;  %v7406_v15 = vld [vmem:[%s9290_s1 + $0x3e0] ss:$16 sps:$4 sm:$0xff]   ;;  %v7409_v16 = vld [vmem:[%s9290_s1 + $0x3e8] ss:$16 sps:$4 sm:$0xff]  }
  0x52   : > { %3128 = vmatprep.subr.bf16.mxu0 %v7300_v17  ;;  %4093 = vmatprep.subr.bf16.mxu1 %v7303_v18  ;;  %v7417_v17 = vld [vmem:[%s9290_s1 + $0x404] ss:$16 sps:$4 sm:$0xff]   ;;  %v7420_v18 = vld [vmem:[%s9290_s1 + $0x40c] ss:$16 sps:$4 sm:$0xff]  }
  0x55   : > { %3129 = vmatpush1.bf16.msra.mxu0 %v7298_v19  ;;  %4094 = vmatpush1.bf16.msra.mxu1 %v7301_v20  ;;  %v7342_v19 = vld [vmem:[%s8030_s8 + $0x240] ss:$36 sps:$4 sm:$0xff]   ;;  %v7349_v20 = vld [vmem:[%s8030_s8 + $0x28c] ss:$36 sps:$4 sm:$0xff]  }
  0x56   : > { %3130 = vmatprep.subr.bf16.mxu0 %v7309_v21  ;;  %4095 = vmatprep.subr.bf16.mxu1 %v7312_v22  ;;  %v7351_v21 = vld [vmem:[%s8030_s8 + $0x288] ss:$36 sps:$4 sm:$0xff]   ;;  %v7358_v22 = vld [vmem:[%s8030_s8 + $0x2d4] ss:$36 sps:$4 sm:$0xff]  }
  0x57   : > { %2982 = vmatmul.mubr.bf16.gmra.mrb[8].mxu0 %v7288_v23  ;;  %3947 = vmatmul.mubr.bf16.gmra.mrb[8].mxu1 %v7288_v23  ;;  %v7360_v23 = vld [vmem:[%s8030_s8 + $0x2d0] ss:$36 sps:$4 sm:$0xff]  }
  0x58   : > { %2991 = vmatprep.mubr.bf16.mxu0 %v7295_v24  ;;  %3956 = vmatprep.mubr.bf16.mxu1 %v7295_v24  ;;  %v7367_v24 = vld [vmem:[%s8030_s8 + $0x31c] ss:$36 sps:$4 sm:$0xff]  }
  0x59   : > { %3131 = vmatpush1.bf16.msra.mxu0 %v7307_v25  ;;  %4096 = vmatpush1.bf16.msra.mxu1 %v7310_v26  ;;  %v7369_v25 = vld [vmem:[%s8030_s8 + $0x318] ss:$36 sps:$4 sm:$0xff]   ;;  %v7376_v26 = vld [vmem:[%s8030_s8 + $0x364] ss:$36 sps:$4 sm:$0xff]  }
  0x5a   : > { %3132 = vmatprep.subr.bf16.mxu0 %v7318_v27  ;;  %4097 = vmatprep.subr.bf16.mxu1 %v7321_v28  ;;  %v7378_v27 = vld [vmem:[%s8030_s8 + $0x360] ss:$36 sps:$4 sm:$0xff]   ;;  %v7385_v28 = vld [vmem:[%s8030_s8 + $0x3ac] ss:$36 sps:$4 sm:$0xff]  }
  0x5d   : > { %3133 = vmatpush1.bf16.msra.mxu0 %v7316_v29  ;;  %4098 = vmatpush1.bf16.msra.mxu1 %v7319_v30  ;;  %v7387_v29 = vld [vmem:[%s8030_s8 + $0x3a8] ss:$36 sps:$4 sm:$0xff]   ;;  %v7394_v30 = vld [vmem:[%s8030_s8 + $0x3f4] ss:$36 sps:$4 sm:$0xff]  }
  0x5e   : > { %3134 = vmatprep.subr.bf16.mxu0 %v7327_v31  ;;  %4099 = vmatprep.subr.bf16.mxu1 %v7330_v32  ;;  %v7396_v31 = vld [vmem:[%s8030_s8 + $0x3f0] ss:$36 sps:$4 sm:$0xff]   ;;  %v7403_v32 = vld [vmem:[%s8030_s8 + $0x43c] ss:$36 sps:$4 sm:$0xff]  }
  0x5f   : > { %2992 = vmatmul.mubr.bf16.gmra.mrb[12].mxu0 %v7297_v33  ;;  %3957 = vmatmul.mubr.bf16.gmra.mrb[12].mxu1 %v7297_v33  ;;  %v7405_v33 = vld [vmem:[%s8030_s8 + $0x438] ss:$36 sps:$4 sm:$0xff]  }
  0x60   : > { %3001 = vmatprep.mubr.bf16.mxu0 %v7304_v34  ;;  %3966 = vmatprep.mubr.bf16.mxu1 %v7304_v34  ;;  %v7414_v34 = vld [vmem:[%s8030_s8 + $0xc] ss:$36 sps:$4 sm:$0xff]  }
  0x61   : > { %3135 = vmatpush1.bf16.msra.mxu0 %v7325_v35  ;;  %4100 = vmatpush1.bf16.msra.mxu1 %v7328_v36  ;;  %v7412_v35 = vld [vmem:[%s8030_s8 + $0x8] ss:$36 sps:$4 sm:$0xff]   ;;  %v7415_v36 = vld [vmem:[%s9290_s1 + $0x400] ss:$16 sps:$4 sm:$0xff]  }
  0x62   : > { %3136 = vmatprep.subr.bf16.mxu0 %v7336_v37  ;;  %4101 = vmatprep.subr.bf16.mxu1 %v7339_v38  ;;  %v7418_v37 = vld [vmem:[%s9290_s1 + $0x408] ss:$16 sps:$4 sm:$0xff]  }
  0x63   : > { %v7421_v38 = vld [vmem:[%s8030_s8 + $0x54] ss:$36 sps:$4 sm:$0xff]  }
  0x65   : > { %3137 = vmatpush1.bf16.msra.mxu0 %v7334_v39  ;;  %4102 = vmatpush1.bf16.msra.mxu1 %v7337_v40  ;;  %v7426_v39 = vld [vmem:[%s9290_s1 + $0x424] ss:$16 sps:$4 sm:$0xff]   ;;  %v7429_v40 = vld [vmem:[%s9290_s1 + $0x42c] ss:$16 sps:$4 sm:$0xff]  }
  0x66   : > { %3138 = vmatprep.subr.bf16.mxu0 %v7345_v41  ;;  %4103 = vmatprep.subr.bf16.mxu1 %v7348_v42  ;;  %v7424_v41 = vld [vmem:[%s9290_s1 + $0x420] ss:$16 sps:$4 sm:$0xff]   ;;  %v7427_v42 = vld [vmem:[%s9290_s1 + $0x428] ss:$16 sps:$4 sm:$0xff]  }
  0x67   : > { %3002 = vmatmul.mubr.bf16.gmra.mrb[16].mxu0 %v7306_v43  ;;  %3967 = vmatmul.mubr.bf16.gmra.mrb[16].mxu1 %v7306_v43  ;;  %v7435_v43 = vld [vmem:[%s9290_s1 + $0x444] ss:$16 sps:$4 sm:$0xff]  }
  0x68   : > { %3011 = vmatprep.mubr.bf16.mxu0 %v7313_v44  ;;  %3976 = vmatprep.mubr.bf16.mxu1 %v7313_v44  ;;  %v7423_v44 = vld [vmem:[%s8030_s8 + $0x50] ss:$36 sps:$4 sm:$0xff]  }
  0x69   : > { %3139 = vmatpush1.bf16.msra.mxu0 %v7343_v45  ;;  %4104 = vmatpush1.bf16.msra.mxu1 %v7346_v46  ;;  %v7438_v45 = vld [vmem:[%s9290_s1 + $0x44c] ss:$16 sps:$4 sm:$0xff]  }
  0x6a   : > { %3140 = vmatprep.subr.bf16.mxu0 %v7354_v47  ;;  %4105 = vmatprep.subr.bf16.mxu1 %v7357_v48  ;;  %v7430_v46 = vld [vmem:[%s8030_s8 + $0x9c] ss:$36 sps:$4 sm:$0xff]   ;;  %v7436_v48 = vld [vmem:[%s9290_s1 + $0x448] ss:$16 sps:$4 sm:$0xff]  }
  0x6b   : > { %v7433_v47 = vld [vmem:[%s9290_s1 + $0x440] ss:$16 sps:$4 sm:$0xff]  }
  0x6d   : > { %3141 = vmatpush1.bf16.msra.mxu0 %v7352_v49  ;;  %4106 = vmatpush1.bf16.msra.mxu1 %v7355_v50  ;;  %v7444_v49 = vld [vmem:[%s9290_s1 + $0x464] ss:$16 sps:$4 sm:$0xff]   ;;  %v7447_v50 = vld [vmem:[%s9290_s1 + $0x46c] ss:$16 sps:$4 sm:$0xff]  }
  0x6e   : > { %3142 = vmatprep.subr.bf16.mxu0 %v7363_v51  ;;  %4107 = vmatprep.subr.bf16.mxu1 %v7366_v52  ;;  %v7442_v51 = vld [vmem:[%s9290_s1 + $0x460] ss:$16 sps:$4 sm:$0xff]   ;;  %v7445_v52 = vld [vmem:[%s9290_s1 + $0x468] ss:$16 sps:$4 sm:$0xff]  }
  0x6f   : > { %3012 = vmatmul.mubr.bf16.gmra.mrb[20].mxu0 %v7315_v53  ;;  %3977 = vmatmul.mubr.bf16.gmra.mrb[20].mxu1 %v7315_v53  ;;  %v7453_v53 = vld [vmem:[%s9290_s1 + $0x484] ss:$16 sps:$4 sm:$0xff]  }
  0x70   : > { %3021 = vmatprep.mubr.bf16.mxu0 %v7322_v54  ;;  %3986 = vmatprep.mubr.bf16.mxu1 %v7322_v54  ;;  %v7456_v54 = vld [vmem:[%s9290_s1 + $0x48c] ss:$16 sps:$4 sm:$0xff]  }
  0x71   : > { %3143 = vmatpush1.bf16.msra.mxu0 %v7361_v55  ;;  %4108 = vmatpush1.bf16.msra.mxu1 %v7364_v56  ;;  %v7432_v55 = vld [vmem:[%s8030_s8 + $0x98] ss:$36 sps:$4 sm:$0xff]   ;;  %v7439_v56 = vld [vmem:[%s8030_s8 + $0xe4] ss:$36 sps:$4 sm:$0xff]  }
  0x72   : > { %3144 = vmatprep.subr.bf16.mxu0 %v7372_v57  ;;  %4109 = vmatprep.subr.bf16.mxu1 %v7375_v58  ;;  %v7451_v57 = vld [vmem:[%s9290_s1 + $0x480] ss:$16 sps:$4 sm:$0xff]   ;;  %v7454_v58 = vld [vmem:[%s9290_s1 + $0x488] ss:$16 sps:$4 sm:$0xff]  }
  0x75   : > { %3145 = vmatpush1.bf16.msra.mxu0 %v7370_v59  ;;  %4110 = vmatpush1.bf16.msra.mxu1 %v7373_v60  ;;  %v7462_v59 = vld [vmem:[%s9290_s1 + $0x4a4] ss:$16 sps:$4 sm:$0xff]   ;;  %v7465_v60 = vld [vmem:[%s9290_s1 + $0x4ac] ss:$16 sps:$4 sm:$0xff]  }
  0x76   : > { %3146 = vmatprep.subr.bf16.mxu0 %v7381_v61  ;;  %4111 = vmatprep.subr.bf16.mxu1 %v7384_v62  ;;  %v7460_v61 = vld [vmem:[%s9290_s1 + $0x4a0] ss:$16 sps:$4 sm:$0xff]   ;;  %v7463_v62 = vld [vmem:[%s9290_s1 + $0x4a8] ss:$16 sps:$4 sm:$0xff]  }
  0x77   : > { %3022 = vmatmul.mubr.bf16.gmra.mrb[24].mxu0 %v7324_v63  ;;  %3987 = vmatmul.mubr.bf16.gmra.mrb[24].mxu1 %v7324_v63  ;;  %v7471_v63 = vld [vmem:[%s9290_s1 + $0x4c4] ss:$16 sps:$4 sm:$0xff]  }
  0x78   : > { %3031 = vmatprep.mubr.bf16.mxu0 %v7331_v0  ;;  %3996 = vmatprep.mubr.bf16.mxu1 %v7331_v0  ;;  %v7474_v0 = vld [vmem:[%s9290_s1 + $0x4cc] ss:$16 sps:$4 sm:$0xff]  }
  0x79   : > { %3147 = vmatpush1.bf16.msra.mxu0 %v7379_v1  ;;  %4112 = vmatpush1.bf16.msra.mxu1 %v7382_v2  ;;  %v7441_v1 = vld [vmem:[%s8030_s8 + $0xe0] ss:$36 sps:$4 sm:$0xff]   ;;  %v7448_v2 = vld [vmem:[%s8030_s8 + $0x12c] ss:$36 sps:$4 sm:$0xff]  }
  0x7a   : > { %3148 = vmatprep.subr.bf16.mxu0 %v7390_v3  ;;  %4113 = vmatprep.subr.bf16.mxu1 %v7393_v4  ;;  %v7469_v3 = vld [vmem:[%s9290_s1 + $0x4c0] ss:$16 sps:$4 sm:$0xff]   ;;  %v7472_v4 = vld [vmem:[%s9290_s1 + $0x4c8] ss:$16 sps:$4 sm:$0xff]  }
  0x7d   : > { %3149 = vmatpush1.bf16.msra.mxu0 %v7388_v5  ;;  %4114 = vmatpush1.bf16.msra.mxu1 %v7391_v6  ;;  %v7480_v5 = vld [vmem:[%s9290_s1 + $0x4e4] ss:$16 sps:$4 sm:$0xff]   ;;  %v7483_v6 = vld [vmem:[%s9290_s1 + $0x4ec] ss:$16 sps:$4 sm:$0xff]  }
  0x7e   : > { %3150 = vmatprep.subr.bf16.mxu0 %v7399_v7  ;;  %4115 = vmatprep.subr.bf16.mxu1 %v7402_v8  ;;  %v7478_v7 = vld [vmem:[%s9290_s1 + $0x4e0] ss:$16 sps:$4 sm:$0xff]   ;;  %v7481_v8 = vld [vmem:[%s9290_s1 + $0x4e8] ss:$16 sps:$4 sm:$0xff]  }
  0x7f   : > { %3032 = vmatmul.mubr.bf16.gmra.mrb[28].mxu0 %v7333_v9  ;;  %3997 = vmatmul.mubr.bf16.gmra.mrb[28].mxu1 %v7333_v9  ;;  %v7489_v9 = vld [vmem:[%s9290_s1 + $0x504] ss:$16 sps:$4 sm:$0xff]  }
  0x80   : > { %3041 = vmatprep.mubr.bf16.mxu0 %v7340_v10  ;;  %4006 = vmatprep.mubr.bf16.mxu1 %v7340_v10  ;;  %v7492_v10 = vld [vmem:[%s9290_s1 + $0x50c] ss:$16 sps:$4 sm:$0xff]  }
  0x81   : > { %3151 = vmatpush1.bf16.msra.mxu0 %v7397_v11  ;;  %4116 = vmatpush1.bf16.msra.mxu1 %v7400_v12  ;;  %v7450_v11 = vld [vmem:[%s8030_s8 + $0x128] ss:$36 sps:$4 sm:$0xff]   ;;  %v7457_v12 = vld [vmem:[%s8030_s8 + $0x174] ss:$36 sps:$4 sm:$0xff]  }
  0x82   : > { %3152 = vmatprep.subr.bf16.mxu0 %v7408_v13  ;;  %4117 = vmatprep.subr.bf16.mxu1 %v7411_v14  ;;  %v7487_v13 = vld [vmem:[%s9290_s1 + $0x500] ss:$16 sps:$4 sm:$0xff]   ;;  %v7490_v14 = vld [vmem:[%s9290_s1 + $0x508] ss:$16 sps:$4 sm:$0xff]  }
  0x85   : > { %3153 = vmatpush1.bf16.msra.mxu0 %v7406_v15  ;;  %4118 = vmatpush1.bf16.msra.mxu1 %v7409_v16  ;;  %v7498_v15 = vld [vmem:[%s9290_s1 + $0x524] ss:$16 sps:$4 sm:$0xff]   ;;  %v7501_v16 = vld [vmem:[%s9290_s1 + $0x52c] ss:$16 sps:$4 sm:$0xff]  }
  0x86   : > { %3315 = vmatprep.subr.bf16.mxu0 %v7417_v17  ;;  %4280 = vmatprep.subr.bf16.mxu1 %v7420_v18  ;;  %v7496_v17 = vld [vmem:[%s9290_s1 + $0x520] ss:$16 sps:$4 sm:$0xff]   ;;  %v7499_v18 = vld [vmem:[%s9290_s1 + $0x528] ss:$16 sps:$4 sm:$0xff]  }
  0x87   : > { %3042 = vmatmul.mubr.bf16.gmra.mrb[32].mxu0 %v7342_v19  ;;  %4007 = vmatmul.mubr.bf16.gmra.mrb[32].mxu1 %v7342_v19  ;;  %v7507_v19 = vld [vmem:[%s9290_s1 + $0x544] ss:$16 sps:$4 sm:$0xff]  }
  0x88   : > { %3051 = vmatprep.mubr.bf16.mxu0 %v7349_v20  ;;  %4016 = vmatprep.mubr.bf16.mxu1 %v7349_v20  ;;  %v7510_v20 = vld [vmem:[%s9290_s1 + $0x54c] ss:$16 sps:$4 sm:$0xff]  }
  0x8f   : > { %3052 = vmatmul.mubr.bf16.gmra.mrb[36].mxu0 %v7351_v21  ;;  %4017 = vmatmul.mubr.bf16.gmra.mrb[36].mxu1 %v7351_v21  ;;  %v7459_v21 = vld [vmem:[%s8030_s8 + $0x170] ss:$36 sps:$4 sm:$0xff]  }
  0x90   : > { %3061 = vmatprep.mubr.bf16.mxu0 %v7358_v22  ;;  %4026 = vmatprep.mubr.bf16.mxu1 %v7358_v22  ;;  %v7466_v22 = vld [vmem:[%s8030_s8 + $0x1bc] ss:$36 sps:$4 sm:$0xff]  }
  0x97   : > { %3062 = vmatmul.mubr.bf16.gmra.mrb[40].mxu0 %v7360_v23  ;;  %4027 = vmatmul.mubr.bf16.gmra.mrb[40].mxu1 %v7360_v23  ;;  %v7505_v23 = vld [vmem:[%s9290_s1 + $0x540] ss:$16 sps:$4 sm:$0xff]  }
  0x98   : > { %3071 = vmatprep.mubr.bf16.mxu0 %v7367_v24  ;;  %4036 = vmatprep.mubr.bf16.mxu1 %v7367_v24  ;;  %v7508_v24 = vld [vmem:[%s9290_s1 + $0x548] ss:$16 sps:$4 sm:$0xff]  }
  0x9f   : > { %3072 = vmatmul.mubr.bf16.gmra.mrb[44].mxu0 %v7369_v25  ;;  %4037 = vmatmul.mubr.bf16.gmra.mrb[44].mxu1 %v7369_v25  ;;  %v7516_v25 = vld [vmem:[%s9290_s1 + $0x564] ss:$16 sps:$4 sm:$0xff]  }
  0xa0   : > { %3081 = vmatprep.mubr.bf16.mxu0 %v7376_v26  ;;  %4046 = vmatprep.mubr.bf16.mxu1 %v7376_v26  ;;  %v7519_v26 = vld [vmem:[%s9290_s1 + $0x56c] ss:$16 sps:$4 sm:$0xff]  }
  0xa7   : > { %3082 = vmatmul.mubr.bf16.gmra.mrb[48].mxu0 %v7378_v27  ;;  %4047 = vmatmul.mubr.bf16.gmra.mrb[48].mxu1 %v7378_v27  ;;  %v7514_v27 = vld [vmem:[%s9290_s1 + $0x560] ss:$16 sps:$4 sm:$0xff]  }
  0xa8   : > { %3091 = vmatprep.mubr.bf16.mxu0 %v7385_v28  ;;  %4056 = vmatprep.mubr.bf16.mxu1 %v7385_v28  ;;  %v7517_v28 = vld [vmem:[%s9290_s1 + $0x568] ss:$16 sps:$4 sm:$0xff]  }
  0xaf   : > { %3092 = vmatmul.mubr.bf16.gmra.mrb[52].mxu0 %v7387_v29  ;;  %4057 = vmatmul.mubr.bf16.gmra.mrb[52].mxu1 %v7387_v29  ;;  %v7525_v29 = vld [vmem:[%s9290_s1 + $0x584] ss:$16 sps:$4 sm:$0xff]  }
  0xb0   : > { %3101 = vmatprep.mubr.bf16.mxu0 %v7394_v30  ;;  %4066 = vmatprep.mubr.bf16.mxu1 %v7394_v30  ;;  %v7528_v30 = vld [vmem:[%s9290_s1 + $0x58c] ss:$16 sps:$4 sm:$0xff]  }
  0xb7   : > { %3102 = vmatmul.mubr.bf16.gmra.mrb[56].mxu0 %v7396_v31  ;;  %4067 = vmatmul.mubr.bf16.gmra.mrb[56].mxu1 %v7396_v31  ;;  %v7468_v31 = vld [vmem:[%s8030_s8 + $0x1b8] ss:$36 sps:$4 sm:$0xff]  }
  0xb8   : > { %3111 = vmatprep.mubr.bf16.mxu0 %v7403_v32  ;;  %4076 = vmatprep.mubr.bf16.mxu1 %v7403_v32  ;;  %v7475_v32 = vld [vmem:[%s8030_s8 + $0x204] ss:$36 sps:$4 sm:$0xff]  }
  0xbf   : > { %3112 = vmatmul.mubr.bf16.gmra.mrb[60].mxu0 %v7405_v33  ;;  %4077 = vmatmul.mubr.bf16.gmra.mrb[60].mxu1 %v7405_v33  ;;  %v7523_v33 = vld [vmem:[%s9290_s1 + $0x580] ss:$16 sps:$4 sm:$0xff]  }
  0xc0   : > { %3154 = vmatprep.mubr.bf16.mxu0 %v7414_v34  ;;  %4119 = vmatprep.mubr.bf16.mxu1 %v7414_v34  ;;  %v7526_v34 = vld [vmem:[%s9290_s1 + $0x588] ss:$16 sps:$4 sm:$0xff]  }
  0xc7   : > { %3155 = vmatmul.mubr.bf16.vlgmr.msra.gmra.mrb[0].mxu0 %v7412_v35  ;;  %4120 = vmatmul.mubr.bf16.vlgmr.msra.gmra.mrb[0].mxu1 %v7412_v35  ;;  %v7534_v35 = vld [vmem:[%s9290_s1 + $0x5a4] ss:$16 sps:$4 sm:$0xff]  }
  0xc8   : > { %3316 = vmatpush1.bf16.msra.mxu0 %v7415_v36  ;;  %4281 = vmatpush1.bf16.msra.mxu1 %v7418_v37  ;;  %v7537_v36 = vld [vmem:[%s9290_s1 + $0x5ac] ss:$16 sps:$4 sm:$0xff]   ;;  %v7532_v37 = vld [vmem:[%s9290_s1 + $0x5a0] ss:$16 sps:$4 sm:$0xff]  }
  0xc9   : > { %3164 = vmatprep.mubr.bf16.mxu0 %v7421_v38  ;;  %4129 = vmatprep.mubr.bf16.mxu1 %v7421_v38  ;;  %v7535_v38 = vld [vmem:[%s9290_s1 + $0x5a8] ss:$16 sps:$4 sm:$0xff]  }
  0xca   : > { %3317 = vmatprep.subr.bf16.mxu0 %v7426_v39  ;;  %4282 = vmatprep.subr.bf16.mxu1 %v7429_v40  ;;  %v7543_v39 = vld [vmem:[%s9290_s1 + $0x5c4] ss:$16 sps:$4 sm:$0xff]   ;;  %v7546_v40 = vld [vmem:[%s9290_s1 + $0x5cc] ss:$16 sps:$4 sm:$0xff]  }
  0xcc   : > { %3318 = vmatpush1.bf16.msra.mxu0 %v7424_v41  ;;  %4283 = vmatpush1.bf16.msra.mxu1 %v7427_v42  ;;  %v7477_v41 = vld [vmem:[%s8030_s8 + $0x200] ss:$36 sps:$4 sm:$0xff]   ;;  %v7484_v42 = vld [vmem:[%s8030_s8 + $0x24c] ss:$36 sps:$4 sm:$0xff]  }
  0xcd   : > { %3319 = vmatprep.subr.bf16.mxu0 %v7435_v43  ;;  %4284 = vmatprep.subr.bf16.mxu1 %v7438_v45  ;;  %v7541_v43 = vld [vmem:[%s9290_s1 + $0x5c0] ss:$16 sps:$4 sm:$0xff]   ;;  %v7552_v45 = vld [vmem:[%s9290_s1 + $0x5e4] ss:$16 sps:$4 sm:$0xff]  }
  0xcf   : > { %3165 = vmatmul.mubr.bf16.gmra.mrb[4].mxu0 %v7423_v44  ;;  %4130 = vmatmul.mubr.bf16.gmra.mrb[4].mxu1 %v7423_v44  ;;  %v7544_v44 = vld [vmem:[%s9290_s1 + $0x5c8] ss:$16 sps:$4 sm:$0xff]  }
  0xd0   : > { %3174 = vmatprep.mubr.bf16.mxu0 %v7430_v46  ;;  %4139 = vmatprep.mubr.bf16.mxu1 %v7430_v46  ;;  %v7555_v46 = vld [vmem:[%s9290_s1 + $0x5ec] ss:$16 sps:$4 sm:$0xff]  }
  0xd1   : > { %3320 = vmatpush1.bf16.msra.mxu0 %v7433_v47  ;;  %4285 = vmatpush1.bf16.msra.mxu1 %v7436_v48  ;;  %v7550_v47 = vld [vmem:[%s9290_s1 + $0x5e0] ss:$16 sps:$4 sm:$0xff]   ;;  %v7553_v48 = vld [vmem:[%s9290_s1 + $0x5e8] ss:$16 sps:$4 sm:$0xff]  }
  0xd2   : > { %3321 = vmatprep.subr.bf16.mxu0 %v7444_v49  ;;  %4286 = vmatprep.subr.bf16.mxu1 %v7447_v50  ;;  %v7561_v49 = vld [vmem:[%s9290_s1 + $0x604] ss:$16 sps:$4 sm:$0xff]   ;;  %v7564_v50 = vld [vmem:[%s9290_s1 + $0x60c] ss:$16 sps:$4 sm:$0xff]  }
  0xd5   : > { %3322 = vmatpush1.bf16.msra.mxu0 %v7442_v51  ;;  %4287 = vmatpush1.bf16.msra.mxu1 %v7445_v52  ;;  %v7486_v51 = vld [vmem:[%s8030_s8 + $0x248] ss:$36 sps:$4 sm:$0xff]   ;;  %v7493_v52 = vld [vmem:[%s8030_s8 + $0x294] ss:$36 sps:$4 sm:$0xff]  }
  0xd6   : > { %3323 = vmatprep.subr.bf16.mxu0 %v7453_v53  ;;  %4288 = vmatprep.subr.bf16.mxu1 %v7456_v54  ;;  %v7495_v53 = vld [vmem:[%s8030_s8 + $0x290] ss:$36 sps:$4 sm:$0xff]   ;;  %v7502_v54 = vld [vmem:[%s8030_s8 + $0x2dc] ss:$36 sps:$4 sm:$0xff]  }
  0xd7   : > { %3175 = vmatmul.mubr.bf16.gmra.mrb[8].mxu0 %v7432_v55  ;;  %4140 = vmatmul.mubr.bf16.gmra.mrb[8].mxu1 %v7432_v55  ;;  %v7504_v55 = vld [vmem:[%s8030_s8 + $0x2d8] ss:$36 sps:$4 sm:$0xff]  }
  0xd8   : > { %3184 = vmatprep.mubr.bf16.mxu0 %v7439_v56  ;;  %4149 = vmatprep.mubr.bf16.mxu1 %v7439_v56  ;;  %v7511_v56 = vld [vmem:[%s8030_s8 + $0x324] ss:$36 sps:$4 sm:$0xff]  }
  0xd9   : > { %3324 = vmatpush1.bf16.msra.mxu0 %v7451_v57  ;;  %4289 = vmatpush1.bf16.msra.mxu1 %v7454_v58  ;;  %v7513_v57 = vld [vmem:[%s8030_s8 + $0x320] ss:$36 sps:$4 sm:$0xff]   ;;  %v7520_v58 = vld [vmem:[%s8030_s8 + $0x36c] ss:$36 sps:$4 sm:$0xff]  }
  0xda   : > { %3325 = vmatprep.subr.bf16.mxu0 %v7462_v59  ;;  %4290 = vmatprep.subr.bf16.mxu1 %v7465_v60  ;;  %v7522_v59 = vld [vmem:[%s8030_s8 + $0x368] ss:$36 sps:$4 sm:$0xff]   ;;  %v7529_v60 = vld [vmem:[%s8030_s8 + $0x3b4] ss:$36 sps:$4 sm:$0xff]  }
  0xdd   : > { %3326 = vmatpush1.bf16.msra.mxu0 %v7460_v61  ;;  %4291 = vmatpush1.bf16.msra.mxu1 %v7463_v62  ;;  %v7531_v61 = vld [vmem:[%s8030_s8 + $0x3b0] ss:$36 sps:$4 sm:$0xff]   ;;  %v7538_v62 = vld [vmem:[%s8030_s8 + $0x3fc] ss:$36 sps:$4 sm:$0xff]  }
  0xde   : > { %3327 = vmatprep.subr.bf16.mxu0 %v7471_v63  ;;  %4292 = vmatprep.subr.bf16.mxu1 %v7474_v0  ;;  %v7540_v63 = vld [vmem:[%s8030_s8 + $0x3f8] ss:$36 sps:$4 sm:$0xff]   ;;  %v7547_v0 = vld [vmem:[%s8030_s8 + $0x444] ss:$36 sps:$4 sm:$0xff]  }
  0xdf   : > { %3185 = vmatmul.mubr.bf16.gmra.mrb[12].mxu0 %v7441_v1  ;;  %4150 = vmatmul.mubr.bf16.gmra.mrb[12].mxu1 %v7441_v1  ;;  %v7549_v1 = vld [vmem:[%s8030_s8 + $0x440] ss:$36 sps:$4 sm:$0xff]  }
  0xe0   : > { %3194 = vmatprep.mubr.bf16.mxu0 %v7448_v2  ;;  %4159 = vmatprep.mubr.bf16.mxu1 %v7448_v2  ;;  %v7558_v2 = vld [vmem:[%s8030_s8 + $0x14] ss:$36 sps:$4 sm:$0xff]  }
  0xe1   : > { %3328 = vmatpush1.bf16.msra.mxu0 %v7469_v3  ;;  %4293 = vmatpush1.bf16.msra.mxu1 %v7472_v4  ;;  %v7556_v3 = vld [vmem:[%s8030_s8 + $0x10] ss:$36 sps:$4 sm:$0xff]  }
  0xe2   : > { %3329 = vmatprep.subr.bf16.mxu0 %v7480_v5  ;;  %4294 = vmatprep.subr.bf16.mxu1 %v7483_v6  ;;  %v7559_v4 = vld [vmem:[%s9290_s1 + $0x600] ss:$16 sps:$4 sm:$0xff]   ;;  %v7562_v5 = vld [vmem:[%s9290_s1 + $0x608] ss:$16 sps:$4 sm:$0xff]  }
  0xe3   : > { %v7565_v6 = vld [vmem:[%s8030_s8 + $0x5c] ss:$36 sps:$4 sm:$0xff]  }
  0xe5   : > { %3330 = vmatpush1.bf16.msra.mxu0 %v7478_v7  ;;  %4295 = vmatpush1.bf16.msra.mxu1 %v7481_v8  ;;  %v7570_v7 = vld [vmem:[%s9290_s1 + $0x624] ss:$16 sps:$4 sm:$0xff]   ;;  %v7573_v8 = vld [vmem:[%s9290_s1 + $0x62c] ss:$16 sps:$4 sm:$0xff]  }
  0xe6   : > { %3331 = vmatprep.subr.bf16.mxu0 %v7489_v9  ;;  %4296 = vmatprep.subr.bf16.mxu1 %v7492_v10  ;;  %v7568_v9 = vld [vmem:[%s9290_s1 + $0x620] ss:$16 sps:$4 sm:$0xff]   ;;  %v7571_v10 = vld [vmem:[%s9290_s1 + $0x628] ss:$16 sps:$4 sm:$0xff]  }
  0xe7   : > { %3195 = vmatmul.mubr.bf16.gmra.mrb[16].mxu0 %v7450_v11  ;;  %4160 = vmatmul.mubr.bf16.gmra.mrb[16].mxu1 %v7450_v11  ;;  %v7579_v11 = vld [vmem:[%s9290_s1 + $0x644] ss:$16 sps:$4 sm:$0xff]  }
  0xe8   : > { %3204 = vmatprep.mubr.bf16.mxu0 %v7457_v12  ;;  %4169 = vmatprep.mubr.bf16.mxu1 %v7457_v12  ;;  %v7582_v12 = vld [vmem:[%s9290_s1 + $0x64c] ss:$16 sps:$4 sm:$0xff]  }
  0xe9   : > { %3332 = vmatpush1.bf16.msra.mxu0 %v7487_v13  ;;  %4297 = vmatpush1.bf16.msra.mxu1 %v7490_v14  ;;  %v7567_v13 = vld [vmem:[%s8030_s8 + $0x58] ss:$36 sps:$4 sm:$0xff]   ;;  %v7574_v14 = vld [vmem:[%s8030_s8 + $0xa4] ss:$36 sps:$4 sm:$0xff]  }
  0xea   : > { %3333 = vmatprep.subr.bf16.mxu0 %v7498_v15  ;;  %4298 = vmatprep.subr.bf16.mxu1 %v7501_v16  ;;  %v7577_v15 = vld [vmem:[%s9290_s1 + $0x640] ss:$16 sps:$4 sm:$0xff]   ;;  %v7580_v16 = vld [vmem:[%s9290_s1 + $0x648] ss:$16 sps:$4 sm:$0xff]  }
  0xed   : > { %3334 = vmatpush1.bf16.msra.mxu0 %v7496_v17  ;;  %4299 = vmatpush1.bf16.msra.mxu1 %v7499_v18  ;;  %v7588_v17 = vld [vmem:[%s9290_s1 + $0x664] ss:$16 sps:$4 sm:$0xff]   ;;  %v7591_v18 = vld [vmem:[%s9290_s1 + $0x66c] ss:$16 sps:$4 sm:$0xff]  }
  0xee   : > { %3335 = vmatprep.subr.bf16.mxu0 %v7507_v19  ;;  %4300 = vmatprep.subr.bf16.mxu1 %v7510_v20  ;;  %v7586_v19 = vld [vmem:[%s9290_s1 + $0x660] ss:$16 sps:$4 sm:$0xff]   ;;  %v7589_v20 = vld [vmem:[%s9290_s1 + $0x668] ss:$16 sps:$4 sm:$0xff]  }
  0xef   : > { %3205 = vmatmul.mubr.bf16.gmra.mrb[20].mxu0 %v7459_v21  ;;  %4170 = vmatmul.mubr.bf16.gmra.mrb[20].mxu1 %v7459_v21  ;;  %v7597_v21 = vld [vmem:[%s9290_s1 + $0x684] ss:$16 sps:$4 sm:$0xff]  }
  0xf0   : > { %3214 = vmatprep.mubr.bf16.mxu0 %v7466_v22  ;;  %4179 = vmatprep.mubr.bf16.mxu1 %v7466_v22  ;;  %v7600_v22 = vld [vmem:[%s9290_s1 + $0x68c] ss:$16 sps:$4 sm:$0xff]  }
  0xf1   : > { %3336 = vmatpush1.bf16.msra.mxu0 %v7505_v23  ;;  %4301 = vmatpush1.bf16.msra.mxu1 %v7508_v24  ;;  %v7576_v23 = vld [vmem:[%s8030_s8 + $0xa0] ss:$36 sps:$4 sm:$0xff]   ;;  %v7583_v24 = vld [vmem:[%s8030_s8 + $0xec] ss:$36 sps:$4 sm:$0xff]  }
  0xf2   : > { %3337 = vmatprep.subr.bf16.mxu0 %v7516_v25  ;;  %4302 = vmatprep.subr.bf16.mxu1 %v7519_v26  ;;  %v7595_v25 = vld [vmem:[%s9290_s1 + $0x680] ss:$16 sps:$4 sm:$0xff]   ;;  %v7598_v26 = vld [vmem:[%s9290_s1 + $0x688] ss:$16 sps:$4 sm:$0xff]  }
  0xf5   : > { %3338 = vmatpush1.bf16.msra.mxu0 %v7514_v27  ;;  %4303 = vmatpush1.bf16.msra.mxu1 %v7517_v28  ;;  %v7606_v27 = vld [vmem:[%s9290_s1 + $0x6a4] ss:$16 sps:$4 sm:$0xff]   ;;  %v7609_v28 = vld [vmem:[%s9290_s1 + $0x6ac] ss:$16 sps:$4 sm:$0xff]  }
  0xf6   : > { %3339 = vmatprep.subr.bf16.mxu0 %v7525_v29  ;;  %4304 = vmatprep.subr.bf16.mxu1 %v7528_v30  ;;  %v7604_v29 = vld [vmem:[%s9290_s1 + $0x6a0] ss:$16 sps:$4 sm:$0xff]   ;;  %v7607_v30 = vld [vmem:[%s9290_s1 + $0x6a8] ss:$16 sps:$4 sm:$0xff]  }
  0xf7   : > { %3215 = vmatmul.mubr.bf16.gmra.mrb[24].mxu0 %v7468_v31  ;;  %4180 = vmatmul.mubr.bf16.gmra.mrb[24].mxu1 %v7468_v31  ;;  %v7615_v31 = vld [vmem:[%s9290_s1 + $0x6c4] ss:$16 sps:$4 sm:$0xff]  }
  0xf8   : > { %3224 = vmatprep.mubr.bf16.mxu0 %v7475_v32  ;;  %4189 = vmatprep.mubr.bf16.mxu1 %v7475_v32  ;;  %v7618_v32 = vld [vmem:[%s9290_s1 + $0x6cc] ss:$16 sps:$4 sm:$0xff]  }
  0xf9   : > { %3340 = vmatpush1.bf16.msra.mxu0 %v7523_v33  ;;  %4305 = vmatpush1.bf16.msra.mxu1 %v7526_v34  ;;  %v7585_v33 = vld [vmem:[%s8030_s8 + $0xe8] ss:$36 sps:$4 sm:$0xff]   ;;  %v7592_v34 = vld [vmem:[%s8030_s8 + $0x134] ss:$36 sps:$4 sm:$0xff]  }
  0xfa   : > { %3341 = vmatprep.subr.bf16.mxu0 %v7534_v35  ;;  %4306 = vmatprep.subr.bf16.mxu1 %v7537_v36  ;;  %v7613_v35 = vld [vmem:[%s9290_s1 + $0x6c0] ss:$16 sps:$4 sm:$0xff]   ;;  %v7616_v36 = vld [vmem:[%s9290_s1 + $0x6c8] ss:$16 sps:$4 sm:$0xff]  }
  0xfd   : > { %3342 = vmatpush1.bf16.msra.mxu0 %v7532_v37  ;;  %4307 = vmatpush1.bf16.msra.mxu1 %v7535_v38  ;;  %v7624_v37 = vld [vmem:[%s9290_s1 + $0x6e4] ss:$16 sps:$4 sm:$0xff]   ;;  %v7627_v38 = vld [vmem:[%s9290_s1 + $0x6ec] ss:$16 sps:$4 sm:$0xff]  }
  0xfe   : > { %3343 = vmatprep.subr.bf16.mxu0 %v7543_v39  ;;  %4308 = vmatprep.subr.bf16.mxu1 %v7546_v40  ;;  %v7622_v39 = vld [vmem:[%s9290_s1 + $0x6e0] ss:$16 sps:$4 sm:$0xff]   ;;  %v7625_v40 = vld [vmem:[%s9290_s1 + $0x6e8] ss:$16 sps:$4 sm:$0xff]  }
  0xff   : > { %3225 = vmatmul.mubr.bf16.gmra.mrb[28].mxu0 %v7477_v41  ;;  %4190 = vmatmul.mubr.bf16.gmra.mrb[28].mxu1 %v7477_v41  ;;  %v7633_v41 = vld [vmem:[%s9290_s1 + $0x704] ss:$16 sps:$4 sm:$0xff]  }
 0x100   : > { %3234 = vmatprep.mubr.bf16.mxu0 %v7484_v42  ;;  %4199 = vmatprep.mubr.bf16.mxu1 %v7484_v42  ;;  %v7636_v42 = vld [vmem:[%s9290_s1 + $0x70c] ss:$16 sps:$4 sm:$0xff]  }
 0x101   : > { %3344 = vmatpush1.bf16.msra.mxu0 %v7541_v43  ;;  %4309 = vmatpush1.bf16.msra.mxu1 %v7544_v44  ;;  %v7594_v43 = vld [vmem:[%s8030_s8 + $0x130] ss:$36 sps:$4 sm:$0xff]   ;;  %v7601_v44 = vld [vmem:[%s8030_s8 + $0x17c] ss:$36 sps:$4 sm:$0xff]  }
 0x102   : > { %3345 = vmatprep.subr.bf16.mxu0 %v7552_v45  ;;  %4310 = vmatprep.subr.bf16.mxu1 %v7555_v46  ;;  %v7631_v45 = vld [vmem:[%s9290_s1 + $0x700] ss:$16 sps:$4 sm:$0xff]   ;;  %v7634_v46 = vld [vmem:[%s9290_s1 + $0x708] ss:$16 sps:$4 sm:$0xff]  }
 0x105   : > { %3346 = vmatpush1.bf16.msra.mxu0 %v7550_v47  ;;  %4311 = vmatpush1.bf16.msra.mxu1 %v7553_v48  ;;  %v7642_v47 = vld [vmem:[%s9290_s1 + $0x724] ss:$16 sps:$4 sm:$0xff]   ;;  %v7645_v48 = vld [vmem:[%s9290_s1 + $0x72c] ss:$16 sps:$4 sm:$0xff]  }
 0x106   : > { %3508 = vmatprep.subr.bf16.mxu0 %v7561_v49  ;;  %4473 = vmatprep.subr.bf16.mxu1 %v7564_v50  ;;  %v7640_v49 = vld [vmem:[%s9290_s1 + $0x720] ss:$16 sps:$4 sm:$0xff]   ;;  %v7643_v50 = vld [vmem:[%s9290_s1 + $0x728] ss:$16 sps:$4 sm:$0xff]  }
 0x107   : > { %3235 = vmatmul.mubr.bf16.gmra.mrb[32].mxu0 %v7486_v51  ;;  %4200 = vmatmul.mubr.bf16.gmra.mrb[32].mxu1 %v7486_v51  ;;  %v7651_v51 = vld [vmem:[%s9290_s1 + $0x744] ss:$16 sps:$4 sm:$0xff]  }
 0x108   : > { %3244 = vmatprep.mubr.bf16.mxu0 %v7493_v52  ;;  %4209 = vmatprep.mubr.bf16.mxu1 %v7493_v52  ;;  %v7654_v52 = vld [vmem:[%s9290_s1 + $0x74c] ss:$16 sps:$4 sm:$0xff]  }
 0x10f   : > { %3245 = vmatmul.mubr.bf16.gmra.mrb[36].mxu0 %v7495_v53  ;;  %4210 = vmatmul.mubr.bf16.gmra.mrb[36].mxu1 %v7495_v53  ;;  %v7603_v53 = vld [vmem:[%s8030_s8 + $0x178] ss:$36 sps:$4 sm:$0xff]  }
 0x110   : > { %3254 = vmatprep.mubr.bf16.mxu0 %v7502_v54  ;;  %4219 = vmatprep.mubr.bf16.mxu1 %v7502_v54  ;;  %v7610_v54 = vld [vmem:[%s8030_s8 + $0x1c4] ss:$36 sps:$4 sm:$0xff]  }
 0x117   : > { %3255 = vmatmul.mubr.bf16.gmra.mrb[40].mxu0 %v7504_v55  ;;  %4220 = vmatmul.mubr.bf16.gmra.mrb[40].mxu1 %v7504_v55  ;;  %v7649_v55 = vld [vmem:[%s9290_s1 + $0x740] ss:$16 sps:$4 sm:$0xff]  }
 0x118   : > { %3264 = vmatprep.mubr.bf16.mxu0 %v7511_v56  ;;  %4229 = vmatprep.mubr.bf16.mxu1 %v7511_v56  ;;  %v7652_v56 = vld [vmem:[%s9290_s1 + $0x748] ss:$16 sps:$4 sm:$0xff]  }
 0x11f   : > { %3265 = vmatmul.mubr.bf16.gmra.mrb[44].mxu0 %v7513_v57  ;;  %4230 = vmatmul.mubr.bf16.gmra.mrb[44].mxu1 %v7513_v57  ;;  %v7660_v57 = vld [vmem:[%s9290_s1 + $0x764] ss:$16 sps:$4 sm:$0xff]  }
 0x120   : > { %3274 = vmatprep.mubr.bf16.mxu0 %v7520_v58  ;;  %4239 = vmatprep.mubr.bf16.mxu1 %v7520_v58  ;;  %v7663_v58 = vld [vmem:[%s9290_s1 + $0x76c] ss:$16 sps:$4 sm:$0xff]  }
 0x127   : > { %3275 = vmatmul.mubr.bf16.gmra.mrb[48].mxu0 %v7522_v59  ;;  %4240 = vmatmul.mubr.bf16.gmra.mrb[48].mxu1 %v7522_v59  ;;  %v7658_v59 = vld [vmem:[%s9290_s1 + $0x760] ss:$16 sps:$4 sm:$0xff]  }
 0x128   : > { %3284 = vmatprep.mubr.bf16.mxu0 %v7529_v60  ;;  %4249 = vmatprep.mubr.bf16.mxu1 %v7529_v60  ;;  %v7661_v60 = vld [vmem:[%s9290_s1 + $0x768] ss:$16 sps:$4 sm:$0xff]  }
 0x12f   : > { %3285 = vmatmul.mubr.bf16.gmra.mrb[52].mxu0 %v7531_v61  ;;  %4250 = vmatmul.mubr.bf16.gmra.mrb[52].mxu1 %v7531_v61  ;;  %v7669_v61 = vld [vmem:[%s9290_s1 + $0x784] ss:$16 sps:$4 sm:$0xff]  }
 0x130   : > { %3294 = vmatprep.mubr.bf16.mxu0 %v7538_v62  ;;  %4259 = vmatprep.mubr.bf16.mxu1 %v7538_v62  ;;  %v7672_v62 = vld [vmem:[%s9290_s1 + $0x78c] ss:$16 sps:$4 sm:$0xff]  }
 0x137   : > { %3295 = vmatmul.mubr.bf16.gmra.mrb[56].mxu0 %v7540_v63  ;;  %4260 = vmatmul.mubr.bf16.gmra.mrb[56].mxu1 %v7540_v63  ;;  %v7612_v63 = vld [vmem:[%s8030_s8 + $0x1c0] ss:$36 sps:$4 sm:$0xff]  }
 0x138   : > { %3304 = vmatprep.mubr.bf16.mxu0 %v7547_v0  ;;  %4269 = vmatprep.mubr.bf16.mxu1 %v7547_v0  ;;  %v7619_v0 = vld [vmem:[%s8030_s8 + $0x20c] ss:$36 sps:$4 sm:$0xff]  }
 0x13f   : > { %3305 = vmatmul.mubr.bf16.gmra.mrb[60].mxu0 %v7549_v1  ;;  %4270 = vmatmul.mubr.bf16.gmra.mrb[60].mxu1 %v7549_v1  ;;  %v7667_v1 = vld [vmem:[%s9290_s1 + $0x780] ss:$16 sps:$4 sm:$0xff]  }
 0x140   : > { %3347 = vmatprep.mubr.bf16.mxu0 %v7558_v2  ;;  %4312 = vmatprep.mubr.bf16.mxu1 %v7558_v2  ;;  %v7670_v2 = vld [vmem:[%s9290_s1 + $0x788] ss:$16 sps:$4 sm:$0xff]  }
 0x147   : > { %3348 = vmatmul.mubr.bf16.vlgmr.msra.gmra.mrb[0].mxu0 %v7556_v3  ;;  %4313 = vmatmul.mubr.bf16.vlgmr.msra.gmra.mrb[0].mxu1 %v7556_v3  ;;  %v7678_v3 = vld [vmem:[%s9290_s1 + $0x7a4] ss:$16 sps:$4 sm:$0xff]  }
 0x148   : > { %3509 = vmatpush1.bf16.msra.mxu0 %v7559_v4  ;;  %4474 = vmatpush1.bf16.msra.mxu1 %v7562_v5  ;;  %v7681_v4 = vld [vmem:[%s9290_s1 + $0x7ac] ss:$16 sps:$4 sm:$0xff]   ;;  %v7676_v5 = vld [vmem:[%s9290_s1 + $0x7a0] ss:$16 sps:$4 sm:$0xff]  }
 0x149   : > { %3357 = vmatprep.mubr.bf16.mxu0 %v7565_v6  ;;  %4322 = vmatprep.mubr.bf16.mxu1 %v7565_v6  ;;  %v7679_v6 = vld [vmem:[%s9290_s1 + $0x7a8] ss:$16 sps:$4 sm:$0xff]  }
 0x14a   : > { %3510 = vmatprep.subr.bf16.mxu0 %v7570_v7  ;;  %4475 = vmatprep.subr.bf16.mxu1 %v7573_v8  ;;  %v7687_v7 = vld [vmem:[%s9290_s1 + $0x7c4] ss:$16 sps:$4 sm:$0xff]   ;;  %v7690_v8 = vld [vmem:[%s9290_s1 + $0x7cc] ss:$16 sps:$4 sm:$0xff]  }
 0x14c   : > { %3511 = vmatpush1.bf16.msra.mxu0 %v7568_v9  ;;  %4476 = vmatpush1.bf16.msra.mxu1 %v7571_v10  ;;  %v7621_v9 = vld [vmem:[%s8030_s8 + $0x208] ss:$36 sps:$4 sm:$0xff]   ;;  %v7628_v10 = vld [vmem:[%s8030_s8 + $0x254] ss:$36 sps:$4 sm:$0xff]  }
 0x14d   : > { %3512 = vmatprep.subr.bf16.mxu0 %v7579_v11  ;;  %4477 = vmatprep.subr.bf16.mxu1 %v7582_v12  ;;  %v7685_v11 = vld [vmem:[%s9290_s1 + $0x7c0] ss:$16 sps:$4 sm:$0xff]   ;;  %v7688_v12 = vld [vmem:[%s9290_s1 + $0x7c8] ss:$16 sps:$4 sm:$0xff]  }
 0x14f   : > { %3358 = vmatmul.mubr.bf16.gmra.mrb[4].mxu0 %v7567_v13  ;;  %4323 = vmatmul.mubr.bf16.gmra.mrb[4].mxu1 %v7567_v13  ;;  %v7696_v13 = vld [vmem:[%s9290_s1 + $0x7e4] ss:$16 sps:$4 sm:$0xff]  }
 0x150   : > { %3367 = vmatprep.mubr.bf16.mxu0 %v7574_v14  ;;  %4332 = vmatprep.mubr.bf16.mxu1 %v7574_v14  ;;  %v7699_v14 = vld [vmem:[%s9290_s1 + $0x7ec] ss:$16 sps:$4 sm:$0xff]  }
 0x151   : > { %3513 = vmatpush1.bf16.msra.mxu0 %v7577_v15  ;;  %4478 = vmatpush1.bf16.msra.mxu1 %v7580_v16  ;;  %v7694_v15 = vld [vmem:[%s9290_s1 + $0x7e0] ss:$16 sps:$4 sm:$0xff]   ;;  %v7697_v16 = vld [vmem:[%s9290_s1 + $0x7e8] ss:$16 sps:$4 sm:$0xff]  }
 0x152   : > { %3514 = vmatprep.subr.bf16.mxu0 %v7588_v17  ;;  %4479 = vmatprep.subr.bf16.mxu1 %v7591_v18  ;;  %v7705_v17 = vld [vmem:[%s9290_s1 + $0x804] ss:$16 sps:$4 sm:$0xff]   ;;  %v7708_v18 = vld [vmem:[%s9290_s1 + $0x80c] ss:$16 sps:$4 sm:$0xff]  }
 0x155   : > { %3515 = vmatpush1.bf16.msra.mxu0 %v7586_v19  ;;  %4480 = vmatpush1.bf16.msra.mxu1 %v7589_v20  ;;  %v7630_v19 = vld [vmem:[%s8030_s8 + $0x250] ss:$36 sps:$4 sm:$0xff]   ;;  %v7637_v20 = vld [vmem:[%s8030_s8 + $0x29c] ss:$36 sps:$4 sm:$0xff]  }
 0x156   : > { %3516 = vmatprep.subr.bf16.mxu0 %v7597_v21  ;;  %4481 = vmatprep.subr.bf16.mxu1 %v7600_v22  ;;  %v7639_v21 = vld [vmem:[%s8030_s8 + $0x298] ss:$36 sps:$4 sm:$0xff]   ;;  %v7646_v22 = vld [vmem:[%s8030_s8 + $0x2e4] ss:$36 sps:$4 sm:$0xff]  }
 0x157   : > { %3368 = vmatmul.mubr.bf16.gmra.mrb[8].mxu0 %v7576_v23  ;;  %4333 = vmatmul.mubr.bf16.gmra.mrb[8].mxu1 %v7576_v23  ;;  %v7648_v23 = vld [vmem:[%s8030_s8 + $0x2e0] ss:$36 sps:$4 sm:$0xff]  }
 0x158   : > { %3377 = vmatprep.mubr.bf16.mxu0 %v7583_v24  ;;  %4342 = vmatprep.mubr.bf16.mxu1 %v7583_v24  ;;  %v7655_v24 = vld [vmem:[%s8030_s8 + $0x32c] ss:$36 sps:$4 sm:$0xff]  }
 0x159   : > { %3517 = vmatpush1.bf16.msra.mxu0 %v7595_v25  ;;  %4482 = vmatpush1.bf16.msra.mxu1 %v7598_v26  ;;  %v7657_v25 = vld [vmem:[%s8030_s8 + $0x328] ss:$36 sps:$4 sm:$0xff]   ;;  %v7664_v26 = vld [vmem:[%s8030_s8 + $0x374] ss:$36 sps:$4 sm:$0xff]  }
 0x15a   : > { %3518 = vmatprep.subr.bf16.mxu0 %v7606_v27  ;;  %4483 = vmatprep.subr.bf16.mxu1 %v7609_v28  ;;  %v7666_v27 = vld [vmem:[%s8030_s8 + $0x370] ss:$36 sps:$4 sm:$0xff]   ;;  %v7673_v28 = vld [vmem:[%s8030_s8 + $0x3bc] ss:$36 sps:$4 sm:$0xff]  }
 0x15d   : > { %3519 = vmatpush1.bf16.msra.mxu0 %v7604_v29  ;;  %4484 = vmatpush1.bf16.msra.mxu1 %v7607_v30  ;;  %v7675_v29 = vld [vmem:[%s8030_s8 + $0x3b8] ss:$36 sps:$4 sm:$0xff]   ;;  %v7682_v30 = vld [vmem:[%s8030_s8 + $0x404] ss:$36 sps:$4 sm:$0xff]  }
 0x15e   : > { %3520 = vmatprep.subr.bf16.mxu0 %v7615_v31  ;;  %4485 = vmatprep.subr.bf16.mxu1 %v7618_v32  ;;  %v7684_v31 = vld [vmem:[%s8030_s8 + $0x400] ss:$36 sps:$4 sm:$0xff]   ;;  %v7691_v32 = vld [vmem:[%s8030_s8 + $0x44c] ss:$36 sps:$4 sm:$0xff]  }
 0x15f   : > { %3378 = vmatmul.mubr.bf16.gmra.mrb[12].mxu0 %v7585_v33  ;;  %4343 = vmatmul.mubr.bf16.gmra.mrb[12].mxu1 %v7585_v33  ;;  %v7693_v33 = vld [vmem:[%s8030_s8 + $0x448] ss:$36 sps:$4 sm:$0xff]  }
 0x160   : > { %3387 = vmatprep.mubr.bf16.mxu0 %v7592_v34  ;;  %4352 = vmatprep.mubr.bf16.mxu1 %v7592_v34  ;;  %v7702_v34 = vld [vmem:[%s8030_s8 + $0x1c] ss:$36 sps:$4 sm:$0xff]  }
 0x161   : > { %3521 = vmatpush1.bf16.msra.mxu0 %v7613_v35  ;;  %4486 = vmatpush1.bf16.msra.mxu1 %v7616_v36  ;;  %v7700_v35 = vld [vmem:[%s8030_s8 + $0x18] ss:$36 sps:$4 sm:$0xff]   ;;  %v7703_v36 = vld [vmem:[%s9290_s1 + $0x800] ss:$16 sps:$4 sm:$0xff]  }
 0x162   : > { %3522 = vmatprep.subr.bf16.mxu0 %v7624_v37  ;;  %4487 = vmatprep.subr.bf16.mxu1 %v7627_v38  ;;  %v7706_v37 = vld [vmem:[%s9290_s1 + $0x808] ss:$16 sps:$4 sm:$0xff]  }
 0x163   : > { %v7709_v38 = vld [vmem:[%s8030_s8 + $0x64] ss:$36 sps:$4 sm:$0xff]  }
 0x165   : > { %3523 = vmatpush1.bf16.msra.mxu0 %v7622_v39  ;;  %4488 = vmatpush1.bf16.msra.mxu1 %v7625_v40  ;;  %v7717_v39 = vld [vmem:[%s9290_s1 + $0x824] ss:$16 sps:$4 sm:$0xff]   ;;  %v7720_v40 = vld [vmem:[%s9290_s1 + $0x82c] ss:$16 sps:$4 sm:$0xff]  }
 0x166   : > { %3524 = vmatprep.subr.bf16.mxu0 %v7633_v41  ;;  %4489 = vmatprep.subr.bf16.mxu1 %v7636_v42  ;;  %v7715_v41 = vld [vmem:[%s9290_s1 + $0x820] ss:$16 sps:$4 sm:$0xff]   ;;  %v7718_v42 = vld [vmem:[%s9290_s1 + $0x828] ss:$16 sps:$4 sm:$0xff]  }
 0x167   : > { %3388 = vmatmul.mubr.bf16.gmra.mrb[16].mxu0 %v7594_v43  ;;  %4353 = vmatmul.mubr.bf16.gmra.mrb[16].mxu1 %v7594_v43  ;;  %v7729_v43 = vld [vmem:[%s9290_s1 + $0x844] ss:$16 sps:$4 sm:$0xff]  }
 0x168   : > { %3397 = vmatprep.mubr.bf16.mxu0 %v7601_v44  ;;  %4362 = vmatprep.mubr.bf16.mxu1 %v7601_v44  ;;  %v7732_v44 = vld [vmem:[%s9290_s1 + $0x84c] ss:$16 sps:$4 sm:$0xff]  }
 0x169   : > { %3525 = vmatpush1.bf16.msra.mxu0 %v7631_v45  ;;  %4490 = vmatpush1.bf16.msra.mxu1 %v7634_v46  ;;  %v7711_v45 = vld [vmem:[%s8030_s8 + $0x60] ss:$36 sps:$4 sm:$0xff]   ;;  %v7712_v46 = vld [vmem:[%s8030_s8 + $0xac] ss:$36 sps:$4 sm:$0xff]  }
 0x16a   : > { %3526 = vmatprep.subr.bf16.mxu0 %v7642_v47  ;;  %4491 = vmatprep.subr.bf16.mxu1 %v7645_v48  ;;  %v7727_v47 = vld [vmem:[%s9290_s1 + $0x840] ss:$16 sps:$4 sm:$0xff]   ;;  %v7730_v48 = vld [vmem:[%s9290_s1 + $0x848] ss:$16 sps:$4 sm:$0xff]  }
 0x16d   : > { %3527 = vmatpush1.bf16.msra.mxu0 %v7640_v49  ;;  %4492 = vmatpush1.bf16.msra.mxu1 %v7643_v50  ;;  %v7741_v49 = vld [vmem:[%s9290_s1 + $0x864] ss:$16 sps:$4 sm:$0xff]   ;;  %v7744_v50 = vld [vmem:[%s9290_s1 + $0x86c] ss:$16 sps:$4 sm:$0xff]  }
 0x16e   : > { %3528 = vmatprep.subr.bf16.mxu0 %v7651_v51  ;;  %4493 = vmatprep.subr.bf16.mxu1 %v7654_v52  ;;  %v7739_v51 = vld [vmem:[%s9290_s1 + $0x860] ss:$16 sps:$4 sm:$0xff]   ;;  %v7742_v52 = vld [vmem:[%s9290_s1 + $0x868] ss:$16 sps:$4 sm:$0xff]  }
 0x16f   : > { %3398 = vmatmul.mubr.bf16.gmra.mrb[20].mxu0 %v7603_v53  ;;  %4363 = vmatmul.mubr.bf16.gmra.mrb[20].mxu1 %v7603_v53  ;;  %v7753_v53 = vld [vmem:[%s9290_s1 + $0x884] ss:$16 sps:$4 sm:$0xff]  }
 0x170   : > { %3407 = vmatprep.mubr.bf16.mxu0 %v7610_v54  ;;  %4372 = vmatprep.mubr.bf16.mxu1 %v7610_v54  ;;  %v7756_v54 = vld [vmem:[%s9290_s1 + $0x88c] ss:$16 sps:$4 sm:$0xff]  }
 0x171   : > { %3529 = vmatpush1.bf16.msra.mxu0 %v7649_v55  ;;  %4494 = vmatpush1.bf16.msra.mxu1 %v7652_v56  ;;  %v7714_v55 = vld [vmem:[%s8030_s8 + $0xa8] ss:$36 sps:$4 sm:$0xff]   ;;  %v7721_v56 = vld [vmem:[%s8030_s8 + $0xf4] ss:$36 sps:$4 sm:$0xff]  }
 0x172   : > { %3530 = vmatprep.subr.bf16.mxu0 %v7660_v57  ;;  %4495 = vmatprep.subr.bf16.mxu1 %v7663_v58  ;;  %v7751_v57 = vld [vmem:[%s9290_s1 + $0x880] ss:$16 sps:$4 sm:$0xff]   ;;  %v7754_v58 = vld [vmem:[%s9290_s1 + $0x888] ss:$16 sps:$4 sm:$0xff]  }
 0x175   : > { %3531 = vmatpush1.bf16.msra.mxu0 %v7658_v59  ;;  %4496 = vmatpush1.bf16.msra.mxu1 %v7661_v60  ;;  %v7765_v59 = vld [vmem:[%s9290_s1 + $0x8a4] ss:$16 sps:$4 sm:$0xff]   ;;  %v7768_v60 = vld [vmem:[%s9290_s1 + $0x8ac] ss:$16 sps:$4 sm:$0xff]  }
 0x176   : > { %3532 = vmatprep.subr.bf16.mxu0 %v7669_v61  ;;  %4497 = vmatprep.subr.bf16.mxu1 %v7672_v62  ;;  %v7763_v61 = vld [vmem:[%s9290_s1 + $0x8a0] ss:$16 sps:$4 sm:$0xff]   ;;  %v7766_v62 = vld [vmem:[%s9290_s1 + $0x8a8] ss:$16 sps:$4 sm:$0xff]  }
 0x177   : > { %3408 = vmatmul.mubr.bf16.gmra.mrb[24].mxu0 %v7612_v63  ;;  %4373 = vmatmul.mubr.bf16.gmra.mrb[24].mxu1 %v7612_v63  ;;  %v7777_v63 = vld [vmem:[%s9290_s1 + $0x8c4] ss:$16 sps:$4 sm:$0xff]  }
 0x178   : > { %3417 = vmatprep.mubr.bf16.mxu0 %v7619_v0  ;;  %4382 = vmatprep.mubr.bf16.mxu1 %v7619_v0  ;;  %v7780_v0 = vld [vmem:[%s9290_s1 + $0x8cc] ss:$16 sps:$4 sm:$0xff]  }
 0x179   : > { %3533 = vmatpush1.bf16.msra.mxu0 %v7667_v1  ;;  %4498 = vmatpush1.bf16.msra.mxu1 %v7670_v2  ;;  %v7723_v1 = vld [vmem:[%s8030_s8 + $0xf0] ss:$36 sps:$4 sm:$0xff]   ;;  %v7724_v2 = vld [vmem:[%s8030_s8 + $0x13c] ss:$36 sps:$4 sm:$0xff]  }
 0x17a   : > { %3534 = vmatprep.subr.bf16.mxu0 %v7678_v3  ;;  %4499 = vmatprep.subr.bf16.mxu1 %v7681_v4  ;;  %v7775_v3 = vld [vmem:[%s9290_s1 + $0x8c0] ss:$16 sps:$4 sm:$0xff]   ;;  %v7778_v4 = vld [vmem:[%s9290_s1 + $0x8c8] ss:$16 sps:$4 sm:$0xff]  }
 0x17d   : > { %3535 = vmatpush1.bf16.msra.mxu0 %v7676_v5  ;;  %4500 = vmatpush1.bf16.msra.mxu1 %v7679_v6  ;;  %v7789_v5 = vld [vmem:[%s9290_s1 + $0x8e4] ss:$16 sps:$4 sm:$0xff]   ;;  %v7792_v6 = vld [vmem:[%s9290_s1 + $0x8ec] ss:$16 sps:$4 sm:$0xff]  }
 0x17e   : > { %3536 = vmatprep.subr.bf16.mxu0 %v7687_v7  ;;  %4501 = vmatprep.subr.bf16.mxu1 %v7690_v8  ;;  %v7787_v7 = vld [vmem:[%s9290_s1 + $0x8e0] ss:$16 sps:$4 sm:$0xff]   ;;  %v7790_v8 = vld [vmem:[%s9290_s1 + $0x8e8] ss:$16 sps:$4 sm:$0xff]  }
 0x17f   : > { %3418 = vmatmul.mubr.bf16.gmra.mrb[28].mxu0 %v7621_v9  ;;  %4383 = vmatmul.mubr.bf16.gmra.mrb[28].mxu1 %v7621_v9  ;;  %v7726_v9 = vld [vmem:[%s8030_s8 + $0x138] ss:$36 sps:$4 sm:$0xff]  }
 0x180   : > { %3427 = vmatprep.mubr.bf16.mxu0 %v7628_v10  ;;  %4392 = vmatprep.mubr.bf16.mxu1 %v7628_v10  ;;  %v7733_v10 = vld [vmem:[%s8030_s8 + $0x184] ss:$36 sps:$4 sm:$0xff]  }
 0x181   : > { %3537 = vmatpush1.bf16.msra.mxu0 %v7685_v11  ;;  %4502 = vmatpush1.bf16.msra.mxu1 %v7688_v12  ;;  %v7735_v11 = vld [vmem:[%s8030_s8 + $0x180] ss:$36 sps:$4 sm:$0xff]   ;;  %v7736_v12 = vld [vmem:[%s8030_s8 + $0x1cc] ss:$36 sps:$4 sm:$0xff]  }
 0x182   : > { %3538 = vmatprep.subr.bf16.mxu0 %v7696_v13  ;;  %4503 = vmatprep.subr.bf16.mxu1 %v7699_v14  ;;  %v7738_v13 = vld [vmem:[%s8030_s8 + $0x1c8] ss:$36 sps:$4 sm:$0xff]   ;;  %v7745_v14 = vld [vmem:[%s8030_s8 + $0x214] ss:$36 sps:$4 sm:$0xff]  }
 0x185   : > { %3539 = vmatpush1.bf16.msra.mxu0 %v7694_v15  ;;  %4504 = vmatpush1.bf16.msra.mxu1 %v7697_v16  ;;  %v7747_v15 = vld [vmem:[%s8030_s8 + $0x210] ss:$36 sps:$4 sm:$0xff]   ;;  %v7748_v16 = vld [vmem:[%s8030_s8 + $0x25c] ss:$36 sps:$4 sm:$0xff]  }
 0x186   : > { %3701 = vmatprep.subr.bf16.mxu0 %v7705_v17  ;;  %4666 = vmatprep.subr.bf16.mxu1 %v7708_v18  ;;  %v7750_v17 = vld [vmem:[%s8030_s8 + $0x258] ss:$36 sps:$4 sm:$0xff]   ;;  %v7757_v18 = vld [vmem:[%s8030_s8 + $0x2a4] ss:$36 sps:$4 sm:$0xff]  }
 0x187   : > { %3428 = vmatmul.mubr.bf16.gmra.mrb[32].mxu0 %v7630_v19  ;;  %4393 = vmatmul.mubr.bf16.gmra.mrb[32].mxu1 %v7630_v19  ;;  %v7759_v19 = vld [vmem:[%s8030_s8 + $0x2a0] ss:$36 sps:$4 sm:$0xff]  }
 0x188   : > { %3437 = vmatprep.mubr.bf16.mxu0 %v7637_v20  ;;  %4402 = vmatprep.mubr.bf16.mxu1 %v7637_v20  ;;  %v7760_v20 = vld [vmem:[%s8030_s8 + $0x2ec] ss:$36 sps:$4 sm:$0xff]  }
 0x18f   : > { %3438 = vmatmul.mubr.bf16.gmra.mrb[36].mxu0 %v7639_v21  ;;  %4403 = vmatmul.mubr.bf16.gmra.mrb[36].mxu1 %v7639_v21  ;;  %v7762_v21 = vld [vmem:[%s8030_s8 + $0x2e8] ss:$36 sps:$4 sm:$0xff]  }
 0x190   : > { %3447 = vmatprep.mubr.bf16.mxu0 %v7646_v22  ;;  %4412 = vmatprep.mubr.bf16.mxu1 %v7646_v22  ;;  %v7769_v22 = vld [vmem:[%s8030_s8 + $0x334] ss:$36 sps:$4 sm:$0xff]  }
 0x197   : > { %3448 = vmatmul.mubr.bf16.gmra.mrb[40].mxu0 %v7648_v23  ;;  %4413 = vmatmul.mubr.bf16.gmra.mrb[40].mxu1 %v7648_v23  ;;  %v7771_v23 = vld [vmem:[%s8030_s8 + $0x330] ss:$36 sps:$4 sm:$0xff]  }
 0x198   : > { %3457 = vmatprep.mubr.bf16.mxu0 %v7655_v24  ;;  %4422 = vmatprep.mubr.bf16.mxu1 %v7655_v24  ;;  %v7772_v24 = vld [vmem:[%s8030_s8 + $0x37c] ss:$36 sps:$4 sm:$0xff]  }
 0x19f   : > { %3458 = vmatmul.mubr.bf16.gmra.mrb[44].mxu0 %v7657_v25  ;;  %4423 = vmatmul.mubr.bf16.gmra.mrb[44].mxu1 %v7657_v25  ;;  %v7774_v25 = vld [vmem:[%s8030_s8 + $0x378] ss:$36 sps:$4 sm:$0xff]  }
 0x1a0   : > { %3467 = vmatprep.mubr.bf16.mxu0 %v7664_v26  ;;  %4432 = vmatprep.mubr.bf16.mxu1 %v7664_v26  ;;  %v7781_v26 = vld [vmem:[%s8030_s8 + $0x3c4] ss:$36 sps:$4 sm:$0xff]  }
 0x1a7   : > { %3468 = vmatmul.mubr.bf16.gmra.mrb[48].mxu0 %v7666_v27  ;;  %4433 = vmatmul.mubr.bf16.gmra.mrb[48].mxu1 %v7666_v27  ;;  %v7783_v27 = vld [vmem:[%s8030_s8 + $0x3c0] ss:$36 sps:$4 sm:$0xff]  }
 0x1a8   : > { %3477 = vmatprep.mubr.bf16.mxu0 %v7673_v28  ;;  %4442 = vmatprep.mubr.bf16.mxu1 %v7673_v28  ;;  %v7784_v28 = vld [vmem:[%s8030_s8 + $0x40c] ss:$36 sps:$4 sm:$0xff]  }
 0x1af   : > { %3478 = vmatmul.mubr.bf16.gmra.mrb[52].mxu0 %v7675_v29  ;;  %4443 = vmatmul.mubr.bf16.gmra.mrb[52].mxu1 %v7675_v29  ;;  %v7786_v29 = vld [vmem:[%s8030_s8 + $0x408] ss:$36 sps:$4 sm:$0xff]  }
 0x1b0   : > { %3487 = vmatprep.mubr.bf16.mxu0 %v7682_v30  ;;  %4452 = vmatprep.mubr.bf16.mxu1 %v7682_v30  ;;  %v7793_v30 = vld [vmem:[%s8030_s8 + $0x454] ss:$36 sps:$4 sm:$0xff]  }
 0x1b7   : > { %3488 = vmatmul.mubr.bf16.gmra.mrb[56].mxu0 %v7684_v31  ;;  %4453 = vmatmul.mubr.bf16.gmra.mrb[56].mxu1 %v7684_v31  ;;  %v7795_v31 = vld [vmem:[%s8030_s8 + $0x450] ss:$36 sps:$4 sm:$0xff]  }
 0x1b8   : > { %3497 = vmatprep.mubr.bf16.mxu0 %v7691_v32  ;;  %4462 = vmatprep.mubr.bf16.mxu1 %v7691_v32  ;;  %v7836_v32 = vmov 0  }
 0x1bf   : > { %3498 = vmatmul.mubr.bf16.gmra.mrb[60].mxu0 %v7693_v33  ;;  %4463 = vmatmul.mubr.bf16.gmra.mrb[60].mxu1 %v7693_v33  ;;  %v7796_v33 = vld [vmem:[%s8030_s8 + $0x20] ss:$36 sps:$4 sm:$0xff]  }
 0x1c0   : > { %3540 = vmatprep.mubr.bf16.mxu0 %v7702_v34  ;;  %4505 = vmatprep.mubr.bf16.mxu1 %v7702_v34  ;;  %v7797_v34 = vld [vmem:[%s8030_s8 + $0x68] ss:$36 sps:$4 sm:$0xff]  }
 0x1c7   : > { %3541 = vmatmul.mubr.bf16.vlgmr.msra.gmra.mrb[0].mxu0 %v7700_v35  ;;  %4506 = vmatmul.mubr.bf16.vlgmr.msra.gmra.mrb[0].mxu1 %v7700_v35  ;;  %v7798_v35 = vld [vmem:[%s8030_s8 + $0xb0] ss:$36 sps:$4 sm:$0xff]  }
 0x1c8   : > { %3702 = vmatpush1.bf16.msra.mxu0 %v7703_v36  ;;  %4667 = vmatpush1.bf16.msra.mxu1 %v7706_v37  ;;  %v7799_v36 = vld [vmem:[%s8030_s8 + $0xf8] ss:$36 sps:$4 sm:$0xff]   ;;  %v7800_v37 = vld [vmem:[%s8030_s8 + $0x140] ss:$36 sps:$4 sm:$0xff]  }
 0x1c9   : > { %3550 = vmatprep.mubr.bf16.mxu0 %v7709_v38  ;;  %4515 = vmatprep.mubr.bf16.mxu1 %v7709_v38  ;;  %v7801_v38 = vld [vmem:[%s8030_s8 + $0x188] ss:$36 sps:$4 sm:$0xff]  }
 0x1ca   : > { %3703 = vmatprep.subr.bf16.mxu0 %v7717_v39  ;;  %4668 = vmatprep.subr.bf16.mxu1 %v7720_v40  ;;  %v7802_v39 = vld [vmem:[%s8030_s8 + $0x1d0] ss:$36 sps:$4 sm:$0xff]   ;;  %v7803_v40 = vld [vmem:[%s8030_s8 + $0x218] ss:$36 sps:$4 sm:$0xff]  }
 0x1cc   : > { %3704 = vmatpush1.bf16.msra.mxu0 %v7715_v41  ;;  %4669 = vmatpush1.bf16.msra.mxu1 %v7718_v42  ;;  %v7804_v41 = vld [vmem:[%s8030_s8 + $0x260] ss:$36 sps:$4 sm:$0xff]   ;;  %v7805_v42 = vld [vmem:[%s8030_s8 + $0x2a8] ss:$36 sps:$4 sm:$0xff]  }
 0x1cd   : > { %3705 = vmatprep.subr.bf16.mxu0 %v7729_v43  ;;  %4670 = vmatprep.subr.bf16.mxu1 %v7732_v44  ;;  %v7806_v43 = vld [vmem:[%s8030_s8 + $0x2f0] ss:$36 sps:$4 sm:$0xff]   ;;  %v7807_v44 = vld [vmem:[%s8030_s8 + $0x338] ss:$36 sps:$4 sm:$0xff]  }
 0x1cf   : > { %3551 = vmatmul.mubr.bf16.gmra.mrb[4].mxu0 %v7711_v45  ;;  %4516 = vmatmul.mubr.bf16.gmra.mrb[4].mxu1 %v7711_v45  ;;  %v7808_v45 = vld [vmem:[%s8030_s8 + $0x380] ss:$36 sps:$4 sm:$0xff]  }
 0x1d0   : > { %3560 = vmatprep.mubr.bf16.mxu0 %v7712_v46  ;;  %4525 = vmatprep.mubr.bf16.mxu1 %v7712_v46  ;;  %v7809_v46 = vld [vmem:[%s8030_s8 + $0x3c8] ss:$36 sps:$4 sm:$0xff]  }
 0x1d1   : > { %3706 = vmatpush1.bf16.msra.mxu0 %v7727_v47  ;;  %4671 = vmatpush1.bf16.msra.mxu1 %v7730_v48  ;;  %v7810_v47 = vld [vmem:[%s8030_s8 + $0x410] ss:$36 sps:$4 sm:$0xff]   ;;  %v7811_v48 = vld [vmem:[%s8030_s8 + $0x458] ss:$36 sps:$4 sm:$0xff]   ;;  %s6440_s8 = sshll.u32 %s9300_s15, 4  ;;  %s5940_s15 = sshll.u32 %s9302_s18, 2 }
 0x1d2   : > { %3707 = vmatprep.subr.bf16.mxu0 %v7741_v49  ;;  %4672 = vmatprep.subr.bf16.mxu1 %v7744_v50  ;;  %v733_v49 = vlaneseq  ;;  %s8963_s29 = scalar_lea.vmem %s9292_s3, %s6440_s8  ;;  %s277_s7 = scalar_lea.vmem %s9293_s4, %s5940_s15 }
 0x1d3   : > { %s281_s11 = scalar_lea.vmem %s9294_s5, %s5940_s15 }
 0x1d4   : > { %v8938_v50 = vshrl.u32 %v733_v49, 7  ;;  %vm5486_vm0 = vcmp.lt.s32.totalorder %v733_v49, 512 }
 0x1d5   : > { %3708 = vmatpush1.bf16.msra.mxu0 %v7739_v51  ;;  %4673 = vmatpush1.bf16.msra.mxu1 %v7742_v52 }
 0x1d6   : > { %3709 = vmatprep.subr.bf16.mxu0 %v7753_v53  ;;  %4674 = vmatprep.subr.bf16.mxu1 %v7756_v54  ;;  %v735_v51 = vsub.s32 0, %v8938_v50  ;;  %v743_v52 = vsub.s32 2, %v8938_v50  ;;  %v731_v53 = vld [vmem:[%s9291_s2] sm:$0xf]  ;;  %v739_v54 = vsub.s32 1, %v8938_v50 }
 0x1d7   : > { %3561 = vmatmul.mubr.bf16.gmra.mrb[8].mxu0 %v7714_v55  ;;  %4526 = vmatmul.mubr.bf16.gmra.mrb[8].mxu1 %v7714_v55  ;;  %v747_v55 = vsub.s32 3, %v8938_v50 }
 0x1d8   : > { %3570 = vmatprep.mubr.bf16.mxu0 %v7721_v56  ;;  %4535 = vmatprep.mubr.bf16.mxu1 %v7721_v56  ;;  %v8947_v56 = vrot.slane %v731_v53, %v735_v51 }
 0x1d9   : > { %3710 = vmatpush1.bf16.msra.mxu0 %v7751_v57  ;;  %4675 = vmatpush1.bf16.msra.mxu1 %v7754_v58  ;;  %v8949_v57 = vrot.slane %v731_v53, %v743_v52  ;;  %v8951_v58 = vrot.slane %v731_v53, %v739_v54 }
 0x1da   : > { %3711 = vmatprep.subr.bf16.mxu0 %v7765_v59  ;;  %4676 = vmatprep.subr.bf16.mxu1 %v7768_v60  ;;  %v8953_v59 = vrot.slane %v731_v53, %v747_v55 }
 0x1dd   : > { %3712 = vmatpush1.bf16.msra.mxu0 %v7763_v61  ;;  %4677 = vmatpush1.bf16.msra.mxu1 %v7766_v62 }
 0x1de   : > { %3713 = vmatprep.subr.bf16.mxu0 %v7777_v63  ;;  %4678 = vmatprep.subr.bf16.mxu1 %v7780_v0 }
 0x1df   : > { %3571 = vmatmul.mubr.bf16.gmra.mrb[12].mxu0 %v7723_v1  ;;  %4536 = vmatmul.mubr.bf16.gmra.mrb[12].mxu1 %v7723_v1 }
 0x1e0   : > { %3580 = vmatprep.mubr.bf16.mxu0 %v7724_v2  ;;  %4545 = vmatprep.mubr.bf16.mxu1 %v7724_v2 }
 0x1e1   : > { %3714 = vmatpush1.bf16.msra.mxu0 %v7775_v3  ;;  %4679 = vmatpush1.bf16.msra.mxu1 %v7778_v4 }
 0x1e2   : > { %3715 = vmatprep.subr.bf16.mxu0 %v7789_v5  ;;  %4680 = vmatprep.subr.bf16.mxu1 %v7792_v6 }
 0x1e5   : > { %3716 = vmatpush1.bf16.msra.mxu0 %v7787_v7  ;;  %4681 = vmatpush1.bf16.msra.mxu1 %v7790_v8 }
 0x1e7   : > { %3581 = vmatmul.mubr.bf16.gmra.mrb[16].mxu0 %v7726_v9  ;;  %4546 = vmatmul.mubr.bf16.gmra.mrb[16].mxu1 %v7726_v9 }
 0x1e8   : > { %3590 = vmatprep.mubr.bf16.mxu0 %v7733_v10  ;;  %4555 = vmatprep.mubr.bf16.mxu1 %v7733_v10 }
 0x1ef   : > { %3591 = vmatmul.mubr.bf16.gmra.mrb[20].mxu0 %v7735_v11  ;;  %4556 = vmatmul.mubr.bf16.gmra.mrb[20].mxu1 %v7735_v11 }
 0x1f0   : > { %3600 = vmatprep.mubr.bf16.mxu0 %v7736_v12  ;;  %4565 = vmatprep.mubr.bf16.mxu1 %v7736_v12 }
 0x1f7   : > { %3601 = vmatmul.mubr.bf16.gmra.mrb[24].mxu0 %v7738_v13  ;;  %4566 = vmatmul.mubr.bf16.gmra.mrb[24].mxu1 %v7738_v13 }
 0x1f8   : > { %3610 = vmatprep.mubr.bf16.mxu0 %v7745_v14  ;;  %4575 = vmatprep.mubr.bf16.mxu1 %v7745_v14 }
 0x1ff   : > { %3611 = vmatmul.mubr.bf16.gmra.mrb[28].mxu0 %v7747_v15  ;;  %4576 = vmatmul.mubr.bf16.gmra.mrb[28].mxu1 %v7747_v15 }
 0x200   : > { %3620 = vmatprep.mubr.bf16.mxu0 %v7748_v16  ;;  %4585 = vmatprep.mubr.bf16.mxu1 %v7748_v16 }
 0x207   : > { %3621 = vmatmul.mubr.bf16.gmra.mrb[32].mxu0 %v7750_v17  ;;  %4586 = vmatmul.mubr.bf16.gmra.mrb[32].mxu1 %v7750_v17 }
 0x208   : > { %3630 = vmatprep.mubr.bf16.mxu0 %v7757_v18  ;;  %4595 = vmatprep.mubr.bf16.mxu1 %v7757_v18 }
 0x20f   : > { %3631 = vmatmul.mubr.bf16.gmra.mrb[36].mxu0 %v7759_v19  ;;  %4596 = vmatmul.mubr.bf16.gmra.mrb[36].mxu1 %v7759_v19 }
 0x210   : > { %3640 = vmatprep.mubr.bf16.mxu0 %v7760_v20  ;;  %4605 = vmatprep.mubr.bf16.mxu1 %v7760_v20 }
 0x217   : > { %3641 = vmatmul.mubr.bf16.gmra.mrb[40].mxu0 %v7762_v21  ;;  %4606 = vmatmul.mubr.bf16.gmra.mrb[40].mxu1 %v7762_v21 }
 0x218   : > { %3650 = vmatprep.mubr.bf16.mxu0 %v7769_v22  ;;  %4615 = vmatprep.mubr.bf16.mxu1 %v7769_v22 }
 0x21f   : > { %3651 = vmatmul.mubr.bf16.gmra.mrb[44].mxu0 %v7771_v23  ;;  %4616 = vmatmul.mubr.bf16.gmra.mrb[44].mxu1 %v7771_v23 }
 0x220   : > { %3660 = vmatprep.mubr.bf16.mxu0 %v7772_v24  ;;  %4625 = vmatprep.mubr.bf16.mxu1 %v7772_v24 }
 0x227   : > { %3661 = vmatmul.mubr.bf16.gmra.mrb[48].mxu0 %v7774_v25  ;;  %4626 = vmatmul.mubr.bf16.gmra.mrb[48].mxu1 %v7774_v25 }
 0x228   : > { %3670 = vmatprep.mubr.bf16.mxu0 %v7781_v26  ;;  %4635 = vmatprep.mubr.bf16.mxu1 %v7781_v26 }
 0x22f   : > { %3671 = vmatmul.mubr.bf16.gmra.mrb[52].mxu0 %v7783_v27  ;;  %4636 = vmatmul.mubr.bf16.gmra.mrb[52].mxu1 %v7783_v27 }
 0x230   : > { %3680 = vmatprep.mubr.bf16.mxu0 %v7784_v28  ;;  %4645 = vmatprep.mubr.bf16.mxu1 %v7784_v28 }
 0x237   : > { %3681 = vmatmul.mubr.bf16.gmra.mrb[56].mxu0 %v7786_v29  ;;  %4646 = vmatmul.mubr.bf16.gmra.mrb[56].mxu1 %v7786_v29 }
 0x238   : > { %3690 = vmatprep.mubr.bf16.mxu0 %v7793_v30  ;;  %4655 = vmatprep.mubr.bf16.mxu1 %v7793_v30 }
 0x23f   : > { %3691 = vmatmul.mubr.bf16.gmra.mrb[60].mxu0 %v7795_v31  ;;  %4656 = vmatmul.mubr.bf16.gmra.mrb[60].mxu1 %v7795_v31 }
 0x240   : > { %3733 = vmatprep.mubr.bf16.mxu0 %v7836_v32  ;;  %4698 = vmatprep.mubr.bf16.mxu1 %v7836_v32 }
 0x247   : > { %3734 = vmatmul.mubr.bf16.vlgmr.msra.gmra.mrb[0].mxu0 %v7796_v33  ;;  %4699 = vmatmul.mubr.bf16.vlgmr.msra.gmra.mrb[0].mxu1 %v7796_v33 }
 0x248   : > { %3743 = vmatprep.mubr.bf16.mxu0 %v7836_v32  ;;  %4708 = vmatprep.mubr.bf16.mxu1 %v7836_v32 }
 0x24f   : > { %3744 = vmatmul.mubr.bf16.gmra.mrb[4].mxu0 %v7797_v34  ;;  %4709 = vmatmul.mubr.bf16.gmra.mrb[4].mxu1 %v7797_v34 }
 0x250   : > { %3753 = vmatprep.mubr.bf16.mxu0 %v7836_v32  ;;  %4718 = vmatprep.mubr.bf16.mxu1 %v7836_v32 }
 0x257   : > { %3754 = vmatmul.mubr.bf16.gmra.mrb[8].mxu0 %v7798_v35  ;;  %4719 = vmatmul.mubr.bf16.gmra.mrb[8].mxu1 %v7798_v35 }
 0x258   : > { %3763 = vmatprep.mubr.bf16.mxu0 %v7836_v32  ;;  %4728 = vmatprep.mubr.bf16.mxu1 %v7836_v32 }
 0x25f   : > { %3764 = vmatmul.mubr.bf16.gmra.mrb[12].mxu0 %v7799_v36  ;;  %4729 = vmatmul.mubr.bf16.gmra.mrb[12].mxu1 %v7799_v36 }
 0x260   : > { %3773 = vmatprep.mubr.bf16.mxu0 %v7836_v32  ;;  %4738 = vmatprep.mubr.bf16.mxu1 %v7836_v32 }
 0x267   : > { %3774 = vmatmul.mubr.bf16.gmra.mrb[16].mxu0 %v7800_v37  ;;  %4739 = vmatmul.mubr.bf16.gmra.mrb[16].mxu1 %v7800_v37 }
 0x268   : > { %3783 = vmatprep.mubr.bf16.mxu0 %v7836_v32  ;;  %4748 = vmatprep.mubr.bf16.mxu1 %v7836_v32 }
 0x26f   : > { %3784 = vmatmul.mubr.bf16.gmra.mrb[20].mxu0 %v7801_v38  ;;  %4749 = vmatmul.mubr.bf16.gmra.mrb[20].mxu1 %v7801_v38 }
 0x270   : > { %3793 = vmatprep.mubr.bf16.mxu0 %v7836_v32  ;;  %4758 = vmatprep.mubr.bf16.mxu1 %v7836_v32 }
 0x277   : > { %3794 = vmatmul.mubr.bf16.gmra.mrb[24].mxu0 %v7802_v39  ;;  %4759 = vmatmul.mubr.bf16.gmra.mrb[24].mxu1 %v7802_v39 }
 0x278   : > { %3803 = vmatprep.mubr.bf16.mxu0 %v7836_v32  ;;  %4768 = vmatprep.mubr.bf16.mxu1 %v7836_v32 }
 0x27f   : > { %3804 = vmatmul.mubr.bf16.gmra.mrb[28].mxu0 %v7803_v40  ;;  %4769 = vmatmul.mubr.bf16.gmra.mrb[28].mxu1 %v7803_v40 }
 0x280   : > { %3813 = vmatprep.mubr.bf16.mxu0 %v7836_v32  ;;  %4778 = vmatprep.mubr.bf16.mxu1 %v7836_v32 }
 0x287   : > { %3814 = vmatmul.mubr.bf16.gmra.mrb[32].mxu0 %v7804_v41  ;;  %4779 = vmatmul.mubr.bf16.gmra.mrb[32].mxu1 %v7804_v41 }
 0x288   : > { %3823 = vmatprep.mubr.bf16.mxu0 %v7836_v32  ;;  %4788 = vmatprep.mubr.bf16.mxu1 %v7836_v32 }
 0x28f   : > { %3824 = vmatmul.mubr.bf16.gmra.mrb[36].mxu0 %v7805_v42  ;;  %4789 = vmatmul.mubr.bf16.gmra.mrb[36].mxu1 %v7805_v42 }
 0x290   : > { %3833 = vmatprep.mubr.bf16.mxu0 %v7836_v32  ;;  %4798 = vmatprep.mubr.bf16.mxu1 %v7836_v32 }
 0x297   : > { %3834 = vmatmul.mubr.bf16.gmra.mrb[40].mxu0 %v7806_v43  ;;  %4799 = vmatmul.mubr.bf16.gmra.mrb[40].mxu1 %v7806_v43 }
 0x298   : > { %3843 = vmatprep.mubr.bf16.mxu0 %v7836_v32  ;;  %4808 = vmatprep.mubr.bf16.mxu1 %v7836_v32 }
 0x29f   : > { %3844 = vmatmul.mubr.bf16.gmra.mrb[44].mxu0 %v7807_v44  ;;  %4809 = vmatmul.mubr.bf16.gmra.mrb[44].mxu1 %v7807_v44 }
 0x2a0   : > { %3853 = vmatprep.mubr.bf16.mxu0 %v7836_v32  ;;  %4818 = vmatprep.mubr.bf16.mxu1 %v7836_v32 }
 0x2a7   : > { %3854 = vmatmul.mubr.bf16.gmra.mrb[48].mxu0 %v7808_v45  ;;  %4819 = vmatmul.mubr.bf16.gmra.mrb[48].mxu1 %v7808_v45 }
 0x2a8   : > { %3863 = vmatprep.mubr.bf16.mxu0 %v7836_v32  ;;  %4828 = vmatprep.mubr.bf16.mxu1 %v7836_v32 }
 0x2af   : > { %3864 = vmatmul.mubr.bf16.gmra.mrb[52].mxu0 %v7809_v46  ;;  %4829 = vmatmul.mubr.bf16.gmra.mrb[52].mxu1 %v7809_v46 }
 0x2b0   : > { %3873 = vmatprep.mubr.bf16.mxu0 %v7836_v32  ;;  %4838 = vmatprep.mubr.bf16.mxu1 %v7836_v32 }
 0x2b7   : > { %3874 = vmatmul.mubr.bf16.gmra.mrb[56].mxu0 %v7810_v47  ;;  %4839 = vmatmul.mubr.bf16.gmra.mrb[56].mxu1 %v7810_v47 }
 0x2b8   : > { %3883 = vmatprep.mubr.bf16.mxu0 %v7836_v32  ;;  %4848 = vmatprep.mubr.bf16.mxu1 %v7836_v32 }
 0x2bf   : > { %3884 = vmatmul.mubr.bf16.gmra.mrb[60].mxu0 %v7811_v48  ;;  %4849 = vmatmul.mubr.bf16.gmra.mrb[60].mxu1 %v7811_v48 }
 0x31a   : > { %v3735_v60 = vpop.f32.mrb[0].mxu0  ;;  %v4700_v61 = vpop.f32.mrb[0].mxu1 }
 0x31b   : > { %v6505_v62 = vadd.f32 %v3735_v60, %v8947_v56  ;;  %v6569_v63 = vadd.f32 %v4700_v61, %v8949_v57  ;;  %v3737_v0 = vpop.f32.mrb[1].mxu0  ;;  %v4702_v1 = vpop.f32.mrb[1].mxu1 }
 0x31c   : > { %v6506_v2 = vadd.f32 %v3737_v0, %v8951_v58  ;;  %v6570_v3 = vadd.f32 %v4702_v1, %v8953_v59  ;;  %v3739_v4 = vpop.f32.mrb[2].mxu0  ;;  %v4704_v5 = vpop.f32.mrb[2].mxu1 }
 0x31d   : > { %v6507_v6 = vadd.f32 %v3739_v4, %v8947_v56  ;;  %v6571_v7 = vadd.f32 %v4704_v5, %v8949_v57  ;;  %v3741_v8 = vpop.f32.mrb[3].mxu0  ;;  %v4706_v9 = vpop.f32.mrb[3].mxu1  ;;  %v5489_v10 = vmul.f32 %v6505_v62, %v6505_v62  ;;  %v5491_v11 = vmul.f32 %v6569_v63, %v6569_v63 }
 0x31e   : > { %v6441_v12 = vpack.c.bf16 %v6506_v2, %v6505_v62  ;;  %v6442_v13 = vpack.c.bf16 %v6570_v3, %v6569_v63  ;;  %v6508_v18 = vadd.f32 %v3741_v8, %v8951_v58  ;;  %v6572_v19 = vadd.f32 %v4706_v9, %v8953_v59 }
 0x31f   : > { %v5307_v14 = vadd.f32 %v6507_v6, %v6505_v62  ;;  %v5493_v15 = vmul.f32 %v6507_v6, %v6507_v6  ;;  %v5381_v16 = vadd.f32 %v6571_v7, %v6569_v63  ;;  %v5495_v17 = vmul.f32 %v6571_v7, %v6571_v7 }
 0x320   : > { %5243 = vst [vmem:[%s8963_s29] sm:$0xff] %v6441_v12  ;;  %5244 = vst [vmem:[%s8963_s29 + $0x8] sm:$0xff] %v6442_v13  ;;  %v5490_v20 = vmul.f32 %v6506_v2, %v6506_v2  ;;  %v5492_v21 = vmul.f32 %v6570_v3, %v6570_v3  ;;  %v6443_v24 = vpack.c.bf16 %v6508_v18, %v6507_v6 }
 0x321   : > { %v5617_v22 = vadd.f32 %v5493_v15, %v5489_v10  ;;  %v5691_v23 = vadd.f32 %v5495_v17, %v5491_v11  ;;  %v5344_v25 = vadd.f32 %v6508_v18, %v6506_v2  ;;  %v5494_v26 = vmul.f32 %v6508_v18, %v6508_v18 }
 0x322   : > { %v6444_v27 = vpack.c.bf16 %v6572_v19, %v6571_v7  ;;  %v3745_v28 = vpop.f32.mrb[4].mxu0  ;;  %v4710_v29 = vpop.f32.mrb[4].mxu1  ;;  %v5418_v30 = vadd.f32 %v6572_v19, %v6570_v3  ;;  %v5496_v31 = vmul.f32 %v6572_v19, %v6572_v19  ;;  %5245 = vst [vmem:[%s8963_s29 + $0x10] sm:$0xff] %v6443_v24 }
 0x323   : > { %v6509_v32 = vadd.f32 %v3745_v28, %v8947_v56  ;;  %v6573_v33 = vadd.f32 %v4710_v29, %v8949_v57  ;;  %v3747_v34 = vpop.f32.mrb[5].mxu0  ;;  %v4712_v35 = vpop.f32.mrb[5].mxu1  ;;  %v5654_v36 = vadd.f32 %v5494_v26, %v5490_v20 }
 0x324   : > { %5246 = vst [vmem:[%s8963_s29 + $0x18] sm:$0xff] %v6444_v27  ;;  %v6510_v37 = vadd.f32 %v3747_v34, %v8951_v58  ;;  %v6574_v38 = vadd.f32 %v4712_v35, %v8953_v59  ;;  %v3749_v39 = vpop.f32.mrb[6].mxu0  ;;  %v4714_v40 = vpop.f32.mrb[6].mxu1  ;;  %v5728_v41 = vadd.f32 %v5496_v31, %v5492_v21 }
 0x325   : > { %v5308_v42 = vadd.f32 %v6509_v32, %v5307_v14  ;;  %v5497_v43 = vmul.f32 %v6509_v32, %v6509_v32  ;;  %v5382_v44 = vadd.f32 %v6573_v33, %v5381_v16  ;;  %v3751_v45 = vpop.f32.mrb[7].mxu0  ;;  %v4716_v46 = vpop.f32.mrb[7].mxu1  ;;  %v5499_v47 = vmul.f32 %v6573_v33, %v6573_v33 }
 0x326   : > { %v6445_v48 = vpack.c.bf16 %v6510_v37, %v6509_v32  ;;  %v5345_v51 = vadd.f32 %v6510_v37, %v5344_v25  ;;  %v5498_v52 = vmul.f32 %v6510_v37, %v6510_v37  ;;  %v6446_v54 = vpack.c.bf16 %v6574_v38, %v6573_v33 }
 0x327   : > { %v5618_v53 = vadd.f32 %v5617_v22, %v5497_v43  ;;  %v5419_v55 = vadd.f32 %v6574_v38, %v5418_v30  ;;  %v5500_v60 = vmul.f32 %v6574_v38, %v6574_v38  ;;  %v5692_v61 = vadd.f32 %v5691_v23, %v5499_v47 }
 0x328   : > { %5247 = vst [vmem:[%s8963_s29 + $0x20] sm:$0xff] %v6445_v48  ;;  %v5655_v62 = vadd.f32 %v5654_v36, %v5498_v52  ;;  %v6511_v63 = vadd.f32 %v3749_v39, %v8947_v56  ;;  %v6575_v0 = vadd.f32 %v4714_v40, %v8949_v57  ;;  %5248 = vst [vmem:[%s8963_s29 + $0x28] sm:$0xff] %v6446_v54 }
 0x329   : > { %v5729_v1 = vadd.f32 %v5728_v41, %v5500_v60  ;;  %v6512_v2 = vadd.f32 %v3751_v45, %v8951_v58  ;;  %v6576_v3 = vadd.f32 %v4716_v46, %v8953_v59 }
 0x32a   : > { %v5309_v4 = vadd.f32 %v6511_v63, %v5308_v42  ;;  %v5501_v5 = vmul.f32 %v6511_v63, %v6511_v63  ;;  %v5383_v6 = vadd.f32 %v6575_v0, %v5382_v44  ;;  %v5503_v7 = vmul.f32 %v6575_v0, %v6575_v0  ;;  %v3755_v8 = vpop.f32.mrb[8].mxu0  ;;  %v4720_v9 = vpop.f32.mrb[8].mxu1 }
 0x32b   : > { %v6447_v10 = vpack.c.bf16 %v6512_v2, %v6511_v63  ;;  %v5346_v11 = vadd.f32 %v6512_v2, %v5345_v51  ;;  %v5502_v12 = vmul.f32 %v6512_v2, %v6512_v2  ;;  %v6448_v13 = vpack.c.bf16 %v6576_v3, %v6575_v0  ;;  %v3757_v14 = vpop.f32.mrb[9].mxu0  ;;  %v4722_v15 = vpop.f32.mrb[9].mxu1 }
 0x32c   : > { %v5619_v16 = vadd.f32 %v5618_v53, %v5501_v5  ;;  %v5693_v17 = vadd.f32 %v5692_v61, %v5503_v7  ;;  %v5420_v18 = vadd.f32 %v6576_v3, %v5419_v55  ;;  %v5504_v19 = vmul.f32 %v6576_v3, %v6576_v3  ;;  %v3759_v20 = vpop.f32.mrb[10].mxu0  ;;  %v4724_v21 = vpop.f32.mrb[10].mxu1 }
 0x32d   : > { %5249 = vst [vmem:[%s8963_s29 + $0x30] sm:$0xff] %v6447_v10  ;;  %v5656_v22 = vadd.f32 %v5655_v62, %v5502_v12  ;;  %5250 = vst [vmem:[%s8963_s29 + $0x38] sm:$0xff] %v6448_v13  ;;  %v6513_v23 = vadd.f32 %v3755_v8, %v8947_v56  ;;  %v6577_v24 = vadd.f32 %v4720_v9, %v8949_v57  ;;  %v3761_v26 = vpop.f32.mrb[11].mxu0  ;;  %v4726_v27 = vpop.f32.mrb[11].mxu1 }
 0x32e   : > { %v6514_v25 = vadd.f32 %v3757_v14, %v8951_v58  ;;  %v5730_v28 = vadd.f32 %v5729_v1, %v5504_v19  ;;  %v6578_v29 = vadd.f32 %v4722_v15, %v8953_v59  ;;  %v6515_v30 = vadd.f32 %v3759_v20, %v8947_v56 }
 0x32f   : > { %v6579_v31 = vadd.f32 %v4724_v21, %v8949_v57  ;;  %v5310_v32 = vadd.f32 %v6513_v23, %v5309_v4  ;;  %v5505_v33 = vmul.f32 %v6513_v23, %v6513_v23  ;;  %v5384_v34 = vadd.f32 %v6577_v24, %v5383_v6 }
 0x330   : > { %v5507_v35 = vmul.f32 %v6577_v24, %v6577_v24  ;;  %v6449_v36 = vpack.c.bf16 %v6514_v25, %v6513_v23  ;;  %v5347_v37 = vadd.f32 %v6514_v25, %v5346_v11  ;;  %v5506_v38 = vmul.f32 %v6514_v25, %v6514_v25 }
 0x331   : > { %v6450_v39 = vpack.c.bf16 %v6578_v29, %v6577_v24  ;;  %v5620_v40 = vadd.f32 %v5619_v16, %v5505_v33  ;;  %v5421_v42 = vadd.f32 %v6578_v29, %v5420_v18  ;;  %v5508_v43 = vmul.f32 %v6578_v29, %v6578_v29 }
 0x332   : > { %v5694_v41 = vadd.f32 %v5693_v17, %v5507_v35  ;;  %5251 = vst [vmem:[%s8963_s29 + $0x40] sm:$0xff] %v6449_v36  ;;  %v5657_v44 = vadd.f32 %v5656_v22, %v5506_v38  ;;  %v5311_v45 = vadd.f32 %v6515_v30, %v5310_v32  ;;  %v5509_v46 = vmul.f32 %v6515_v30, %v6515_v30  ;;  %v3765_v48 = vpop.f32.mrb[12].mxu0  ;;  %v4730_v51 = vpop.f32.mrb[12].mxu1 }
 0x333   : > { %5252 = vst [vmem:[%s8963_s29 + $0x48] sm:$0xff] %v6450_v39  ;;  %v5385_v47 = vadd.f32 %v6579_v31, %v5384_v34  ;;  %v5731_v52 = vadd.f32 %v5730_v28, %v5508_v43  ;;  %v5511_v53 = vmul.f32 %v6579_v31, %v6579_v31  ;;  %v6516_v54 = vadd.f32 %v3761_v26, %v8951_v58  ;;  %v3767_v60 = vpop.f32.mrb[13].mxu0  ;;  %v4732_v61 = vpop.f32.mrb[13].mxu1 }
 0x334   : > { %v6580_v55 = vadd.f32 %v4726_v27, %v8953_v59  ;;  %v5621_v62 = vadd.f32 %v5620_v40, %v5509_v46  ;;  %v6517_v63 = vadd.f32 %v3765_v48, %v8947_v56  ;;  %v6581_v0 = vadd.f32 %v4730_v51, %v8949_v57  ;;  %v3769_v2 = vpop.f32.mrb[14].mxu0  ;;  %v4734_v3 = vpop.f32.mrb[14].mxu1 }
 0x335   : > { %v6518_v1 = vadd.f32 %v3767_v60, %v8951_v58  ;;  %v5695_v4 = vadd.f32 %v5694_v41, %v5511_v53  ;;  %v6451_v5 = vpack.c.bf16 %v6516_v54, %v6515_v30  ;;  %v5348_v6 = vadd.f32 %v6516_v54, %v5347_v37  ;;  %v3771_v8 = vpop.f32.mrb[15].mxu0  ;;  %v4736_v9 = vpop.f32.mrb[15].mxu1 }
 0x336   : > { %v5510_v7 = vmul.f32 %v6516_v54, %v6516_v54  ;;  %v6452_v10 = vpack.c.bf16 %v6580_v55, %v6579_v31  ;;  %v5422_v11 = vadd.f32 %v6580_v55, %v5421_v42  ;;  %v5512_v12 = vmul.f32 %v6580_v55, %v6580_v55 }
 0x337   : > { %v5312_v13 = vadd.f32 %v6517_v63, %v5311_v45  ;;  %5253 = vst [vmem:[%s8963_s29 + $0x50] sm:$0xff] %v6451_v5  ;;  %v5513_v15 = vmul.f32 %v6517_v63, %v6517_v63  ;;  %v5386_v16 = vadd.f32 %v6581_v0, %v5385_v47  ;;  %v5515_v17 = vmul.f32 %v6581_v0, %v6581_v0 }
 0x338   : > { %v5658_v14 = vadd.f32 %v5657_v44, %v5510_v7  ;;  %5254 = vst [vmem:[%s8963_s29 + $0x58] sm:$0xff] %v6452_v10  ;;  %v5732_v18 = vadd.f32 %v5731_v52, %v5512_v12  ;;  %v6453_v19 = vpack.c.bf16 %v6518_v1, %v6517_v63  ;;  %v5349_v20 = vadd.f32 %v6518_v1, %v5348_v6 }
 0x339   : > { %v5514_v21 = vmul.f32 %v6518_v1, %v6518_v1  ;;  %v5622_v22 = vadd.f32 %v5621_v62, %v5513_v15  ;;  %v5696_v23 = vadd.f32 %v5695_v4, %v5515_v17  ;;  %v6582_v24 = vadd.f32 %v4732_v61, %v8953_v59 }
 0x33a   : > { %v6519_v25 = vadd.f32 %v3769_v2, %v8947_v56  ;;  %5255 = vst [vmem:[%s8963_s29 + $0x60] sm:$0xff] %v6453_v19  ;;  %v6583_v27 = vadd.f32 %v4734_v3, %v8949_v57  ;;  %v6520_v28 = vadd.f32 %v3771_v8, %v8951_v58  ;;  %v6584_v29 = vadd.f32 %v4736_v9, %v8953_v59  ;;  %v3775_v30 = vpop.f32.mrb[16].mxu0  ;;  %v4740_v31 = vpop.f32.mrb[16].mxu1 }
 0x33b   : > { %v5659_v26 = vadd.f32 %v5658_v14, %v5514_v21  ;;  %v6454_v32 = vpack.c.bf16 %v6582_v24, %v6581_v0  ;;  %v5423_v33 = vadd.f32 %v6582_v24, %v5422_v11  ;;  %v5516_v34 = vmul.f32 %v6582_v24, %v6582_v24  ;;  %v3777_v36 = vpop.f32.mrb[17].mxu0  ;;  %v4742_v37 = vpop.f32.mrb[17].mxu1 }
 0x33c   : > { %v5313_v35 = vadd.f32 %v6519_v25, %v5312_v13  ;;  %v5517_v38 = vmul.f32 %v6519_v25, %v6519_v25  ;;  %v5387_v39 = vadd.f32 %v6583_v27, %v5386_v16  ;;  %v5519_v40 = vmul.f32 %v6583_v27, %v6583_v27  ;;  %v3779_v42 = vpop.f32.mrb[18].mxu0  ;;  %v4744_v43 = vpop.f32.mrb[18].mxu1 }
 0x33d   : > { %v6455_v41 = vpack.c.bf16 %v6520_v28, %v6519_v25  ;;  %5256 = vst [vmem:[%s8963_s29 + $0x68] sm:$0xff] %v6454_v32  ;;  %v5733_v44 = vadd.f32 %v5732_v18, %v5516_v34  ;;  %v5350_v45 = vadd.f32 %v6520_v28, %v5349_v20  ;;  %v5518_v46 = vmul.f32 %v6520_v28, %v6520_v28  ;;  %v3781_v48 = vpop.f32.mrb[19].mxu0  ;;  %v4746_v51 = vpop.f32.mrb[19].mxu1 }
 0x33e   : > { %v6456_v47 = vpack.c.bf16 %v6584_v29, %v6583_v27  ;;  %v5623_v52 = vadd.f32 %v5622_v22, %v5517_v38  ;;  %v5697_v53 = vadd.f32 %v5696_v23, %v5519_v40  ;;  %v5424_v54 = vadd.f32 %v6584_v29, %v5423_v33 }
 0x33f   : > { %5257 = vst [vmem:[%s8963_s29 + $0x70] sm:$0xff] %v6455_v41  ;;  %v5520_v55 = vmul.f32 %v6584_v29, %v6584_v29  ;;  %v5660_v60 = vadd.f32 %v5659_v26, %v5518_v46  ;;  %v6521_v61 = vadd.f32 %v3775_v30, %v8947_v56  ;;  %v6585_v62 = vadd.f32 %v4740_v31, %v8949_v57 }
 0x340   : > { %5258 = vst [vmem:[%s8963_s29 + $0x78] sm:$0xff] %v6456_v47  ;;  %v6522_v63 = vadd.f32 %v3777_v36, %v8951_v58  ;;  %v6586_v1 = vadd.f32 %v4742_v37, %v8953_v59  ;;  %v6523_v2 = vadd.f32 %v3779_v42, %v8947_v56  ;;  %v6587_v3 = vadd.f32 %v4744_v43, %v8949_v57 }
 0x341   : > { %v5734_v0 = vadd.f32 %v5733_v44, %v5520_v55  ;;  %v5314_v4 = vadd.f32 %v6521_v61, %v5313_v35  ;;  %v5521_v5 = vmul.f32 %v6521_v61, %v6521_v61  ;;  %v5388_v6 = vadd.f32 %v6585_v62, %v5387_v39 }
 0x342   : > { %v5523_v7 = vmul.f32 %v6585_v62, %v6585_v62  ;;  %v6457_v8 = vpack.c.bf16 %v6522_v63, %v6521_v61  ;;  %v5351_v9 = vadd.f32 %v6522_v63, %v5350_v45  ;;  %v5522_v10 = vmul.f32 %v6522_v63, %v6522_v63  ;;  %v3785_v12 = vpop.f32.mrb[20].mxu0  ;;  %v4750_v13 = vpop.f32.mrb[20].mxu1 }
 0x343   : > { %v6458_v11 = vpack.c.bf16 %v6586_v1, %v6585_v62  ;;  %v5624_v14 = vadd.f32 %v5623_v52, %v5521_v5  ;;  %v5425_v16 = vadd.f32 %v6586_v1, %v5424_v54  ;;  %v5524_v17 = vmul.f32 %v6586_v1, %v6586_v1  ;;  %v3787_v18 = vpop.f32.mrb[21].mxu0  ;;  %v4752_v19 = vpop.f32.mrb[21].mxu1 }
 0x344   : > { %v5698_v15 = vadd.f32 %v5697_v53, %v5523_v7  ;;  %5259 = vst [vmem:[%s8963_s29 + $0x80] sm:$0xff] %v6457_v8  ;;  %v5661_v20 = vadd.f32 %v5660_v60, %v5522_v10  ;;  %v5315_v21 = vadd.f32 %v6523_v2, %v5314_v4  ;;  %v5525_v22 = vmul.f32 %v6523_v2, %v6523_v2  ;;  %v3789_v24 = vpop.f32.mrb[22].mxu0  ;;  %v4754_v25 = vpop.f32.mrb[22].mxu1 }
 0x345   : > { %5260 = vst [vmem:[%s8963_s29 + $0x88] sm:$0xff] %v6458_v11  ;;  %v5389_v23 = vadd.f32 %v6587_v3, %v5388_v6  ;;  %v5735_v26 = vadd.f32 %v5734_v0, %v5524_v17  ;;  %v5527_v27 = vmul.f32 %v6587_v3, %v6587_v3  ;;  %v6524_v28 = vadd.f32 %v3781_v48, %v8951_v58  ;;  %v3791_v30 = vpop.f32.mrb[23].mxu0  ;;  %v4756_v31 = vpop.f32.mrb[23].mxu1 }
 0x346   : > { %v6588_v29 = vadd.f32 %v4746_v51, %v8953_v59  ;;  %v5625_v32 = vadd.f32 %v5624_v14, %v5525_v22  ;;  %v6525_v33 = vadd.f32 %v3785_v12, %v8947_v56  ;;  %v6589_v34 = vadd.f32 %v4750_v13, %v8949_v57 }
 0x347   : > { %v6526_v35 = vadd.f32 %v3787_v18, %v8951_v58  ;;  %v5699_v36 = vadd.f32 %v5698_v15, %v5527_v27  ;;  %v6459_v37 = vpack.c.bf16 %v6524_v28, %v6523_v2  ;;  %v5352_v38 = vadd.f32 %v6524_v28, %v5351_v9 }
 0x348   : > { %v5526_v39 = vmul.f32 %v6524_v28, %v6524_v28  ;;  %v6460_v40 = vpack.c.bf16 %v6588_v29, %v6587_v3  ;;  %v5426_v41 = vadd.f32 %v6588_v29, %v5425_v16  ;;  %v5528_v42 = vmul.f32 %v6588_v29, %v6588_v29 }
 0x349   : > { %v5316_v43 = vadd.f32 %v6525_v33, %v5315_v21  ;;  %5261 = vst [vmem:[%s8963_s29 + $0x90] sm:$0xff] %v6459_v37  ;;  %v5529_v45 = vmul.f32 %v6525_v33, %v6525_v33  ;;  %v5390_v46 = vadd.f32 %v6589_v34, %v5389_v23  ;;  %v5531_v47 = vmul.f32 %v6589_v34, %v6589_v34 }
 0x34a   : > { %v5662_v44 = vadd.f32 %v5661_v20, %v5526_v39  ;;  %5262 = vst [vmem:[%s8963_s29 + $0x98] sm:$0xff] %v6460_v40  ;;  %v5736_v48 = vadd.f32 %v5735_v26, %v5528_v42  ;;  %v6461_v51 = vpack.c.bf16 %v6526_v35, %v6525_v33  ;;  %v5353_v52 = vadd.f32 %v6526_v35, %v5352_v38  ;;  %v3795_v54 = vpop.f32.mrb[24].mxu0  ;;  %v4760_v55 = vpop.f32.mrb[24].mxu1 }
 0x34b   : > { %v5530_v53 = vmul.f32 %v6526_v35, %v6526_v35  ;;  %v5626_v60 = vadd.f32 %v5625_v32, %v5529_v45  ;;  %v5700_v61 = vadd.f32 %v5699_v36, %v5531_v47  ;;  %v6590_v62 = vadd.f32 %v4752_v19, %v8953_v59  ;;  %v3797_v0 = vpop.f32.mrb[25].mxu0  ;;  %v4762_v1 = vpop.f32.mrb[25].mxu1 }
 0x34c   : > { %v6527_v63 = vadd.f32 %v3789_v24, %v8947_v56  ;;  %5263 = vst [vmem:[%s8963_s29 + $0xa0] sm:$0xff] %v6461_v51  ;;  %v6591_v3 = vadd.f32 %v4754_v25, %v8949_v57  ;;  %v6528_v4 = vadd.f32 %v3791_v30, %v8951_v58  ;;  %v6592_v5 = vadd.f32 %v4756_v31, %v8953_v59  ;;  %v3799_v6 = vpop.f32.mrb[26].mxu0  ;;  %v4764_v7 = vpop.f32.mrb[26].mxu1 }
 0x34d   : > { %v5663_v2 = vadd.f32 %v5662_v44, %v5530_v53  ;;  %v6462_v8 = vpack.c.bf16 %v6590_v62, %v6589_v34  ;;  %v5427_v9 = vadd.f32 %v6590_v62, %v5426_v41  ;;  %v5532_v10 = vmul.f32 %v6590_v62, %v6590_v62  ;;  %v3801_v12 = vpop.f32.mrb[27].mxu0  ;;  %v4766_v13 = vpop.f32.mrb[27].mxu1 }
 0x34e   : > { %v5317_v11 = vadd.f32 %v6527_v63, %v5316_v43  ;;  %v5533_v14 = vmul.f32 %v6527_v63, %v6527_v63  ;;  %v5391_v15 = vadd.f32 %v6591_v3, %v5390_v46  ;;  %v5535_v16 = vmul.f32 %v6591_v3, %v6591_v3 }
 0x34f   : > { %v6463_v17 = vpack.c.bf16 %v6528_v4, %v6527_v63  ;;  %5264 = vst [vmem:[%s8963_s29 + $0xa8] sm:$0xff] %v6462_v8  ;;  %v5737_v18 = vadd.f32 %v5736_v48, %v5532_v10  ;;  %v5354_v19 = vadd.f32 %v6528_v4, %v5353_v52  ;;  %v5534_v20 = vmul.f32 %v6528_v4, %v6528_v4 }
 0x350   : > { %v6464_v21 = vpack.c.bf16 %v6592_v5, %v6591_v3  ;;  %v5627_v22 = vadd.f32 %v5626_v60, %v5533_v14  ;;  %v5701_v23 = vadd.f32 %v5700_v61, %v5535_v16  ;;  %v5428_v24 = vadd.f32 %v6592_v5, %v5427_v9 }
 0x351   : > { %5265 = vst [vmem:[%s8963_s29 + $0xb0] sm:$0xff] %v6463_v17  ;;  %v5536_v25 = vmul.f32 %v6592_v5, %v6592_v5  ;;  %v5664_v26 = vadd.f32 %v5663_v2, %v5534_v20  ;;  %v6529_v27 = vadd.f32 %v3795_v54, %v8947_v56  ;;  %v6593_v28 = vadd.f32 %v4760_v55, %v8949_v57 }
 0x352   : > { %5266 = vst [vmem:[%s8963_s29 + $0xb8] sm:$0xff] %v6464_v21  ;;  %v6530_v29 = vadd.f32 %v3797_v0, %v8951_v58  ;;  %v6594_v31 = vadd.f32 %v4762_v1, %v8953_v59  ;;  %v6531_v32 = vadd.f32 %v3799_v6, %v8947_v56  ;;  %v6595_v33 = vadd.f32 %v4764_v7, %v8949_v57  ;;  %v3805_v34 = vpop.f32.mrb[28].mxu0  ;;  %v4770_v35 = vpop.f32.mrb[28].mxu1 }
 0x353   : > { %v5738_v30 = vadd.f32 %v5737_v18, %v5536_v25  ;;  %v5318_v36 = vadd.f32 %v6529_v27, %v5317_v11  ;;  %v5537_v37 = vmul.f32 %v6529_v27, %v6529_v27  ;;  %v5392_v38 = vadd.f32 %v6593_v28, %v5391_v15  ;;  %v3807_v40 = vpop.f32.mrb[29].mxu0  ;;  %v4772_v41 = vpop.f32.mrb[29].mxu1 }
 0x354   : > { %v5539_v39 = vmul.f32 %v6593_v28, %v6593_v28  ;;  %v6465_v42 = vpack.c.bf16 %v6530_v29, %v6529_v27  ;;  %v5355_v43 = vadd.f32 %v6530_v29, %v5354_v19  ;;  %v5538_v44 = vmul.f32 %v6530_v29, %v6530_v29  ;;  %v3809_v46 = vpop.f32.mrb[30].mxu0  ;;  %v4774_v47 = vpop.f32.mrb[30].mxu1 }
 0x355   : > { %v6466_v45 = vpack.c.bf16 %v6594_v31, %v6593_v28  ;;  %v5628_v48 = vadd.f32 %v5627_v22, %v5537_v37  ;;  %v5429_v52 = vadd.f32 %v6594_v31, %v5428_v24  ;;  %v5540_v53 = vmul.f32 %v6594_v31, %v6594_v31  ;;  %v3811_v54 = vpop.f32.mrb[31].mxu0  ;;  %v4776_v55 = vpop.f32.mrb[31].mxu1 }
 0x356   : > { %v5702_v51 = vadd.f32 %v5701_v23, %v5539_v39  ;;  %5267 = vst [vmem:[%s8963_s29 + $0xc0] sm:$0xff] %v6465_v42  ;;  %v5665_v60 = vadd.f32 %v5664_v26, %v5538_v44  ;;  %v5319_v61 = vadd.f32 %v6531_v32, %v5318_v36  ;;  %v5541_v62 = vmul.f32 %v6531_v32, %v6531_v32 }
 0x357   : > { %5268 = vst [vmem:[%s8963_s29 + $0xc8] sm:$0xff] %v6466_v45  ;;  %v5393_v63 = vadd.f32 %v6595_v33, %v5392_v38  ;;  %v5739_v0 = vadd.f32 %v5738_v30, %v5540_v53  ;;  %v5543_v1 = vmul.f32 %v6595_v33, %v6595_v33  ;;  %v6532_v2 = vadd.f32 %v3801_v12, %v8951_v58 }
 0x358   : > { %v6596_v3 = vadd.f32 %v4766_v13, %v8953_v59  ;;  %v5629_v4 = vadd.f32 %v5628_v48, %v5541_v62  ;;  %v6533_v5 = vadd.f32 %v3805_v34, %v8947_v56  ;;  %v6597_v6 = vadd.f32 %v4770_v35, %v8949_v57 }
 0x359   : > { %v6534_v7 = vadd.f32 %v3807_v40, %v8951_v58  ;;  %v5703_v8 = vadd.f32 %v5702_v51, %v5543_v1  ;;  %v6467_v9 = vpack.c.bf16 %v6532_v2, %v6531_v32  ;;  %v5356_v10 = vadd.f32 %v6532_v2, %v5355_v43 }
 0x35a   : > { %v5542_v11 = vmul.f32 %v6532_v2, %v6532_v2  ;;  %v6468_v14 = vpack.c.bf16 %v6596_v3, %v6595_v33  ;;  %v5430_v15 = vadd.f32 %v6596_v3, %v5429_v52  ;;  %v5544_v16 = vmul.f32 %v6596_v3, %v6596_v3  ;;  %v3815_v12 = vpop.f32.mrb[32].mxu0  ;;  %v4780_v18 = vpop.f32.mrb[32].mxu1 }
 0x35b   : > { %v5320_v17 = vadd.f32 %v6533_v5, %v5319_v61  ;;  %5269 = vst [vmem:[%s8963_s29 + $0xd0] sm:$0xff] %v6467_v9  ;;  %v5545_v19 = vmul.f32 %v6533_v5, %v6533_v5  ;;  %v5394_v20 = vadd.f32 %v6597_v6, %v5393_v63  ;;  %v5547_v21 = vmul.f32 %v6597_v6, %v6597_v6  ;;  %v3817_v22 = vpop.f32.mrb[33].mxu0  ;;  %v4782_v23 = vpop.f32.mrb[33].mxu1 }
 0x35c   : > { %v5666_v13 = vadd.f32 %v5665_v60, %v5542_v11  ;;  %5270 = vst [vmem:[%s8963_s29 + $0xd8] sm:$0xff] %v6468_v14  ;;  %v5740_v24 = vadd.f32 %v5739_v0, %v5544_v16  ;;  %v6469_v25 = vpack.c.bf16 %v6534_v7, %v6533_v5  ;;  %v5357_v26 = vadd.f32 %v6534_v7, %v5356_v10  ;;  %v3819_v28 = vpop.f32.mrb[34].mxu0  ;;  %v4784_v29 = vpop.f32.mrb[34].mxu1 }
 0x35d   : > { %v5546_v27 = vmul.f32 %v6534_v7, %v6534_v7  ;;  %v5630_v30 = vadd.f32 %v5629_v4, %v5545_v19  ;;  %v5704_v31 = vadd.f32 %v5703_v8, %v5547_v21  ;;  %v6598_v32 = vadd.f32 %v4772_v41, %v8953_v59  ;;  %v3821_v34 = vpop.f32.mrb[35].mxu0  ;;  %v4786_v35 = vpop.f32.mrb[35].mxu1 }
 0x35e   : > { %v6535_v33 = vadd.f32 %v3809_v46, %v8947_v56  ;;  %5271 = vst [vmem:[%s8963_s29 + $0xe0] sm:$0xff] %v6469_v25  ;;  %v6599_v37 = vadd.f32 %v4774_v47, %v8949_v57  ;;  %v6536_v38 = vadd.f32 %v3811_v54, %v8951_v58  ;;  %v6600_v39 = vadd.f32 %v4776_v55, %v8953_v59 }
 0x35f   : > { %v5667_v36 = vadd.f32 %v5666_v13, %v5546_v27  ;;  %v6470_v40 = vpack.c.bf16 %v6598_v32, %v6597_v6  ;;  %v5431_v42 = vadd.f32 %v6598_v32, %v5430_v15  ;;  %v5548_v43 = vmul.f32 %v6598_v32, %v6598_v32 }
 0x360   : > { %v5321_v44 = vadd.f32 %v6535_v33, %v5320_v17  ;;  %v5549_v45 = vmul.f32 %v6535_v33, %v6535_v33  ;;  %v5395_v41 = vadd.f32 %v6599_v37, %v5394_v20  ;;  %v5551_v46 = vmul.f32 %v6599_v37, %v6599_v37 }
 0x361   : > { %v6471_v48 = vpack.c.bf16 %v6536_v38, %v6535_v33  ;;  %5272 = vst [vmem:[%s8963_s29 + $0xe8] sm:$0xff] %v6470_v40  ;;  %v5741_v51 = vadd.f32 %v5740_v24, %v5548_v43  ;;  %v5358_v52 = vadd.f32 %v6536_v38, %v5357_v26  ;;  %v5550_v53 = vmul.f32 %v6536_v38, %v6536_v38 }
 0x362   : > { %v6472_v60 = vpack.c.bf16 %v6600_v39, %v6599_v37  ;;  %v5631_v47 = vadd.f32 %v5630_v30, %v5549_v45  ;;  %v5705_v61 = vadd.f32 %v5704_v31, %v5551_v46  ;;  %v5432_v54 = vadd.f32 %v6600_v39, %v5431_v42  ;;  %v3825_v62 = vpop.f32.mrb[36].mxu0  ;;  %v4790_v63 = vpop.f32.mrb[36].mxu1 }
 0x363   : > { %5273 = vst [vmem:[%s8963_s29 + $0xf0] sm:$0xff] %v6471_v48  ;;  %v5552_v55 = vmul.f32 %v6600_v39, %v6600_v39  ;;  %v5668_v0 = vadd.f32 %v5667_v36, %v5550_v53  ;;  %v6537_v1 = vadd.f32 %v3815_v12, %v8947_v56  ;;  %v6601_v2 = vadd.f32 %v4780_v18, %v8949_v57  ;;  %v3827_v4 = vpop.f32.mrb[37].mxu0  ;;  %v9060_v5 = vpop.f32.mrb[37].mxu1 }
 0x364   : > { %5274 = vst [vmem:[%s8963_s29 + $0xf8] sm:$0xff] %v6472_v60  ;;  %v6538_v3 = vadd.f32 %v3817_v22, %v8951_v58  ;;  %v6602_v7 = vadd.f32 %v4782_v23, %v8953_v59  ;;  %v6539_v8 = vadd.f32 %v3819_v28, %v8947_v56  ;;  %v6603_v9 = vadd.f32 %v4784_v29, %v8949_v57  ;;  %v3829_v10 = vpop.f32.mrb[38].mxu0  ;;  %v4794_v11 = vpop.f32.mrb[38].mxu1 }
 0x365   : > { %v5742_v6 = vadd.f32 %v5741_v51, %v5552_v55  ;;  %v5322_v14 = vadd.f32 %v6537_v1, %v5321_v44  ;;  %v5553_v15 = vmul.f32 %v6537_v1, %v6537_v1  ;;  %v5396_v16 = vadd.f32 %v6601_v2, %v5395_v41  ;;  %v3831_v12 = vpop.f32.mrb[39].mxu0  ;;  %v4796_v18 = vpop.f32.mrb[39].mxu1 }
 0x366   : > { %v5555_v17 = vmul.f32 %v6601_v2, %v6601_v2  ;;  %v6473_v13 = vpack.c.bf16 %v6538_v3, %v6537_v1  ;;  %v5359_v19 = vadd.f32 %v6538_v3, %v5358_v52  ;;  %v5554_v20 = vmul.f32 %v6538_v3, %v6538_v3 }
 0x367   : > { %v6474_v21 = vpack.c.bf16 %v6602_v7, %v6601_v2  ;;  %v5632_v22 = vadd.f32 %v5631_v47, %v5553_v15  ;;  %v5433_v24 = vadd.f32 %v6602_v7, %v5432_v54  ;;  %v5556_v25 = vmul.f32 %v6602_v7, %v6602_v7 }
 0x368   : > { %v5706_v23 = vadd.f32 %v5705_v61, %v5555_v17  ;;  %5275 = vst [vmem:[%s8963_s29 + $0x100] sm:$0xff] %v6473_v13  ;;  %v5669_v26 = vadd.f32 %v5668_v0, %v5554_v20  ;;  %v5323_v27 = vadd.f32 %v6539_v8, %v5322_v14  ;;  %v5557_v28 = vmul.f32 %v6539_v8, %v6539_v8 }
 0x369   : > { %5276 = vst [vmem:[%s8963_s29 + $0x108] sm:$0xff] %v6474_v21  ;;  %v5397_v29 = vadd.f32 %v6603_v9, %v5396_v16  ;;  %v5743_v30 = vadd.f32 %v5742_v6, %v5556_v25  ;;  %v5559_v31 = vmul.f32 %v6603_v9, %v6603_v9  ;;  %v6540_v32 = vadd.f32 %v3821_v34, %v8951_v58 }
 0x36a   : > { %v6604_v33 = vadd.f32 %v4786_v35, %v8953_v59  ;;  %v5633_v36 = vadd.f32 %v5632_v22, %v5557_v28  ;;  %v6541_v37 = vadd.f32 %v3825_v62, %v8947_v56  ;;  %v6605_v38 = vadd.f32 %v4790_v63, %v8949_v57  ;;  %v3835_v40 = vpop.f32.mrb[40].mxu0  ;;  %v4800_v42 = vpop.f32.mrb[40].mxu1 }
 0x36b   : > { %v6542_v39 = vadd.f32 %v3827_v4, %v8951_v58  ;;  %v5707_v43 = vadd.f32 %v5706_v23, %v5559_v31  ;;  %v6475_v44 = vpack.c.bf16 %v6540_v32, %v6539_v8  ;;  %v5360_v45 = vadd.f32 %v6540_v32, %v5359_v19  ;;  %v3837_v46 = vpop.f32.mrb[41].mxu0  ;;  %v4802_v48 = vpop.f32.mrb[41].mxu1 }
 0x36c   : > { %v5558_v41 = vmul.f32 %v6540_v32, %v6540_v32  ;;  %v6476_v34 = vpack.c.bf16 %v6604_v33, %v6603_v9  ;;  %v5434_v51 = vadd.f32 %v6604_v33, %v5433_v24  ;;  %v5560_v35 = vmul.f32 %v6604_v33, %v6604_v33  ;;  %v3839_v53 = vpop.f32.mrb[42].mxu0  ;;  %v4804_v60 = vpop.f32.mrb[42].mxu1 }
 0x36d   : > { %v5324_v52 = vadd.f32 %v6541_v37, %v5323_v27  ;;  %5277 = vst [vmem:[%s8963_s29 + $0x110] sm:$0xff] %v6475_v44  ;;  %v5561_v61 = vmul.f32 %v6541_v37, %v6541_v37  ;;  %v5398_v54 = vadd.f32 %v6605_v38, %v5397_v29  ;;  %v5563_v55 = vmul.f32 %v6605_v38, %v6605_v38  ;;  %v9073_v62 = vpop.f32.mrb[43].mxu0  ;;  %v9075_v63 = vpop.f32.mrb[43].mxu1 }
 0x36e   : > { %v5670_v47 = vadd.f32 %v5669_v26, %v5558_v41  ;;  %5278 = vst [vmem:[%s8963_s29 + $0x118] sm:$0xff] %v6476_v34  ;;  %v5744_v0 = vadd.f32 %v5743_v30, %v5560_v35  ;;  %v6477_v1 = vpack.c.bf16 %v6542_v39, %v6541_v37  ;;  %v5361_v2 = vadd.f32 %v6542_v39, %v5360_v45 }
 0x36f   : > { %v5562_v3 = vmul.f32 %v6542_v39, %v6542_v39  ;;  %v5634_v4 = vadd.f32 %v5633_v36, %v5561_v61  ;;  %v5708_v6 = vadd.f32 %v5707_v43, %v5563_v55  ;;  %v6606_v7 = vadd.f32 %v9060_v5, %v8953_v59 }
 0x370   : > { %v6543_v8 = vadd.f32 %v3829_v10, %v8947_v56  ;;  %5279 = vst [vmem:[%s8963_s29 + $0x120] sm:$0xff] %v6477_v1  ;;  %v6607_v14 = vadd.f32 %v4794_v11, %v8949_v57  ;;  %v6544_v15 = vadd.f32 %v3831_v12, %v8951_v58  ;;  %v6608_v16 = vadd.f32 %v4796_v18, %v8953_v59 }
 0x371   : > { %v5671_v9 = vadd.f32 %v5670_v47, %v5562_v3  ;;  %v6478_v17 = vpack.c.bf16 %v6606_v7, %v6605_v38  ;;  %v5435_v13 = vadd.f32 %v6606_v7, %v5434_v51  ;;  %v5564_v19 = vmul.f32 %v6606_v7, %v6606_v7 }
 0x372   : > { %v5325_v20 = vadd.f32 %v6543_v8, %v5324_v52  ;;  %v5565_v21 = vmul.f32 %v6543_v8, %v6543_v8  ;;  %v5399_v22 = vadd.f32 %v6607_v14, %v5398_v54  ;;  %v5567_v23 = vmul.f32 %v6607_v14, %v6607_v14  ;;  %v3845_v24 = vpop.f32.mrb[44].mxu0  ;;  %v4810_v10 = vpop.f32.mrb[44].mxu1 }
 0x373   : > { %v6479_v5 = vpack.c.bf16 %v6544_v15, %v6543_v8  ;;  %5280 = vst [vmem:[%s8963_s29 + $0x128] sm:$0xff] %v6478_v17  ;;  %v5745_v25 = vadd.f32 %v5744_v0, %v5564_v19  ;;  %v5362_v26 = vadd.f32 %v6544_v15, %v5361_v2  ;;  %v5566_v11 = vmul.f32 %v6544_v15, %v6544_v15  ;;  %v3847_v12 = vpop.f32.mrb[45].mxu0  ;;  %v9086_v28 = vpop.f32.mrb[45].mxu1 }
 0x374   : > { %v6480_v27 = vpack.c.bf16 %v6608_v16, %v6607_v14  ;;  %v5635_v18 = vadd.f32 %v5634_v4, %v5565_v21  ;;  %v5709_v29 = vadd.f32 %v5708_v6, %v5567_v23  ;;  %v5436_v30 = vadd.f32 %v6608_v16, %v5435_v13  ;;  %v9089_v32 = vpop.f32.mrb[46].mxu0  ;;  %v9091_v33 = vpop.f32.mrb[46].mxu1 }
 0x375   : > { %5281 = vst [vmem:[%s8963_s29 + $0x130] sm:$0xff] %v6479_v5  ;;  %v5568_v31 = vmul.f32 %v6608_v16, %v6608_v16  ;;  %v5672_v36 = vadd.f32 %v5671_v9, %v5566_v11  ;;  %v6545_v37 = vadd.f32 %v3835_v40, %v8947_v56  ;;  %v6609_v38 = vadd.f32 %v4800_v42, %v8949_v57  ;;  %v9097_v43 = vpop.f32.mrb[47].mxu0  ;;  %v9099_v44 = vpop.f32.mrb[47].mxu1 }
 0x376   : > { %5282 = vst [vmem:[%s8963_s29 + $0x138] sm:$0xff] %v6480_v27  ;;  %v6546_v39 = vadd.f32 %v3837_v46, %v8951_v58  ;;  %v6610_v41 = vadd.f32 %v4802_v48, %v8953_v59  ;;  %v6547_v34 = vadd.f32 %v3839_v53, %v8947_v56  ;;  %v6611_v51 = vadd.f32 %v4804_v60, %v8949_v57 }
 0x377   : > { %v5746_v45 = vadd.f32 %v5745_v25, %v5568_v31  ;;  %v5326_v35 = vadd.f32 %v6545_v37, %v5325_v20  ;;  %v5569_v52 = vmul.f32 %v6545_v37, %v6545_v37  ;;  %v5400_v40 = vadd.f32 %v6609_v38, %v5399_v22 }
 0x378   : > { %v5571_v47 = vmul.f32 %v6609_v38, %v6609_v38  ;;  %v6481_v42 = vpack.c.bf16 %v6546_v39, %v6545_v37  ;;  %v5363_v61 = vadd.f32 %v6546_v39, %v5362_v26  ;;  %v5570_v46 = vmul.f32 %v6546_v39, %v6546_v39 }
 0x379   : > { %v6482_v54 = vpack.c.bf16 %v6610_v41, %v6609_v38  ;;  %v5636_v55 = vadd.f32 %v5635_v18, %v5569_v52  ;;  %v5437_v1 = vadd.f32 %v6610_v41, %v5436_v30  ;;  %v5572_v2 = vmul.f32 %v6610_v41, %v6610_v41 }
 0x37a   : > { %v5710_v0 = vadd.f32 %v5709_v29, %v5571_v47  ;;  %5283 = vst [vmem:[%s8963_s29 + $0x140] sm:$0xff] %v6481_v42  ;;  %v5673_v3 = vadd.f32 %v5672_v36, %v5570_v46  ;;  %v5327_v48 = vadd.f32 %v6547_v34, %v5326_v35  ;;  %v5573_v53 = vmul.f32 %v6547_v34, %v6547_v34  ;;  %v9106_v6 = vpop.f32.mrb[48].mxu0  ;;  %v9108_v60 = vpop.f32.mrb[48].mxu1 }
 0x37b   : > { %5284 = vst [vmem:[%s8963_s29 + $0x148] sm:$0xff] %v6482_v54  ;;  %v5401_v4 = vadd.f32 %v6611_v51, %v5400_v40  ;;  %v5747_v7 = vadd.f32 %v5746_v45, %v5572_v2  ;;  %v5575_v8 = vmul.f32 %v6611_v51, %v6611_v51  ;;  %v6548_v9 = vadd.f32 %v9073_v62, %v8951_v58  ;;  %v9114_v15 = vpop.f32.mrb[49].mxu0  ;;  %v9116_v16 = vpop.f32.mrb[49].mxu1 }
 0x37c   : > { %v6612_v14 = vadd.f32 %v9075_v63, %v8953_v59  ;;  %v5637_v17 = vadd.f32 %v5636_v55, %v5573_v53  ;;  %v6549_v13 = vadd.f32 %v3845_v24, %v8947_v56  ;;  %v6613_v19 = vadd.f32 %v4810_v10, %v8949_v57  ;;  %v9121_v21 = vpop.f32.mrb[50].mxu0  ;;  %v9123_v22 = vpop.f32.mrb[50].mxu1 }
 0x37d   : > { %v6550_v20 = vadd.f32 %v3847_v12, %v8951_v58  ;;  %v5711_v62 = vadd.f32 %v5710_v0, %v5575_v8  ;;  %v6483_v23 = vpack.c.bf16 %v6548_v9, %v6547_v34  ;;  %v5364_v63 = vadd.f32 %v6548_v9, %v5363_v61  ;;  %v9125_v25 = vpop.f32.mrb[51].mxu0  ;;  %v9127_v26 = vpop.f32.mrb[51].mxu1 }
 0x37e   : > { %v5574_v5 = vmul.f32 %v6548_v9, %v6548_v9  ;;  %v6484_v11 = vpack.c.bf16 %v6612_v14, %v6611_v51  ;;  %v5438_v27 = vadd.f32 %v6612_v14, %v5437_v1  ;;  %v5576_v24 = vmul.f32 %v6612_v14, %v6612_v14 }
 0x37f   : > { %v5328_v10 = vadd.f32 %v6549_v13, %v5327_v48  ;;  %5285 = vst [vmem:[%s8963_s29 + $0x150] sm:$0xff] %v6483_v23  ;;  %v5577_v18 = vmul.f32 %v6549_v13, %v6549_v13  ;;  %v5402_v29 = vadd.f32 %v6613_v19, %v5401_v4  ;;  %v5579_v30 = vmul.f32 %v6613_v19, %v6613_v19 }
 0x380   : > { %v5674_v12 = vadd.f32 %v5673_v3, %v5574_v5  ;;  %5286 = vst [vmem:[%s8963_s29 + $0x158] sm:$0xff] %v6484_v11  ;;  %v5748_v31 = vadd.f32 %v5747_v7, %v5576_v24  ;;  %v6485_v36 = vpack.c.bf16 %v6550_v20, %v6549_v13  ;;  %v5365_v37 = vadd.f32 %v6550_v20, %v5364_v63 }
 0x381   : > { %v5578_v38 = vmul.f32 %v6550_v20, %v6550_v20  ;;  %v5638_v39 = vadd.f32 %v5637_v17, %v5577_v18  ;;  %v5712_v45 = vadd.f32 %v5711_v62, %v5579_v30  ;;  %v6614_v41 = vadd.f32 %v9086_v28, %v8953_v59 }
 0x382   : > { %v6551_v34 = vadd.f32 %v9089_v32, %v8947_v56  ;;  %5287 = vst [vmem:[%s8963_s29 + $0x160] sm:$0xff] %v6485_v36  ;;  %v6615_v35 = vadd.f32 %v9091_v33, %v8949_v57  ;;  %v6552_v52 = vadd.f32 %v9097_v43, %v8951_v58  ;;  %v6616_v40 = vadd.f32 %v9099_v44, %v8953_v59  ;;  %v9142_v47 = vpop.f32.mrb[52].mxu0  ;;  %v9144_v42 = vpop.f32.mrb[52].mxu1 }
 0x383   : > { %v5675_v51 = vadd.f32 %v5674_v12, %v5578_v38  ;;  %v6486_v28 = vpack.c.bf16 %v6614_v41, %v6613_v19  ;;  %v5439_v61 = vadd.f32 %v6614_v41, %v5438_v27  ;;  %v5580_v46 = vmul.f32 %v6614_v41, %v6614_v41  ;;  %v3867_v54 = vpop.f32.mrb[53].mxu0  ;;  %v9146_v55 = vpop.f32.mrb[53].mxu1 }
 0x384   : > { %v5329_v32 = vadd.f32 %v6551_v34, %v5328_v10  ;;  %v5581_v33 = vmul.f32 %v6551_v34, %v6551_v34  ;;  %v5403_v0 = vadd.f32 %v6615_v35, %v5402_v29  ;;  %v5583_v1 = vmul.f32 %v6615_v35, %v6615_v35  ;;  %v9148_v2 = vpop.f32.mrb[54].mxu0  ;;  %v9150_v44 = vpop.f32.mrb[54].mxu1 }
 0x385   : > { %v6487_v43 = vpack.c.bf16 %v6552_v52, %v6551_v34  ;;  %5288 = vst [vmem:[%s8963_s29 + $0x168] sm:$0xff] %v6486_v28  ;;  %v5749_v3 = vadd.f32 %v5748_v31, %v5580_v46  ;;  %v5366_v48 = vadd.f32 %v6552_v52, %v5365_v37  ;;  %v5582_v53 = vmul.f32 %v6552_v52, %v6552_v52  ;;  %v9153_v7 = vpop.f32.mrb[55].mxu0  ;;  %v9155_v8 = vpop.f32.mrb[55].mxu1 }
 0x386   : > { %v6488_v4 = vpack.c.bf16 %v6616_v40, %v6615_v35  ;;  %v5639_v9 = vadd.f32 %v5638_v39, %v5581_v33  ;;  %v5713_v14 = vadd.f32 %v5712_v45, %v5583_v1  ;;  %v5440_v17 = vadd.f32 %v6616_v40, %v5439_v61 }
 0x387   : > { %5289 = vst [vmem:[%s8963_s29 + $0x170] sm:$0xff] %v6487_v43  ;;  %v5584_v13 = vmul.f32 %v6616_v40, %v6616_v40  ;;  %v5676_v19 = vadd.f32 %v5675_v51, %v5582_v53  ;;  %v6553_v20 = vadd.f32 %v9106_v6, %v8947_v56  ;;  %v6617_v62 = vadd.f32 %v9108_v60, %v8949_v57 }
 0x388   : > { %5290 = vst [vmem:[%s8963_s29 + $0x178] sm:$0xff] %v6488_v4  ;;  %v6554_v23 = vadd.f32 %v9114_v15, %v8951_v58  ;;  %v6618_v5 = vadd.f32 %v9116_v16, %v8953_v59  ;;  %v6555_v11 = vadd.f32 %v9121_v21, %v8947_v56  ;;  %v6619_v27 = vadd.f32 %v9123_v22, %v8949_v57 }
 0x389   : > { %v5750_v63 = vadd.f32 %v5749_v3, %v5584_v13  ;;  %v5330_v24 = vadd.f32 %v6553_v20, %v5329_v32  ;;  %v5585_v10 = vmul.f32 %v6553_v20, %v6553_v20  ;;  %v5404_v6 = vadd.f32 %v6617_v62, %v5403_v0 }
 0x38a   : > { %v5587_v12 = vmul.f32 %v6617_v62, %v6617_v62  ;;  %v6489_v60 = vpack.c.bf16 %v6554_v23, %v6553_v20  ;;  %v5367_v18 = vadd.f32 %v6554_v23, %v5366_v48  ;;  %v5586_v29 = vmul.f32 %v6554_v23, %v6554_v23  ;;  %v9171_v30 = vpop.f32.mrb[56].mxu0  ;;  %v9173_v31 = vpop.f32.mrb[56].mxu1 }
 0x38b   : > { %v6490_v15 = vpack.c.bf16 %v6618_v5, %v6617_v62  ;;  %v5640_v16 = vadd.f32 %v5639_v9, %v5585_v10  ;;  %v5441_v21 = vadd.f32 %v6618_v5, %v5440_v17  ;;  %v5588_v37 = vmul.f32 %v6618_v5, %v6618_v5  ;;  %v9175_v38 = vpop.f32.mrb[57].mxu0  ;;  %v9177_v22 = vpop.f32.mrb[57].mxu1 }
 0x38c   : > { %v5714_v36 = vadd.f32 %v5713_v14, %v5587_v12  ;;  %5291 = vst [vmem:[%s8963_s29 + $0x180] sm:$0xff] %v6489_v60  ;;  %v5677_v39 = vadd.f32 %v5676_v19, %v5586_v29  ;;  %v5331_v45 = vadd.f32 %v6555_v11, %v5330_v24  ;;  %v5589_v41 = vmul.f32 %v6555_v11, %v6555_v11  ;;  %v9181_v51 = vpop.f32.mrb[58].mxu0  ;;  %v9183_v35 = vpop.f32.mrb[58].mxu1 }
 0x38d   : > { %5292 = vst [vmem:[%s8963_s29 + $0x188] sm:$0xff] %v6490_v15  ;;  %v5405_v34 = vadd.f32 %v6619_v27, %v5404_v6  ;;  %v5751_v52 = vadd.f32 %v5750_v63, %v5588_v37  ;;  %v5591_v40 = vmul.f32 %v6619_v27, %v6619_v27  ;;  %v6556_v28 = vadd.f32 %v9125_v25, %v8951_v58  ;;  %v9189_v46 = vpop.f32.mrb[59].mxu0  ;;  %v9191_v32 = vpop.f32.mrb[59].mxu1 }
 0x38e   : > { %v6620_v61 = vadd.f32 %v9127_v26, %v8953_v59  ;;  %v5641_v33 = vadd.f32 %v5640_v16, %v5589_v41  ;;  %v6557_v0 = vadd.f32 %v9142_v47, %v8947_v56  ;;  %v6621_v1 = vadd.f32 %v9144_v42, %v8949_v57 }
 0x38f   : > { %v6558_v43 = vadd.f32 %v3867_v54, %v8951_v58  ;;  %v5715_v3 = vadd.f32 %v5714_v36, %v5591_v40  ;;  %v6491_v25 = vpack.c.bf16 %v6556_v28, %v6555_v11  ;;  %v5368_v48 = vadd.f32 %v6556_v28, %v5367_v18 }
 0x390   : > { %v5590_v53 = vmul.f32 %v6556_v28, %v6556_v28  ;;  %v6492_v4 = vpack.c.bf16 %v6620_v61, %v6619_v27  ;;  %v5442_v26 = vadd.f32 %v6620_v61, %v5441_v21  ;;  %v5592_v9 = vmul.f32 %v6620_v61, %v6620_v61 }
 0x391   : > { %v5332_v14 = vadd.f32 %v6557_v0, %v5331_v45  ;;  %5293 = vst [vmem:[%s8963_s29 + $0x190] sm:$0xff] %v6491_v25  ;;  %v5593_v13 = vmul.f32 %v6557_v0, %v6557_v0  ;;  %v5406_v19 = vadd.f32 %v6621_v1, %v5405_v34  ;;  %v5595_v47 = vmul.f32 %v6621_v1, %v6621_v1 }
 0x392   : > { %v5678_v17 = vadd.f32 %v5677_v39, %v5590_v53  ;;  %5294 = vst [vmem:[%s8963_s29 + $0x198] sm:$0xff] %v6492_v4  ;;  %v5752_v20 = vadd.f32 %v5751_v52, %v5592_v9  ;;  %v6493_v62 = vpack.c.bf16 %v6558_v43, %v6557_v0  ;;  %v5369_v42 = vadd.f32 %v6558_v43, %v5368_v48  ;;  %v9200_v54 = vpop.f32.mrb[60].mxu0  ;;  %v9202_v63 = vpop.f32.mrb[60].mxu1 }
 0x393   : > { %v5594_v23 = vmul.f32 %v6558_v43, %v6558_v43  ;;  %v5642_v5 = vadd.f32 %v5641_v33, %v5593_v13  ;;  %v5716_v11 = vadd.f32 %v5715_v3, %v5595_v47  ;;  %v6622_v27 = vadd.f32 %v9146_v55, %v8953_v59  ;;  %v9208_v10 = vpop.f32.mrb[61].mxu0  ;;  %v9210_v6 = vpop.f32.mrb[61].mxu1 }
 0x394   : > { %v6559_v24 = vadd.f32 %v9148_v2, %v8947_v56  ;;  %5295 = vst [vmem:[%s8963_s29 + $0x1a0] sm:$0xff] %v6493_v62  ;;  %v6623_v60 = vadd.f32 %v9150_v44, %v8949_v57  ;;  %v6560_v18 = vadd.f32 %v9153_v7, %v8951_v58  ;;  %v6624_v29 = vadd.f32 %v9155_v8, %v8953_v59  ;;  %v9219_v55 = vpop.f32.mrb[62].mxu0  ;;  %v9221_v15 = vpop.f32.mrb[62].mxu1 }
 0x395   : > { %v5679_v12 = vadd.f32 %v5678_v17, %v5594_v23  ;;  %v6494_v2 = vpack.c.bf16 %v6622_v27, %v6621_v1  ;;  %v5443_v16 = vadd.f32 %v6622_v27, %v5442_v26  ;;  %v5596_v36 = vmul.f32 %v6622_v27, %v6622_v27  ;;  %v9223_v37 = vpop.f32.mrb[63].mxu0  ;;  %v9225_v39 = vpop.f32.mrb[63].mxu1 }
 0x396   : > { %v5333_v21 = vadd.f32 %v6559_v24, %v5332_v14  ;;  %v5597_v44 = vmul.f32 %v6559_v24, %v6559_v24  ;;  %v5407_v45 = vadd.f32 %v6623_v60, %v5406_v19  ;;  %v5599_v7 = vmul.f32 %v6623_v60, %v6623_v60 }
 0x397   : > { %v6495_v41 = vpack.c.bf16 %v6560_v18, %v6559_v24  ;;  %5296 = vst [vmem:[%s8963_s29 + $0x1a8] sm:$0xff] %v6494_v2  ;;  %v5753_v8 = vadd.f32 %v5752_v20, %v5596_v36  ;;  %v5370_v34 = vadd.f32 %v6560_v18, %v5369_v42  ;;  %v5598_v52 = vmul.f32 %v6560_v18, %v6560_v18 }
 0x398   : > { %v6496_v40 = vpack.c.bf16 %v6624_v29, %v6623_v60  ;;  %v5643_v28 = vadd.f32 %v5642_v5, %v5597_v44  ;;  %v5717_v61 = vadd.f32 %v5716_v11, %v5599_v7  ;;  %v5444_v33 = vadd.f32 %v6624_v29, %v5443_v16 }
 0x399   : > { %5297 = vst [vmem:[%s8963_s29 + $0x1b0] sm:$0xff] %v6495_v41  ;;  %v5600_v0 = vmul.f32 %v6624_v29, %v6624_v29  ;;  %v5680_v1 = vadd.f32 %v5679_v12, %v5598_v52  ;;  %v6561_v43 = vadd.f32 %v9171_v30, %v8947_v56  ;;  %v6625_v3 = vadd.f32 %v9173_v31, %v8949_v57 }
 0x39a   : > { %5298 = vst [vmem:[%s8963_s29 + $0x1b8] sm:$0xff] %v6496_v40  ;;  %v6562_v25 = vadd.f32 %v9175_v38, %v8951_v58  ;;  %v6626_v53 = vadd.f32 %v9177_v22, %v8953_v59  ;;  %v6563_v4 = vadd.f32 %v9181_v51, %v8947_v56  ;;  %v6627_v26 = vadd.f32 %v9183_v35, %v8949_v57 }
 0x39b   : > { %v5754_v48 = vadd.f32 %v5753_v8, %v5600_v0  ;;  %v5334_v9 = vadd.f32 %v6561_v43, %v5333_v21  ;;  %v5601_v30 = vmul.f32 %v6561_v43, %v6561_v43  ;;  %v5408_v14 = vadd.f32 %v6625_v3, %v5407_v45 }
 0x39c   : > { %v5603_v17 = vmul.f32 %v6625_v3, %v6625_v3  ;;  %v6497_v31 = vpack.c.bf16 %v6562_v25, %v6561_v43  ;;  %v5371_v13 = vadd.f32 %v6562_v25, %v5370_v34  ;;  %v5602_v19 = vmul.f32 %v6562_v25, %v6562_v25 }
 0x39d   : > { %v6498_v38 = vpack.c.bf16 %v6626_v53, %v6625_v3  ;;  %v5644_v47 = vadd.f32 %v5643_v28, %v5601_v30  ;;  %v5445_v62 = vadd.f32 %v6626_v53, %v5444_v33  ;;  %v5604_v42 = vmul.f32 %v6626_v53, %v6626_v53 }
 0x39e   : > { %v5718_v20 = vadd.f32 %v5717_v61, %v5603_v17  ;;  %5299 = vst [vmem:[%s8963_s29 + $0x1c0] sm:$0xff] %v6497_v31  ;;  %v5681_v22 = vadd.f32 %v5680_v1, %v5602_v19  ;;  %v5335_v51 = vadd.f32 %v6563_v4, %v5334_v9  ;;  %v5605_v23 = vmul.f32 %v6563_v4, %v6563_v4 }
 0x39f   : > { %5300 = vst [vmem:[%s8963_s29 + $0x1c8] sm:$0xff] %v6498_v38  ;;  %v5409_v5 = vadd.f32 %v6627_v26, %v5408_v14  ;;  %v5755_v11 = vadd.f32 %v5754_v48, %v5604_v42  ;;  %v5607_v35 = vmul.f32 %v6627_v26, %v6627_v26  ;;  %v6564_v27 = vadd.f32 %v9189_v46, %v8951_v58 }
 0x3a0   : > { %v6628_v24 = vadd.f32 %v9191_v32, %v8953_v59  ;;  %v5645_v12 = vadd.f32 %v5644_v47, %v5605_v23  ;;  %v6565_v60 = vadd.f32 %v9200_v54, %v8947_v56  ;;  %v6629_v18 = vadd.f32 %v9202_v63, %v8949_v57 }
 0x3a1   : > { %v6566_v29 = vadd.f32 %v9208_v10, %v8951_v58  ;;  %v5719_v2 = vadd.f32 %v5718_v20, %v5607_v35  ;;  %v6499_v16 = vpack.c.bf16 %v6564_v27, %v6563_v4  ;;  %v5372_v36 = vadd.f32 %v6564_v27, %v5371_v13 }
 0x3a2   : > { %v5606_v21 = vmul.f32 %v6564_v27, %v6564_v27  ;;  %v6500_v44 = vpack.c.bf16 %v6628_v24, %v6627_v26  ;;  %v5446_v46 = vadd.f32 %v6628_v24, %v5445_v62  ;;  %v5608_v45 = vmul.f32 %v6628_v24, %v6628_v24 }
 0x3a3   : > { %v5336_v32 = vadd.f32 %v6565_v60, %v5335_v51  ;;  %5301 = vst [vmem:[%s8963_s29 + $0x1d0] sm:$0xff] %v6499_v16  ;;  %v5609_v41 = vmul.f32 %v6565_v60, %v6565_v60  ;;  %v5410_v54 = vadd.f32 %v6629_v18, %v5409_v5  ;;  %v5611_v8 = vmul.f32 %v6629_v18, %v6629_v18 }
 0x3a4   : > { %v5682_v7 = vadd.f32 %v5681_v22, %v5606_v21  ;;  %5302 = vst [vmem:[%s8963_s29 + $0x1d8] sm:$0xff] %v6500_v44  ;;  %v5756_v34 = vadd.f32 %v5755_v11, %v5608_v45  ;;  %v6501_v63 = vpack.c.bf16 %v6566_v29, %v6565_v60  ;;  %v5373_v52 = vadd.f32 %v6566_v29, %v5372_v36 }
 0x3a5   : > { %v5610_v40 = vmul.f32 %v6566_v29, %v6566_v29  ;;  %v5646_v10 = vadd.f32 %v5645_v12, %v5609_v41  ;;  %v5720_v28 = vadd.f32 %v5719_v2, %v5611_v8  ;;  %v6630_v61 = vadd.f32 %v9210_v6, %v8953_v59 }
 0x3a6   : > { %v6567_v33 = vadd.f32 %v9219_v55, %v8947_v56  ;;  %5303 = vst [vmem:[%s8963_s29 + $0x1e0] sm:$0xff] %v6501_v63  ;;  %v6631_v1 = vadd.f32 %v9221_v15, %v8949_v57  ;;  %v6568_v43 = vadd.f32 %v9223_v37, %v8951_v58  ;;  %v6632_v37 = vadd.f32 %v9225_v39, %v8953_v59 }
 0x3a7   : > { %v5683_v0 = vadd.f32 %v5682_v7, %v5610_v40  ;;  %v6502_v3 = vpack.c.bf16 %v6630_v61, %v6629_v18  ;;  %v5447_v25 = vadd.f32 %v6630_v61, %v5446_v46  ;;  %v5612_v48 = vmul.f32 %v6630_v61, %v6630_v61 }
 0x3a8   : > { %v5337_v53 = vadd.f32 %v6567_v33, %v5336_v32  ;;  %v5613_v4 = vmul.f32 %v6567_v33, %v6567_v33  ;;  %v5411_v26 = vadd.f32 %v6631_v1, %v5410_v54  ;;  %v5615_v9 = vmul.f32 %v6631_v1, %v6631_v1 }
 0x3a9   : > { %v6503_v6 = vpack.c.bf16 %v6568_v43, %v6567_v33  ;;  %5304 = vst [vmem:[%s8963_s29 + $0x1e8] sm:$0xff] %v6502_v3  ;;  %v5757_v30 = vadd.f32 %v5756_v34, %v5612_v48  ;;  %v5374_v55 = vadd.f32 %v6568_v43, %v5373_v52  ;;  %v5614_v57 = vmul.f32 %v6568_v43, %v6568_v43 }
 0x3aa   : > { %v5338_v56 = vrot.slane %v5337_v53, 4  ;;  %v5647_v14 = vadd.f32 %v5646_v10, %v5613_v4  ;;  %v5412_v17 = vrot.slane %v5411_v26, 4  ;;  %v5721_v31 = vadd.f32 %v5720_v28, %v5615_v9 }
 0x3ab   : > { %5305 = vst [vmem:[%s8963_s29 + $0x1f0] sm:$0xff] %v6503_v6  ;;  %v5375_v58 = vrot.slane %v5374_v55, 4  ;;  %v5684_v47 = vadd.f32 %v5683_v0, %v5614_v57  ;;  %v6504_v42 = vpack.c.bf16 %v6632_v37, %v6631_v1  ;;  %v7837_v27 = vmov 1966171168  }
 0x3ac   : > { %v5339_v15 = vadd.f32 %v5338_v56, %v5337_v53  ;;  %v5648_v13 = vrot.slane %v5647_v14, 4  ;;  %v5413_v19 = vadd.f32 %v5412_v17, %v5411_v26  ;;  %v5722_v38 = vrot.slane %v5721_v31, 4 }
 0x3ad   : > { %v5376_v62 = vadd.f32 %v5375_v58, %v5374_v55  ;;  %v5685_v5 = vrot.slane %v5684_v47, 4  ;;  %v5462_v24 = vunpack.c.l.s4 %v7837_v27  ;;  %5306 = vst [vmem:[%s8963_s29 + $0x1f8] sm:$0xff] %v6504_v42  ;;  %v5448_v12 = vadd.f32 %v6632_v37, %v5447_v25 }
 0x3ae   : > { %v5340_v20 = vrot.slane %v5339_v15, 2  ;;  %v5649_v22 = vadd.f32 %v5648_v13, %v5647_v14  ;;  %v5414_v51 = vrot.slane %v5413_v19, 2  ;;  %v5723_v23 = vadd.f32 %v5722_v38, %v5721_v31 }
 0x3af   : > { %v5377_v35 = vrot.slane %v5376_v62, 2  ;;  %v5686_v18 = vadd.f32 %v5685_v5, %v5684_v47  ;;  %v5449_v16 = vrot.slane %v5448_v12, 4  ;;  %v5616_v36 = vmul.f32 %v6632_v37, %v6632_v37 }
 0x3b0   : > { %v5341_v11 = vadd.f32 %v5340_v20, %v5339_v15  ;;  %v5650_v60 = vrot.slane %v5649_v22, 2  ;;  %v5415_v59 = vadd.f32 %v5414_v51, %v5413_v19  ;;  %v5724_v39 = vrot.slane %v5723_v23, 2 }
 0x3b1   : > { %v5378_v2 = vadd.f32 %v5377_v35, %v5376_v62  ;;  %v5687_v44 = vrot.slane %v5686_v18, 2  ;;  %v5450_v32 = vadd.f32 %v5449_v16, %v5448_v12  ;;  %v5758_v7 = vadd.f32 %v5757_v30, %v5616_v36 }
 0x3b2   : > { %v5342_v29 = vrot.slane %v5341_v11, 1  ;;  %v5651_v21 = vadd.f32 %v5650_v60, %v5649_v22  ;;  %v5416_v54 = vrot.slane %v5415_v59, 1  ;;  %v5463_v8 = vunpack.c.0.s8 %v5462_v24 }
 0x3b3   : > { %v5379_v45 = vrot.slane %v5378_v2, 1  ;;  %v5688_v34 = vadd.f32 %v5687_v44, %v5686_v18  ;;  %v5725_v63 = vadd.f32 %v5724_v39, %v5723_v23  ;;  %v5451_v40 = vrot.slane %v5450_v32, 2 }
 0x3b4   : > { %v5343_v46 = vadd.f32 %v5342_v29, %v5341_v11  ;;  %v5652_v41 = vrot.slane %v5651_v21, 1  ;;  %v5759_v10 = vrot.slane %v5758_v7, 4  ;;  %v5466_v43 = vsub.s32 %v5463_v8, %v8938_v50 }
 0x3b5   : > { %v5380_v52 = vadd.f32 %v5379_v45, %v5378_v2  ;;  %v5689_v61 = vrot.slane %v5688_v34, 1  ;;  %v5452_v0 = vadd.f32 %v5451_v40, %v5450_v32  ;;  %v5417_v25 = vadd.f32 %v5416_v54, %v5415_v59 }
 0x3b6   : > { %v5653_v28 = vadd.f32 %v5652_v41, %v5651_v21  ;;  %v5760_v1 = vadd.f32 %v5759_v10, %v5758_v7  ;;  %v5726_v48 = vrot.slane %v5725_v63, 1 }
 0x3b7   : > { %v5459_v33 = vcombine.low %v5343_v46, %v5380_v52  ;;  %v5690_v3 = vadd.f32 %v5689_v61, %v5688_v34  ;;  %v5453_v53 = vrot.slane %v5452_v0, 1 }
 0x3b8   : > { %v5761_v4 = vrot.slane %v5760_v1, 2  ;;  %v5727_v30 = vadd.f32 %v5726_v48, %v5725_v63 }
 0x3b9   : > { %v5769_v26 = vcombine.low %v5653_v28, %v5690_v3  ;;  %v5454_v9 = vadd.f32 %v5453_v53, %v5452_v0  ;;  %v5467_v56 = vrot.slane %v5459_v33, %v5466_v43 }
 0x3ba   : > { %v5762_v6 = vadd.f32 %v5761_v4, %v5760_v1 }
 0x3bb   : > { %v5460_v55 = vcombine.low %v5417_v25, %v5454_v9  ;;  %v5777_v57 = vrot.slane %v5769_v26, %v5466_v43 }
 0x3bc   : > { %v5763_v14 = vrot.slane %v5762_v6, 1 }
 0x3bd   : > { %v5474_v17 = vrot.slane %v5460_v55, %v5466_v43 }
 0x3be   : > { %v5764_v31 = vadd.f32 %v5763_v14, %v5762_v6 }
 0x3bf   : > { %v5475_v15 = vcombine.low %v5467_v56, %v5474_v17 }
 0x3c0   : > { %v5770_v58 = vcombine.low %v5727_v30, %v5764_v31 }
 0x3c1   : > { %v5482_v50 = vrot.slane %v5475_v15, %v5466_v43 }
 0x3c2   : > { %v5784_v37 = vrot.slane %v5770_v58, %v5466_v43 }
 0x3c3   : > { %5488 = vst.msk [vmem:[%s277_s7] sm:$0xf] %vm5486_vm0, %v5482_v50 }
 0x3c4   : > { %v5785_v13 = vcombine.low %v5777_v57, %v5784_v37 }
 0x3c6   : > { %v5792_v19 = vrot.slane %v5785_v13, %v5466_v43 }
 0x3c8   : > { %5794 = vst.msk [vmem:[%s281_s11] sm:$0xf] %vm5486_vm0, %v5792_v19 }
 0x3c9 PF: > { %s16_s20 = sadd.s32 1, %s7834_s20   ;;  %s9295_s18 = smov %s7830_s19 }
 0x3ca   : > { %p13_p6 = scmp.ge.s32.totalorder %s16_s20, 4   ;;  %s9296_s19 = smov %s9298_s21 }
 0x3cc   :  { %15 = sbr.rel (!%p13_p6) target bundleno = 2 (0x2), region = 86 }

</bundles_post_ra>
